<compile_context>
chip_gen: v7x
topology: tpu7x:2x2x1
jax: 0.10.0
libtpu: 0.0.40
codegen_flags: <defaults>
</compile_context>

<pallas_src>
import math

import jax
import jax.numpy as jnp
from jax.experimental import pallas as pl
from jax.experimental.pallas import tpu as pltpu

# --- TransAm defaults (from the PyTorch module __init__) ---
INPUT_SIZE = 2            # input_size
FEATURE_SIZE = 250        # feature_size == d_model
NHEAD = 10
HEAD_DIM = FEATURE_SIZE // NHEAD      # 25
DIM_FF = 2048             # nn.TransformerEncoderLayer default dim_feedforward
LN_EPS = 1e-5             # nn.LayerNorm default eps

# --- lane-friendly padded layout used inside the kernel ---
E_PAD = 256               # d_model padded to 2 x 128 lanes
HEAD_PAD = 32             # per-head dim padded 25 -> 32
QKV_W = NHEAD * HEAD_PAD  # 320
QKV3_W = 3 * QKV_W        # 960 fused q|k|v projection width
IN_PAD = 8                # input features padded 2 -> 8 (was 128)
OUT_PAD = 128             # decoder output padded 2 -> 128 (lane-dense stores)
NEG_INF = -1e30           # finite "masked" value (robust vs -inf)


def transam_kernel(x_ref, pe_ref,
                   wc_ref, bc_ref,
                   wqkv_ref, bqkv_ref,
                   wo_ref, bo_ref,
                   g1_ref, be1_ref, g2_ref, be2_ref,
                   w1_hbm, b1_ref, w2_hbm, b2_ref,
                   wd_ref, bd_ref,
                   out_ref,
                   w1_vmem, w2_vmem, ff_sem):
    S = pe_ref.shape[0]
    N = x_ref.shape[0]                 # B * S
    B = N // S
    inv_e = 1.0 / float(FEATURE_SIZE)  # layernorm divides by the true 250

    # ---- start the FF-weight DMA immediately (overlaps with attention) ----
    cp_w1 = pltpu.make_async_copy(w1_hbm, w1_vmem, ff_sem.at[0])
    cp_w2 = pltpu.make_async_copy(w2_hbm, w2_vmem, ff_sem.at[1])
    cp_w1.start()
    cp_w2.start()

    def bf16_linear(x, w, b):
        # bf16 weights, bf16 MXU inputs, f32 accumulation.
        return jnp.dot(x.astype(jnp.bfloat16), w,
                       preferred_element_type=jnp.float32) + b

    # Lane mask over the true 250 features (padded lanes -> 0).
    lane_idx = jax.lax.broadcasted_iota(jnp.int32, (1, E_PAD), 1)
    lane_mask = (lane_idx < FEATURE_SIZE).astype(jnp.float32)

    def layernorm(x, g_ref, b_ref):
        # Two-pass variance ((x-mu)^2) for fidelity with PyTorch; padded lanes
        # of x are zero on entry and are re-zeroed after centering so the sums
        # over E_PAD equal sums over the true 250 features.
        mu = jnp.sum(x, axis=-1, keepdims=True) * inv_e
        d = (x - mu) * lane_mask
        var = jnp.sum(d * d, axis=-1, keepdims=True) * inv_e
        # gamma/beta padded lanes are zero -> padded output lanes stay zero.
        return d * jax.lax.rsqrt(var + LN_EPS) * g_ref[...] + b_ref[...]

    # ---- change_layer (Linear I->E, f32) + positional encoding ----
    pe_tiled = jnp.concatenate([pe_ref[...]] * B, axis=0)             # (N, E_PAD)
    h = (jnp.dot(x_ref[...], wc_ref[...], preferred_element_type=jnp.float32)
         + bc_ref[...] + pe_tiled)                                    # (N, E_PAD) f32

    # ---- multi-head self-attention with causal mask (eval mode) ----
    # One fused (N,256)@(256,960) bf16 matmul; the 1/sqrt(25) score scale was
    # folded into the q columns (and bias) at prepare_params time.
    qkv = bf16_linear(h, wqkv_ref[...], bqkv_ref[...])                # (N, 960) f32

    # Causal mask built in-kernel (no (S,S) HBM traffic).
    row = jax.lax.broadcasted_iota(jnp.int32, (S, S), 0)
    col = jax.lax.broadcasted_iota(jnp.int32, (S, S), 1)
    mask_b = jnp.broadcast_to(jnp.where(col <= row, 0.0, NEG_INF), (B, S, S))

    head_outs = []
    for hh in range(NHEAD):
        c = hh * HEAD_PAD
        qh = qkv[:, c:c + HEAD_PAD].reshape(B, S, HEAD_PAD)
        kh = qkv[:, QKV_W + c:QKV_W + c + HEAD_PAD].reshape(B, S, HEAD_PAD)
        vh = qkv[:, 2 * QKV_W + c:2 * QKV_W + c + HEAD_PAD].reshape(B, S, HEAD_PAD)
        s = jnp.einsum("bqd,bkd->bqk", qh, kh,
                       preferred_element_type=jnp.float32) + mask_b   # (B, S, S)
        s = s - jnp.max(s, axis=-1, keepdims=True)
        p = jnp.exp(s)
        p = p * pl.reciprocal(jnp.sum(p, axis=-1, keepdims=True), approx=True)
        oh = jnp.einsum("bqk,bkd->bqd", p, vh,
                        preferred_element_type=jnp.float32)           # (B, S, Dhp)
        head_outs.append(oh.reshape(N, HEAD_PAD))
    o = jnp.concatenate(head_outs, axis=-1)                           # (N, QKV_W)
    attn = bf16_linear(o, wo_ref[...], bo_ref[...])                   # (N, E_PAD)

    # ---- residual + layernorm 1 ----
    h = layernorm(h + attn, g1_ref, be1_ref)

    # ---- feed-forward: wait on the overlapped weight DMA, then 2 matmuls ----
    cp_w1.wait()
    f = jnp.maximum(bf16_linear(h, w1_vmem[...], b1_ref[...]), 0.0)   # (N, DIM_FF)
    cp_w2.wait()
    f = bf16_linear(f, w2_vmem[...], b2_ref[...])                     # (N, E_PAD)
    h = layernorm(h + f, g2_ref, be2_ref)

    # ---- decoder (Linear E->I, lane-padded output, lane-dense store) ----
    out_ref[...] = bf16_linear(h, wd_ref[...], bd_ref[...])           # (N, OUT_PAD)


# ----------------------------- glue (plain JAX) -----------------------------

def positional_encoding(seq_len, d_model):
    position = jnp.arange(seq_len, dtype=jnp.float32)[:, None]
    div_term = jnp.exp(jnp.arange(0, d_model, 2, dtype=jnp.float32)
                       * (-math.log(10000.0) / d_model))
    ang = position * div_term
    pe = jnp.zeros((seq_len, d_model), jnp.float32)
    pe = pe.at[:, 0::2].set(jnp.sin(ang))
    pe = pe.at[:, 1::2].set(jnp.cos(ang))
    return pe


def init_params(key):
    """Logical (PyTorch-shaped) parameters; weights stored transposed (in, out)."""
    E, I, F = FEATURE_SIZE, INPUT_SIZE, DIM_FF
    ks = jax.random.split(key, 12)

    def u(k, shape, bound):
        return jax.random.uniform(k, shape, jnp.float32, -bound, bound)

    p = {}
    p["wc_t"] = u(ks[0], (I, E), 1.0 / math.sqrt(I))     # change_layer
    p["bc"] = u(ks[1], (E,), 1.0 / math.sqrt(I))
    p["wq_t"] = u(ks[2], (E, E), 1.0 / math.sqrt(E))     # attention in/out proj
    p["bq"] = jnp.zeros((E,), jnp.float32)
    p["wk_t"] = u(ks[3], (E, E), 1.0 / math.sqrt(E))
    p["bk"] = jnp.zeros((E,), jnp.float32)
    p["wv_t"] = u(ks[4], (E, E), 1.0 / math.sqrt(E))
    p["bv"] = jnp.zeros((E,), jnp.float32)
    p["wo_t"] = u(ks[5], (E, E), 1.0 / math.sqrt(E))
    p["bo"] = jnp.zeros((E,), jnp.float32)
    p["g1"] = jnp.ones((E,), jnp.float32)                # layer norms
    p["be1"] = jnp.zeros((E,), jnp.float32)
    p["g2"] = jnp.ones((E,), jnp.float32)
    p["be2"] = jnp.zeros((E,), jnp.float32)
    p["w1_t"] = u(ks[6], (E, F), 1.0 / math.sqrt(E))     # feed-forward
    p["b1"] = u(ks[7], (F,), 1.0 / math.sqrt(E))
    p["w2_t"] = u(ks[8], (F, E), 1.0 / math.sqrt(F))
    p["b2"] = u(ks[9], (E,), 1.0 / math.sqrt(F))
    p["wd_t"] = u(ks[10], (E, I), 0.1)                   # decoder (init_weights)
    p["bd"] = jnp.zeros((I,), jnp.float32)
    return p


def prepare_params(p):
    """Pad / re-layout logical params into the lane-aligned kernel layout."""
    E, Ep = FEATURE_SIZE, E_PAD
    H, Dh, Dhp = NHEAD, HEAD_DIM, HEAD_PAD
    F = DIM_FF
    bf = jnp.bfloat16
    scale = 1.0 / math.sqrt(Dh)      # PyTorch scales q by 1/sqrt(true head_dim)

    def pad_mat(w, rows, cols):
        return jnp.zeros((rows, cols), jnp.float32).at[:w.shape[0], :w.shape[1]].set(w)

    def pad_vec(b, cols):
        return jnp.zeros((1, cols), jnp.float32).at[0, :b.shape[0]].set(b)

    def head_pad_cols(w_t):                   # (E, E) -> (Ep, H*Dhp)
        out = jnp.zeros((Ep, QKV_W), jnp.float32)
        for hh in range(H):
            out = out.at[:E, hh * Dhp:hh * Dhp + Dh].set(w_t[:, hh * Dh:(hh + 1) * Dh])
        return out

    def head_pad_vec(b):                      # (E,) -> (1, H*Dhp)
        out = jnp.zeros((1, QKV_W), jnp.float32)
        for hh in range(H):
            out = out.at[0, hh * Dhp:hh * Dhp + Dh].set(b[hh * Dh:(hh + 1) * Dh])
        return out

    def head_pad_rows(w_t):                   # (E, E) -> (H*Dhp, Ep)
        out = jnp.zeros((QKV_W, Ep), jnp.float32)
        for hh in range(H):
            out = out.at[hh * Dhp:hh * Dhp + Dh, :E].set(w_t[hh * Dh:(hh + 1) * Dh, :])
        return out

    # Fused QKV weight/bias: columns [0:320]=q (pre-scaled), [320:640]=k, [640:960]=v.
    wqkv = jnp.concatenate([head_pad_cols(p["wq_t"]) * scale,
                            head_pad_cols(p["wk_t"]),
                            head_pad_cols(p["wv_t"])], axis=1)
    bqkv = jnp.concatenate([head_pad_vec(p["bq"]) * scale,
                            head_pad_vec(p["bk"]),
                            head_pad_vec(p["bv"])], axis=1)

    return {
        "wc_t":   pad_mat(p["wc_t"], IN_PAD, Ep),          # f32, only (8, 256)
        "bc":     pad_vec(p["bc"], Ep),
        "wqkv_t": wqkv.astype(bf),
        "bqkv":   bqkv,
        "wo_t":   head_pad_rows(p["wo_t"]).astype(bf),
        "bo":     pad_vec(p["bo"], Ep),
        "g1":     pad_vec(p["g1"], Ep),
        "be1":    pad_vec(p["be1"], Ep),
        "g2":     pad_vec(p["g2"], Ep),
        "be2":    pad_vec(p["be2"], Ep),
        "w1_t":   pad_mat(p["w1_t"], Ep, F).astype(bf),
        "b1":     pad_vec(p["b1"], F),
        "w2_t":   pad_mat(p["w2_t"], F, Ep).astype(bf),
        "b2":     pad_vec(p["b2"], Ep),
        "wd_t":   pad_mat(p["wd_t"], Ep, OUT_PAD).astype(bf),
        "bd":     pad_vec(p["bd"], OUT_PAD),
    }


PARAM_ORDER = ("wc_t", "bc", "wqkv_t", "bqkv", "wo_t", "bo",
               "g1", "be1", "g2", "be2",
               "w1_t", "b1", "w2_t", "b2", "wd_t", "bd")

# These two (~2 MiB of bf16) stay in HBM and are DMA'd manually inside the
# kernel so their transfer overlaps the attention compute.
HBM_PARAMS = ("w1_t", "w2_t")


def transam_forward(src_sbi, kparams):
    # src_sbi: (S, B, INPUT_SIZE) — same layout the PyTorch module consumes.
    S, B, I = src_sbi.shape
    N = B * S
    src_bsi = jnp.transpose(src_sbi, (1, 0, 2)).astype(jnp.float32)
    x2d = jnp.zeros((N, IN_PAD), jnp.float32).at[:, :I].set(src_bsi.reshape(N, I))

    pe = positional_encoding(S, FEATURE_SIZE)                       # (S, 250)
    pe_pad = jnp.zeros((S, E_PAD), jnp.float32).at[:, :FEATURE_SIZE].set(pe)

    in_specs = [pl.BlockSpec(memory_space=pltpu.MemorySpace.VMEM),  # x
                pl.BlockSpec(memory_space=pltpu.MemorySpace.VMEM)]  # pe
    for name in PARAM_ORDER:
        if name in HBM_PARAMS:
            in_specs.append(pl.BlockSpec(memory_space=pl.ANY))
        else:
            in_specs.append(pl.BlockSpec(memory_space=pltpu.MemorySpace.VMEM))

    args = (x2d, pe_pad) + tuple(kparams[name] for name in PARAM_ORDER)
    out2d = pl.pallas_call(
        transam_kernel,
        out_shape=jax.ShapeDtypeStruct((N, OUT_PAD), jnp.float32),
        in_specs=in_specs,
        out_specs=pl.BlockSpec(memory_space=pltpu.MemorySpace.VMEM),
        scratch_shapes=[pltpu.VMEM((E_PAD, DIM_FF), jnp.bfloat16),   # w1 buffer
                        pltpu.VMEM((DIM_FF, E_PAD), jnp.bfloat16),   # w2 buffer
                        pltpu.SemaphoreType.DMA((2,))],
        compiler_params=pltpu.CompilerParams(vmem_limit_bytes=32 * 1024 * 1024),
    )(*args)

    out = out2d[:, :I].reshape(B, S, I)
    return jnp.transpose(out, (1, 0, 2))        # back to (S, B, INPUT_SIZE)


if __name__ == "__main__":
    key = jax.random.PRNGKey(0)
    k_param, k_src = jax.random.split(key)
    params = prepare_params(init_params(k_param))

    S, B = 8, 2
    src = jax.random.normal(k_src, (S, B, INPUT_SIZE), dtype=jnp.float32)

    out = jax.jit(transam_forward)(src, params)
    out = jax.block_until_ready(out)

    assert out.shape == (S, B, INPUT_SIZE), out.shape
    assert bool(jnp.all(jnp.isfinite(out)))
    print("KERNEL_OK")
</pallas_src>

<mosaic_0001>
module attributes {stable_mosaic.version = 11 : i64} {
  func.func @transam_kernel(%arg0: memref<16x8xf32, #tpu.memory_space<vmem>>, %arg1: memref<8x256xf32, #tpu.memory_space<vmem>>, %arg2: memref<8x256xf32, #tpu.memory_space<vmem>>, %arg3: memref<1x256xf32, #tpu.memory_space<vmem>>, %arg4: memref<256x960xbf16, #tpu.memory_space<vmem>>, %arg5: memref<1x960xf32, #tpu.memory_space<vmem>>, %arg6: memref<320x256xbf16, #tpu.memory_space<vmem>>, %arg7: memref<1x256xf32, #tpu.memory_space<vmem>>, %arg8: memref<1x256xf32, #tpu.memory_space<vmem>>, %arg9: memref<1x256xf32, #tpu.memory_space<vmem>>, %arg10: memref<1x256xf32, #tpu.memory_space<vmem>>, %arg11: memref<1x256xf32, #tpu.memory_space<vmem>>, %arg12: memref<256x2048xbf16, #tpu.memory_space<any>>, %arg13: memref<1x2048xf32, #tpu.memory_space<vmem>>, %arg14: memref<2048x256xbf16, #tpu.memory_space<any>>, %arg15: memref<1x256xf32, #tpu.memory_space<vmem>>, %arg16: memref<256x128xbf16, #tpu.memory_space<vmem>>, %arg17: memref<1x128xf32, #tpu.memory_space<vmem>>, %arg18: memref<16x128xf32, #tpu.memory_space<vmem>>, %arg19: memref<256x2048xbf16, #tpu.memory_space<vmem>>, %arg20: memref<2048x256xbf16, #tpu.memory_space<vmem>>, %arg21: memref<2x!tpu.dma_semaphore, #tpu.memory_space<semaphore_mem>>) attributes {dimension_semantics = [], scalar_prefetch = 0 : i64, scratch_operands = 3 : i64, tpu.core_type = #tpu.core_type<tc>} {
    %c0_i32 = arith.constant 0 : i32
    %0 = tpu.memref_slice %arg21[%c0_i32] : memref<2x!tpu.dma_semaphore, #tpu.memory_space<semaphore_mem>> -> memref<1x!tpu.dma_semaphore, #tpu.memory_space<semaphore_mem>>
    %1 = tpu.memref_squeeze %0 : memref<1x!tpu.dma_semaphore, #tpu.memory_space<semaphore_mem>> -> memref<!tpu.dma_semaphore, #tpu.memory_space<semaphore_mem>>
    tpu.enqueue_dma source(%arg12 : memref<256x2048xbf16, #tpu.memory_space<any>>) target(%arg19 : memref<256x2048xbf16, #tpu.memory_space<vmem>>) target_semaphore(%1 : memref<!tpu.dma_semaphore, #tpu.memory_space<semaphore_mem>>)
    %c1_i32 = arith.constant 1 : i32
    %2 = tpu.memref_slice %arg21[%c1_i32] : memref<2x!tpu.dma_semaphore, #tpu.memory_space<semaphore_mem>> -> memref<1x!tpu.dma_semaphore, #tpu.memory_space<semaphore_mem>>
    %3 = tpu.memref_squeeze %2 : memref<1x!tpu.dma_semaphore, #tpu.memory_space<semaphore_mem>> -> memref<!tpu.dma_semaphore, #tpu.memory_space<semaphore_mem>>
    tpu.enqueue_dma source(%arg14 : memref<2048x256xbf16, #tpu.memory_space<any>>) target(%arg20 : memref<2048x256xbf16, #tpu.memory_space<vmem>>) target_semaphore(%3 : memref<!tpu.dma_semaphore, #tpu.memory_space<semaphore_mem>>)
    %4 = tpu.iota {dimensions = array<i32: 1>} : vector<1x256xi32>
    %c250_i32 = arith.constant 250 : i32
    %5 = vector.broadcast %c250_i32 : i32 to vector<1x256xi32>
    %6 = arith.cmpi slt, %4, %5 : vector<1x256xi32>
    %7 = arith.extui %6 : vector<1x256xi1> to vector<1x256xi32>
    %8 = arith.sitofp %7 : vector<1x256xi32> to vector<1x256xf32>
    %c0 = arith.constant 0 : index
    %c0_0 = arith.constant 0 : index
    %9 = vector.load %arg1[%c0, %c0_0] : memref<8x256xf32, #tpu.memory_space<vmem>>, vector<8x256xf32>
    %10 = tpu.concatenate %9, %9 in 0 : vector<8x256xf32>, vector<8x256xf32> -> vector<16x256xf32>
    %c0_1 = arith.constant 0 : index
    %c0_2 = arith.constant 0 : index
    %11 = vector.load %arg0[%c0_1, %c0_2] : memref<16x8xf32, #tpu.memory_space<vmem>>, vector<16x8xf32>
    %c0_3 = arith.constant 0 : index
    %c0_4 = arith.constant 0 : index
    %12 = vector.load %arg2[%c0_3, %c0_4] : memref<8x256xf32, #tpu.memory_space<vmem>>, vector<8x256xf32>
    %cst = arith.constant dense<0.000000e+00> : vector<16x256xf32>
    %13 = tpu.matmul %11, %12, %cst {dimension_numbers = #tpu.dot_dimension_numbers<[1], [0], [0], [1], [0, 0, 1, 1], [], []>} : vector<16x8xf32>, vector<8x256xf32>, vector<16x256xf32> -> vector<16x256xf32>
    %c0_5 = arith.constant 0 : index
    %c0_6 = arith.constant 0 : index
    %14 = vector.load %arg3[%c0_5, %c0_6] : memref<1x256xf32, #tpu.memory_space<vmem>>, vector<1x256xf32>
    %15 = vector.broadcast %14 : vector<1x256xf32> to vector<16x256xf32>
    %16 = arith.addf %13, %15 : vector<16x256xf32>
    %17 = arith.addf %16, %10 : vector<16x256xf32>
    %c0_7 = arith.constant 0 : index
    %c0_8 = arith.constant 0 : index
    %18 = vector.load %arg4[%c0_7, %c0_8] : memref<256x960xbf16, #tpu.memory_space<vmem>>, vector<256x960xbf16>
    %c0_9 = arith.constant 0 : index
    %c0_10 = arith.constant 0 : index
    %19 = vector.load %arg5[%c0_9, %c0_10] : memref<1x960xf32, #tpu.memory_space<vmem>>, vector<1x960xf32>
    %20 = arith.truncf %17 : vector<16x256xf32> to vector<16x256xbf16>
    %cst_11 = arith.constant dense<0.000000e+00> : vector<16x960xf32>
    %21 = tpu.matmul %20, %18, %cst_11 {dimension_numbers = #tpu.dot_dimension_numbers<[1], [0], [0], [1], [0, 0, 1, 1], [], []>} : vector<16x256xbf16>, vector<256x960xbf16>, vector<16x960xf32> -> vector<16x960xf32>
    %22 = vector.broadcast %19 : vector<1x960xf32> to vector<16x960xf32>
    %23 = arith.addf %21, %22 : vector<16x960xf32>
    %24 = tpu.iota {dimensions = array<i32: 0>} : vector<8x8xi32>
    %25 = tpu.iota {dimensions = array<i32: 1>} : vector<8x8xi32>
    %26 = arith.cmpi sle, %25, %24 : vector<8x8xi32>
    %cst_12 = arith.constant 0.000000e+00 : f32
    %cst_13 = arith.constant -1.000000e+30 : f32
    %27 = vector.broadcast %cst_12 : f32 to vector<8x8xf32>
    %28 = vector.broadcast %cst_13 : f32 to vector<8x8xf32>
    %29 = arith.select %26, %27, %28 : vector<8x8xi1>, vector<8x8xf32>
    %30 = vector.shape_cast %29 : vector<8x8xf32> to vector<1x8x8xf32>
    %31 = vector.broadcast %30 : vector<1x8x8xf32> to vector<2x8x8xf32>
    %32 = vector.extract_strided_slice %23 {offsets = [0, 0], sizes = [16, 32], strides = [1, 1]} : vector<16x960xf32> to vector<16x32xf32>
    %33 = vector.shape_cast %32 : vector<16x32xf32> to vector<2x8x32xf32>
    %34 = vector.extract_strided_slice %23 {offsets = [0, 320], sizes = [16, 32], strides = [1, 1]} : vector<16x960xf32> to vector<16x32xf32>
    %35 = vector.shape_cast %34 : vector<16x32xf32> to vector<2x8x32xf32>
    %36 = vector.extract_strided_slice %23 {offsets = [0, 640], sizes = [16, 32], strides = [1, 1]} : vector<16x960xf32> to vector<16x32xf32>
    %37 = vector.shape_cast %36 : vector<16x32xf32> to vector<2x8x32xf32>
    "tpu.trace_start"() <{level = 10 : i32, message = "bqd,bkd->bqk"}> : () -> ()
    %cst_14 = arith.constant dense<0.000000e+00> : vector<2x8x8xf32>
    %38 = tpu.matmul %33, %35, %cst_14 {dimension_numbers = #tpu.dot_dimension_numbers<[2], [2], [1], [1], [0, 0, 0, 1, 1, 1], [0], [0]>} : vector<2x8x32xf32>, vector<2x8x32xf32>, vector<2x8x8xf32> -> vector<2x8x8xf32>
    "tpu.trace_stop"() : () -> ()
    %39 = arith.addf %38, %31 : vector<2x8x8xf32>
    %cst_15 = arith.constant dense<0xFF800000> : vector<2x8xf32>
    %40 = vector.multi_reduction <maximumf>, %39, %cst_15 [2] : vector<2x8x8xf32> to vector<2x8xf32>
    %41 = vector.shape_cast %40 : vector<2x8xf32> to vector<2x8x1xf32>
    %42 = vector.broadcast %41 : vector<2x8x1xf32> to vector<2x8x8xf32>
    %43 = arith.subf %39, %42 : vector<2x8x8xf32>
    %44 = math.exp %43 : vector<2x8x8xf32>
    %cst_16 = arith.constant dense<0.000000e+00> : vector<2x8xf32>
    %45 = vector.multi_reduction <add>, %44, %cst_16 [2] : vector<2x8x8xf32> to vector<2x8xf32>
    %46 = vector.shape_cast %45 : vector<2x8xf32> to vector<2x8x1xf32>
    %47 = tpu.reciprocal %46 {approx = true} : vector<2x8x1xf32> -> vector<2x8x1xf32>
    %48 = vector.broadcast %47 : vector<2x8x1xf32> to vector<2x8x8xf32>
    %49 = arith.mulf %44, %48 : vector<2x8x8xf32>
    "tpu.trace_start"() <{level = 10 : i32, message = "bqk,bkd->bqd"}> : () -> ()
    %cst_17 = arith.constant dense<0.000000e+00> : vector<2x8x32xf32>
    %50 = tpu.matmul %49, %37, %cst_17 {dimension_numbers = #tpu.dot_dimension_numbers<[2], [1], [1], [2], [0, 0, 0, 1, 1, 2], [0], [0]>} : vector<2x8x8xf32>, vector<2x8x32xf32>, vector<2x8x32xf32> -> vector<2x8x32xf32>
    "tpu.trace_stop"() : () -> ()
    %51 = vector.shape_cast %50 : vector<2x8x32xf32> to vector<16x32xf32>
    %52 = vector.extract_strided_slice %23 {offsets = [0, 32], sizes = [16, 32], strides = [1, 1]} : vector<16x960xf32> to vector<16x32xf32>
    %53 = vector.shape_cast %52 : vector<16x32xf32> to vector<2x8x32xf32>
    %54 = vector.extract_strided_slice %23 {offsets = [0, 352], sizes = [16, 32], strides = [1, 1]} : vector<16x960xf32> to vector<16x32xf32>
    %55 = vector.shape_cast %54 : vector<16x32xf32> to vector<2x8x32xf32>
    %56 = vector.extract_strided_slice %23 {offsets = [0, 672], sizes = [16, 32], strides = [1, 1]} : vector<16x960xf32> to vector<16x32xf32>
    %57 = vector.shape_cast %56 : vector<16x32xf32> to vector<2x8x32xf32>
    "tpu.trace_start"() <{level = 10 : i32, message = "bqd,bkd->bqk"}> : () -> ()
    %cst_18 = arith.constant dense<0.000000e+00> : vector<2x8x8xf32>
    %58 = tpu.matmul %53, %55, %cst_18 {dimension_numbers = #tpu.dot_dimension_numbers<[2], [2], [1], [1], [0, 0, 0, 1, 1, 1], [0], [0]>} : vector<2x8x32xf32>, vector<2x8x32xf32>, vector<2x8x8xf32> -> vector<2x8x8xf32>
    "tpu.trace_stop"() : () -> ()
    %59 = arith.addf %58, %31 : vector<2x8x8xf32>
    %cst_19 = arith.constant dense<0xFF800000> : vector<2x8xf32>
    %60 = vector.multi_reduction <maximumf>, %59, %cst_19 [2] : vector<2x8x8xf32> to vector<2x8xf32>
    %61 = vector.shape_cast %60 : vector<2x8xf32> to vector<2x8x1xf32>
    %62 = vector.broadcast %61 : vector<2x8x1xf32> to vector<2x8x8xf32>
    %63 = arith.subf %59, %62 : vector<2x8x8xf32>
    %64 = math.exp %63 : vector<2x8x8xf32>
    %cst_20 = arith.constant dense<0.000000e+00> : vector<2x8xf32>
    %65 = vector.multi_reduction <add>, %64, %cst_20 [2] : vector<2x8x8xf32> to vector<2x8xf32>
    %66 = vector.shape_cast %65 : vector<2x8xf32> to vector<2x8x1xf32>
    %67 = tpu.reciprocal %66 {approx = true} : vector<2x8x1xf32> -> vector<2x8x1xf32>
    %68 = vector.broadcast %67 : vector<2x8x1xf32> to vector<2x8x8xf32>
    %69 = arith.mulf %64, %68 : vector<2x8x8xf32>
    "tpu.trace_start"() <{level = 10 : i32, message = "bqk,bkd->bqd"}> : () -> ()
    %cst_21 = arith.constant dense<0.000000e+00> : vector<2x8x32xf32>
    %70 = tpu.matmul %69, %57, %cst_21 {dimension_numbers = #tpu.dot_dimension_numbers<[2], [1], [1], [2], [0, 0, 0, 1, 1, 2], [0], [0]>} : vector<2x8x8xf32>, vector<2x8x32xf32>, vector<2x8x32xf32> -> vector<2x8x32xf32>
    "tpu.trace_stop"() : () -> ()
    %71 = vector.shape_cast %70 : vector<2x8x32xf32> to vector<16x32xf32>
    %72 = vector.extract_strided_slice %23 {offsets = [0, 64], sizes = [16, 32], strides = [1, 1]} : vector<16x960xf32> to vector<16x32xf32>
    %73 = vector.shape_cast %72 : vector<16x32xf32> to vector<2x8x32xf32>
    %74 = vector.extract_strided_slice %23 {offsets = [0, 384], sizes = [16, 32], strides = [1, 1]} : vector<16x960xf32> to vector<16x32xf32>
    %75 = vector.shape_cast %74 : vector<16x32xf32> to vector<2x8x32xf32>
    %76 = vector.extract_strided_slice %23 {offsets = [0, 704], sizes = [16, 32], strides = [1, 1]} : vector<16x960xf32> to vector<16x32xf32>
    %77 = vector.shape_cast %76 : vector<16x32xf32> to vector<2x8x32xf32>
    "tpu.trace_start"() <{level = 10 : i32, message = "bqd,bkd->bqk"}> : () -> ()
    %cst_22 = arith.constant dense<0.000000e+00> : vector<2x8x8xf32>
    %78 = tpu.matmul %73, %75, %cst_22 {dimension_numbers = #tpu.dot_dimension_numbers<[2], [2], [1], [1], [0, 0, 0, 1, 1, 1], [0], [0]>} : vector<2x8x32xf32>, vector<2x8x32xf32>, vector<2x8x8xf32> -> vector<2x8x8xf32>
    "tpu.trace_stop"() : () -> ()
    %79 = arith.addf %78, %31 : vector<2x8x8xf32>
    %cst_23 = arith.constant dense<0xFF800000> : vector<2x8xf32>
    %80 = vector.multi_reduction <maximumf>, %79, %cst_23 [2] : vector<2x8x8xf32> to vector<2x8xf32>
    %81 = vector.shape_cast %80 : vector<2x8xf32> to vector<2x8x1xf32>
    %82 = vector.broadcast %81 : vector<2x8x1xf32> to vector<2x8x8xf32>
    %83 = arith.subf %79, %82 : vector<2x8x8xf32>
    %84 = math.exp %83 : vector<2x8x8xf32>
    %cst_24 = arith.constant dense<0.000000e+00> : vector<2x8xf32>
    %85 = vector.multi_reduction <add>, %84, %cst_24 [2] : vector<2x8x8xf32> to vector<2x8xf32>
    %86 = vector.shape_cast %85 : vector<2x8xf32> to vector<2x8x1xf32>
    %87 = tpu.reciprocal %86 {approx = true} : vector<2x8x1xf32> -> vector<2x8x1xf32>
    %88 = vector.broadcast %87 : vector<2x8x1xf32> to vector<2x8x8xf32>
    %89 = arith.mulf %84, %88 : vector<2x8x8xf32>
    "tpu.trace_start"() <{level = 10 : i32, message = "bqk,bkd->bqd"}> : () -> ()
    %cst_25 = arith.constant dense<0.000000e+00> : vector<2x8x32xf32>
    %90 = tpu.matmul %89, %77, %cst_25 {dimension_numbers = #tpu.dot_dimension_numbers<[2], [1], [1], [2], [0, 0, 0, 1, 1, 2], [0], [0]>} : vector<2x8x8xf32>, vector<2x8x32xf32>, vector<2x8x32xf32> -> vector<2x8x32xf32>
    "tpu.trace_stop"() : () -> ()
    %91 = vector.shape_cast %90 : vector<2x8x32xf32> to vector<16x32xf32>
    %92 = vector.extract_strided_slice %23 {offsets = [0, 96], sizes = [16, 32], strides = [1, 1]} : vector<16x960xf32> to vector<16x32xf32>
    %93 = vector.shape_cast %92 : vector<16x32xf32> to vector<2x8x32xf32>
    %94 = vector.extract_strided_slice %23 {offsets = [0, 416], sizes = [16, 32], strides = [1, 1]} : vector<16x960xf32> to vector<16x32xf32>
    %95 = vector.shape_cast %94 : vector<16x32xf32> to vector<2x8x32xf32>
    %96 = vector.extract_strided_slice %23 {offsets = [0, 736], sizes = [16, 32], strides = [1, 1]} : vector<16x960xf32> to vector<16x32xf32>
    %97 = vector.shape_cast %96 : vector<16x32xf32> to vector<2x8x32xf32>
    "tpu.trace_start"() <{level = 10 : i32, message = "bqd,bkd->bqk"}> : () -> ()
    %cst_26 = arith.constant dense<0.000000e+00> : vector<2x8x8xf32>
    %98 = tpu.matmul %93, %95, %cst_26 {dimension_numbers = #tpu.dot_dimension_numbers<[2], [2], [1], [1], [0, 0, 0, 1, 1, 1], [0], [0]>} : vector<2x8x32xf32>, vector<2x8x32xf32>, vector<2x8x8xf32> -> vector<2x8x8xf32>
    "tpu.trace_stop"() : () -> ()
    %99 = arith.addf %98, %31 : vector<2x8x8xf32>
    %cst_27 = arith.constant dense<0xFF800000> : vector<2x8xf32>
    %100 = vector.multi_reduction <maximumf>, %99, %cst_27 [2] : vector<2x8x8xf32> to vector<2x8xf32>
    %101 = vector.shape_cast %100 : vector<2x8xf32> to vector<2x8x1xf32>
    %102 = vector.broadcast %101 : vector<2x8x1xf32> to vector<2x8x8xf32>
    %103 = arith.subf %99, %102 : vector<2x8x8xf32>
    %104 = math.exp %103 : vector<2x8x8xf32>
    %cst_28 = arith.constant dense<0.000000e+00> : vector<2x8xf32>
    %105 = vector.multi_reduction <add>, %104, %cst_28 [2] : vector<2x8x8xf32> to vector<2x8xf32>
    %106 = vector.shape_cast %105 : vector<2x8xf32> to vector<2x8x1xf32>
    %107 = tpu.reciprocal %106 {approx = true} : vector<2x8x1xf32> -> vector<2x8x1xf32>
    %108 = vector.broadcast %107 : vector<2x8x1xf32> to vector<2x8x8xf32>
    %109 = arith.mulf %104, %108 : vector<2x8x8xf32>
    "tpu.trace_start"() <{level = 10 : i32, message = "bqk,bkd->bqd"}> : () -> ()
    %cst_29 = arith.constant dense<0.000000e+00> : vector<2x8x32xf32>
    %110 = tpu.matmul %109, %97, %cst_29 {dimension_numbers = #tpu.dot_dimension_numbers<[2], [1], [1], [2], [0, 0, 0, 1, 1, 2], [0], [0]>} : vector<2x8x8xf32>, vector<2x8x32xf32>, vector<2x8x32xf32> -> vector<2x8x32xf32>
    "tpu.trace_stop"() : () -> ()
    %111 = vector.shape_cast %110 : vector<2x8x32xf32> to vector<16x32xf32>
    %112 = vector.extract_strided_slice %23 {offsets = [0, 128], sizes = [16, 32], strides = [1, 1]} : vector<16x960xf32> to vector<16x32xf32>
    %113 = vector.shape_cast %112 : vector<16x32xf32> to vector<2x8x32xf32>
    %114 = vector.extract_strided_slice %23 {offsets = [0, 448], sizes = [16, 32], strides = [1, 1]} : vector<16x960xf32> to vector<16x32xf32>
    %115 = vector.shape_cast %114 : vector<16x32xf32> to vector<2x8x32xf32>
    %116 = vector.extract_strided_slice %23 {offsets = [0, 768], sizes = [16, 32], strides = [1, 1]} : vector<16x960xf32> to vector<16x32xf32>
    %117 = vector.shape_cast %116 : vector<16x32xf32> to vector<2x8x32xf32>
    "tpu.trace_start"() <{level = 10 : i32, message = "bqd,bkd->bqk"}> : () -> ()
    %cst_30 = arith.constant dense<0.000000e+00> : vector<2x8x8xf32>
    %118 = tpu.matmul %113, %115, %cst_30 {dimension_numbers = #tpu.dot_dimension_numbers<[2], [2], [1], [1], [0, 0, 0, 1, 1, 1], [0], [0]>} : vector<2x8x32xf32>, vector<2x8x32xf32>, vector<2x8x8xf32> -> vector<2x8x8xf32>
    "tpu.trace_stop"() : () -> ()
    %119 = arith.addf %118, %31 : vector<2x8x8xf32>
    %cst_31 = arith.constant dense<0xFF800000> : vector<2x8xf32>
    %120 = vector.multi_reduction <maximumf>, %119, %cst_31 [2] : vector<2x8x8xf32> to vector<2x8xf32>
    %121 = vector.shape_cast %120 : vector<2x8xf32> to vector<2x8x1xf32>
    %122 = vector.broadcast %121 : vector<2x8x1xf32> to vector<2x8x8xf32>
    %123 = arith.subf %119, %122 : vector<2x8x8xf32>
    %124 = math.exp %123 : vector<2x8x8xf32>
    %cst_32 = arith.constant dense<0.000000e+00> : vector<2x8xf32>
    %125 = vector.multi_reduction <add>, %124, %cst_32 [2] : vector<2x8x8xf32> to vector<2x8xf32>
    %126 = vector.shape_cast %125 : vector<2x8xf32> to vector<2x8x1xf32>
    %127 = tpu.reciprocal %126 {approx = true} : vector<2x8x1xf32> -> vector<2x8x1xf32>
    %128 = vector.broadcast %127 : vector<2x8x1xf32> to vector<2x8x8xf32>
    %129 = arith.mulf %124, %128 : vector<2x8x8xf32>
    "tpu.trace_start"() <{level = 10 : i32, message = "bqk,bkd->bqd"}> : () -> ()
    %cst_33 = arith.constant dense<0.000000e+00> : vector<2x8x32xf32>
    %130 = tpu.matmul %129, %117, %cst_33 {dimension_numbers = #tpu.dot_dimension_numbers<[2], [1], [1], [2], [0, 0, 0, 1, 1, 2], [0], [0]>} : vector<2x8x8xf32>, vector<2x8x32xf32>, vector<2x8x32xf32> -> vector<2x8x32xf32>
    "tpu.trace_stop"() : () -> ()
    %131 = vector.shape_cast %130 : vector<2x8x32xf32> to vector<16x32xf32>
    %132 = vector.extract_strided_slice %23 {offsets = [0, 160], sizes = [16, 32], strides = [1, 1]} : vector<16x960xf32> to vector<16x32xf32>
    %133 = vector.shape_cast %132 : vector<16x32xf32> to vector<2x8x32xf32>
    %134 = vector.extract_strided_slice %23 {offsets = [0, 480], sizes = [16, 32], strides = [1, 1]} : vector<16x960xf32> to vector<16x32xf32>
    %135 = vector.shape_cast %134 : vector<16x32xf32> to vector<2x8x32xf32>
    %136 = vector.extract_strided_slice %23 {offsets = [0, 800], sizes = [16, 32], strides = [1, 1]} : vector<16x960xf32> to vector<16x32xf32>
    %137 = vector.shape_cast %136 : vector<16x32xf32> to vector<2x8x32xf32>
    "tpu.trace_start"() <{level = 10 : i32, message = "bqd,bkd->bqk"}> : () -> ()
    %cst_34 = arith.constant dense<0.000000e+00> : vector<2x8x8xf32>
    %138 = tpu.matmul %133, %135, %cst_34 {dimension_numbers = #tpu.dot_dimension_numbers<[2], [2], [1], [1], [0, 0, 0, 1, 1, 1], [0], [0]>} : vector<2x8x32xf32>, vector<2x8x32xf32>, vector<2x8x8xf32> -> vector<2x8x8xf32>
    "tpu.trace_stop"() : () -> ()
    %139 = arith.addf %138, %31 : vector<2x8x8xf32>
    %cst_35 = arith.constant dense<0xFF800000> : vector<2x8xf32>
    %140 = vector.multi_reduction <maximumf>, %139, %cst_35 [2] : vector<2x8x8xf32> to vector<2x8xf32>
    %141 = vector.shape_cast %140 : vector<2x8xf32> to vector<2x8x1xf32>
    %142 = vector.broadcast %141 : vector<2x8x1xf32> to vector<2x8x8xf32>
    %143 = arith.subf %139, %142 : vector<2x8x8xf32>
    %144 = math.exp %143 : vector<2x8x8xf32>
    %cst_36 = arith.constant dense<0.000000e+00> : vector<2x8xf32>
    %145 = vector.multi_reduction <add>, %144, %cst_36 [2] : vector<2x8x8xf32> to vector<2x8xf32>
    %146 = vector.shape_cast %145 : vector<2x8xf32> to vector<2x8x1xf32>
    %147 = tpu.reciprocal %146 {approx = true} : vector<2x8x1xf32> -> vector<2x8x1xf32>
    %148 = vector.broadcast %147 : vector<2x8x1xf32> to vector<2x8x8xf32>
    %149 = arith.mulf %144, %148 : vector<2x8x8xf32>
    "tpu.trace_start"() <{level = 10 : i32, message = "bqk,bkd->bqd"}> : () -> ()
    %cst_37 = arith.constant dense<0.000000e+00> : vector<2x8x32xf32>
    %150 = tpu.matmul %149, %137, %cst_37 {dimension_numbers = #tpu.dot_dimension_numbers<[2], [1], [1], [2], [0, 0, 0, 1, 1, 2], [0], [0]>} : vector<2x8x8xf32>, vector<2x8x32xf32>, vector<2x8x32xf32> -> vector<2x8x32xf32>
    "tpu.trace_stop"() : () -> ()
    %151 = vector.shape_cast %150 : vector<2x8x32xf32> to vector<16x32xf32>
    %152 = vector.extract_strided_slice %23 {offsets = [0, 192], sizes = [16, 32], strides = [1, 1]} : vector<16x960xf32> to vector<16x32xf32>
    %153 = vector.shape_cast %152 : vector<16x32xf32> to vector<2x8x32xf32>
    %154 = vector.extract_strided_slice %23 {offsets = [0, 512], sizes = [16, 32], strides = [1, 1]} : vector<16x960xf32> to vector<16x32xf32>
    %155 = vector.shape_cast %154 : vector<16x32xf32> to vector<2x8x32xf32>
    %156 = vector.extract_strided_slice %23 {offsets = [0, 832], sizes = [16, 32], strides = [1, 1]} : vector<16x960xf32> to vector<16x32xf32>
    %157 = vector.shape_cast %156 : vector<16x32xf32> to vector<2x8x32xf32>
    "tpu.trace_start"() <{level = 10 : i32, message = "bqd,bkd->bqk"}> : () -> ()
    %cst_38 = arith.constant dense<0.000000e+00> : vector<2x8x8xf32>
    %158 = tpu.matmul %153, %155, %cst_38 {dimension_numbers = #tpu.dot_dimension_numbers<[2], [2], [1], [1], [0, 0, 0, 1, 1, 1], [0], [0]>} : vector<2x8x32xf32>, vector<2x8x32xf32>, vector<2x8x8xf32> -> vector<2x8x8xf32>
    "tpu.trace_stop"() : () -> ()
    %159 = arith.addf %158, %31 : vector<2x8x8xf32>
    %cst_39 = arith.constant dense<0xFF800000> : vector<2x8xf32>
    %160 = vector.multi_reduction <maximumf>, %159, %cst_39 [2] : vector<2x8x8xf32> to vector<2x8xf32>
    %161 = vector.shape_cast %160 : vector<2x8xf32> to vector<2x8x1xf32>
    %162 = vector.broadcast %161 : vector<2x8x1xf32> to vector<2x8x8xf32>
    %163 = arith.subf %159, %162 : vector<2x8x8xf32>
    %164 = math.exp %163 : vector<2x8x8xf32>
    %cst_40 = arith.constant dense<0.000000e+00> : vector<2x8xf32>
    %165 = vector.multi_reduction <add>, %164, %cst_40 [2] : vector<2x8x8xf32> to vector<2x8xf32>
    %166 = vector.shape_cast %165 : vector<2x8xf32> to vector<2x8x1xf32>
    %167 = tpu.reciprocal %166 {approx = true} : vector<2x8x1xf32> -> vector<2x8x1xf32>
    %168 = vector.broadcast %167 : vector<2x8x1xf32> to vector<2x8x8xf32>
    %169 = arith.mulf %164, %168 : vector<2x8x8xf32>
    "tpu.trace_start"() <{level = 10 : i32, message = "bqk,bkd->bqd"}> : () -> ()
    %cst_41 = arith.constant dense<0.000000e+00> : vector<2x8x32xf32>
    %170 = tpu.matmul %169, %157, %cst_41 {dimension_numbers = #tpu.dot_dimension_numbers<[2], [1], [1], [2], [0, 0, 0, 1, 1, 2], [0], [0]>} : vector<2x8x8xf32>, vector<2x8x32xf32>, vector<2x8x32xf32> -> vector<2x8x32xf32>
    "tpu.trace_stop"() : () -> ()
    %171 = vector.shape_cast %170 : vector<2x8x32xf32> to vector<16x32xf32>
    %172 = vector.extract_strided_slice %23 {offsets = [0, 224], sizes = [16, 32], strides = [1, 1]} : vector<16x960xf32> to vector<16x32xf32>
    %173 = vector.shape_cast %172 : vector<16x32xf32> to vector<2x8x32xf32>
    %174 = vector.extract_strided_slice %23 {offsets = [0, 544], sizes = [16, 32], strides = [1, 1]} : vector<16x960xf32> to vector<16x32xf32>
    %175 = vector.shape_cast %174 : vector<16x32xf32> to vector<2x8x32xf32>
    %176 = vector.extract_strided_slice %23 {offsets = [0, 864], sizes = [16, 32], strides = [1, 1]} : vector<16x960xf32> to vector<16x32xf32>
    %177 = vector.shape_cast %176 : vector<16x32xf32> to vector<2x8x32xf32>
    "tpu.trace_start"() <{level = 10 : i32, message = "bqd,bkd->bqk"}> : () -> ()
    %cst_42 = arith.constant dense<0.000000e+00> : vector<2x8x8xf32>
    %178 = tpu.matmul %173, %175, %cst_42 {dimension_numbers = #tpu.dot_dimension_numbers<[2], [2], [1], [1], [0, 0, 0, 1, 1, 1], [0], [0]>} : vector<2x8x32xf32>, vector<2x8x32xf32>, vector<2x8x8xf32> -> vector<2x8x8xf32>
    "tpu.trace_stop"() : () -> ()
    %179 = arith.addf %178, %31 : vector<2x8x8xf32>
    %cst_43 = arith.constant dense<0xFF800000> : vector<2x8xf32>
    %180 = vector.multi_reduction <maximumf>, %179, %cst_43 [2] : vector<2x8x8xf32> to vector<2x8xf32>
    %181 = vector.shape_cast %180 : vector<2x8xf32> to vector<2x8x1xf32>
    %182 = vector.broadcast %181 : vector<2x8x1xf32> to vector<2x8x8xf32>
    %183 = arith.subf %179, %182 : vector<2x8x8xf32>
    %184 = math.exp %183 : vector<2x8x8xf32>
    %cst_44 = arith.constant dense<0.000000e+00> : vector<2x8xf32>
    %185 = vector.multi_reduction <add>, %184, %cst_44 [2] : vector<2x8x8xf32> to vector<2x8xf32>
    %186 = vector.shape_cast %185 : vector<2x8xf32> to vector<2x8x1xf32>
    %187 = tpu.reciprocal %186 {approx = true} : vector<2x8x1xf32> -> vector<2x8x1xf32>
    %188 = vector.broadcast %187 : vector<2x8x1xf32> to vector<2x8x8xf32>
    %189 = arith.mulf %184, %188 : vector<2x8x8xf32>
    "tpu.trace_start"() <{level = 10 : i32, message = "bqk,bkd->bqd"}> : () -> ()
    %cst_45 = arith.constant dense<0.000000e+00> : vector<2x8x32xf32>
    %190 = tpu.matmul %189, %177, %cst_45 {dimension_numbers = #tpu.dot_dimension_numbers<[2], [1], [1], [2], [0, 0, 0, 1, 1, 2], [0], [0]>} : vector<2x8x8xf32>, vector<2x8x32xf32>, vector<2x8x32xf32> -> vector<2x8x32xf32>
    "tpu.trace_stop"() : () -> ()
    %191 = vector.shape_cast %190 : vector<2x8x32xf32> to vector<16x32xf32>
    %192 = vector.extract_strided_slice %23 {offsets = [0, 256], sizes = [16, 32], strides = [1, 1]} : vector<16x960xf32> to vector<16x32xf32>
    %193 = vector.shape_cast %192 : vector<16x32xf32> to vector<2x8x32xf32>
    %194 = vector.extract_strided_slice %23 {offsets = [0, 576], sizes = [16, 32], strides = [1, 1]} : vector<16x960xf32> to vector<16x32xf32>
    %195 = vector.shape_cast %194 : vector<16x32xf32> to vector<2x8x32xf32>
    %196 = vector.extract_strided_slice %23 {offsets = [0, 896], sizes = [16, 32], strides = [1, 1]} : vector<16x960xf32> to vector<16x32xf32>
    %197 = vector.shape_cast %196 : vector<16x32xf32> to vector<2x8x32xf32>
    "tpu.trace_start"() <{level = 10 : i32, message = "bqd,bkd->bqk"}> : () -> ()
    %cst_46 = arith.constant dense<0.000000e+00> : vector<2x8x8xf32>
    %198 = tpu.matmul %193, %195, %cst_46 {dimension_numbers = #tpu.dot_dimension_numbers<[2], [2], [1], [1], [0, 0, 0, 1, 1, 1], [0], [0]>} : vector<2x8x32xf32>, vector<2x8x32xf32>, vector<2x8x8xf32> -> vector<2x8x8xf32>
    "tpu.trace_stop"() : () -> ()
    %199 = arith.addf %198, %31 : vector<2x8x8xf32>
    %cst_47 = arith.constant dense<0xFF800000> : vector<2x8xf32>
    %200 = vector.multi_reduction <maximumf>, %199, %cst_47 [2] : vector<2x8x8xf32> to vector<2x8xf32>
    %201 = vector.shape_cast %200 : vector<2x8xf32> to vector<2x8x1xf32>
    %202 = vector.broadcast %201 : vector<2x8x1xf32> to vector<2x8x8xf32>
    %203 = arith.subf %199, %202 : vector<2x8x8xf32>
    %204 = math.exp %203 : vector<2x8x8xf32>
    %cst_48 = arith.constant dense<0.000000e+00> : vector<2x8xf32>
    %205 = vector.multi_reduction <add>, %204, %cst_48 [2] : vector<2x8x8xf32> to vector<2x8xf32>
    %206 = vector.shape_cast %205 : vector<2x8xf32> to vector<2x8x1xf32>
    %207 = tpu.reciprocal %206 {approx = true} : vector<2x8x1xf32> -> vector<2x8x1xf32>
    %208 = vector.broadcast %207 : vector<2x8x1xf32> to vector<2x8x8xf32>
    %209 = arith.mulf %204, %208 : vector<2x8x8xf32>
    "tpu.trace_start"() <{level = 10 : i32, message = "bqk,bkd->bqd"}> : () -> ()
    %cst_49 = arith.constant dense<0.000000e+00> : vector<2x8x32xf32>
    %210 = tpu.matmul %209, %197, %cst_49 {dimension_numbers = #tpu.dot_dimension_numbers<[2], [1], [1], [2], [0, 0, 0, 1, 1, 2], [0], [0]>} : vector<2x8x8xf32>, vector<2x8x32xf32>, vector<2x8x32xf32> -> vector<2x8x32xf32>
    "tpu.trace_stop"() : () -> ()
    %211 = vector.shape_cast %210 : vector<2x8x32xf32> to vector<16x32xf32>
    %212 = vector.extract_strided_slice %23 {offsets = [0, 288], sizes = [16, 32], strides = [1, 1]} : vector<16x960xf32> to vector<16x32xf32>
    %213 = vector.shape_cast %212 : vector<16x32xf32> to vector<2x8x32xf32>
    %214 = vector.extract_strided_slice %23 {offsets = [0, 608], sizes = [16, 32], strides = [1, 1]} : vector<16x960xf32> to vector<16x32xf32>
    %215 = vector.shape_cast %214 : vector<16x32xf32> to vector<2x8x32xf32>
    %216 = vector.extract_strided_slice %23 {offsets = [0, 928], sizes = [16, 32], strides = [1, 1]} : vector<16x960xf32> to vector<16x32xf32>
    %217 = vector.shape_cast %216 : vector<16x32xf32> to vector<2x8x32xf32>
    "tpu.trace_start"() <{level = 10 : i32, message = "bqd,bkd->bqk"}> : () -> ()
    %cst_50 = arith.constant dense<0.000000e+00> : vector<2x8x8xf32>
    %218 = tpu.matmul %213, %215, %cst_50 {dimension_numbers = #tpu.dot_dimension_numbers<[2], [2], [1], [1], [0, 0, 0, 1, 1, 1], [0], [0]>} : vector<2x8x32xf32>, vector<2x8x32xf32>, vector<2x8x8xf32> -> vector<2x8x8xf32>
    "tpu.trace_stop"() : () -> ()
    %219 = arith.addf %218, %31 : vector<2x8x8xf32>
    %cst_51 = arith.constant dense<0xFF800000> : vector<2x8xf32>
    %220 = vector.multi_reduction <maximumf>, %219, %cst_51 [2] : vector<2x8x8xf32> to vector<2x8xf32>
    %221 = vector.shape_cast %220 : vector<2x8xf32> to vector<2x8x1xf32>
    %222 = vector.broadcast %221 : vector<2x8x1xf32> to vector<2x8x8xf32>
    %223 = arith.subf %219, %222 : vector<2x8x8xf32>
    %224 = math.exp %223 : vector<2x8x8xf32>
    %cst_52 = arith.constant dense<0.000000e+00> : vector<2x8xf32>
    %225 = vector.multi_reduction <add>, %224, %cst_52 [2] : vector<2x8x8xf32> to vector<2x8xf32>
    %226 = vector.shape_cast %225 : vector<2x8xf32> to vector<2x8x1xf32>
    %227 = tpu.reciprocal %226 {approx = true} : vector<2x8x1xf32> -> vector<2x8x1xf32>
    %228 = vector.broadcast %227 : vector<2x8x1xf32> to vector<2x8x8xf32>
    %229 = arith.mulf %224, %228 : vector<2x8x8xf32>
    "tpu.trace_start"() <{level = 10 : i32, message = "bqk,bkd->bqd"}> : () -> ()
    %cst_53 = arith.constant dense<0.000000e+00> : vector<2x8x32xf32>
    %230 = tpu.matmul %229, %217, %cst_53 {dimension_numbers = #tpu.dot_dimension_numbers<[2], [1], [1], [2], [0, 0, 0, 1, 1, 2], [0], [0]>} : vector<2x8x8xf32>, vector<2x8x32xf32>, vector<2x8x32xf32> -> vector<2x8x32xf32>
    "tpu.trace_stop"() : () -> ()
    %231 = vector.shape_cast %230 : vector<2x8x32xf32> to vector<16x32xf32>
    %232 = tpu.concatenate %51, %71, %91, %111, %131, %151, %171, %191, %211, %231 in 1 : vector<16x32xf32>, vector<16x32xf32>, vector<16x32xf32>, vector<16x32xf32>, vector<16x32xf32>, vector<16x32xf32>, vector<16x32xf32>, vector<16x32xf32>, vector<16x32xf32>, vector<16x32xf32> -> vector<16x320xf32>
    %c0_54 = arith.constant 0 : index
    %c0_55 = arith.constant 0 : index
    %233 = vector.load %arg6[%c0_54, %c0_55] : memref<320x256xbf16, #tpu.memory_space<vmem>>, vector<320x256xbf16>
    %c0_56 = arith.constant 0 : index
    %c0_57 = arith.constant 0 : index
    %234 = vector.load %arg7[%c0_56, %c0_57] : memref<1x256xf32, #tpu.memory_space<vmem>>, vector<1x256xf32>
    %235 = arith.truncf %232 : vector<16x320xf32> to vector<16x320xbf16>
    %cst_58 = arith.constant dense<0.000000e+00> : vector<16x256xf32>
    %236 = tpu.matmul %235, %233, %cst_58 {dimension_numbers = #tpu.dot_dimension_numbers<[1], [0], [0], [1], [0, 0, 1, 1], [], []>} : vector<16x320xbf16>, vector<320x256xbf16>, vector<16x256xf32> -> vector<16x256xf32>
    %237 = vector.broadcast %234 : vector<1x256xf32> to vector<16x256xf32>
    %238 = arith.addf %236, %237 : vector<16x256xf32>
    %239 = arith.addf %17, %238 : vector<16x256xf32>
    %cst_59 = arith.constant dense<0.000000e+00> : vector<16xf32>
    %240 = vector.multi_reduction <add>, %239, %cst_59 [1] : vector<16x256xf32> to vector<16xf32>
    %241 = vector.shape_cast %240 : vector<16xf32> to vector<16x1xf32>
    %cst_60 = arith.constant 4.000000e-03 : f32
    %242 = vector.broadcast %cst_60 : f32 to vector<16x1xf32>
    %243 = arith.mulf %241, %242 : vector<16x1xf32>
    %244 = vector.broadcast %243 : vector<16x1xf32> to vector<16x256xf32>
    %245 = arith.subf %239, %244 : vector<16x256xf32>
    %246 = vector.broadcast %8 : vector<1x256xf32> to vector<16x256xf32>
    %247 = arith.mulf %245, %246 : vector<16x256xf32>
    %248 = arith.mulf %247, %247 : vector<16x256xf32>
    %cst_61 = arith.constant dense<0.000000e+00> : vector<16xf32>
    %249 = vector.multi_reduction <add>, %248, %cst_61 [1] : vector<16x256xf32> to vector<16xf32>
    %250 = vector.shape_cast %249 : vector<16xf32> to vector<16x1xf32>
    %cst_62 = arith.constant 4.000000e-03 : f32
    %251 = vector.broadcast %cst_62 : f32 to vector<16x1xf32>
    %252 = arith.mulf %250, %251 : vector<16x1xf32>
    %cst_63 = arith.constant 9.99999974E-6 : f32
    %253 = vector.broadcast %cst_63 : f32 to vector<16x1xf32>
    %254 = arith.addf %252, %253 : vector<16x1xf32>
    %255 = math.rsqrt %254 : vector<16x1xf32>
    %256 = vector.broadcast %255 : vector<16x1xf32> to vector<16x256xf32>
    %257 = arith.mulf %247, %256 : vector<16x256xf32>
    %c0_64 = arith.constant 0 : index
    %c0_65 = arith.constant 0 : index
    %258 = vector.load %arg8[%c0_64, %c0_65] : memref<1x256xf32, #tpu.memory_space<vmem>>, vector<1x256xf32>
    %259 = vector.broadcast %258 : vector<1x256xf32> to vector<16x256xf32>
    %260 = arith.mulf %257, %259 : vector<16x256xf32>
    %c0_66 = arith.constant 0 : index
    %c0_67 = arith.constant 0 : index
    %261 = vector.load %arg9[%c0_66, %c0_67] : memref<1x256xf32, #tpu.memory_space<vmem>>, vector<1x256xf32>
    %262 = vector.broadcast %261 : vector<1x256xf32> to vector<16x256xf32>
    %263 = arith.addf %260, %262 : vector<16x256xf32>
    %c0_i32_68 = arith.constant 0 : i32
    %264 = tpu.memref_slice %arg21[%c0_i32_68] : memref<2x!tpu.dma_semaphore, #tpu.memory_space<semaphore_mem>> -> memref<1x!tpu.dma_semaphore, #tpu.memory_space<semaphore_mem>>
    %265 = tpu.memref_squeeze %264 : memref<1x!tpu.dma_semaphore, #tpu.memory_space<semaphore_mem>> -> memref<!tpu.dma_semaphore, #tpu.memory_space<semaphore_mem>>
    tpu.wait_dma2 semaphore(%265 : memref<!tpu.dma_semaphore, #tpu.memory_space<semaphore_mem>>) src(%arg12 : memref<256x2048xbf16, #tpu.memory_space<any>>) dst(%arg19 : memref<256x2048xbf16, #tpu.memory_space<vmem>>)
    %c0_69 = arith.constant 0 : index
    %c0_70 = arith.constant 0 : index
    %266 = vector.load %arg19[%c0_69, %c0_70] : memref<256x2048xbf16, #tpu.memory_space<vmem>>, vector<256x2048xbf16>
    %c0_71 = arith.constant 0 : index
    %c0_72 = arith.constant 0 : index
    %267 = vector.load %arg13[%c0_71, %c0_72] : memref<1x2048xf32, #tpu.memory_space<vmem>>, vector<1x2048xf32>
    %268 = arith.truncf %263 : vector<16x256xf32> to vector<16x256xbf16>
    %cst_73 = arith.constant dense<0.000000e+00> : vector<16x2048xf32>
    %269 = tpu.matmul %268, %266, %cst_73 {dimension_numbers = #tpu.dot_dimension_numbers<[1], [0], [0], [1], [0, 0, 1, 1], [], []>} : vector<16x256xbf16>, vector<256x2048xbf16>, vector<16x2048xf32> -> vector<16x2048xf32>
    %270 = vector.broadcast %267 : vector<1x2048xf32> to vector<16x2048xf32>
    %271 = arith.addf %269, %270 : vector<16x2048xf32>
    %cst_74 = arith.constant 0.000000e+00 : f32
    %272 = vector.broadcast %cst_74 : f32 to vector<16x2048xf32>
    %273 = arith.maximumf %271, %272 : vector<16x2048xf32>
    %c1_i32_75 = arith.constant 1 : i32
    %274 = tpu.memref_slice %arg21[%c1_i32_75] : memref<2x!tpu.dma_semaphore, #tpu.memory_space<semaphore_mem>> -> memref<1x!tpu.dma_semaphore, #tpu.memory_space<semaphore_mem>>
    %275 = tpu.memref_squeeze %274 : memref<1x!tpu.dma_semaphore, #tpu.memory_space<semaphore_mem>> -> memref<!tpu.dma_semaphore, #tpu.memory_space<semaphore_mem>>
    tpu.wait_dma2 semaphore(%275 : memref<!tpu.dma_semaphore, #tpu.memory_space<semaphore_mem>>) src(%arg14 : memref<2048x256xbf16, #tpu.memory_space<any>>) dst(%arg20 : memref<2048x256xbf16, #tpu.memory_space<vmem>>)
    %c0_76 = arith.constant 0 : index
    %c0_77 = arith.constant 0 : index
    %276 = vector.load %arg20[%c0_76, %c0_77] : memref<2048x256xbf16, #tpu.memory_space<vmem>>, vector<2048x256xbf16>
    %c0_78 = arith.constant 0 : index
    %c0_79 = arith.constant 0 : index
    %277 = vector.load %arg15[%c0_78, %c0_79] : memref<1x256xf32, #tpu.memory_space<vmem>>, vector<1x256xf32>
    %278 = arith.truncf %273 : vector<16x2048xf32> to vector<16x2048xbf16>
    %cst_80 = arith.constant dense<0.000000e+00> : vector<16x256xf32>
    %279 = tpu.matmul %278, %276, %cst_80 {dimension_numbers = #tpu.dot_dimension_numbers<[1], [0], [0], [1], [0, 0, 1, 1], [], []>} : vector<16x2048xbf16>, vector<2048x256xbf16>, vector<16x256xf32> -> vector<16x256xf32>
    %280 = vector.broadcast %277 : vector<1x256xf32> to vector<16x256xf32>
    %281 = arith.addf %279, %280 : vector<16x256xf32>
    %282 = arith.addf %263, %281 : vector<16x256xf32>
    %cst_81 = arith.constant dense<0.000000e+00> : vector<16xf32>
    %283 = vector.multi_reduction <add>, %282, %cst_81 [1] : vector<16x256xf32> to vector<16xf32>
    %284 = vector.shape_cast %283 : vector<16xf32> to vector<16x1xf32>
    %cst_82 = arith.constant 4.000000e-03 : f32
    %285 = vector.broadcast %cst_82 : f32 to vector<16x1xf32>
    %286 = arith.mulf %284, %285 : vector<16x1xf32>
    %287 = vector.broadcast %286 : vector<16x1xf32> to vector<16x256xf32>
    %288 = arith.subf %282, %287 : vector<16x256xf32>
    %289 = vector.broadcast %8 : vector<1x256xf32> to vector<16x256xf32>
    %290 = arith.mulf %288, %289 : vector<16x256xf32>
    %291 = arith.mulf %290, %290 : vector<16x256xf32>
    %cst_83 = arith.constant dense<0.000000e+00> : vector<16xf32>
    %292 = vector.multi_reduction <add>, %291, %cst_83 [1] : vector<16x256xf32> to vector<16xf32>
    %293 = vector.shape_cast %292 : vector<16xf32> to vector<16x1xf32>
    %cst_84 = arith.constant 4.000000e-03 : f32
    %294 = vector.broadcast %cst_84 : f32 to vector<16x1xf32>
    %295 = arith.mulf %293, %294 : vector<16x1xf32>
    %cst_85 = arith.constant 9.99999974E-6 : f32
    %296 = vector.broadcast %cst_85 : f32 to vector<16x1xf32>
    %297 = arith.addf %295, %296 : vector<16x1xf32>
    %298 = math.rsqrt %297 : vector<16x1xf32>
    %299 = vector.broadcast %298 : vector<16x1xf32> to vector<16x256xf32>
    %300 = arith.mulf %290, %299 : vector<16x256xf32>
    %c0_86 = arith.constant 0 : index
    %c0_87 = arith.constant 0 : index
    %301 = vector.load %arg10[%c0_86, %c0_87] : memref<1x256xf32, #tpu.memory_space<vmem>>, vector<1x256xf32>
    %302 = vector.broadcast %301 : vector<1x256xf32> to vector<16x256xf32>
    %303 = arith.mulf %300, %302 : vector<16x256xf32>
    %c0_88 = arith.constant 0 : index
    %c0_89 = arith.constant 0 : index
    %304 = vector.load %arg11[%c0_88, %c0_89] : memref<1x256xf32, #tpu.memory_space<vmem>>, vector<1x256xf32>
    %305 = vector.broadcast %304 : vector<1x256xf32> to vector<16x256xf32>
    %306 = arith.addf %303, %305 : vector<16x256xf32>
    %c0_90 = arith.constant 0 : index
    %c0_91 = arith.constant 0 : index
    %307 = vector.load %arg16[%c0_90, %c0_91] : memref<256x128xbf16, #tpu.memory_space<vmem>>, vector<256x128xbf16>
    %c0_92 = arith.constant 0 : index
    %c0_93 = arith.constant 0 : index
    %308 = vector.load %arg17[%c0_92, %c0_93] : memref<1x128xf32, #tpu.memory_space<vmem>>, vector<1x128xf32>
    %309 = arith.truncf %306 : vector<16x256xf32> to vector<16x256xbf16>
    %cst_94 = arith.constant dense<0.000000e+00> : vector<16x128xf32>
    %310 = tpu.matmul %309, %307, %cst_94 {dimension_numbers = #tpu.dot_dimension_numbers<[1], [0], [0], [1], [0, 0, 1, 1], [], []>} : vector<16x256xbf16>, vector<256x128xbf16>, vector<16x128xf32> -> vector<16x128xf32>
    %311 = vector.broadcast %308 : vector<1x128xf32> to vector<16x128xf32>
    %312 = arith.addf %310, %311 : vector<16x128xf32>
    %c0_95 = arith.constant 0 : index
    %c0_96 = arith.constant 0 : index
    %313 = vector.load %arg18[%c0_95, %c0_96] : memref<16x128xf32, #tpu.memory_space<vmem>>, vector<16x128xf32>
    tpu.vector_store %arg18[%c0_95, %c0_96], %312 {strides = array<i32>} : memref<16x128xf32, #tpu.memory_space<vmem>>, vector<16x128xf32>,
    return
  }
}

</mosaic_0001>

<bundles_post_ra>
// kernel: transam_forward.1
= control target key start
LH: loop header
LB: loop body
LE: loop exit
PB: predicated region body
PF: predicated region fallthrough
CT: control target
= control target key end

     0   :  { %s14678_s0 = inlined_call_operand.vmem [shape: f32[16,8], index: 0, kind: input, shape index: {}]   ;;  %s14679_s1 = inlined_call_operand.vmem [shape: f32[8,256], index: 1, kind: input, shape index: {}]   ;;  %s14680_s2 = inlined_call_operand.vmem [shape: f32[8,256], index: 2, kind: input, shape index: {}]   ;;  %s14681_s3 = inlined_call_operand.vmem [shape: f32[1,256], index: 3, kind: input, shape index: {}]   ;;  %s14682_s4 = inlined_call_operand.vmem [shape: bf16[256,960], index: 4, kind: input, shape index: {}]   ;;  %s14683_s5 = inlined_call_operand.vmem [shape: f32[1,960], index: 5, kind: input, shape index: {}]   ;;  %s14684_s6 = inlined_call_operand.vmem [shape: bf16[320,256], index: 6, kind: input, shape index: {}]   ;;  %s14685_s7 = inlined_call_operand.vmem [shape: f32[1,256], index: 7, kind: input, shape index: {}]   ;;  %s14686_s8 = inlined_call_operand.vmem [shape: f32[1,256], index: 8, kind: input, shape index: {}]   ;;  %s14687_s9 = inlined_call_operand.vmem [shape: f32[1,256], index: 9, kind: input, shape index: {}]   ;;  %s14688_s10 = inlined_call_operand.vmem [shape: f32[1,256], index: 10, kind: input, shape index: {}]   ;;  %s14689_s11 = inlined_call_operand.vmem [shape: f32[1,256], index: 11, kind: input, shape index: {}]   ;;  %s14690_s12 = inlined_call_operand.vmem [shape: bf16[256,2048], index: 12, kind: input, shape index: {}]   ;;  %s14691_s13 = inlined_call_operand.vmem [shape: f32[1,2048], index: 13, kind: input, shape index: {}]   ;;  %s14692_s14 = inlined_call_operand.hbm [shape: bf16[2048,256], index: 14, kind: input, shape index: {}]   ;;  %s14693_s15 = inlined_call_operand.vmem [shape: f32[1,256], index: 15, kind: input, shape index: {}]   ;;  %s14694_s16 = inlined_call_operand.vmem [shape: bf16[256,128], index: 16, kind: input, shape index: {}]   ;;  %s14695_s17 = inlined_call_operand.vmem [shape: f32[1,128], index: 17, kind: input, shape index: {}]   ;;  %s14696_s18 = inlined_call_operand.vmem [shape: f32[16,128], index: 18, kind: output, shape index: {}]  }
   0x1   :  { %14702 = sst [smem:[#allocation10_spill]] %s14678_s0 }
   0x2   :  { %14703 = sst [smem:[#allocation11_spill]] %s14679_s1 }
   0x3   :  { %14704 = sst [smem:[#allocation12_spill]] %s14680_s2 }
   0x4   :  { %v73_v0 = vld [vmem:[%s14690_s12] sm:$0xf]  ;;  %v77_v2 = vld [vmem:[%s14690_s12 + $0x4] sm:$0xf]  ;;  %v81_v4 = vld [vmem:[%s14690_s12 + $0x8] sm:$0xf] }
   0x5   :  { %v75_v1 = vld [vmem:[%s14690_s12 + $0x40] sm:$0xf]  ;;  %74 = vst [vmem:[#allocation2] sm:$0xf] %v73_v0  ;;  %78 = vst [vmem:[#allocation2 + $0x8] sm:$0xf] %v77_v2 }
   0x6   :  { %76 = vst [vmem:[#allocation2 + $0x4] sm:$0xf] %v75_v1  ;;  %v79_v3 = vld [vmem:[%s14690_s12 + $0x44] sm:$0xf]  ;;  %v83_v5 = vld [vmem:[%s14690_s12 + $0x48] sm:$0xf] }
   0x7   :  { %80 = vst [vmem:[#allocation2 + $0xc] sm:$0xf] %v79_v3  ;;  %82 = vst [vmem:[#allocation2 + $0x10] sm:$0xf] %v81_v4  ;;  %v85_v6 = vld [vmem:[%s14690_s12 + $0xc] sm:$0xf] }
   0x8   :  { %84 = vst [vmem:[#allocation2 + $0x14] sm:$0xf] %v83_v5  ;;  %v87_v7 = vld [vmem:[%s14690_s12 + $0x4c] sm:$0xf]  ;;  %v89_v8 = vld [vmem:[%s14690_s12 + $0x10] sm:$0xf] }
   0x9   :  { %86 = vst [vmem:[#allocation2 + $0x18] sm:$0xf] %v85_v6  ;;  %88 = vst [vmem:[#allocation2 + $0x1c] sm:$0xf] %v87_v7  ;;  %v91_v9 = vld [vmem:[%s14690_s12 + $0x50] sm:$0xf] }
   0xa   :  { %90 = vst [vmem:[#allocation2 + $0x20] sm:$0xf] %v89_v8  ;;  %v93_v10 = vld [vmem:[%s14690_s12 + $0x14] sm:$0xf]  ;;  %92 = vst [vmem:[#allocation2 + $0x24] sm:$0xf] %v91_v9 }
   0xb   :  { %v95_v11 = vld [vmem:[%s14690_s12 + $0x54] sm:$0xf]  ;;  %94 = vst [vmem:[#allocation2 + $0x28] sm:$0xf] %v93_v10  ;;  %v97_v12 = vld [vmem:[%s14690_s12 + $0x18] sm:$0xf] }
   0xc   :  { %96 = vst [vmem:[#allocation2 + $0x2c] sm:$0xf] %v95_v11  ;;  %v99_v13 = vld [vmem:[%s14690_s12 + $0x58] sm:$0xf]  ;;  %v101_v14 = vld [vmem:[%s14690_s12 + $0x1c] sm:$0xf] }
   0xd   :  { %98 = vst [vmem:[#allocation2 + $0x30] sm:$0xf] %v97_v12  ;;  %100 = vst [vmem:[#allocation2 + $0x34] sm:$0xf] %v99_v13  ;;  %v103_v15 = vld [vmem:[%s14690_s12 + $0x5c] sm:$0xf] }
   0xe   :  { %102 = vst [vmem:[#allocation2 + $0x38] sm:$0xf] %v101_v14  ;;  %v105_v16 = vld [vmem:[%s14690_s12 + $0x20] sm:$0xf]  ;;  %104 = vst [vmem:[#allocation2 + $0x3c] sm:$0xf] %v103_v15 }
   0xf   :  { %v107_v17 = vld [vmem:[%s14690_s12 + $0x60] sm:$0xf]  ;;  %106 = vst [vmem:[#allocation2 + $0x40] sm:$0xf] %v105_v16  ;;  %v109_v18 = vld [vmem:[%s14690_s12 + $0x24] sm:$0xf] }
  0x10   :  { %108 = vst [vmem:[#allocation2 + $0x44] sm:$0xf] %v107_v17  ;;  %v111_v19 = vld [vmem:[%s14690_s12 + $0x64] sm:$0xf]  ;;  %v113_v20 = vld [vmem:[%s14690_s12 + $0x28] sm:$0xf] }
  0x11   :  { %110 = vst [vmem:[#allocation2 + $0x48] sm:$0xf] %v109_v18  ;;  %112 = vst [vmem:[#allocation2 + $0x4c] sm:$0xf] %v111_v19  ;;  %v115_v21 = vld [vmem:[%s14690_s12 + $0x68] sm:$0xf] }
  0x12   :  { %114 = vst [vmem:[#allocation2 + $0x50] sm:$0xf] %v113_v20  ;;  %v117_v22 = vld [vmem:[%s14690_s12 + $0x2c] sm:$0xf]  ;;  %116 = vst [vmem:[#allocation2 + $0x54] sm:$0xf] %v115_v21 }
  0x13   :  { %v119_v23 = vld [vmem:[%s14690_s12 + $0x6c] sm:$0xf]  ;;  %118 = vst [vmem:[#allocation2 + $0x58] sm:$0xf] %v117_v22  ;;  %v121_v24 = vld [vmem:[%s14690_s12 + $0x30] sm:$0xf] }
  0x14   :  { %120 = vst [vmem:[#allocation2 + $0x5c] sm:$0xf] %v119_v23  ;;  %v123_v25 = vld [vmem:[%s14690_s12 + $0x70] sm:$0xf]  ;;  %v125_v26 = vld [vmem:[%s14690_s12 + $0x34] sm:$0xf] }
  0x15   :  { %122 = vst [vmem:[#allocation2 + $0x60] sm:$0xf] %v121_v24  ;;  %124 = vst [vmem:[#allocation2 + $0x64] sm:$0xf] %v123_v25  ;;  %v127_v27 = vld [vmem:[%s14690_s12 + $0x74] sm:$0xf] }
  0x16   :  { %126 = vst [vmem:[#allocation2 + $0x68] sm:$0xf] %v125_v26  ;;  %v129_v28 = vld [vmem:[%s14690_s12 + $0x38] sm:$0xf]  ;;  %128 = vst [vmem:[#allocation2 + $0x6c] sm:$0xf] %v127_v27 }
  0x17   :  { %v131_v29 = vld [vmem:[%s14690_s12 + $0x78] sm:$0xf]  ;;  %130 = vst [vmem:[#allocation2 + $0x70] sm:$0xf] %v129_v28  ;;  %v133_v30 = vld [vmem:[%s14690_s12 + $0x3c] sm:$0xf] }
  0x18   :  { %132 = vst [vmem:[#allocation2 + $0x74] sm:$0xf] %v131_v29  ;;  %v135_v31 = vld [vmem:[%s14690_s12 + $0x7c] sm:$0xff]   ;;  %134 = vst [vmem:[#allocation2 + $0x78] sm:$0xf] %v133_v30 }
  0x19   :  { %v139_v32 = vld [vmem:[%s14690_s12 + $0xc0] sm:$0xf]  ;;  %136 = vst [vmem:[#allocation2 + $0x7c] sm:$0xff] %v135_v31   ;;  %v141_v33 = vld [vmem:[%s14690_s12 + $0x84] sm:$0xf] }
  0x1a   :  { %140 = vst [vmem:[#allocation2 + $0x84] sm:$0xf] %v139_v32  ;;  %v143_v34 = vld [vmem:[%s14690_s12 + $0xc4] sm:$0xf]  ;;  %v145_v35 = vld [vmem:[%s14690_s12 + $0x88] sm:$0xf] }
  0x1b   :  { %142 = vst [vmem:[#allocation2 + $0x88] sm:$0xf] %v141_v33  ;;  %144 = vst [vmem:[#allocation2 + $0x8c] sm:$0xf] %v143_v34  ;;  %v147_v36 = vld [vmem:[%s14690_s12 + $0xc8] sm:$0xf] }
  0x1c   :  { %146 = vst [vmem:[#allocation2 + $0x90] sm:$0xf] %v145_v35  ;;  %v149_v37 = vld [vmem:[%s14690_s12 + $0x8c] sm:$0xf]  ;;  %148 = vst [vmem:[#allocation2 + $0x94] sm:$0xf] %v147_v36 }
  0x1d   :  { %v151_v38 = vld [vmem:[%s14690_s12 + $0xcc] sm:$0xf]  ;;  %150 = vst [vmem:[#allocation2 + $0x98] sm:$0xf] %v149_v37  ;;  %v153_v39 = vld [vmem:[%s14690_s12 + $0x90] sm:$0xf] }
  0x1e   :  { %152 = vst [vmem:[#allocation2 + $0x9c] sm:$0xf] %v151_v38  ;;  %v155_v40 = vld [vmem:[%s14690_s12 + $0xd0] sm:$0xf]  ;;  %v157_v41 = vld [vmem:[%s14690_s12 + $0x94] sm:$0xf] }
  0x1f   :  { %154 = vst [vmem:[#allocation2 + $0xa0] sm:$0xf] %v153_v39  ;;  %156 = vst [vmem:[#allocation2 + $0xa4] sm:$0xf] %v155_v40  ;;  %v159_v42 = vld [vmem:[%s14690_s12 + $0xd4] sm:$0xf] }
  0x20   :  { %158 = vst [vmem:[#allocation2 + $0xa8] sm:$0xf] %v157_v41  ;;  %v161_v43 = vld [vmem:[%s14690_s12 + $0x98] sm:$0xf]  ;;  %160 = vst [vmem:[#allocation2 + $0xac] sm:$0xf] %v159_v42 }
  0x21   :  { %v163_v44 = vld [vmem:[%s14690_s12 + $0xd8] sm:$0xf]  ;;  %162 = vst [vmem:[#allocation2 + $0xb0] sm:$0xf] %v161_v43  ;;  %v165_v45 = vld [vmem:[%s14690_s12 + $0x9c] sm:$0xf] }
  0x22   :  { %164 = vst [vmem:[#allocation2 + $0xb4] sm:$0xf] %v163_v44  ;;  %v167_v46 = vld [vmem:[%s14690_s12 + $0xdc] sm:$0xf]  ;;  %v169_v47 = vld [vmem:[%s14690_s12 + $0xa0] sm:$0xf] }
  0x23   :  { %166 = vst [vmem:[#allocation2 + $0xb8] sm:$0xf] %v165_v45  ;;  %168 = vst [vmem:[#allocation2 + $0xbc] sm:$0xf] %v167_v46  ;;  %v171_v48 = vld [vmem:[%s14690_s12 + $0xe0] sm:$0xf] }
  0x24   :  { %170 = vst [vmem:[#allocation2 + $0xc0] sm:$0xf] %v169_v47  ;;  %v173_v49 = vld [vmem:[%s14690_s12 + $0xa4] sm:$0xf]  ;;  %172 = vst [vmem:[#allocation2 + $0xc4] sm:$0xf] %v171_v48 }
  0x25   :  { %v175_v50 = vld [vmem:[%s14690_s12 + $0xe4] sm:$0xf]  ;;  %174 = vst [vmem:[#allocation2 + $0xc8] sm:$0xf] %v173_v49  ;;  %v177_v51 = vld [vmem:[%s14690_s12 + $0xa8] sm:$0xf] }
  0x26   :  { %176 = vst [vmem:[#allocation2 + $0xcc] sm:$0xf] %v175_v50  ;;  %v179_v52 = vld [vmem:[%s14690_s12 + $0xe8] sm:$0xf]  ;;  %v181_v53 = vld [vmem:[%s14690_s12 + $0xac] sm:$0xf] }
  0x27   :  { %178 = vst [vmem:[#allocation2 + $0xd0] sm:$0xf] %v177_v51  ;;  %180 = vst [vmem:[#allocation2 + $0xd4] sm:$0xf] %v179_v52  ;;  %v183_v54 = vld [vmem:[%s14690_s12 + $0xec] sm:$0xf] }
  0x28   :  { %182 = vst [vmem:[#allocation2 + $0xd8] sm:$0xf] %v181_v53  ;;  %v185_v55 = vld [vmem:[%s14690_s12 + $0xb0] sm:$0xf]  ;;  %184 = vst [vmem:[#allocation2 + $0xdc] sm:$0xf] %v183_v54 }
  0x29   :  { %v187_v56 = vld [vmem:[%s14690_s12 + $0xf0] sm:$0xf]  ;;  %186 = vst [vmem:[#allocation2 + $0xe0] sm:$0xf] %v185_v55  ;;  %v189_v57 = vld [vmem:[%s14690_s12 + $0xb4] sm:$0xf] }
  0x2a   :  { %188 = vst [vmem:[#allocation2 + $0xe4] sm:$0xf] %v187_v56  ;;  %v191_v58 = vld [vmem:[%s14690_s12 + $0xf4] sm:$0xf]  ;;  %v193_v59 = vld [vmem:[%s14690_s12 + $0xb8] sm:$0xf] }
  0x2b   :  { %190 = vst [vmem:[#allocation2 + $0xe8] sm:$0xf] %v189_v57  ;;  %192 = vst [vmem:[#allocation2 + $0xec] sm:$0xf] %v191_v58  ;;  %v195_v60 = vld [vmem:[%s14690_s12 + $0xf8] sm:$0xf] }
  0x2c   :  { %194 = vst [vmem:[#allocation2 + $0xf0] sm:$0xf] %v193_v59  ;;  %v197_v61 = vld [vmem:[%s14690_s12 + $0xbc] sm:$0xf]  ;;  %196 = vst [vmem:[#allocation2 + $0xf4] sm:$0xf] %v195_v60 }
  0x2d   :  { %v199_v62 = vld [vmem:[%s14690_s12 + $0xfc] sm:$0xff]   ;;  %198 = vst [vmem:[#allocation2 + $0xf8] sm:$0xf] %v197_v61  ;;  %v205_v0 = vld [vmem:[%s14690_s12 + $0x104] sm:$0xf] }
  0x2e   :  { %200 = vst [vmem:[#allocation2 + $0xfc] sm:$0xff] %v199_v62   ;;  %v203_v63 = vld [vmem:[%s14690_s12 + $0x140] sm:$0xf]  ;;  %v207_v1 = vld [vmem:[%s14690_s12 + $0x144] sm:$0xf] }
  0x2f   :  { %204 = vst [vmem:[#allocation2 + $0x104] sm:$0xf] %v203_v63  ;;  %206 = vst [vmem:[#allocation2 + $0x108] sm:$0xf] %v205_v0  ;;  %v209_v2 = vld [vmem:[%s14690_s12 + $0x108] sm:$0xf] }
  0x30   :  { %208 = vst [vmem:[#allocation2 + $0x10c] sm:$0xf] %v207_v1  ;;  %v211_v3 = vld [vmem:[%s14690_s12 + $0x148] sm:$0xf]  ;;  %v213_v4 = vld [vmem:[%s14690_s12 + $0x10c] sm:$0xf] }
  0x31   :  { %210 = vst [vmem:[#allocation2 + $0x110] sm:$0xf] %v209_v2  ;;  %212 = vst [vmem:[#allocation2 + $0x114] sm:$0xf] %v211_v3  ;;  %v215_v5 = vld [vmem:[%s14690_s12 + $0x14c] sm:$0xf] }
  0x32   :  { %214 = vst [vmem:[#allocation2 + $0x118] sm:$0xf] %v213_v4  ;;  %v217_v6 = vld [vmem:[%s14690_s12 + $0x110] sm:$0xf]  ;;  %216 = vst [vmem:[#allocation2 + $0x11c] sm:$0xf] %v215_v5 }
  0x33   :  { %v219_v7 = vld [vmem:[%s14690_s12 + $0x150] sm:$0xf]  ;;  %218 = vst [vmem:[#allocation2 + $0x120] sm:$0xf] %v217_v6  ;;  %v221_v8 = vld [vmem:[%s14690_s12 + $0x114] sm:$0xf] }
  0x34   :  { %220 = vst [vmem:[#allocation2 + $0x124] sm:$0xf] %v219_v7  ;;  %v223_v9 = vld [vmem:[%s14690_s12 + $0x154] sm:$0xf]  ;;  %v225_v10 = vld [vmem:[%s14690_s12 + $0x118] sm:$0xf] }
  0x35   :  { %222 = vst [vmem:[#allocation2 + $0x128] sm:$0xf] %v221_v8  ;;  %224 = vst [vmem:[#allocation2 + $0x12c] sm:$0xf] %v223_v9  ;;  %v227_v11 = vld [vmem:[%s14690_s12 + $0x158] sm:$0xf] }
  0x36   :  { %226 = vst [vmem:[#allocation2 + $0x130] sm:$0xf] %v225_v10  ;;  %v229_v12 = vld [vmem:[%s14690_s12 + $0x11c] sm:$0xf]  ;;  %228 = vst [vmem:[#allocation2 + $0x134] sm:$0xf] %v227_v11 }
  0x37   :  { %v231_v13 = vld [vmem:[%s14690_s12 + $0x15c] sm:$0xf]  ;;  %230 = vst [vmem:[#allocation2 + $0x138] sm:$0xf] %v229_v12  ;;  %v233_v14 = vld [vmem:[%s14690_s12 + $0x120] sm:$0xf] }
  0x38   :  { %232 = vst [vmem:[#allocation2 + $0x13c] sm:$0xf] %v231_v13  ;;  %v235_v15 = vld [vmem:[%s14690_s12 + $0x160] sm:$0xf]  ;;  %v237_v16 = vld [vmem:[%s14690_s12 + $0x124] sm:$0xf] }
  0x39   :  { %234 = vst [vmem:[#allocation2 + $0x140] sm:$0xf] %v233_v14  ;;  %236 = vst [vmem:[#allocation2 + $0x144] sm:$0xf] %v235_v15  ;;  %v239_v17 = vld [vmem:[%s14690_s12 + $0x164] sm:$0xf] }
  0x3a   :  { %238 = vst [vmem:[#allocation2 + $0x148] sm:$0xf] %v237_v16  ;;  %v241_v18 = vld [vmem:[%s14690_s12 + $0x128] sm:$0xf]  ;;  %240 = vst [vmem:[#allocation2 + $0x14c] sm:$0xf] %v239_v17 }
  0x3b   :  { %v243_v19 = vld [vmem:[%s14690_s12 + $0x168] sm:$0xf]  ;;  %242 = vst [vmem:[#allocation2 + $0x150] sm:$0xf] %v241_v18  ;;  %v245_v20 = vld [vmem:[%s14690_s12 + $0x12c] sm:$0xf] }
  0x3c   :  { %244 = vst [vmem:[#allocation2 + $0x154] sm:$0xf] %v243_v19  ;;  %v247_v21 = vld [vmem:[%s14690_s12 + $0x16c] sm:$0xf]  ;;  %v249_v22 = vld [vmem:[%s14690_s12 + $0x130] sm:$0xf] }
  0x3d   :  { %246 = vst [vmem:[#allocation2 + $0x158] sm:$0xf] %v245_v20  ;;  %248 = vst [vmem:[#allocation2 + $0x15c] sm:$0xf] %v247_v21  ;;  %v251_v23 = vld [vmem:[%s14690_s12 + $0x170] sm:$0xf] }
  0x3e   :  { %250 = vst [vmem:[#allocation2 + $0x160] sm:$0xf] %v249_v22  ;;  %v253_v24 = vld [vmem:[%s14690_s12 + $0x134] sm:$0xf]  ;;  %252 = vst [vmem:[#allocation2 + $0x164] sm:$0xf] %v251_v23 }
  0x3f   :  { %v255_v25 = vld [vmem:[%s14690_s12 + $0x174] sm:$0xf]  ;;  %254 = vst [vmem:[#allocation2 + $0x168] sm:$0xf] %v253_v24  ;;  %v257_v26 = vld [vmem:[%s14690_s12 + $0x138] sm:$0xf] }
  0x40   :  { %256 = vst [vmem:[#allocation2 + $0x16c] sm:$0xf] %v255_v25  ;;  %v259_v27 = vld [vmem:[%s14690_s12 + $0x178] sm:$0xf]  ;;  %v261_v28 = vld [vmem:[%s14690_s12 + $0x13c] sm:$0xf] }
  0x41   :  { %258 = vst [vmem:[#allocation2 + $0x170] sm:$0xf] %v257_v26  ;;  %260 = vst [vmem:[#allocation2 + $0x174] sm:$0xf] %v259_v27  ;;  %v263_v29 = vld [vmem:[%s14690_s12 + $0x17c] sm:$0xff]  }
  0x42   :  { %262 = vst [vmem:[#allocation2 + $0x178] sm:$0xf] %v261_v28  ;;  %v267_v30 = vld [vmem:[%s14690_s12 + $0x1c0] sm:$0xf]  ;;  %v269_v31 = vld [vmem:[%s14690_s12 + $0x184] sm:$0xf] }
  0x43   :  { %264 = vst [vmem:[#allocation2 + $0x17c] sm:$0xff] %v263_v29   ;;  %268 = vst [vmem:[#allocation2 + $0x184] sm:$0xf] %v267_v30  ;;  %v271_v32 = vld [vmem:[%s14690_s12 + $0x1c4] sm:$0xf]  ;;  %v327_v60 = vld [vmem:[%s14690_s12 + $0x1fc] sm:$0xff]  }
  0x44   :  { %270 = vst [vmem:[#allocation2 + $0x188] sm:$0xf] %v269_v31  ;;  %v273_v33 = vld [vmem:[%s14690_s12 + $0x188] sm:$0xf]  ;;  %272 = vst [vmem:[#allocation2 + $0x18c] sm:$0xf] %v271_v32 }
  0x45   :  { %v275_v34 = vld [vmem:[%s14690_s12 + $0x1c8] sm:$0xf]  ;;  %274 = vst [vmem:[#allocation2 + $0x190] sm:$0xf] %v273_v33  ;;  %v277_v35 = vld [vmem:[%s14690_s12 + $0x18c] sm:$0xf] }
  0x46   :  { %276 = vst [vmem:[#allocation2 + $0x194] sm:$0xf] %v275_v34  ;;  %v279_v36 = vld [vmem:[%s14690_s12 + $0x1cc] sm:$0xf]  ;;  %v281_v37 = vld [vmem:[%s14690_s12 + $0x190] sm:$0xf] }
  0x47   :  { %278 = vst [vmem:[#allocation2 + $0x198] sm:$0xf] %v277_v35  ;;  %280 = vst [vmem:[#allocation2 + $0x19c] sm:$0xf] %v279_v36  ;;  %v283_v38 = vld [vmem:[%s14690_s12 + $0x1d0] sm:$0xf] }
  0x48   :  { %282 = vst [vmem:[#allocation2 + $0x1a0] sm:$0xf] %v281_v37  ;;  %v285_v39 = vld [vmem:[%s14690_s12 + $0x194] sm:$0xf]  ;;  %284 = vst [vmem:[#allocation2 + $0x1a4] sm:$0xf] %v283_v38 }
  0x49   :  { %v287_v40 = vld [vmem:[%s14690_s12 + $0x1d4] sm:$0xf]  ;;  %286 = vst [vmem:[#allocation2 + $0x1a8] sm:$0xf] %v285_v39  ;;  %v289_v41 = vld [vmem:[%s14690_s12 + $0x198] sm:$0xf] }
  0x4a   :  { %288 = vst [vmem:[#allocation2 + $0x1ac] sm:$0xf] %v287_v40  ;;  %v291_v42 = vld [vmem:[%s14690_s12 + $0x1d8] sm:$0xf]  ;;  %v293_v43 = vld [vmem:[%s14690_s12 + $0x19c] sm:$0xf] }
  0x4b   :  { %290 = vst [vmem:[#allocation2 + $0x1b0] sm:$0xf] %v289_v41  ;;  %292 = vst [vmem:[#allocation2 + $0x1b4] sm:$0xf] %v291_v42  ;;  %v295_v44 = vld [vmem:[%s14690_s12 + $0x1dc] sm:$0xf] }
  0x4c   :  { %294 = vst [vmem:[#allocation2 + $0x1b8] sm:$0xf] %v293_v43  ;;  %v297_v45 = vld [vmem:[%s14690_s12 + $0x1a0] sm:$0xf]  ;;  %296 = vst [vmem:[#allocation2 + $0x1bc] sm:$0xf] %v295_v44 }
  0x4d   :  { %v299_v46 = vld [vmem:[%s14690_s12 + $0x1e0] sm:$0xf]  ;;  %298 = vst [vmem:[#allocation2 + $0x1c0] sm:$0xf] %v297_v45  ;;  %v301_v47 = vld [vmem:[%s14690_s12 + $0x1a4] sm:$0xf] }
  0x4e   :  { %300 = vst [vmem:[#allocation2 + $0x1c4] sm:$0xf] %v299_v46  ;;  %v303_v48 = vld [vmem:[%s14690_s12 + $0x1e4] sm:$0xf]  ;;  %v305_v49 = vld [vmem:[%s14690_s12 + $0x1a8] sm:$0xf] }
  0x4f   :  { %302 = vst [vmem:[#allocation2 + $0x1c8] sm:$0xf] %v301_v47  ;;  %304 = vst [vmem:[#allocation2 + $0x1cc] sm:$0xf] %v303_v48  ;;  %v307_v50 = vld [vmem:[%s14690_s12 + $0x1e8] sm:$0xf] }
  0x50   :  { %306 = vst [vmem:[#allocation2 + $0x1d0] sm:$0xf] %v305_v49  ;;  %v309_v51 = vld [vmem:[%s14690_s12 + $0x1ac] sm:$0xf]  ;;  %308 = vst [vmem:[#allocation2 + $0x1d4] sm:$0xf] %v307_v50 }
  0x51   :  { %v311_v52 = vld [vmem:[%s14690_s12 + $0x1ec] sm:$0xf]  ;;  %310 = vst [vmem:[#allocation2 + $0x1d8] sm:$0xf] %v309_v51  ;;  %v313_v53 = vld [vmem:[%s14690_s12 + $0x1b0] sm:$0xf] }
  0x52   :  { %312 = vst [vmem:[#allocation2 + $0x1dc] sm:$0xf] %v311_v52  ;;  %v315_v54 = vld [vmem:[%s14690_s12 + $0x1f0] sm:$0xf]  ;;  %v317_v55 = vld [vmem:[%s14690_s12 + $0x1b4] sm:$0xf] }
  0x53   :  { %314 = vst [vmem:[#allocation2 + $0x1e0] sm:$0xf] %v313_v53  ;;  %316 = vst [vmem:[#allocation2 + $0x1e4] sm:$0xf] %v315_v54  ;;  %v319_v56 = vld [vmem:[%s14690_s12 + $0x1f4] sm:$0xf] }
  0x54   :  { %318 = vst [vmem:[#allocation2 + $0x1e8] sm:$0xf] %v317_v55  ;;  %v321_v57 = vld [vmem:[%s14690_s12 + $0x1b8] sm:$0xf]  ;;  %320 = vst [vmem:[#allocation2 + $0x1ec] sm:$0xf] %v319_v56 }
  0x55   :  { %v323_v58 = vld [vmem:[%s14690_s12 + $0x1f8] sm:$0xf]  ;;  %322 = vst [vmem:[#allocation2 + $0x1f0] sm:$0xf] %v321_v57  ;;  %v325_v59 = vld [vmem:[%s14690_s12 + $0x1bc] sm:$0xf] }
  0x56   :  { %324 = vst [vmem:[#allocation2 + $0x1f4] sm:$0xf] %v323_v58  ;;  %v331_v61 = vld [vmem:[%s14690_s12 + $0x240] sm:$0xf]  ;;  %326 = vst [vmem:[#allocation2 + $0x1f8] sm:$0xf] %v325_v59 }
  0x57   :  { %328 = vst [vmem:[#allocation2 + $0x1fc] sm:$0xff] %v327_v60   ;;  %332 = vst [vmem:[#allocation2 + $0x204] sm:$0xf] %v331_v61  ;;  %v333_v62 = vld [vmem:[%s14690_s12 + $0x204] sm:$0xf]  ;;  %v391_v27 = vld [vmem:[%s14690_s12 + $0x27c] sm:$0xff]  }
  0x58   :  { %v335_v63 = vld [vmem:[%s14690_s12 + $0x244] sm:$0xf]  ;;  %v337_v0 = vld [vmem:[%s14690_s12 + $0x208] sm:$0xf]  ;;  %334 = vst [vmem:[#allocation2 + $0x208] sm:$0xf] %v333_v62 }
  0x59   :  { %336 = vst [vmem:[#allocation2 + $0x20c] sm:$0xf] %v335_v63  ;;  %338 = vst [vmem:[#allocation2 + $0x210] sm:$0xf] %v337_v0  ;;  %v339_v1 = vld [vmem:[%s14690_s12 + $0x248] sm:$0xf] }
  0x5a   :  { %v341_v2 = vld [vmem:[%s14690_s12 + $0x20c] sm:$0xf]  ;;  %340 = vst [vmem:[#allocation2 + $0x214] sm:$0xf] %v339_v1  ;;  %v345_v4 = vld [vmem:[%s14690_s12 + $0x210] sm:$0xf] }
  0x5b   :  { %v343_v3 = vld [vmem:[%s14690_s12 + $0x24c] sm:$0xf]  ;;  %342 = vst [vmem:[#allocation2 + $0x218] sm:$0xf] %v341_v2  ;;  %v347_v5 = vld [vmem:[%s14690_s12 + $0x250] sm:$0xf] }
  0x5c   :  { %344 = vst [vmem:[#allocation2 + $0x21c] sm:$0xf] %v343_v3  ;;  %v349_v6 = vld [vmem:[%s14690_s12 + $0x214] sm:$0xf]  ;;  %346 = vst [vmem:[#allocation2 + $0x220] sm:$0xf] %v345_v4 }
  0x5d   :  { %348 = vst [vmem:[#allocation2 + $0x224] sm:$0xf] %v347_v5  ;;  %350 = vst [vmem:[#allocation2 + $0x228] sm:$0xf] %v349_v6  ;;  %v351_v7 = vld [vmem:[%s14690_s12 + $0x254] sm:$0xf] }
  0x5e   :  { %v353_v8 = vld [vmem:[%s14690_s12 + $0x218] sm:$0xf]  ;;  %352 = vst [vmem:[#allocation2 + $0x22c] sm:$0xf] %v351_v7  ;;  %v357_v10 = vld [vmem:[%s14690_s12 + $0x21c] sm:$0xf] }
  0x5f   :  { %v355_v9 = vld [vmem:[%s14690_s12 + $0x258] sm:$0xf]  ;;  %354 = vst [vmem:[#allocation2 + $0x230] sm:$0xf] %v353_v8  ;;  %v359_v11 = vld [vmem:[%s14690_s12 + $0x25c] sm:$0xf] }
  0x60   :  { %356 = vst [vmem:[#allocation2 + $0x234] sm:$0xf] %v355_v9  ;;  %v361_v12 = vld [vmem:[%s14690_s12 + $0x220] sm:$0xf]  ;;  %358 = vst [vmem:[#allocation2 + $0x238] sm:$0xf] %v357_v10 }
  0x61   :  { %360 = vst [vmem:[#allocation2 + $0x23c] sm:$0xf] %v359_v11  ;;  %362 = vst [vmem:[#allocation2 + $0x240] sm:$0xf] %v361_v12  ;;  %v363_v13 = vld [vmem:[%s14690_s12 + $0x260] sm:$0xf] }
  0x62   :  { %v365_v14 = vld [vmem:[%s14690_s12 + $0x224] sm:$0xf]  ;;  %364 = vst [vmem:[#allocation2 + $0x244] sm:$0xf] %v363_v13  ;;  %v369_v16 = vld [vmem:[%s14690_s12 + $0x228] sm:$0xf] }
  0x63   :  { %v367_v15 = vld [vmem:[%s14690_s12 + $0x264] sm:$0xf]  ;;  %366 = vst [vmem:[#allocation2 + $0x248] sm:$0xf] %v365_v14  ;;  %v371_v17 = vld [vmem:[%s14690_s12 + $0x268] sm:$0xf] }
  0x64   :  { %368 = vst [vmem:[#allocation2 + $0x24c] sm:$0xf] %v367_v15  ;;  %v373_v18 = vld [vmem:[%s14690_s12 + $0x22c] sm:$0xf]  ;;  %370 = vst [vmem:[#allocation2 + $0x250] sm:$0xf] %v369_v16 }
  0x65   :  { %372 = vst [vmem:[#allocation2 + $0x254] sm:$0xf] %v371_v17  ;;  %374 = vst [vmem:[#allocation2 + $0x258] sm:$0xf] %v373_v18  ;;  %v375_v19 = vld [vmem:[%s14690_s12 + $0x26c] sm:$0xf] }
  0x66   :  { %v377_v20 = vld [vmem:[%s14690_s12 + $0x230] sm:$0xf]  ;;  %376 = vst [vmem:[#allocation2 + $0x25c] sm:$0xf] %v375_v19  ;;  %v381_v22 = vld [vmem:[%s14690_s12 + $0x234] sm:$0xf] }
  0x67   :  { %v379_v21 = vld [vmem:[%s14690_s12 + $0x270] sm:$0xf]  ;;  %378 = vst [vmem:[#allocation2 + $0x260] sm:$0xf] %v377_v20  ;;  %v383_v23 = vld [vmem:[%s14690_s12 + $0x274] sm:$0xf] }
  0x68   :  { %380 = vst [vmem:[#allocation2 + $0x264] sm:$0xf] %v379_v21  ;;  %v385_v24 = vld [vmem:[%s14690_s12 + $0x238] sm:$0xf]  ;;  %382 = vst [vmem:[#allocation2 + $0x268] sm:$0xf] %v381_v22 }
  0x69   :  { %384 = vst [vmem:[#allocation2 + $0x26c] sm:$0xf] %v383_v23  ;;  %386 = vst [vmem:[#allocation2 + $0x270] sm:$0xf] %v385_v24  ;;  %v387_v25 = vld [vmem:[%s14690_s12 + $0x278] sm:$0xf] }
  0x6a   :  { %v389_v26 = vld [vmem:[%s14690_s12 + $0x23c] sm:$0xf]  ;;  %388 = vst [vmem:[#allocation2 + $0x274] sm:$0xf] %v387_v25  ;;  %392 = vst [vmem:[#allocation2 + $0x27c] sm:$0xff] %v391_v27  }
  0x6b   :  { %390 = vst [vmem:[#allocation2 + $0x278] sm:$0xf] %v389_v26  ;;  %v395_v28 = vld [vmem:[%s14690_s12 + $0x2c0] sm:$0xf]  ;;  %v397_v29 = vld [vmem:[%s14690_s12 + $0x284] sm:$0xf] }
  0x6c   :  { %v399_v30 = vld [vmem:[%s14690_s12 + $0x2c4] sm:$0xf]  ;;  %396 = vst [vmem:[#allocation2 + $0x284] sm:$0xf] %v395_v28  ;;  %398 = vst [vmem:[#allocation2 + $0x288] sm:$0xf] %v397_v29 }
  0x6d   :  { %400 = vst [vmem:[#allocation2 + $0x28c] sm:$0xf] %v399_v30  ;;  %v401_v31 = vld [vmem:[%s14690_s12 + $0x288] sm:$0xf]  ;;  %v405_v33 = vld [vmem:[%s14690_s12 + $0x28c] sm:$0xf] }
  0x6e   :  { %v403_v32 = vld [vmem:[%s14690_s12 + $0x2c8] sm:$0xf]  ;;  %402 = vst [vmem:[#allocation2 + $0x290] sm:$0xf] %v401_v31  ;;  %406 = vst [vmem:[#allocation2 + $0x298] sm:$0xf] %v405_v33 }
  0x6f   :  { %404 = vst [vmem:[#allocation2 + $0x294] sm:$0xf] %v403_v32  ;;  %v407_v34 = vld [vmem:[%s14690_s12 + $0x2cc] sm:$0xf]  ;;  %v409_v35 = vld [vmem:[%s14690_s12 + $0x290] sm:$0xf] }
  0x70   :  { %v411_v36 = vld [vmem:[%s14690_s12 + $0x2d0] sm:$0xf]  ;;  %408 = vst [vmem:[#allocation2 + $0x29c] sm:$0xf] %v407_v34  ;;  %410 = vst [vmem:[#allocation2 + $0x2a0] sm:$0xf] %v409_v35 }
  0x71   :  { %412 = vst [vmem:[#allocation2 + $0x2a4] sm:$0xf] %v411_v36  ;;  %v413_v37 = vld [vmem:[%s14690_s12 + $0x294] sm:$0xf]  ;;  %v417_v39 = vld [vmem:[%s14690_s12 + $0x298] sm:$0xf] }
  0x72   :  { %v415_v38 = vld [vmem:[%s14690_s12 + $0x2d4] sm:$0xf]  ;;  %414 = vst [vmem:[#allocation2 + $0x2a8] sm:$0xf] %v413_v37  ;;  %418 = vst [vmem:[#allocation2 + $0x2b0] sm:$0xf] %v417_v39 }
  0x73   :  { %416 = vst [vmem:[#allocation2 + $0x2ac] sm:$0xf] %v415_v38  ;;  %v419_v40 = vld [vmem:[%s14690_s12 + $0x2d8] sm:$0xf]  ;;  %v421_v41 = vld [vmem:[%s14690_s12 + $0x29c] sm:$0xf] }
  0x74   :  { %v423_v42 = vld [vmem:[%s14690_s12 + $0x2dc] sm:$0xf]  ;;  %420 = vst [vmem:[#allocation2 + $0x2b4] sm:$0xf] %v419_v40  ;;  %422 = vst [vmem:[#allocation2 + $0x2b8] sm:$0xf] %v421_v41 }
  0x75   :  { %424 = vst [vmem:[#allocation2 + $0x2bc] sm:$0xf] %v423_v42  ;;  %v425_v43 = vld [vmem:[%s14690_s12 + $0x2a0] sm:$0xf]  ;;  %v429_v45 = vld [vmem:[%s14690_s12 + $0x2a4] sm:$0xf] }
  0x76   :  { %v427_v44 = vld [vmem:[%s14690_s12 + $0x2e0] sm:$0xf]  ;;  %426 = vst [vmem:[#allocation2 + $0x2c0] sm:$0xf] %v425_v43  ;;  %430 = vst [vmem:[#allocation2 + $0x2c8] sm:$0xf] %v429_v45 }
  0x77   :  { %428 = vst [vmem:[#allocation2 + $0x2c4] sm:$0xf] %v427_v44  ;;  %v431_v46 = vld [vmem:[%s14690_s12 + $0x2e4] sm:$0xf]  ;;  %v433_v47 = vld [vmem:[%s14690_s12 + $0x2a8] sm:$0xf] }
  0x78   :  { %v435_v48 = vld [vmem:[%s14690_s12 + $0x2e8] sm:$0xf]  ;;  %432 = vst [vmem:[#allocation2 + $0x2cc] sm:$0xf] %v431_v46  ;;  %434 = vst [vmem:[#allocation2 + $0x2d0] sm:$0xf] %v433_v47 }
  0x79   :  { %436 = vst [vmem:[#allocation2 + $0x2d4] sm:$0xf] %v435_v48  ;;  %v437_v49 = vld [vmem:[%s14690_s12 + $0x2ac] sm:$0xf]  ;;  %v441_v51 = vld [vmem:[%s14690_s12 + $0x2b0] sm:$0xf] }
  0x7a   :  { %v439_v50 = vld [vmem:[%s14690_s12 + $0x2ec] sm:$0xf]  ;;  %438 = vst [vmem:[#allocation2 + $0x2d8] sm:$0xf] %v437_v49  ;;  %442 = vst [vmem:[#allocation2 + $0x2e0] sm:$0xf] %v441_v51 }
  0x7b   :  { %440 = vst [vmem:[#allocation2 + $0x2dc] sm:$0xf] %v439_v50  ;;  %v443_v52 = vld [vmem:[%s14690_s12 + $0x2f0] sm:$0xf]  ;;  %v445_v53 = vld [vmem:[%s14690_s12 + $0x2b4] sm:$0xf] }
  0x7c   :  { %v447_v54 = vld [vmem:[%s14690_s12 + $0x2f4] sm:$0xf]  ;;  %444 = vst [vmem:[#allocation2 + $0x2e4] sm:$0xf] %v443_v52  ;;  %446 = vst [vmem:[#allocation2 + $0x2e8] sm:$0xf] %v445_v53 }
  0x7d   :  { %448 = vst [vmem:[#allocation2 + $0x2ec] sm:$0xf] %v447_v54  ;;  %v449_v55 = vld [vmem:[%s14690_s12 + $0x2b8] sm:$0xf]  ;;  %v453_v57 = vld [vmem:[%s14690_s12 + $0x2bc] sm:$0xf] }
  0x7e   :  { %v451_v56 = vld [vmem:[%s14690_s12 + $0x2f8] sm:$0xf]  ;;  %450 = vst [vmem:[#allocation2 + $0x2f0] sm:$0xf] %v449_v55  ;;  %454 = vst [vmem:[#allocation2 + $0x2f8] sm:$0xf] %v453_v57 }
  0x7f   :  { %452 = vst [vmem:[#allocation2 + $0x2f4] sm:$0xf] %v451_v56  ;;  %v455_v58 = vld [vmem:[%s14690_s12 + $0x2fc] sm:$0xff]   ;;  %v461_v60 = vld [vmem:[%s14690_s12 + $0x304] sm:$0xf] }
  0x80   :  { %v459_v59 = vld [vmem:[%s14690_s12 + $0x340] sm:$0xf]  ;;  %456 = vst [vmem:[#allocation2 + $0x2fc] sm:$0xff] %v455_v58   ;;  %462 = vst [vmem:[#allocation2 + $0x308] sm:$0xf] %v461_v60 }
  0x81   :  { %460 = vst [vmem:[#allocation2 + $0x304] sm:$0xf] %v459_v59  ;;  %v463_v61 = vld [vmem:[%s14690_s12 + $0x344] sm:$0xf]  ;;  %v465_v62 = vld [vmem:[%s14690_s12 + $0x308] sm:$0xf] }
  0x82   :  { %v467_v63 = vld [vmem:[%s14690_s12 + $0x348] sm:$0xf]  ;;  %464 = vst [vmem:[#allocation2 + $0x30c] sm:$0xf] %v463_v61  ;;  %466 = vst [vmem:[#allocation2 + $0x310] sm:$0xf] %v465_v62 }
  0x83   :  { %468 = vst [vmem:[#allocation2 + $0x314] sm:$0xf] %v467_v63  ;;  %v469_v0 = vld [vmem:[%s14690_s12 + $0x30c] sm:$0xf]  ;;  %v473_v2 = vld [vmem:[%s14690_s12 + $0x310] sm:$0xf] }
  0x84   :  { %v471_v1 = vld [vmem:[%s14690_s12 + $0x34c] sm:$0xf]  ;;  %470 = vst [vmem:[#allocation2 + $0x318] sm:$0xf] %v469_v0  ;;  %474 = vst [vmem:[#allocation2 + $0x320] sm:$0xf] %v473_v2 }
  0x85   :  { %472 = vst [vmem:[#allocation2 + $0x31c] sm:$0xf] %v471_v1  ;;  %v475_v3 = vld [vmem:[%s14690_s12 + $0x350] sm:$0xf]  ;;  %v477_v4 = vld [vmem:[%s14690_s12 + $0x314] sm:$0xf] }
  0x86   :  { %v479_v5 = vld [vmem:[%s14690_s12 + $0x354] sm:$0xf]  ;;  %476 = vst [vmem:[#allocation2 + $0x324] sm:$0xf] %v475_v3  ;;  %478 = vst [vmem:[#allocation2 + $0x328] sm:$0xf] %v477_v4 }
  0x87   :  { %480 = vst [vmem:[#allocation2 + $0x32c] sm:$0xf] %v479_v5  ;;  %v481_v6 = vld [vmem:[%s14690_s12 + $0x318] sm:$0xf]  ;;  %v485_v8 = vld [vmem:[%s14690_s12 + $0x31c] sm:$0xf] }
  0x88   :  { %v483_v7 = vld [vmem:[%s14690_s12 + $0x358] sm:$0xf]  ;;  %482 = vst [vmem:[#allocation2 + $0x330] sm:$0xf] %v481_v6  ;;  %486 = vst [vmem:[#allocation2 + $0x338] sm:$0xf] %v485_v8 }
  0x89   :  { %484 = vst [vmem:[#allocation2 + $0x334] sm:$0xf] %v483_v7  ;;  %v487_v9 = vld [vmem:[%s14690_s12 + $0x35c] sm:$0xf]  ;;  %v489_v10 = vld [vmem:[%s14690_s12 + $0x320] sm:$0xf] }
  0x8a   :  { %v491_v11 = vld [vmem:[%s14690_s12 + $0x360] sm:$0xf]  ;;  %488 = vst [vmem:[#allocation2 + $0x33c] sm:$0xf] %v487_v9  ;;  %490 = vst [vmem:[#allocation2 + $0x340] sm:$0xf] %v489_v10 }
  0x8b   :  { %492 = vst [vmem:[#allocation2 + $0x344] sm:$0xf] %v491_v11  ;;  %v493_v12 = vld [vmem:[%s14690_s12 + $0x324] sm:$0xf]  ;;  %v497_v14 = vld [vmem:[%s14690_s12 + $0x328] sm:$0xf] }
  0x8c   :  { %v495_v13 = vld [vmem:[%s14690_s12 + $0x364] sm:$0xf]  ;;  %494 = vst [vmem:[#allocation2 + $0x348] sm:$0xf] %v493_v12  ;;  %498 = vst [vmem:[#allocation2 + $0x350] sm:$0xf] %v497_v14 }
  0x8d   :  { %496 = vst [vmem:[#allocation2 + $0x34c] sm:$0xf] %v495_v13  ;;  %v499_v15 = vld [vmem:[%s14690_s12 + $0x368] sm:$0xf]  ;;  %v501_v16 = vld [vmem:[%s14690_s12 + $0x32c] sm:$0xf] }
  0x8e   :  { %v503_v17 = vld [vmem:[%s14690_s12 + $0x36c] sm:$0xf]  ;;  %500 = vst [vmem:[#allocation2 + $0x354] sm:$0xf] %v499_v15  ;;  %502 = vst [vmem:[#allocation2 + $0x358] sm:$0xf] %v501_v16 }
  0x8f   :  { %504 = vst [vmem:[#allocation2 + $0x35c] sm:$0xf] %v503_v17  ;;  %v505_v18 = vld [vmem:[%s14690_s12 + $0x330] sm:$0xf]  ;;  %v509_v20 = vld [vmem:[%s14690_s12 + $0x334] sm:$0xf] }
  0x90   :  { %v507_v19 = vld [vmem:[%s14690_s12 + $0x370] sm:$0xf]  ;;  %506 = vst [vmem:[#allocation2 + $0x360] sm:$0xf] %v505_v18  ;;  %510 = vst [vmem:[#allocation2 + $0x368] sm:$0xf] %v509_v20 }
  0x91   :  { %508 = vst [vmem:[#allocation2 + $0x364] sm:$0xf] %v507_v19  ;;  %v511_v21 = vld [vmem:[%s14690_s12 + $0x374] sm:$0xf]  ;;  %v513_v22 = vld [vmem:[%s14690_s12 + $0x338] sm:$0xf] }
  0x92   :  { %v515_v23 = vld [vmem:[%s14690_s12 + $0x378] sm:$0xf]  ;;  %512 = vst [vmem:[#allocation2 + $0x36c] sm:$0xf] %v511_v21  ;;  %514 = vst [vmem:[#allocation2 + $0x370] sm:$0xf] %v513_v22 }
  0x93   :  { %516 = vst [vmem:[#allocation2 + $0x374] sm:$0xf] %v515_v23  ;;  %v517_v24 = vld [vmem:[%s14690_s12 + $0x33c] sm:$0xf]  ;;  %v523_v26 = vld [vmem:[%s14690_s12 + $0x3c0] sm:$0xf] }
  0x94   :  { %v519_v25 = vld [vmem:[%s14690_s12 + $0x37c] sm:$0xff]   ;;  %518 = vst [vmem:[#allocation2 + $0x378] sm:$0xf] %v517_v24  ;;  %524 = vst [vmem:[#allocation2 + $0x384] sm:$0xf] %v523_v26 }
  0x95   :  { %520 = vst [vmem:[#allocation2 + $0x37c] sm:$0xff] %v519_v25   ;;  %v525_v27 = vld [vmem:[%s14690_s12 + $0x384] sm:$0xf]  ;;  %v529_v29 = vld [vmem:[%s14690_s12 + $0x388] sm:$0xf]  ;;  %v583_v56 = vld [vmem:[%s14690_s12 + $0x3fc] sm:$0xff]  }
  0x96   :  { %v527_v28 = vld [vmem:[%s14690_s12 + $0x3c4] sm:$0xf]  ;;  %526 = vst [vmem:[#allocation2 + $0x388] sm:$0xf] %v525_v27  ;;  %530 = vst [vmem:[#allocation2 + $0x390] sm:$0xf] %v529_v29 }
  0x97   :  { %528 = vst [vmem:[#allocation2 + $0x38c] sm:$0xf] %v527_v28  ;;  %v531_v30 = vld [vmem:[%s14690_s12 + $0x3c8] sm:$0xf]  ;;  %v533_v31 = vld [vmem:[%s14690_s12 + $0x38c] sm:$0xf] }
  0x98   :  { %v535_v32 = vld [vmem:[%s14690_s12 + $0x3cc] sm:$0xf]  ;;  %532 = vst [vmem:[#allocation2 + $0x394] sm:$0xf] %v531_v30  ;;  %534 = vst [vmem:[#allocation2 + $0x398] sm:$0xf] %v533_v31 }
  0x99   :  { %536 = vst [vmem:[#allocation2 + $0x39c] sm:$0xf] %v535_v32  ;;  %v537_v33 = vld [vmem:[%s14690_s12 + $0x390] sm:$0xf]  ;;  %v541_v35 = vld [vmem:[%s14690_s12 + $0x394] sm:$0xf] }
  0x9a   :  { %v539_v34 = vld [vmem:[%s14690_s12 + $0x3d0] sm:$0xf]  ;;  %538 = vst [vmem:[#allocation2 + $0x3a0] sm:$0xf] %v537_v33  ;;  %542 = vst [vmem:[#allocation2 + $0x3a8] sm:$0xf] %v541_v35 }
  0x9b   :  { %540 = vst [vmem:[#allocation2 + $0x3a4] sm:$0xf] %v539_v34  ;;  %v543_v36 = vld [vmem:[%s14690_s12 + $0x3d4] sm:$0xf]  ;;  %v545_v37 = vld [vmem:[%s14690_s12 + $0x398] sm:$0xf] }
  0x9c   :  { %v547_v38 = vld [vmem:[%s14690_s12 + $0x3d8] sm:$0xf]  ;;  %544 = vst [vmem:[#allocation2 + $0x3ac] sm:$0xf] %v543_v36  ;;  %546 = vst [vmem:[#allocation2 + $0x3b0] sm:$0xf] %v545_v37 }
  0x9d   :  { %548 = vst [vmem:[#allocation2 + $0x3b4] sm:$0xf] %v547_v38  ;;  %v549_v39 = vld [vmem:[%s14690_s12 + $0x39c] sm:$0xf]  ;;  %v553_v41 = vld [vmem:[%s14690_s12 + $0x3a0] sm:$0xf] }
  0x9e   :  { %v551_v40 = vld [vmem:[%s14690_s12 + $0x3dc] sm:$0xf]  ;;  %550 = vst [vmem:[#allocation2 + $0x3b8] sm:$0xf] %v549_v39  ;;  %554 = vst [vmem:[#allocation2 + $0x3c0] sm:$0xf] %v553_v41 }
  0x9f   :  { %552 = vst [vmem:[#allocation2 + $0x3bc] sm:$0xf] %v551_v40  ;;  %v555_v42 = vld [vmem:[%s14690_s12 + $0x3e0] sm:$0xf]  ;;  %v557_v43 = vld [vmem:[%s14690_s12 + $0x3a4] sm:$0xf] }
  0xa0   :  { %v559_v44 = vld [vmem:[%s14690_s12 + $0x3e4] sm:$0xf]  ;;  %556 = vst [vmem:[#allocation2 + $0x3c4] sm:$0xf] %v555_v42  ;;  %558 = vst [vmem:[#allocation2 + $0x3c8] sm:$0xf] %v557_v43 }
  0xa1   :  { %560 = vst [vmem:[#allocation2 + $0x3cc] sm:$0xf] %v559_v44  ;;  %v561_v45 = vld [vmem:[%s14690_s12 + $0x3a8] sm:$0xf]  ;;  %v565_v47 = vld [vmem:[%s14690_s12 + $0x3ac] sm:$0xf] }
  0xa2   :  { %v563_v46 = vld [vmem:[%s14690_s12 + $0x3e8] sm:$0xf]  ;;  %562 = vst [vmem:[#allocation2 + $0x3d0] sm:$0xf] %v561_v45  ;;  %566 = vst [vmem:[#allocation2 + $0x3d8] sm:$0xf] %v565_v47 }
  0xa3   :  { %564 = vst [vmem:[#allocation2 + $0x3d4] sm:$0xf] %v563_v46  ;;  %v567_v48 = vld [vmem:[%s14690_s12 + $0x3ec] sm:$0xf]  ;;  %v569_v49 = vld [vmem:[%s14690_s12 + $0x3b0] sm:$0xf] }
  0xa4   :  { %v571_v50 = vld [vmem:[%s14690_s12 + $0x3f0] sm:$0xf]  ;;  %568 = vst [vmem:[#allocation2 + $0x3dc] sm:$0xf] %v567_v48  ;;  %570 = vst [vmem:[#allocation2 + $0x3e0] sm:$0xf] %v569_v49 }
  0xa5   :  { %572 = vst [vmem:[#allocation2 + $0x3e4] sm:$0xf] %v571_v50  ;;  %v573_v51 = vld [vmem:[%s14690_s12 + $0x3b4] sm:$0xf]  ;;  %v577_v53 = vld [vmem:[%s14690_s12 + $0x3b8] sm:$0xf] }
  0xa6   :  { %v575_v52 = vld [vmem:[%s14690_s12 + $0x3f4] sm:$0xf]  ;;  %574 = vst [vmem:[#allocation2 + $0x3e8] sm:$0xf] %v573_v51  ;;  %578 = vst [vmem:[#allocation2 + $0x3f0] sm:$0xf] %v577_v53 }
  0xa7   :  { %576 = vst [vmem:[#allocation2 + $0x3ec] sm:$0xf] %v575_v52  ;;  %v579_v54 = vld [vmem:[%s14690_s12 + $0x3f8] sm:$0xf]  ;;  %v581_v55 = vld [vmem:[%s14690_s12 + $0x3bc] sm:$0xf] }
  0xa8   :  { %580 = vst [vmem:[#allocation2 + $0x3f4] sm:$0xf] %v579_v54  ;;  %582 = vst [vmem:[#allocation2 + $0x3f8] sm:$0xf] %v581_v55  ;;  %v587_v57 = vld [vmem:[%s14690_s12 + $0x440] sm:$0xf] }
  0xa9   :  { %584 = vst [vmem:[#allocation2 + $0x3fc] sm:$0xff] %v583_v56   ;;  %v589_v58 = vld [vmem:[%s14690_s12 + $0x404] sm:$0xf]  ;;  %588 = vst [vmem:[#allocation2 + $0x404] sm:$0xf] %v587_v57  ;;  %v647_v23 = vld [vmem:[%s14690_s12 + $0x47c] sm:$0xff]  }
  0xaa   :  { %v591_v59 = vld [vmem:[%s14690_s12 + $0x444] sm:$0xf]  ;;  %590 = vst [vmem:[#allocation2 + $0x408] sm:$0xf] %v589_v58  ;;  %v593_v60 = vld [vmem:[%s14690_s12 + $0x408] sm:$0xf] }
  0xab   :  { %592 = vst [vmem:[#allocation2 + $0x40c] sm:$0xf] %v591_v59  ;;  %v595_v61 = vld [vmem:[%s14690_s12 + $0x448] sm:$0xf]  ;;  %v597_v62 = vld [vmem:[%s14690_s12 + $0x40c] sm:$0xf] }
  0xac   :  { %594 = vst [vmem:[#allocation2 + $0x410] sm:$0xf] %v593_v60  ;;  %596 = vst [vmem:[#allocation2 + $0x414] sm:$0xf] %v595_v61  ;;  %v599_v63 = vld [vmem:[%s14690_s12 + $0x44c] sm:$0xf] }
  0xad   :  { %598 = vst [vmem:[#allocation2 + $0x418] sm:$0xf] %v597_v62  ;;  %v601_v0 = vld [vmem:[%s14690_s12 + $0x410] sm:$0xf]  ;;  %600 = vst [vmem:[#allocation2 + $0x41c] sm:$0xf] %v599_v63 }
  0xae   :  { %v603_v1 = vld [vmem:[%s14690_s12 + $0x450] sm:$0xf]  ;;  %602 = vst [vmem:[#allocation2 + $0x420] sm:$0xf] %v601_v0  ;;  %v605_v2 = vld [vmem:[%s14690_s12 + $0x414] sm:$0xf] }
  0xaf   :  { %604 = vst [vmem:[#allocation2 + $0x424] sm:$0xf] %v603_v1  ;;  %v607_v3 = vld [vmem:[%s14690_s12 + $0x454] sm:$0xf]  ;;  %v609_v4 = vld [vmem:[%s14690_s12 + $0x418] sm:$0xf] }
  0xb0   :  { %606 = vst [vmem:[#allocation2 + $0x428] sm:$0xf] %v605_v2  ;;  %608 = vst [vmem:[#allocation2 + $0x42c] sm:$0xf] %v607_v3  ;;  %v611_v5 = vld [vmem:[%s14690_s12 + $0x458] sm:$0xf] }
  0xb1   :  { %610 = vst [vmem:[#allocation2 + $0x430] sm:$0xf] %v609_v4  ;;  %v613_v6 = vld [vmem:[%s14690_s12 + $0x41c] sm:$0xf]  ;;  %612 = vst [vmem:[#allocation2 + $0x434] sm:$0xf] %v611_v5 }
  0xb2   :  { %v615_v7 = vld [vmem:[%s14690_s12 + $0x45c] sm:$0xf]  ;;  %614 = vst [vmem:[#allocation2 + $0x438] sm:$0xf] %v613_v6  ;;  %v617_v8 = vld [vmem:[%s14690_s12 + $0x420] sm:$0xf] }
  0xb3   :  { %616 = vst [vmem:[#allocation2 + $0x43c] sm:$0xf] %v615_v7  ;;  %v619_v9 = vld [vmem:[%s14690_s12 + $0x460] sm:$0xf]  ;;  %v621_v10 = vld [vmem:[%s14690_s12 + $0x424] sm:$0xf] }
  0xb4   :  { %618 = vst [vmem:[#allocation2 + $0x440] sm:$0xf] %v617_v8  ;;  %620 = vst [vmem:[#allocation2 + $0x444] sm:$0xf] %v619_v9  ;;  %v623_v11 = vld [vmem:[%s14690_s12 + $0x464] sm:$0xf] }
  0xb5   :  { %622 = vst [vmem:[#allocation2 + $0x448] sm:$0xf] %v621_v10  ;;  %v625_v12 = vld [vmem:[%s14690_s12 + $0x428] sm:$0xf]  ;;  %624 = vst [vmem:[#allocation2 + $0x44c] sm:$0xf] %v623_v11 }
  0xb6   :  { %v627_v13 = vld [vmem:[%s14690_s12 + $0x468] sm:$0xf]  ;;  %626 = vst [vmem:[#allocation2 + $0x450] sm:$0xf] %v625_v12  ;;  %v629_v14 = vld [vmem:[%s14690_s12 + $0x42c] sm:$0xf] }
  0xb7   :  { %628 = vst [vmem:[#allocation2 + $0x454] sm:$0xf] %v627_v13  ;;  %v631_v15 = vld [vmem:[%s14690_s12 + $0x46c] sm:$0xf]  ;;  %v633_v16 = vld [vmem:[%s14690_s12 + $0x430] sm:$0xf] }
  0xb8   :  { %630 = vst [vmem:[#allocation2 + $0x458] sm:$0xf] %v629_v14  ;;  %632 = vst [vmem:[#allocation2 + $0x45c] sm:$0xf] %v631_v15  ;;  %v635_v17 = vld [vmem:[%s14690_s12 + $0x470] sm:$0xf] }
  0xb9   :  { %634 = vst [vmem:[#allocation2 + $0x460] sm:$0xf] %v633_v16  ;;  %v637_v18 = vld [vmem:[%s14690_s12 + $0x434] sm:$0xf]  ;;  %636 = vst [vmem:[#allocation2 + $0x464] sm:$0xf] %v635_v17 }
  0xba   :  { %v639_v19 = vld [vmem:[%s14690_s12 + $0x474] sm:$0xf]  ;;  %638 = vst [vmem:[#allocation2 + $0x468] sm:$0xf] %v637_v18  ;;  %v641_v20 = vld [vmem:[%s14690_s12 + $0x438] sm:$0xf] }
  0xbb   :  { %640 = vst [vmem:[#allocation2 + $0x46c] sm:$0xf] %v639_v19  ;;  %v643_v21 = vld [vmem:[%s14690_s12 + $0x478] sm:$0xf]  ;;  %v645_v22 = vld [vmem:[%s14690_s12 + $0x43c] sm:$0xf] }
  0xbc   :  { %642 = vst [vmem:[#allocation2 + $0x470] sm:$0xf] %v641_v20  ;;  %644 = vst [vmem:[#allocation2 + $0x474] sm:$0xf] %v643_v21  ;;  %v651_v24 = vld [vmem:[%s14690_s12 + $0x4c0] sm:$0xf] }
  0xbd   :  { %646 = vst [vmem:[#allocation2 + $0x478] sm:$0xf] %v645_v22  ;;  %v653_v25 = vld [vmem:[%s14690_s12 + $0x484] sm:$0xf]  ;;  %648 = vst [vmem:[#allocation2 + $0x47c] sm:$0xff] %v647_v23   ;;  %v711_v54 = vld [vmem:[%s14690_s12 + $0x4fc] sm:$0xff]  }
  0xbe   :  { %652 = vst [vmem:[#allocation2 + $0x484] sm:$0xf] %v651_v24  ;;  %654 = vst [vmem:[#allocation2 + $0x488] sm:$0xf] %v653_v25  ;;  %v655_v26 = vld [vmem:[%s14690_s12 + $0x4c4] sm:$0xf] }
  0xbf   :  { %v657_v27 = vld [vmem:[%s14690_s12 + $0x488] sm:$0xf]  ;;  %656 = vst [vmem:[#allocation2 + $0x48c] sm:$0xf] %v655_v26  ;;  %v661_v29 = vld [vmem:[%s14690_s12 + $0x48c] sm:$0xf] }
  0xc0   :  { %v659_v28 = vld [vmem:[%s14690_s12 + $0x4c8] sm:$0xf]  ;;  %658 = vst [vmem:[#allocation2 + $0x490] sm:$0xf] %v657_v27  ;;  %v663_v30 = vld [vmem:[%s14690_s12 + $0x4cc] sm:$0xf] }
  0xc1   :  { %660 = vst [vmem:[#allocation2 + $0x494] sm:$0xf] %v659_v28  ;;  %v665_v31 = vld [vmem:[%s14690_s12 + $0x490] sm:$0xf]  ;;  %662 = vst [vmem:[#allocation2 + $0x498] sm:$0xf] %v661_v29 }
  0xc2   :  { %664 = vst [vmem:[#allocation2 + $0x49c] sm:$0xf] %v663_v30  ;;  %666 = vst [vmem:[#allocation2 + $0x4a0] sm:$0xf] %v665_v31  ;;  %v667_v32 = vld [vmem:[%s14690_s12 + $0x4d0] sm:$0xf] }
  0xc3   :  { %v669_v33 = vld [vmem:[%s14690_s12 + $0x494] sm:$0xf]  ;;  %668 = vst [vmem:[#allocation2 + $0x4a4] sm:$0xf] %v667_v32  ;;  %v673_v35 = vld [vmem:[%s14690_s12 + $0x498] sm:$0xf] }
  0xc4   :  { %v671_v34 = vld [vmem:[%s14690_s12 + $0x4d4] sm:$0xf]  ;;  %670 = vst [vmem:[#allocation2 + $0x4a8] sm:$0xf] %v669_v33  ;;  %v675_v36 = vld [vmem:[%s14690_s12 + $0x4d8] sm:$0xf] }
  0xc5   :  { %672 = vst [vmem:[#allocation2 + $0x4ac] sm:$0xf] %v671_v34  ;;  %v677_v37 = vld [vmem:[%s14690_s12 + $0x49c] sm:$0xf]  ;;  %674 = vst [vmem:[#allocation2 + $0x4b0] sm:$0xf] %v673_v35 }
  0xc6   :  { %676 = vst [vmem:[#allocation2 + $0x4b4] sm:$0xf] %v675_v36  ;;  %678 = vst [vmem:[#allocation2 + $0x4b8] sm:$0xf] %v677_v37  ;;  %v679_v38 = vld [vmem:[%s14690_s12 + $0x4dc] sm:$0xf] }
  0xc7   :  { %v681_v39 = vld [vmem:[%s14690_s12 + $0x4a0] sm:$0xf]  ;;  %680 = vst [vmem:[#allocation2 + $0x4bc] sm:$0xf] %v679_v38  ;;  %v685_v41 = vld [vmem:[%s14690_s12 + $0x4a4] sm:$0xf] }
  0xc8   :  { %v683_v40 = vld [vmem:[%s14690_s12 + $0x4e0] sm:$0xf]  ;;  %682 = vst [vmem:[#allocation2 + $0x4c0] sm:$0xf] %v681_v39  ;;  %v687_v42 = vld [vmem:[%s14690_s12 + $0x4e4] sm:$0xf] }
  0xc9   :  { %684 = vst [vmem:[#allocation2 + $0x4c4] sm:$0xf] %v683_v40  ;;  %v689_v43 = vld [vmem:[%s14690_s12 + $0x4a8] sm:$0xf]  ;;  %686 = vst [vmem:[#allocation2 + $0x4c8] sm:$0xf] %v685_v41 }
  0xca   :  { %688 = vst [vmem:[#allocation2 + $0x4cc] sm:$0xf] %v687_v42  ;;  %690 = vst [vmem:[#allocation2 + $0x4d0] sm:$0xf] %v689_v43  ;;  %v691_v44 = vld [vmem:[%s14690_s12 + $0x4e8] sm:$0xf] }
  0xcb   :  { %v693_v45 = vld [vmem:[%s14690_s12 + $0x4ac] sm:$0xf]  ;;  %692 = vst [vmem:[#allocation2 + $0x4d4] sm:$0xf] %v691_v44  ;;  %v697_v47 = vld [vmem:[%s14690_s12 + $0x4b0] sm:$0xf] }
  0xcc   :  { %v695_v46 = vld [vmem:[%s14690_s12 + $0x4ec] sm:$0xf]  ;;  %694 = vst [vmem:[#allocation2 + $0x4d8] sm:$0xf] %v693_v45  ;;  %v699_v48 = vld [vmem:[%s14690_s12 + $0x4f0] sm:$0xf] }
  0xcd   :  { %696 = vst [vmem:[#allocation2 + $0x4dc] sm:$0xf] %v695_v46  ;;  %v701_v49 = vld [vmem:[%s14690_s12 + $0x4b4] sm:$0xf]  ;;  %698 = vst [vmem:[#allocation2 + $0x4e0] sm:$0xf] %v697_v47 }
  0xce   :  { %700 = vst [vmem:[#allocation2 + $0x4e4] sm:$0xf] %v699_v48  ;;  %702 = vst [vmem:[#allocation2 + $0x4e8] sm:$0xf] %v701_v49  ;;  %v703_v50 = vld [vmem:[%s14690_s12 + $0x4f4] sm:$0xf] }
  0xcf   :  { %v705_v51 = vld [vmem:[%s14690_s12 + $0x4b8] sm:$0xf]  ;;  %704 = vst [vmem:[#allocation2 + $0x4ec] sm:$0xf] %v703_v50  ;;  %v709_v53 = vld [vmem:[%s14690_s12 + $0x4bc] sm:$0xf] }
  0xd0   :  { %v707_v52 = vld [vmem:[%s14690_s12 + $0x4f8] sm:$0xf]  ;;  %706 = vst [vmem:[#allocation2 + $0x4f0] sm:$0xf] %v705_v51  ;;  %v715_v55 = vld [vmem:[%s14690_s12 + $0x540] sm:$0xf] }
  0xd1   :  { %708 = vst [vmem:[#allocation2 + $0x4f4] sm:$0xf] %v707_v52  ;;  %710 = vst [vmem:[#allocation2 + $0x4f8] sm:$0xf] %v709_v53  ;;  %v717_v56 = vld [vmem:[%s14690_s12 + $0x504] sm:$0xf] }
  0xd2   :  { %712 = vst [vmem:[#allocation2 + $0x4fc] sm:$0xff] %v711_v54   ;;  %716 = vst [vmem:[#allocation2 + $0x504] sm:$0xf] %v715_v55  ;;  %v719_v57 = vld [vmem:[%s14690_s12 + $0x544] sm:$0xf]  ;;  %v775_v21 = vld [vmem:[%s14690_s12 + $0x57c] sm:$0xff]  }
  0xd3   :  { %v721_v58 = vld [vmem:[%s14690_s12 + $0x508] sm:$0xf]  ;;  %718 = vst [vmem:[#allocation2 + $0x508] sm:$0xf] %v717_v56  ;;  %720 = vst [vmem:[#allocation2 + $0x50c] sm:$0xf] %v719_v57 }
  0xd4   :  { %722 = vst [vmem:[#allocation2 + $0x510] sm:$0xf] %v721_v58  ;;  %v723_v59 = vld [vmem:[%s14690_s12 + $0x548] sm:$0xf]  ;;  %v725_v60 = vld [vmem:[%s14690_s12 + $0x50c] sm:$0xf] }
  0xd5   :  { %v727_v61 = vld [vmem:[%s14690_s12 + $0x54c] sm:$0xf]  ;;  %724 = vst [vmem:[#allocation2 + $0x514] sm:$0xf] %v723_v59  ;;  %726 = vst [vmem:[#allocation2 + $0x518] sm:$0xf] %v725_v60 }
  0xd6   :  { %728 = vst [vmem:[#allocation2 + $0x51c] sm:$0xf] %v727_v61  ;;  %v729_v62 = vld [vmem:[%s14690_s12 + $0x510] sm:$0xf]  ;;  %v733_v0 = vld [vmem:[%s14690_s12 + $0x514] sm:$0xf] }
  0xd7   :  { %v731_v63 = vld [vmem:[%s14690_s12 + $0x550] sm:$0xf]  ;;  %730 = vst [vmem:[#allocation2 + $0x520] sm:$0xf] %v729_v62  ;;  %734 = vst [vmem:[#allocation2 + $0x528] sm:$0xf] %v733_v0 }
  0xd8   :  { %732 = vst [vmem:[#allocation2 + $0x524] sm:$0xf] %v731_v63  ;;  %v735_v1 = vld [vmem:[%s14690_s12 + $0x554] sm:$0xf]  ;;  %v737_v2 = vld [vmem:[%s14690_s12 + $0x518] sm:$0xf] }
  0xd9   :  { %v739_v3 = vld [vmem:[%s14690_s12 + $0x558] sm:$0xf]  ;;  %736 = vst [vmem:[#allocation2 + $0x52c] sm:$0xf] %v735_v1  ;;  %738 = vst [vmem:[#allocation2 + $0x530] sm:$0xf] %v737_v2 }
  0xda   :  { %740 = vst [vmem:[#allocation2 + $0x534] sm:$0xf] %v739_v3  ;;  %v741_v4 = vld [vmem:[%s14690_s12 + $0x51c] sm:$0xf]  ;;  %v745_v6 = vld [vmem:[%s14690_s12 + $0x520] sm:$0xf] }
  0xdb   :  { %v743_v5 = vld [vmem:[%s14690_s12 + $0x55c] sm:$0xf]  ;;  %742 = vst [vmem:[#allocation2 + $0x538] sm:$0xf] %v741_v4  ;;  %746 = vst [vmem:[#allocation2 + $0x540] sm:$0xf] %v745_v6 }
  0xdc   :  { %744 = vst [vmem:[#allocation2 + $0x53c] sm:$0xf] %v743_v5  ;;  %v747_v7 = vld [vmem:[%s14690_s12 + $0x560] sm:$0xf]  ;;  %v749_v8 = vld [vmem:[%s14690_s12 + $0x524] sm:$0xf] }
  0xdd   :  { %v751_v9 = vld [vmem:[%s14690_s12 + $0x564] sm:$0xf]  ;;  %748 = vst [vmem:[#allocation2 + $0x544] sm:$0xf] %v747_v7  ;;  %750 = vst [vmem:[#allocation2 + $0x548] sm:$0xf] %v749_v8 }
  0xde   :  { %752 = vst [vmem:[#allocation2 + $0x54c] sm:$0xf] %v751_v9  ;;  %v753_v10 = vld [vmem:[%s14690_s12 + $0x528] sm:$0xf]  ;;  %v757_v12 = vld [vmem:[%s14690_s12 + $0x52c] sm:$0xf] }
  0xdf   :  { %v755_v11 = vld [vmem:[%s14690_s12 + $0x568] sm:$0xf]  ;;  %754 = vst [vmem:[#allocation2 + $0x550] sm:$0xf] %v753_v10  ;;  %758 = vst [vmem:[#allocation2 + $0x558] sm:$0xf] %v757_v12 }
  0xe0   :  { %756 = vst [vmem:[#allocation2 + $0x554] sm:$0xf] %v755_v11  ;;  %v759_v13 = vld [vmem:[%s14690_s12 + $0x56c] sm:$0xf]  ;;  %v761_v14 = vld [vmem:[%s14690_s12 + $0x530] sm:$0xf] }
  0xe1   :  { %v763_v15 = vld [vmem:[%s14690_s12 + $0x570] sm:$0xf]  ;;  %760 = vst [vmem:[#allocation2 + $0x55c] sm:$0xf] %v759_v13  ;;  %762 = vst [vmem:[#allocation2 + $0x560] sm:$0xf] %v761_v14 }
  0xe2   :  { %764 = vst [vmem:[#allocation2 + $0x564] sm:$0xf] %v763_v15  ;;  %v765_v16 = vld [vmem:[%s14690_s12 + $0x534] sm:$0xf]  ;;  %v769_v18 = vld [vmem:[%s14690_s12 + $0x538] sm:$0xf] }
  0xe3   :  { %v767_v17 = vld [vmem:[%s14690_s12 + $0x574] sm:$0xf]  ;;  %766 = vst [vmem:[#allocation2 + $0x568] sm:$0xf] %v765_v16  ;;  %770 = vst [vmem:[#allocation2 + $0x570] sm:$0xf] %v769_v18 }
  0xe4   :  { %768 = vst [vmem:[#allocation2 + $0x56c] sm:$0xf] %v767_v17  ;;  %v771_v19 = vld [vmem:[%s14690_s12 + $0x578] sm:$0xf]  ;;  %v773_v20 = vld [vmem:[%s14690_s12 + $0x53c] sm:$0xf] }
  0xe5   :  { %772 = vst [vmem:[#allocation2 + $0x574] sm:$0xf] %v771_v19  ;;  %774 = vst [vmem:[#allocation2 + $0x578] sm:$0xf] %v773_v20  ;;  %v779_v22 = vld [vmem:[%s14690_s12 + $0x5c0] sm:$0xf] }
  0xe6   :  { %776 = vst [vmem:[#allocation2 + $0x57c] sm:$0xff] %v775_v21   ;;  %v781_v23 = vld [vmem:[%s14690_s12 + $0x584] sm:$0xf]  ;;  %780 = vst [vmem:[#allocation2 + $0x584] sm:$0xf] %v779_v22  ;;  %v839_v52 = vld [vmem:[%s14690_s12 + $0x5fc] sm:$0xff]  }
  0xe7   :  { %v783_v24 = vld [vmem:[%s14690_s12 + $0x5c4] sm:$0xf]  ;;  %782 = vst [vmem:[#allocation2 + $0x588] sm:$0xf] %v781_v23  ;;  %v785_v25 = vld [vmem:[%s14690_s12 + $0x588] sm:$0xf] }
  0xe8   :  { %784 = vst [vmem:[#allocation2 + $0x58c] sm:$0xf] %v783_v24  ;;  %v787_v26 = vld [vmem:[%s14690_s12 + $0x5c8] sm:$0xf]  ;;  %v789_v27 = vld [vmem:[%s14690_s12 + $0x58c] sm:$0xf] }
  0xe9   :  { %786 = vst [vmem:[#allocation2 + $0x590] sm:$0xf] %v785_v25  ;;  %788 = vst [vmem:[#allocation2 + $0x594] sm:$0xf] %v787_v26  ;;  %v791_v28 = vld [vmem:[%s14690_s12 + $0x5cc] sm:$0xf] }
  0xea   :  { %790 = vst [vmem:[#allocation2 + $0x598] sm:$0xf] %v789_v27  ;;  %v793_v29 = vld [vmem:[%s14690_s12 + $0x590] sm:$0xf]  ;;  %792 = vst [vmem:[#allocation2 + $0x59c] sm:$0xf] %v791_v28 }
  0xeb   :  { %v795_v30 = vld [vmem:[%s14690_s12 + $0x5d0] sm:$0xf]  ;;  %794 = vst [vmem:[#allocation2 + $0x5a0] sm:$0xf] %v793_v29  ;;  %v797_v31 = vld [vmem:[%s14690_s12 + $0x594] sm:$0xf] }
  0xec   :  { %796 = vst [vmem:[#allocation2 + $0x5a4] sm:$0xf] %v795_v30  ;;  %v799_v32 = vld [vmem:[%s14690_s12 + $0x5d4] sm:$0xf]  ;;  %v801_v33 = vld [vmem:[%s14690_s12 + $0x598] sm:$0xf] }
  0xed   :  { %798 = vst [vmem:[#allocation2 + $0x5a8] sm:$0xf] %v797_v31  ;;  %800 = vst [vmem:[#allocation2 + $0x5ac] sm:$0xf] %v799_v32  ;;  %v803_v34 = vld [vmem:[%s14690_s12 + $0x5d8] sm:$0xf] }
  0xee   :  { %802 = vst [vmem:[#allocation2 + $0x5b0] sm:$0xf] %v801_v33  ;;  %v805_v35 = vld [vmem:[%s14690_s12 + $0x59c] sm:$0xf]  ;;  %804 = vst [vmem:[#allocation2 + $0x5b4] sm:$0xf] %v803_v34 }
  0xef   :  { %v807_v36 = vld [vmem:[%s14690_s12 + $0x5dc] sm:$0xf]  ;;  %806 = vst [vmem:[#allocation2 + $0x5b8] sm:$0xf] %v805_v35  ;;  %v809_v37 = vld [vmem:[%s14690_s12 + $0x5a0] sm:$0xf] }
  0xf0   :  { %808 = vst [vmem:[#allocation2 + $0x5bc] sm:$0xf] %v807_v36  ;;  %v811_v38 = vld [vmem:[%s14690_s12 + $0x5e0] sm:$0xf]  ;;  %v813_v39 = vld [vmem:[%s14690_s12 + $0x5a4] sm:$0xf] }
  0xf1   :  { %810 = vst [vmem:[#allocation2 + $0x5c0] sm:$0xf] %v809_v37  ;;  %812 = vst [vmem:[#allocation2 + $0x5c4] sm:$0xf] %v811_v38  ;;  %v815_v40 = vld [vmem:[%s14690_s12 + $0x5e4] sm:$0xf] }
  0xf2   :  { %814 = vst [vmem:[#allocation2 + $0x5c8] sm:$0xf] %v813_v39  ;;  %v817_v41 = vld [vmem:[%s14690_s12 + $0x5a8] sm:$0xf]  ;;  %816 = vst [vmem:[#allocation2 + $0x5cc] sm:$0xf] %v815_v40 }
  0xf3   :  { %v819_v42 = vld [vmem:[%s14690_s12 + $0x5e8] sm:$0xf]  ;;  %818 = vst [vmem:[#allocation2 + $0x5d0] sm:$0xf] %v817_v41  ;;  %v821_v43 = vld [vmem:[%s14690_s12 + $0x5ac] sm:$0xf] }
  0xf4   :  { %820 = vst [vmem:[#allocation2 + $0x5d4] sm:$0xf] %v819_v42  ;;  %v823_v44 = vld [vmem:[%s14690_s12 + $0x5ec] sm:$0xf]  ;;  %v825_v45 = vld [vmem:[%s14690_s12 + $0x5b0] sm:$0xf] }
  0xf5   :  { %822 = vst [vmem:[#allocation2 + $0x5d8] sm:$0xf] %v821_v43  ;;  %824 = vst [vmem:[#allocation2 + $0x5dc] sm:$0xf] %v823_v44  ;;  %v827_v46 = vld [vmem:[%s14690_s12 + $0x5f0] sm:$0xf] }
  0xf6   :  { %826 = vst [vmem:[#allocation2 + $0x5e0] sm:$0xf] %v825_v45  ;;  %v829_v47 = vld [vmem:[%s14690_s12 + $0x5b4] sm:$0xf]  ;;  %828 = vst [vmem:[#allocation2 + $0x5e4] sm:$0xf] %v827_v46 }
  0xf7   :  { %v831_v48 = vld [vmem:[%s14690_s12 + $0x5f4] sm:$0xf]  ;;  %830 = vst [vmem:[#allocation2 + $0x5e8] sm:$0xf] %v829_v47  ;;  %v833_v49 = vld [vmem:[%s14690_s12 + $0x5b8] sm:$0xf] }
  0xf8   :  { %832 = vst [vmem:[#allocation2 + $0x5ec] sm:$0xf] %v831_v48  ;;  %v835_v50 = vld [vmem:[%s14690_s12 + $0x5f8] sm:$0xf]  ;;  %v837_v51 = vld [vmem:[%s14690_s12 + $0x5bc] sm:$0xf] }
  0xf9   :  { %834 = vst [vmem:[#allocation2 + $0x5f0] sm:$0xf] %v833_v49  ;;  %836 = vst [vmem:[#allocation2 + $0x5f4] sm:$0xf] %v835_v50  ;;  %v843_v53 = vld [vmem:[%s14690_s12 + $0x640] sm:$0xf] }
  0xfa   :  { %838 = vst [vmem:[#allocation2 + $0x5f8] sm:$0xf] %v837_v51  ;;  %v845_v54 = vld [vmem:[%s14690_s12 + $0x604] sm:$0xf]  ;;  %840 = vst [vmem:[#allocation2 + $0x5fc] sm:$0xff] %v839_v52   ;;  %v903_v19 = vld [vmem:[%s14690_s12 + $0x67c] sm:$0xff]  }
  0xfb   :  { %844 = vst [vmem:[#allocation2 + $0x604] sm:$0xf] %v843_v53  ;;  %846 = vst [vmem:[#allocation2 + $0x608] sm:$0xf] %v845_v54  ;;  %v847_v55 = vld [vmem:[%s14690_s12 + $0x644] sm:$0xf] }
  0xfc   :  { %v849_v56 = vld [vmem:[%s14690_s12 + $0x608] sm:$0xf]  ;;  %848 = vst [vmem:[#allocation2 + $0x60c] sm:$0xf] %v847_v55  ;;  %v853_v58 = vld [vmem:[%s14690_s12 + $0x60c] sm:$0xf] }
  0xfd   :  { %v851_v57 = vld [vmem:[%s14690_s12 + $0x648] sm:$0xf]  ;;  %850 = vst [vmem:[#allocation2 + $0x610] sm:$0xf] %v849_v56  ;;  %v855_v59 = vld [vmem:[%s14690_s12 + $0x64c] sm:$0xf] }
  0xfe   :  { %852 = vst [vmem:[#allocation2 + $0x614] sm:$0xf] %v851_v57  ;;  %v857_v60 = vld [vmem:[%s14690_s12 + $0x610] sm:$0xf]  ;;  %854 = vst [vmem:[#allocation2 + $0x618] sm:$0xf] %v853_v58 }
  0xff   :  { %856 = vst [vmem:[#allocation2 + $0x61c] sm:$0xf] %v855_v59  ;;  %858 = vst [vmem:[#allocation2 + $0x620] sm:$0xf] %v857_v60  ;;  %v859_v61 = vld [vmem:[%s14690_s12 + $0x650] sm:$0xf] }
 0x100   :  { %v861_v62 = vld [vmem:[%s14690_s12 + $0x614] sm:$0xf]  ;;  %860 = vst [vmem:[#allocation2 + $0x624] sm:$0xf] %v859_v61  ;;  %v865_v0 = vld [vmem:[%s14690_s12 + $0x618] sm:$0xf] }
 0x101   :  { %v863_v63 = vld [vmem:[%s14690_s12 + $0x654] sm:$0xf]  ;;  %862 = vst [vmem:[#allocation2 + $0x628] sm:$0xf] %v861_v62  ;;  %v867_v1 = vld [vmem:[%s14690_s12 + $0x658] sm:$0xf] }
 0x102   :  { %864 = vst [vmem:[#allocation2 + $0x62c] sm:$0xf] %v863_v63  ;;  %v869_v2 = vld [vmem:[%s14690_s12 + $0x61c] sm:$0xf]  ;;  %866 = vst [vmem:[#allocation2 + $0x630] sm:$0xf] %v865_v0 }
 0x103   :  { %868 = vst [vmem:[#allocation2 + $0x634] sm:$0xf] %v867_v1  ;;  %870 = vst [vmem:[#allocation2 + $0x638] sm:$0xf] %v869_v2  ;;  %v871_v3 = vld [vmem:[%s14690_s12 + $0x65c] sm:$0xf] }
 0x104   :  { %v873_v4 = vld [vmem:[%s14690_s12 + $0x620] sm:$0xf]  ;;  %872 = vst [vmem:[#allocation2 + $0x63c] sm:$0xf] %v871_v3  ;;  %v877_v6 = vld [vmem:[%s14690_s12 + $0x624] sm:$0xf] }
 0x105   :  { %v875_v5 = vld [vmem:[%s14690_s12 + $0x660] sm:$0xf]  ;;  %874 = vst [vmem:[#allocation2 + $0x640] sm:$0xf] %v873_v4  ;;  %v879_v7 = vld [vmem:[%s14690_s12 + $0x664] sm:$0xf] }
 0x106   :  { %876 = vst [vmem:[#allocation2 + $0x644] sm:$0xf] %v875_v5  ;;  %v881_v8 = vld [vmem:[%s14690_s12 + $0x628] sm:$0xf]  ;;  %878 = vst [vmem:[#allocation2 + $0x648] sm:$0xf] %v877_v6 }
 0x107   :  { %880 = vst [vmem:[#allocation2 + $0x64c] sm:$0xf] %v879_v7  ;;  %882 = vst [vmem:[#allocation2 + $0x650] sm:$0xf] %v881_v8  ;;  %v883_v9 = vld [vmem:[%s14690_s12 + $0x668] sm:$0xf] }
 0x108   :  { %v885_v10 = vld [vmem:[%s14690_s12 + $0x62c] sm:$0xf]  ;;  %884 = vst [vmem:[#allocation2 + $0x654] sm:$0xf] %v883_v9  ;;  %v889_v12 = vld [vmem:[%s14690_s12 + $0x630] sm:$0xf] }
 0x109   :  { %v887_v11 = vld [vmem:[%s14690_s12 + $0x66c] sm:$0xf]  ;;  %886 = vst [vmem:[#allocation2 + $0x658] sm:$0xf] %v885_v10  ;;  %v891_v13 = vld [vmem:[%s14690_s12 + $0x670] sm:$0xf] }
 0x10a   :  { %888 = vst [vmem:[#allocation2 + $0x65c] sm:$0xf] %v887_v11  ;;  %v893_v14 = vld [vmem:[%s14690_s12 + $0x634] sm:$0xf]  ;;  %890 = vst [vmem:[#allocation2 + $0x660] sm:$0xf] %v889_v12 }
 0x10b   :  { %892 = vst [vmem:[#allocation2 + $0x664] sm:$0xf] %v891_v13  ;;  %894 = vst [vmem:[#allocation2 + $0x668] sm:$0xf] %v893_v14  ;;  %v895_v15 = vld [vmem:[%s14690_s12 + $0x674] sm:$0xf] }
 0x10c   :  { %v897_v16 = vld [vmem:[%s14690_s12 + $0x638] sm:$0xf]  ;;  %896 = vst [vmem:[#allocation2 + $0x66c] sm:$0xf] %v895_v15  ;;  %v901_v18 = vld [vmem:[%s14690_s12 + $0x63c] sm:$0xf] }
 0x10d   :  { %v899_v17 = vld [vmem:[%s14690_s12 + $0x678] sm:$0xf]  ;;  %898 = vst [vmem:[#allocation2 + $0x670] sm:$0xf] %v897_v16  ;;  %v907_v20 = vld [vmem:[%s14690_s12 + $0x6c0] sm:$0xf] }
 0x10e   :  { %900 = vst [vmem:[#allocation2 + $0x674] sm:$0xf] %v899_v17  ;;  %902 = vst [vmem:[#allocation2 + $0x678] sm:$0xf] %v901_v18  ;;  %v909_v21 = vld [vmem:[%s14690_s12 + $0x684] sm:$0xf] }
 0x10f   :  { %904 = vst [vmem:[#allocation2 + $0x67c] sm:$0xff] %v903_v19   ;;  %908 = vst [vmem:[#allocation2 + $0x684] sm:$0xf] %v907_v20  ;;  %v911_v22 = vld [vmem:[%s14690_s12 + $0x6c4] sm:$0xf]  ;;  %v967_v50 = vld [vmem:[%s14690_s12 + $0x6fc] sm:$0xff]  }
 0x110   :  { %v913_v23 = vld [vmem:[%s14690_s12 + $0x688] sm:$0xf]  ;;  %910 = vst [vmem:[#allocation2 + $0x688] sm:$0xf] %v909_v21  ;;  %912 = vst [vmem:[#allocation2 + $0x68c] sm:$0xf] %v911_v22 }
 0x111   :  { %914 = vst [vmem:[#allocation2 + $0x690] sm:$0xf] %v913_v23  ;;  %v915_v24 = vld [vmem:[%s14690_s12 + $0x6c8] sm:$0xf]  ;;  %v917_v25 = vld [vmem:[%s14690_s12 + $0x68c] sm:$0xf] }
 0x112   :  { %v919_v26 = vld [vmem:[%s14690_s12 + $0x6cc] sm:$0xf]  ;;  %916 = vst [vmem:[#allocation2 + $0x694] sm:$0xf] %v915_v24  ;;  %918 = vst [vmem:[#allocation2 + $0x698] sm:$0xf] %v917_v25 }
 0x113   :  { %920 = vst [vmem:[#allocation2 + $0x69c] sm:$0xf] %v919_v26  ;;  %v921_v27 = vld [vmem:[%s14690_s12 + $0x690] sm:$0xf]  ;;  %v925_v29 = vld [vmem:[%s14690_s12 + $0x694] sm:$0xf] }
 0x114   :  { %v923_v28 = vld [vmem:[%s14690_s12 + $0x6d0] sm:$0xf]  ;;  %922 = vst [vmem:[#allocation2 + $0x6a0] sm:$0xf] %v921_v27  ;;  %926 = vst [vmem:[#allocation2 + $0x6a8] sm:$0xf] %v925_v29 }
 0x115   :  { %924 = vst [vmem:[#allocation2 + $0x6a4] sm:$0xf] %v923_v28  ;;  %v927_v30 = vld [vmem:[%s14690_s12 + $0x6d4] sm:$0xf]  ;;  %v929_v31 = vld [vmem:[%s14690_s12 + $0x698] sm:$0xf] }
 0x116   :  { %v931_v32 = vld [vmem:[%s14690_s12 + $0x6d8] sm:$0xf]  ;;  %928 = vst [vmem:[#allocation2 + $0x6ac] sm:$0xf] %v927_v30  ;;  %930 = vst [vmem:[#allocation2 + $0x6b0] sm:$0xf] %v929_v31 }
 0x117   :  { %932 = vst [vmem:[#allocation2 + $0x6b4] sm:$0xf] %v931_v32  ;;  %v933_v33 = vld [vmem:[%s14690_s12 + $0x69c] sm:$0xf]  ;;  %v937_v35 = vld [vmem:[%s14690_s12 + $0x6a0] sm:$0xf] }
 0x118   :  { %v935_v34 = vld [vmem:[%s14690_s12 + $0x6dc] sm:$0xf]  ;;  %934 = vst [vmem:[#allocation2 + $0x6b8] sm:$0xf] %v933_v33  ;;  %938 = vst [vmem:[#allocation2 + $0x6c0] sm:$0xf] %v937_v35 }
 0x119   :  { %936 = vst [vmem:[#allocation2 + $0x6bc] sm:$0xf] %v935_v34  ;;  %v939_v36 = vld [vmem:[%s14690_s12 + $0x6e0] sm:$0xf]  ;;  %v941_v37 = vld [vmem:[%s14690_s12 + $0x6a4] sm:$0xf] }
 0x11a   :  { %v943_v38 = vld [vmem:[%s14690_s12 + $0x6e4] sm:$0xf]  ;;  %940 = vst [vmem:[#allocation2 + $0x6c4] sm:$0xf] %v939_v36  ;;  %942 = vst [vmem:[#allocation2 + $0x6c8] sm:$0xf] %v941_v37 }
 0x11b   :  { %944 = vst [vmem:[#allocation2 + $0x6cc] sm:$0xf] %v943_v38  ;;  %v945_v39 = vld [vmem:[%s14690_s12 + $0x6a8] sm:$0xf]  ;;  %v949_v41 = vld [vmem:[%s14690_s12 + $0x6ac] sm:$0xf] }
 0x11c   :  { %v947_v40 = vld [vmem:[%s14690_s12 + $0x6e8] sm:$0xf]  ;;  %946 = vst [vmem:[#allocation2 + $0x6d0] sm:$0xf] %v945_v39  ;;  %950 = vst [vmem:[#allocation2 + $0x6d8] sm:$0xf] %v949_v41 }
 0x11d   :  { %948 = vst [vmem:[#allocation2 + $0x6d4] sm:$0xf] %v947_v40  ;;  %v951_v42 = vld [vmem:[%s14690_s12 + $0x6ec] sm:$0xf]  ;;  %v953_v43 = vld [vmem:[%s14690_s12 + $0x6b0] sm:$0xf] }
 0x11e   :  { %v955_v44 = vld [vmem:[%s14690_s12 + $0x6f0] sm:$0xf]  ;;  %952 = vst [vmem:[#allocation2 + $0x6dc] sm:$0xf] %v951_v42  ;;  %954 = vst [vmem:[#allocation2 + $0x6e0] sm:$0xf] %v953_v43 }
 0x11f   :  { %956 = vst [vmem:[#allocation2 + $0x6e4] sm:$0xf] %v955_v44  ;;  %v957_v45 = vld [vmem:[%s14690_s12 + $0x6b4] sm:$0xf]  ;;  %v961_v47 = vld [vmem:[%s14690_s12 + $0x6b8] sm:$0xf] }
 0x120   :  { %v959_v46 = vld [vmem:[%s14690_s12 + $0x6f4] sm:$0xf]  ;;  %958 = vst [vmem:[#allocation2 + $0x6e8] sm:$0xf] %v957_v45  ;;  %962 = vst [vmem:[#allocation2 + $0x6f0] sm:$0xf] %v961_v47 }
 0x121   :  { %960 = vst [vmem:[#allocation2 + $0x6ec] sm:$0xf] %v959_v46  ;;  %v963_v48 = vld [vmem:[%s14690_s12 + $0x6f8] sm:$0xf]  ;;  %v965_v49 = vld [vmem:[%s14690_s12 + $0x6bc] sm:$0xf] }
 0x122   :  { %964 = vst [vmem:[#allocation2 + $0x6f4] sm:$0xf] %v963_v48  ;;  %966 = vst [vmem:[#allocation2 + $0x6f8] sm:$0xf] %v965_v49  ;;  %v971_v51 = vld [vmem:[%s14690_s12 + $0x740] sm:$0xf] }
 0x123   :  { %968 = vst [vmem:[#allocation2 + $0x6fc] sm:$0xff] %v967_v50   ;;  %v973_v52 = vld [vmem:[%s14690_s12 + $0x704] sm:$0xf]  ;;  %972 = vst [vmem:[#allocation2 + $0x704] sm:$0xf] %v971_v51  ;;  %v1031_v17 = vld [vmem:[%s14690_s12 + $0x77c] sm:$0xff]  }
 0x124   :  { %v975_v53 = vld [vmem:[%s14690_s12 + $0x744] sm:$0xf]  ;;  %974 = vst [vmem:[#allocation2 + $0x708] sm:$0xf] %v973_v52  ;;  %v977_v54 = vld [vmem:[%s14690_s12 + $0x708] sm:$0xf] }
 0x125   :  { %976 = vst [vmem:[#allocation2 + $0x70c] sm:$0xf] %v975_v53  ;;  %v979_v55 = vld [vmem:[%s14690_s12 + $0x748] sm:$0xf]  ;;  %v981_v56 = vld [vmem:[%s14690_s12 + $0x70c] sm:$0xf] }
 0x126   :  { %978 = vst [vmem:[#allocation2 + $0x710] sm:$0xf] %v977_v54  ;;  %980 = vst [vmem:[#allocation2 + $0x714] sm:$0xf] %v979_v55  ;;  %v983_v57 = vld [vmem:[%s14690_s12 + $0x74c] sm:$0xf] }
 0x127   :  { %982 = vst [vmem:[#allocation2 + $0x718] sm:$0xf] %v981_v56  ;;  %v985_v58 = vld [vmem:[%s14690_s12 + $0x710] sm:$0xf]  ;;  %984 = vst [vmem:[#allocation2 + $0x71c] sm:$0xf] %v983_v57 }
 0x128   :  { %v987_v59 = vld [vmem:[%s14690_s12 + $0x750] sm:$0xf]  ;;  %986 = vst [vmem:[#allocation2 + $0x720] sm:$0xf] %v985_v58  ;;  %v989_v60 = vld [vmem:[%s14690_s12 + $0x714] sm:$0xf] }
 0x129   :  { %988 = vst [vmem:[#allocation2 + $0x724] sm:$0xf] %v987_v59  ;;  %v991_v61 = vld [vmem:[%s14690_s12 + $0x754] sm:$0xf]  ;;  %v993_v62 = vld [vmem:[%s14690_s12 + $0x718] sm:$0xf] }
 0x12a   :  { %990 = vst [vmem:[#allocation2 + $0x728] sm:$0xf] %v989_v60  ;;  %992 = vst [vmem:[#allocation2 + $0x72c] sm:$0xf] %v991_v61  ;;  %v995_v63 = vld [vmem:[%s14690_s12 + $0x758] sm:$0xf] }
 0x12b   :  { %994 = vst [vmem:[#allocation2 + $0x730] sm:$0xf] %v993_v62  ;;  %v997_v0 = vld [vmem:[%s14690_s12 + $0x71c] sm:$0xf]  ;;  %996 = vst [vmem:[#allocation2 + $0x734] sm:$0xf] %v995_v63 }
 0x12c   :  { %v999_v1 = vld [vmem:[%s14690_s12 + $0x75c] sm:$0xf]  ;;  %998 = vst [vmem:[#allocation2 + $0x738] sm:$0xf] %v997_v0  ;;  %v1001_v2 = vld [vmem:[%s14690_s12 + $0x720] sm:$0xf] }
 0x12d   :  { %1000 = vst [vmem:[#allocation2 + $0x73c] sm:$0xf] %v999_v1  ;;  %v1003_v3 = vld [vmem:[%s14690_s12 + $0x760] sm:$0xf]  ;;  %v1005_v4 = vld [vmem:[%s14690_s12 + $0x724] sm:$0xf] }
 0x12e   :  { %1002 = vst [vmem:[#allocation2 + $0x740] sm:$0xf] %v1001_v2  ;;  %1004 = vst [vmem:[#allocation2 + $0x744] sm:$0xf] %v1003_v3  ;;  %v1007_v5 = vld [vmem:[%s14690_s12 + $0x764] sm:$0xf] }
 0x12f   :  { %1006 = vst [vmem:[#allocation2 + $0x748] sm:$0xf] %v1005_v4  ;;  %v1009_v6 = vld [vmem:[%s14690_s12 + $0x728] sm:$0xf]  ;;  %1008 = vst [vmem:[#allocation2 + $0x74c] sm:$0xf] %v1007_v5 }
 0x130   :  { %v1011_v7 = vld [vmem:[%s14690_s12 + $0x768] sm:$0xf]  ;;  %1010 = vst [vmem:[#allocation2 + $0x750] sm:$0xf] %v1009_v6  ;;  %v1013_v8 = vld [vmem:[%s14690_s12 + $0x72c] sm:$0xf] }
 0x131   :  { %1012 = vst [vmem:[#allocation2 + $0x754] sm:$0xf] %v1011_v7  ;;  %v1015_v9 = vld [vmem:[%s14690_s12 + $0x76c] sm:$0xf]  ;;  %v1017_v10 = vld [vmem:[%s14690_s12 + $0x730] sm:$0xf] }
 0x132   :  { %1014 = vst [vmem:[#allocation2 + $0x758] sm:$0xf] %v1013_v8  ;;  %1016 = vst [vmem:[#allocation2 + $0x75c] sm:$0xf] %v1015_v9  ;;  %v1019_v11 = vld [vmem:[%s14690_s12 + $0x770] sm:$0xf] }
 0x133   :  { %1018 = vst [vmem:[#allocation2 + $0x760] sm:$0xf] %v1017_v10  ;;  %v1021_v12 = vld [vmem:[%s14690_s12 + $0x734] sm:$0xf]  ;;  %1020 = vst [vmem:[#allocation2 + $0x764] sm:$0xf] %v1019_v11 }
 0x134   :  { %v1023_v13 = vld [vmem:[%s14690_s12 + $0x774] sm:$0xf]  ;;  %1022 = vst [vmem:[#allocation2 + $0x768] sm:$0xf] %v1021_v12  ;;  %v1025_v14 = vld [vmem:[%s14690_s12 + $0x738] sm:$0xf] }
 0x135   :  { %1024 = vst [vmem:[#allocation2 + $0x76c] sm:$0xf] %v1023_v13  ;;  %v1027_v15 = vld [vmem:[%s14690_s12 + $0x778] sm:$0xf]  ;;  %v1029_v16 = vld [vmem:[%s14690_s12 + $0x73c] sm:$0xf] }
 0x136   :  { %1026 = vst [vmem:[#allocation2 + $0x770] sm:$0xf] %v1025_v14  ;;  %1028 = vst [vmem:[#allocation2 + $0x774] sm:$0xf] %v1027_v15  ;;  %v1035_v18 = vld [vmem:[%s14690_s12 + $0x7c0] sm:$0xf] }
 0x137   :  { %1030 = vst [vmem:[#allocation2 + $0x778] sm:$0xf] %v1029_v16  ;;  %v1037_v19 = vld [vmem:[%s14690_s12 + $0x784] sm:$0xf]  ;;  %1032 = vst [vmem:[#allocation2 + $0x77c] sm:$0xff] %v1031_v17  }
 0x138   :  { %1036 = vst [vmem:[#allocation2 + $0x784] sm:$0xf] %v1035_v18  ;;  %1038 = vst [vmem:[#allocation2 + $0x788] sm:$0xf] %v1037_v19  ;;  %v1039_v20 = vld [vmem:[%s14690_s12 + $0x7c4] sm:$0xf] }
 0x139   :  { %v1041_v21 = vld [vmem:[%s14690_s12 + $0x788] sm:$0xf]  ;;  %1040 = vst [vmem:[#allocation2 + $0x78c] sm:$0xf] %v1039_v20  ;;  %v1045_v23 = vld [vmem:[%s14690_s12 + $0x78c] sm:$0xf] }
 0x13a   :  { %v1043_v22 = vld [vmem:[%s14690_s12 + $0x7c8] sm:$0xf]  ;;  %1042 = vst [vmem:[#allocation2 + $0x790] sm:$0xf] %v1041_v21  ;;  %v1047_v24 = vld [vmem:[%s14690_s12 + $0x7cc] sm:$0xf] }
 0x13b   :  { %1044 = vst [vmem:[#allocation2 + $0x794] sm:$0xf] %v1043_v22  ;;  %v1049_v25 = vld [vmem:[%s14690_s12 + $0x790] sm:$0xf]  ;;  %1046 = vst [vmem:[#allocation2 + $0x798] sm:$0xf] %v1045_v23 }
 0x13c   :  { %1048 = vst [vmem:[#allocation2 + $0x79c] sm:$0xf] %v1047_v24  ;;  %1050 = vst [vmem:[#allocation2 + $0x7a0] sm:$0xf] %v1049_v25  ;;  %v1051_v26 = vld [vmem:[%s14690_s12 + $0x7d0] sm:$0xf] }
 0x13d   :  { %v1053_v27 = vld [vmem:[%s14690_s12 + $0x794] sm:$0xf]  ;;  %1052 = vst [vmem:[#allocation2 + $0x7a4] sm:$0xf] %v1051_v26  ;;  %v1057_v29 = vld [vmem:[%s14690_s12 + $0x798] sm:$0xf] }
 0x13e   :  { %v1055_v28 = vld [vmem:[%s14690_s12 + $0x7d4] sm:$0xf]  ;;  %1054 = vst [vmem:[#allocation2 + $0x7a8] sm:$0xf] %v1053_v27  ;;  %v1059_v30 = vld [vmem:[%s14690_s12 + $0x7d8] sm:$0xf] }
 0x13f   :  { %1056 = vst [vmem:[#allocation2 + $0x7ac] sm:$0xf] %v1055_v28  ;;  %v1061_v31 = vld [vmem:[%s14690_s12 + $0x79c] sm:$0xf]  ;;  %1058 = vst [vmem:[#allocation2 + $0x7b0] sm:$0xf] %v1057_v29 }
 0x140   :  { %1060 = vst [vmem:[#allocation2 + $0x7b4] sm:$0xf] %v1059_v30  ;;  %1062 = vst [vmem:[#allocation2 + $0x7b8] sm:$0xf] %v1061_v31  ;;  %v1063_v32 = vld [vmem:[%s14690_s12 + $0x7dc] sm:$0xf] }
 0x141   :  { %v1065_v33 = vld [vmem:[%s14690_s12 + $0x7a0] sm:$0xf]  ;;  %1064 = vst [vmem:[#allocation2 + $0x7bc] sm:$0xf] %v1063_v32  ;;  %v1069_v35 = vld [vmem:[%s14690_s12 + $0x7a4] sm:$0xf] }
 0x142   :  { %v1067_v34 = vld [vmem:[%s14690_s12 + $0x7e0] sm:$0xf]  ;;  %1066 = vst [vmem:[#allocation2 + $0x7c0] sm:$0xf] %v1065_v33  ;;  %v1071_v36 = vld [vmem:[%s14690_s12 + $0x7e4] sm:$0xf] }
 0x143   :  { %1068 = vst [vmem:[#allocation2 + $0x7c4] sm:$0xf] %v1067_v34  ;;  %v1073_v37 = vld [vmem:[%s14690_s12 + $0x7a8] sm:$0xf]  ;;  %1070 = vst [vmem:[#allocation2 + $0x7c8] sm:$0xf] %v1069_v35 }
 0x144   :  { %1072 = vst [vmem:[#allocation2 + $0x7cc] sm:$0xf] %v1071_v36  ;;  %1074 = vst [vmem:[#allocation2 + $0x7d0] sm:$0xf] %v1073_v37  ;;  %v1075_v38 = vld [vmem:[%s14690_s12 + $0x7e8] sm:$0xf] }
 0x145   :  { %v1077_v39 = vld [vmem:[%s14690_s12 + $0x7ac] sm:$0xf]  ;;  %1076 = vst [vmem:[#allocation2 + $0x7d4] sm:$0xf] %v1075_v38  ;;  %v1081_v41 = vld [vmem:[%s14690_s12 + $0x7b0] sm:$0xf] }
 0x146   :  { %v1079_v40 = vld [vmem:[%s14690_s12 + $0x7ec] sm:$0xf]  ;;  %1078 = vst [vmem:[#allocation2 + $0x7d8] sm:$0xf] %v1077_v39  ;;  %v1083_v42 = vld [vmem:[%s14690_s12 + $0x7f0] sm:$0xf] }
 0x147   :  { %1080 = vst [vmem:[#allocation2 + $0x7dc] sm:$0xf] %v1079_v40  ;;  %v1085_v43 = vld [vmem:[%s14690_s12 + $0x7b4] sm:$0xf]  ;;  %1082 = vst [vmem:[#allocation2 + $0x7e0] sm:$0xf] %v1081_v41 }
 0x148   :  { %1084 = vst [vmem:[#allocation2 + $0x7e4] sm:$0xf] %v1083_v42  ;;  %1086 = vst [vmem:[#allocation2 + $0x7e8] sm:$0xf] %v1085_v43  ;;  %v1087_v44 = vld [vmem:[%s14690_s12 + $0x7f4] sm:$0xf] }
 0x149   :  { %v1089_v45 = vld [vmem:[%s14690_s12 + $0x7b8] sm:$0xf]  ;;  %1088 = vst [vmem:[#allocation2 + $0x7ec] sm:$0xf] %v1087_v44  ;;  %v1093_v47 = vld [vmem:[%s14690_s12 + $0x7bc] sm:$0xf] }
 0x14a   :  { %v1091_v46 = vld [vmem:[%s14690_s12 + $0x7f8] sm:$0xf]  ;;  %1090 = vst [vmem:[#allocation2 + $0x7f0] sm:$0xf] %v1089_v45  ;;  %v1095_v48 = vld [vmem:[%s14690_s12 + $0x7fc] sm:$0xf] }
 0x14b   :  { %1092 = vst [vmem:[#allocation2 + $0x7f4] sm:$0xf] %v1091_v46  ;;  %1094 = vst [vmem:[#allocation2 + $0x7f8] sm:$0xf] %v1093_v47 }
 0x14c   :  { %1096 = vst [vmem:[#allocation2 + $0x7fc] sm:$0xf] %v1095_v48 }
 0x14d   :  { %4232 = vsyncadd [#allocation4], 32768  ;;  %s4238_s0 = sld [smem:[#allocation0]]   ;;  %s11625_s19 = smov [#allocation3]   ;;  %v11626_v49 = vmov 0.0   ;;  %vm4296_vm0 = vcmask 64512  }
 0x14e   :  { %s4246_s1 = sshll.u32 %s11625_s19, 4  ;;  %4367 = vmatprep.mubr.f32.mxu0 %v11626_v49  ;;  %11177 = vmatprep.subr.mxu1 %v11626_v49  ;;  %s11627_s20 = smov 256   ;;  %vm11634_vm1 = vmmov 0   ;;  %vm5375_vm2 = vcmask 261120   ;;  %vm8709_vm4 = vcmask 523264   ;;  %vm8712_vm5 = vcmask 785408   ;;  %s4247_s1 = int_to_ptr.vmem [resolvable:$true] %s4246_s1 }
 0x14f   :  { %4250 = sst [smem:[#allocation7]] %s11627_s20  ;;  %s11628_s21 = smov 2   ;;  %11179 = vmatprep.mubr.msk.f32.mxu1 %vm11634_vm1, %v11626_v49 }
 0x150   :  { %4252 = sst [smem:[#allocation7 + $0x1]] %s11627_s20  ;;  %s14700_s22 = smov 64  }
 0x151   :  { %4254 = sst [smem:[#allocation7 + $0x2]] %s11628_s21  ;;  %s11630_s2 = smov 128  }
 0x152   :  { %4256 = sst [smem:[#allocation7 + $0x3]] %s14700_s22  ;;  %s11631_s24 = smov 4  }
 0x153   :  { %s10812_s12 = sshll.u32 %s4238_s0, 26  ;;  %4258 = sst [smem:[#allocation7 + $0x4]] %s11630_s2 }
 0x154   :  { %s10813_s23 = sadd.s32 134217728, %s10812_s12  ;;  %4260 = sst [smem:[#allocation7 + $0x5]] %s11628_s21 }
 0x155   :  { %4262 = sst [smem:[#allocation7 + $0x6]] %s11630_s2  ;;  %s11632_s25 = smov [#allocation4 + $0x1]  }
 0x156   :  { %4264 = sst [smem:[#allocation7 + $0x7]] %s14700_s22  ;;  %s11633_s26 = smov [#allocation6]  }
 0x157   :  { %4266 = sst [smem:[#allocation7 + $0x8]] %s11631_s24  ;;  %s14708_s24 = smov 64  }
 0x158   :  { %4268 = dma.general %s14692_s14, 32768, %s4247_s1, %s11632_s25, %s11633_s26, [#allocation7], %s10813_s23, 0  }
 0x159   :  { %s14705_s19 = sld [smem:[#allocation12_spill]]  ;;  %s14706_s2 = sld [smem:[#allocation10_spill]]  ;;  %v4384_v53 = vld [vmem:[%s14682_s4] sm:$0xff] }
 0x15a   :  { %v4388_v54 = vld [vmem:[%s14682_s4 + $0x20] sm:$0xff]  ;;  %s14707_s25 = sld [smem:[#allocation11_spill]]  ;;  %s11637_s27 = smov 96  }
 0x15b   :  { %v10817_v55 = vcombine.low %v4384_v53, %v4388_v54  ;;  %v10818_v56 = vcombine.high %v4384_v53, %v4388_v54  ;;  %v4392_v57 = vld [vmem:[%s14682_s4 + $0x40] sm:$0xff] }
 0x15c   :  { %v4396_v58 = vld [vmem:[%s14682_s4 + $0x60] sm:$0xff] }
 0x15d   :  { %v10826_v59 = vcombine.high %v4392_v57, %v4396_v58  ;;  %v4400_v60 = vld [vmem:[%s14682_s4 + $0x80] sm:$0xff]  ;;  %v10825_v63 = vcombine.low %v4392_v57, %v4396_v58 }
 0x15e   :  { %v4404_v61 = vld [vmem:[%s14682_s4 + $0xa0] sm:$0xff] }
 0x15f   :  { %v4283_v50 = vld [vmem:[%s14705_s19 + $0x8] sm:$0xff]  ;;  %v4282_v51 = vld [vmem:[%s14705_s19] sm:$0xff]  ;;  %v10834_v0 = vcombine.high %v4400_v60, %v4404_v61  ;;  %v10833_v3 = vcombine.low %v4400_v60, %v4404_v61 }
 0x160   :  { %v4280_v52 = vld [vmem:[%s14706_s2] sm:$0xff]  ;;  %4303 = vmatprep.subr.mxu0 %v4283_v50  ;;  %v4281_v62 = vld [vmem:[%s14706_s2 + $0x8] sm:$0xff]  ;;  %s11636_s2 = smov 32  }
 0x161   :  { %4304 = vmatpush1.msra.mxu0 %v4282_v51  ;;  %v4408_v1 = vld [vmem:[%s14682_s4 + $0xc0] sm:$0xff] }
 0x162   :  { %10815 = vmatmul.mubr.msk.f32.vlgmr.msra.gmra.mrb[0].mxu0 %vm4296_vm0, %v4280_v52  ;;  %5196 = vmatprep.subr.bf16.mxu0 %v10818_v56  ;;  %v4412_v2 = vld [vmem:[%s14682_s4 + $0xe0] sm:$0xff]  ;;  %v4389_v56 = vld [vmem:[%s14682_s4 + $0x28] sm:$0xff] }
 0x163   :  { %4373 = vmatprep.mubr.f32.mxu0 %v11626_v49  ;;  %5197 = vmatpush1.bf16.msra.mxu0 %v10817_v55  ;;  %v10842_v4 = vcombine.high %v4408_v1, %v4412_v2  ;;  %v4416_v5 = vld [vmem:[%s14682_s4 + $0x100] sm:$0xff]  ;;  %v10841_v7 = vcombine.low %v4408_v1, %v4412_v2  ;;  %v4385_v55 = vld [vmem:[%s14682_s4 + $0x8] sm:$0xff] }
 0x164   :  { %5198 = vmatprep.subr.bf16.mxu0 %v10826_v59  ;;  %v4420_v6 = vld [vmem:[%s14682_s4 + $0x120] sm:$0xff]  ;;  %v10820_v57 = vcombine.high %v4385_v55, %v4389_v56  ;;  %v10819_v58 = vcombine.low %v4385_v55, %v4389_v56  ;;  %v4269_v59 = vlaneseq  ;;  %v4469_v55 = vld [vmem:[%s14682_s4 + $0x2a8] sm:$0xff] }
 0x165   :  { %v4424_v8 = vld [vmem:[%s14682_s4 + $0x140] sm:$0xff]  ;;  %v10850_v10 = vcombine.high %v4416_v5, %v4420_v6  ;;  %v10849_v11 = vcombine.low %v4416_v5, %v4420_v6 }
 0x166   :  { %10816 = vmatmul.mubr.msk.f32.gmra.mrb[2].mxu0 %vm4296_vm0, %v4281_v62  ;;  %v4428_v9 = vld [vmem:[%s14682_s4 + $0x160] sm:$0xff]  ;;  %v13350_v60 = vshrl.u32 %v4269_v59, 7 }
 0x167   :  { %5199 = vmatpush1.bf16.msra.mxu0 %v10825_v63  ;;  %v4432_v12 = vld [vmem:[%s14682_s4 + $0x180] sm:$0xff]  ;;  %v10858_v14 = vcombine.high %v4424_v8, %v4428_v9  ;;  %v10857_v15 = vcombine.low %v4424_v8, %v4428_v9 }
 0x168   :  { %5200 = vmatprep.subr.bf16.mxu0 %v10834_v0  ;;  %v4436_v13 = vld [vmem:[%s14682_s4 + $0x1a0] sm:$0xff]  ;;  %v13353_v61 = vsub.s32 1, %v13350_v60  ;;  %v13359_v63 = vsub.s32 0, %v13350_v60 }
 0x169   :  { %v4440_v16 = vld [vmem:[%s14682_s4 + $0x1c0] sm:$0xff]  ;;  %v10866_v18 = vcombine.high %v4432_v12, %v4436_v13  ;;  %v10865_v19 = vcombine.low %v4432_v12, %v4436_v13 }
 0x16a   :  { %v4444_v17 = vld [vmem:[%s14682_s4 + $0x1e0] sm:$0xff] }
 0x16b   :  { %5201 = vmatpush1.bf16.msra.mxu0 %v10833_v3  ;;  %v10874_v20 = vcombine.high %v4440_v16, %v4444_v17  ;;  %v4448_v21 = vld [vmem:[%s14682_s4 + $0x200] sm:$0xff]  ;;  %v10873_v23 = vcombine.low %v4440_v16, %v4444_v17  ;;  %v4397_v16 = vld [vmem:[%s14682_s4 + $0x68] sm:$0xff] }
 0x16c   :  { %5202 = vmatprep.subr.bf16.mxu0 %v10842_v4  ;;  %v4452_v22 = vld [vmem:[%s14682_s4 + $0x220] sm:$0xff] }
 0x16d   :  { %v10882_v24 = vcombine.high %v4448_v21, %v4452_v22  ;;  %v4456_v25 = vld [vmem:[%s14682_s4 + $0x240] sm:$0xff]  ;;  %v10881_v27 = vcombine.low %v4448_v21, %v4452_v22  ;;  %v4401_v21 = vld [vmem:[%s14682_s4 + $0x88] sm:$0xff] }
 0x16e   :  { %v4460_v26 = vld [vmem:[%s14682_s4 + $0x260] sm:$0xff]  ;;  %v4405_v22 = vld [vmem:[%s14682_s4 + $0xa8] sm:$0xff] }
 0x16f   :  { %5203 = vmatpush1.bf16.msra.mxu0 %v10841_v7  ;;  %v10890_v28 = vcombine.high %v4456_v25, %v4460_v26  ;;  %v4464_v29 = vld [vmem:[%s14682_s4 + $0x280] sm:$0xff]  ;;  %v10889_v31 = vcombine.low %v4456_v25, %v4460_v26  ;;  %v4279_v7 = vld [vmem:[%s14707_s25 + $0x8] sm:$0xff] }
 0x170   :  { %5204 = vmatprep.subr.bf16.mxu0 %v10850_v10  ;;  %v4468_v30 = vld [vmem:[%s14682_s4 + $0x2a0] sm:$0xff]  ;;  %v4409_v25 = vld [vmem:[%s14682_s4 + $0xc8] sm:$0xff] }
 0x171   :  { %v10898_v32 = vcombine.high %v4464_v29, %v4468_v30  ;;  %v4472_v33 = vld [vmem:[%s14682_s4 + $0x2c0] sm:$0xff]  ;;  %v10897_v35 = vcombine.low %v4464_v29, %v4468_v30  ;;  %v4413_v26 = vld [vmem:[%s14682_s4 + $0xe8] sm:$0xff] }
 0x172   :  { %v4476_v34 = vld [vmem:[%s14682_s4 + $0x2e0] sm:$0xff]  ;;  %v4417_v29 = vld [vmem:[%s14682_s4 + $0x108] sm:$0xff] }
 0x173   :  { %5205 = vmatpush1.bf16.msra.mxu0 %v10849_v11  ;;  %v10906_v36 = vcombine.high %v4472_v33, %v4476_v34  ;;  %v4480_v37 = vld [vmem:[%s14682_s4 + $0x300] sm:$0xff]  ;;  %v10905_v39 = vcombine.low %v4472_v33, %v4476_v34  ;;  %v4421_v30 = vld [vmem:[%s14682_s4 + $0x128] sm:$0xff] }
 0x174   :  { %5206 = vmatprep.subr.bf16.mxu0 %v10858_v14  ;;  %v4484_v38 = vld [vmem:[%s14682_s4 + $0x320] sm:$0xff]  ;;  %v4425_v33 = vld [vmem:[%s14682_s4 + $0x148] sm:$0xff] }
 0x175   :  { %v10914_v40 = vcombine.high %v4480_v37, %v4484_v38  ;;  %v10913_v41 = vcombine.low %v4480_v37, %v4484_v38  ;;  %v4488_v42 = vld [vmem:[%s14682_s4 + $0x340] sm:$0xff]  ;;  %v4429_v34 = vld [vmem:[%s14682_s4 + $0x168] sm:$0xff] }
 0x176   :  { %v4492_v43 = vld [vmem:[%s14682_s4 + $0x360] sm:$0xff]  ;;  %v4433_v37 = vld [vmem:[%s14682_s4 + $0x188] sm:$0xff] }
 0x177   :  { %5207 = vmatpush1.bf16.msra.mxu0 %v10857_v15  ;;  %v10922_v44 = vcombine.high %v4488_v42, %v4492_v43  ;;  %v10921_v45 = vcombine.low %v4488_v42, %v4492_v43  ;;  %v4496_v46 = vld [vmem:[%s14682_s4 + $0x380] sm:$0xff]  ;;  %v4393_v15 = vld [vmem:[%s14682_s4 + $0x48] sm:$0xff] }
 0x178   :  { %5208 = vmatprep.subr.bf16.mxu0 %v10866_v18  ;;  %v4500_v47 = vld [vmem:[%s14682_s4 + $0x3a0] sm:$0xff]  ;;  %v4437_v38 = vld [vmem:[%s14682_s4 + $0x1a8] sm:$0xff] }
 0x179   :  { %v10930_v48 = vcombine.high %v4496_v46, %v4500_v47  ;;  %v10929_v50 = vcombine.low %v4496_v46, %v4500_v47  ;;  %v4504_v51 = vld [vmem:[%s14682_s4 + $0x3c0] sm:$0xff]  ;;  %v4445_v42 = vld [vmem:[%s14682_s4 + $0x1e8] sm:$0xff]  ;;  %v10867_v43 = vcombine.low %v4433_v37, %v4437_v38 }
 0x17a   :  { %v4508_v52 = vld [vmem:[%s14682_s4 + $0x3e0] sm:$0xff]  ;;  %v4453_v46 = vld [vmem:[%s14682_s4 + $0x228] sm:$0xff] }
 0x17b   :  { %5209 = vmatpush1.bf16.msra.mxu0 %v10865_v19  ;;  %v10938_v53 = vcombine.high %v4504_v51, %v4508_v52  ;;  %v10937_v54 = vcombine.low %v4504_v51, %v4508_v52  ;;  %v4284_v62 = vld [vmem:[%s14681_s3] sm:$0x3]  ;;  %v4461_v51 = vld [vmem:[%s14682_s4 + $0x268] sm:$0xff] }
 0x17c   :  { %5210 = vmatprep.subr.bf16.mxu0 %v10874_v20  ;;  %v4293_v1 = vrot.slane %v4284_v62, %v13353_v61  ;;  %v4289_v2 = vrot.slane %v4284_v62, %v13359_v63  ;;  %v4278_v10 = vld [vmem:[%s14707_s25] sm:$0xff]  ;;  %v10828_v20 = vcombine.high %v4393_v15, %v4397_v16  ;;  %v4477_v62 = vld [vmem:[%s14682_s4 + $0x2e8] sm:$0xff] }
 0x17f   :  { %5211 = vmatpush1.bf16.msra.mxu0 %v10873_v23  ;;  %v10827_v23 = vcombine.low %v4393_v15, %v4397_v16 }
 0x180   :  { %5212 = vmatprep.subr.bf16.mxu0 %v10882_v24  ;;  %v10836_v24 = vcombine.high %v4401_v21, %v4405_v22 }
 0x183   :  { %5213 = vmatpush1.bf16.msra.mxu0 %v10881_v27  ;;  %v10835_v27 = vcombine.low %v4401_v21, %v4405_v22  ;;  %v4509_v21 = vld [vmem:[%s14682_s4 + $0x3e8] sm:$0xff] }
 0x184   :  { %5214 = vmatprep.subr.bf16.mxu0 %v10890_v28  ;;  %v10844_v28 = vcombine.high %v4409_v25, %v4413_v26 }
 0x187   :  { %5215 = vmatpush1.bf16.msra.mxu0 %v10889_v31  ;;  %v10843_v31 = vcombine.low %v4409_v25, %v4413_v26  ;;  %v4390_v25 = vld [vmem:[%s14682_s4 + $0x30] sm:$0xff] }
 0x188   :  { %5216 = vmatprep.subr.bf16.mxu0 %v10898_v32  ;;  %v10852_v32 = vcombine.high %v4417_v29, %v4421_v30 }
 0x18b   :  { %5217 = vmatpush1.bf16.msra.mxu0 %v10897_v35  ;;  %v10851_v35 = vcombine.low %v4417_v29, %v4421_v30  ;;  %v4398_v29 = vld [vmem:[%s14682_s4 + $0x70] sm:$0xff] }
 0x18c   :  { %5218 = vmatprep.subr.bf16.mxu0 %v10906_v36  ;;  %v10860_v36 = vcombine.high %v4425_v33, %v4429_v34 }
 0x18f   :  { %5219 = vmatpush1.bf16.msra.mxu0 %v10905_v39  ;;  %v10859_v39 = vcombine.low %v4425_v33, %v4429_v34  ;;  %v4406_v33 = vld [vmem:[%s14682_s4 + $0xb0] sm:$0xff] }
 0x190   :  { %5220 = vmatprep.subr.bf16.mxu0 %v10914_v40  ;;  %v10868_v40 = vcombine.high %v4433_v37, %v4437_v38  ;;  %v4414_v37 = vld [vmem:[%s14682_s4 + $0xf0] sm:$0xff] }
 0x193   :  { %5221 = vmatpush1.bf16.msra.mxu0 %v10913_v41  ;;  %v4441_v41 = vld [vmem:[%s14682_s4 + $0x1c8] sm:$0xff] }
 0x194   :  { %5222 = vmatprep.subr.bf16.mxu0 %v10922_v44  ;;  %v10876_v44 = vcombine.high %v4441_v41, %v4445_v42  ;;  %v10875_v47 = vcombine.low %v4441_v41, %v4445_v42  ;;  %v4422_v41 = vld [vmem:[%s14682_s4 + $0x130] sm:$0xff] }
 0x197   :  { %5223 = vmatpush1.bf16.msra.mxu0 %v10921_v45  ;;  %v4449_v45 = vld [vmem:[%s14682_s4 + $0x208] sm:$0xff] }
 0x198   :  { %5224 = vmatprep.subr.bf16.mxu0 %v10930_v48  ;;  %v10884_v48 = vcombine.high %v4449_v45, %v4453_v46  ;;  %v10883_v52 = vcombine.low %v4449_v45, %v4453_v46  ;;  %v4430_v45 = vld [vmem:[%s14682_s4 + $0x170] sm:$0xff] }
 0x19b   :  { %5225 = vmatpush1.bf16.msra.mxu0 %v10929_v50  ;;  %v4457_v50 = vld [vmem:[%s14682_s4 + $0x248] sm:$0xff] }
 0x19c   :  { %5226 = vmatprep.subr.bf16.mxu0 %v10938_v53  ;;  %v10892_v53 = vcombine.high %v4457_v50, %v4461_v51  ;;  %v10891_v56 = vcombine.low %v4457_v50, %v4461_v51  ;;  %v4438_v50 = vld [vmem:[%s14682_s4 + $0x1b0] sm:$0xff] }
 0x19f   :  { %5227 = vmatpush1.bf16.msra.mxu0 %v10937_v54  ;;  %v4465_v54 = vld [vmem:[%s14682_s4 + $0x288] sm:$0xff] }
 0x1a0   :  { %5239 = vmatprep.subr.bf16.mxu0 %v10820_v57  ;;  %v10900_v57 = vcombine.high %v4465_v54, %v4469_v55 }
 0x235   :  { %v4369_v0 = vpop.f32.mrb[0].mxu0 }
 0x236   :  { %v4371_v3 = vpop.f32.mrb[1].mxu0  ;;  %v4370_v6 = vadd.f32 %v4369_v0, %v4289_v2  ;;  %v10899_v0 = vcombine.low %v4465_v54, %v4469_v55  ;;  %v4446_v54 = vld [vmem:[%s14682_s4 + $0x1f0] sm:$0xff] }
 0x237   :  { %v4372_v4 = vadd.f32 %v4371_v3, %v4293_v1  ;;  %v4485_v3 = vld [vmem:[%s14682_s4 + $0x328] sm:$0xff] }
 0x238   :  { %v13381_v17 = vadd.f32 %v4370_v6, %v4278_v10  ;;  %v4489_v6 = vld [vmem:[%s14682_s4 + $0x348] sm:$0xff] }
 0x239   :  { %v4375_v5 = vpop.f32.mrb[2].mxu0  ;;  %v13371_v13 = vadd.f32 %v4372_v4, %v4279_v7 }
 0x23a   :  { %v4376_v8 = vadd.f32 %v4375_v5, %v4289_v2  ;;  %v4377_v9 = vpop.f32.mrb[3].mxu0  ;;  %v4481_v2 = vld [vmem:[%s14682_s4 + $0x308] sm:$0xff] }
 0x23b   :  { %v4378_v11 = vadd.f32 %v4377_v9, %v4293_v1  ;;  %v10916_v5 = vcombine.high %v4481_v2, %v4485_v3 }
 0x23c   :  { %v13369_v12 = vadd.f32 %v4376_v8, %v4278_v10  ;;  %v10915_v8 = vcombine.low %v4481_v2, %v4485_v3  ;;  %v4497_v10 = vld [vmem:[%s14682_s4 + $0x388] sm:$0xff]  ;;  %v4462_v2 = vld [vmem:[%s14682_s4 + $0x270] sm:$0xff] }
 0x23d   :  { %v13373_v14 = vadd.f32 %v4378_v11, %v4279_v7  ;;  %v4493_v7 = vld [vmem:[%s14682_s4 + $0x368] sm:$0xff] }
 0x23e   :  { %v13389_v19 = vpack.c.bf16 %v13369_v12, %v13381_v17  ;;  %v10924_v9 = vcombine.high %v4489_v6, %v4493_v7  ;;  %v4501_v11 = vld [vmem:[%s14682_s4 + $0x3a8] sm:$0xff]  ;;  %v10923_v15 = vcombine.low %v4489_v6, %v4493_v7  ;;  %v4470_v6 = vld [vmem:[%s14682_s4 + $0x2b0] sm:$0xff] }
 0x23f   :  { %v13385_v18 = vpack.c.bf16 %v13373_v14, %v13371_v13  ;;  %v10932_v16 = vcombine.high %v4497_v10, %v4501_v11  ;;  %v10931_v22 = vcombine.low %v4497_v10, %v4501_v11  ;;  %v4478_v10 = vld [vmem:[%s14682_s4 + $0x2f0] sm:$0xff] }
 0x241   :  { %5228 = vmatprep.mubr.bf16.mxu0 %v13385_v18 }
 0x242   :  { %5229 = vmatmul.mubr.bf16.vlgmr.msra.gmra.mrb[4].mxu0 %v13389_v19 }
 0x243   :  { %5240 = vmatpush1.bf16.msra.mxu0 %v10819_v58  ;;  %5271 = vmatprep.mubr.bf16.mxu0 %v13385_v18  ;;  %v4473_v58 = vld [vmem:[%s14682_s4 + $0x2c8] sm:$0xff] }
 0x244   :  { %5241 = vmatprep.subr.bf16.mxu0 %v10828_v20  ;;  %v10908_v1 = vcombine.high %v4473_v58, %v4477_v62  ;;  %v10907_v4 = vcombine.low %v4473_v58, %v4477_v62  ;;  %v4505_v20 = vld [vmem:[%s14682_s4 + $0x3c8] sm:$0xff]  ;;  %v4454_v58 = vld [vmem:[%s14682_s4 + $0x230] sm:$0xff] }
 0x245   :  { %v10939_v26 = vcombine.low %v4505_v20, %v4509_v21 }
 0x247   :  { %5242 = vmatpush1.bf16.msra.mxu0 %v10827_v23  ;;  %v10940_v23 = vcombine.high %v4505_v20, %v4509_v21  ;;  %v4486_v20 = vld [vmem:[%s14682_s4 + $0x330] sm:$0xff] }
 0x248   :  { %5243 = vmatprep.subr.bf16.mxu0 %v10836_v24  ;;  %v4386_v24 = vld [vmem:[%s14682_s4 + $0x10] sm:$0xff] }
 0x249   :  { %v10821_v30 = vcombine.low %v4386_v24, %v4390_v25 }
 0x24b   :  { %5244 = vmatpush1.bf16.msra.mxu0 %v10835_v27  ;;  %v10822_v27 = vcombine.high %v4386_v24, %v4390_v25  ;;  %v4494_v24 = vld [vmem:[%s14682_s4 + $0x370] sm:$0xff] }
 0x24c   :  { %5245 = vmatprep.subr.bf16.mxu0 %v10844_v28  ;;  %v4394_v28 = vld [vmem:[%s14682_s4 + $0x50] sm:$0xff] }
 0x24d   :  { %v10829_v34 = vcombine.low %v4394_v28, %v4398_v29 }
 0x24f   :  { %5246 = vmatpush1.bf16.msra.mxu0 %v10843_v31  ;;  %v10830_v31 = vcombine.high %v4394_v28, %v4398_v29  ;;  %v4502_v28 = vld [vmem:[%s14682_s4 + $0x3b0] sm:$0xff] }
 0x250   :  { %5247 = vmatprep.subr.bf16.mxu0 %v10852_v32  ;;  %v4402_v32 = vld [vmem:[%s14682_s4 + $0x90] sm:$0xff] }
 0x251   :  { %v10837_v38 = vcombine.low %v4402_v32, %v4406_v33 }
 0x253   :  { %5248 = vmatpush1.bf16.msra.mxu0 %v10851_v35  ;;  %v10838_v35 = vcombine.high %v4402_v32, %v4406_v33  ;;  %v4510_v32 = vld [vmem:[%s14682_s4 + $0x3f0] sm:$0xff] }
 0x254   :  { %5249 = vmatprep.subr.bf16.mxu0 %v10860_v36  ;;  %v4410_v36 = vld [vmem:[%s14682_s4 + $0xd0] sm:$0xff] }
 0x255   :  { %v10845_v42 = vcombine.low %v4410_v36, %v4414_v37 }
 0x257   :  { %5250 = vmatpush1.bf16.msra.mxu0 %v10859_v39  ;;  %v10846_v39 = vcombine.high %v4410_v36, %v4414_v37  ;;  %v4391_v36 = vld [vmem:[%s14682_s4 + $0x38] sm:$0xff] }
 0x258   :  { %5251 = vmatprep.subr.bf16.mxu0 %v10868_v40  ;;  %v4418_v40 = vld [vmem:[%s14682_s4 + $0x110] sm:$0xff] }
 0x259   :  { %v10853_v46 = vcombine.low %v4418_v40, %v4422_v41 }
 0x25b   :  { %5252 = vmatpush1.bf16.msra.mxu0 %v10867_v43  ;;  %v10854_v43 = vcombine.high %v4418_v40, %v4422_v41  ;;  %v4399_v40 = vld [vmem:[%s14682_s4 + $0x78] sm:$0xff] }
 0x25c   :  { %5253 = vmatprep.subr.bf16.mxu0 %v10876_v44  ;;  %v4426_v44 = vld [vmem:[%s14682_s4 + $0x150] sm:$0xff] }
 0x25d   :  { %v10861_v51 = vcombine.low %v4426_v44, %v4430_v45 }
 0x25f   :  { %5254 = vmatpush1.bf16.msra.mxu0 %v10875_v47  ;;  %v10862_v47 = vcombine.high %v4426_v44, %v4430_v45  ;;  %v4407_v44 = vld [vmem:[%s14682_s4 + $0xb8] sm:$0xff] }
 0x260   :  { %5255 = vmatprep.subr.bf16.mxu0 %v10884_v48  ;;  %v4434_v48 = vld [vmem:[%s14682_s4 + $0x190] sm:$0xff] }
 0x261   :  { %v10869_v55 = vcombine.low %v4434_v48, %v4438_v50 }
 0x263   :  { %5256 = vmatpush1.bf16.msra.mxu0 %v10883_v52  ;;  %v10870_v52 = vcombine.high %v4434_v48, %v4438_v50  ;;  %v4415_v48 = vld [vmem:[%s14682_s4 + $0xf8] sm:$0xff] }
 0x264   :  { %5257 = vmatprep.subr.bf16.mxu0 %v10892_v53  ;;  %v4442_v53 = vld [vmem:[%s14682_s4 + $0x1d0] sm:$0xff] }
 0x265   :  { %v10877_v62 = vcombine.low %v4442_v53, %v4446_v54 }
 0x267   :  { %5258 = vmatpush1.bf16.msra.mxu0 %v10891_v56  ;;  %v10878_v56 = vcombine.high %v4442_v53, %v4446_v54 }
 0x268   :  { %5259 = vmatprep.subr.bf16.mxu0 %v10900_v57  ;;  %v4450_v57 = vld [vmem:[%s14682_s4 + $0x210] sm:$0xff] }
 0x269   :  { %v10885_v3 = vcombine.low %v4450_v57, %v4454_v58 }
 0x26b   :  { %5260 = vmatpush1.bf16.msra.mxu0 %v10899_v0  ;;  %v10886_v0 = vcombine.high %v4450_v57, %v4454_v58 }
 0x26c   :  { %5261 = vmatprep.subr.bf16.mxu0 %v10908_v1  ;;  %v4458_v1 = vld [vmem:[%s14682_s4 + $0x250] sm:$0xff] }
 0x26d   :  { %v10893_v7 = vcombine.low %v4458_v1, %v4462_v2 }
 0x26f   :  { %5262 = vmatpush1.bf16.msra.mxu0 %v10907_v4  ;;  %v10894_v4 = vcombine.high %v4458_v1, %v4462_v2 }
 0x270   :  { %5263 = vmatprep.subr.bf16.mxu0 %v10916_v5  ;;  %v4466_v5 = vld [vmem:[%s14682_s4 + $0x290] sm:$0xff] }
 0x271   :  { %v10901_v11 = vcombine.low %v4466_v5, %v4470_v6 }
 0x273   :  { %5264 = vmatpush1.bf16.msra.mxu0 %v10915_v8  ;;  %v10902_v8 = vcombine.high %v4466_v5, %v4470_v6 }
 0x274   :  { %5265 = vmatprep.subr.bf16.mxu0 %v10924_v9  ;;  %v4474_v9 = vld [vmem:[%s14682_s4 + $0x2d0] sm:$0xff] }
 0x275   :  { %v10909_v21 = vcombine.low %v4474_v9, %v4478_v10 }
 0x277   :  { %5266 = vmatpush1.bf16.msra.mxu0 %v10923_v15  ;;  %v10910_v15 = vcombine.high %v4474_v9, %v4478_v10 }
 0x278   :  { %5267 = vmatprep.subr.bf16.mxu0 %v10932_v16  ;;  %v4482_v16 = vld [vmem:[%s14682_s4 + $0x310] sm:$0xff] }
 0x279   :  { %v10917_v25 = vcombine.low %v4482_v16, %v4486_v20 }
 0x27b   :  { %5268 = vmatpush1.bf16.msra.mxu0 %v10931_v22  ;;  %v10918_v22 = vcombine.high %v4482_v16, %v4486_v20 }
 0x27c   :  { %5269 = vmatprep.subr.bf16.mxu0 %v10940_v23  ;;  %v4490_v23 = vld [vmem:[%s14682_s4 + $0x350] sm:$0xff] }
 0x27d   :  { %v10925_v29 = vcombine.low %v4490_v23, %v4494_v24 }
 0x27f   :  { %5270 = vmatpush1.bf16.msra.mxu0 %v10939_v26  ;;  %v10926_v26 = vcombine.high %v4490_v23, %v4494_v24 }
 0x280   :  { %5282 = vmatprep.subr.bf16.mxu0 %v10822_v27  ;;  %v4498_v27 = vld [vmem:[%s14682_s4 + $0x390] sm:$0xff] }
 0x281   :  { %v10933_v33 = vcombine.low %v4498_v27, %v4502_v28 }
 0x282   :  { %5272 = vmatmul.mubr.bf16.vlgmr.msra.gmra.mrb[8].mxu0 %v13389_v19 }
 0x283   :  { %5283 = vmatpush1.bf16.msra.mxu0 %v10821_v30  ;;  %5314 = vmatprep.mubr.bf16.mxu0 %v13385_v18  ;;  %v10934_v30 = vcombine.high %v4498_v27, %v4502_v28 }
 0x284   :  { %5284 = vmatprep.subr.bf16.mxu0 %v10830_v31  ;;  %v4506_v31 = vld [vmem:[%s14682_s4 + $0x3d0] sm:$0xff] }
 0x285   :  { %v10941_v37 = vcombine.low %v4506_v31, %v4510_v32 }
 0x287   :  { %5285 = vmatpush1.bf16.msra.mxu0 %v10829_v34  ;;  %v10942_v34 = vcombine.high %v4506_v31, %v4510_v32 }
 0x288   :  { %5286 = vmatprep.subr.bf16.mxu0 %v10838_v35  ;;  %v4387_v35 = vld [vmem:[%s14682_s4 + $0x18] sm:$0xff] }
 0x289   :  { %v10823_v41 = vcombine.low %v4387_v35, %v4391_v36 }
 0x28b   :  { %5287 = vmatpush1.bf16.msra.mxu0 %v10837_v38  ;;  %v10824_v38 = vcombine.high %v4387_v35, %v4391_v36 }
 0x28c   :  { %5288 = vmatprep.subr.bf16.mxu0 %v10846_v39  ;;  %v4395_v39 = vld [vmem:[%s14682_s4 + $0x58] sm:$0xff] }
 0x28d   :  { %v10831_v45 = vcombine.low %v4395_v39, %v4399_v40 }
 0x28f   :  { %5289 = vmatpush1.bf16.msra.mxu0 %v10845_v42  ;;  %v10832_v42 = vcombine.high %v4395_v39, %v4399_v40 }
 0x290   :  { %5290 = vmatprep.subr.bf16.mxu0 %v10854_v43  ;;  %v4403_v43 = vld [vmem:[%s14682_s4 + $0x98] sm:$0xff] }
 0x291   :  { %v10839_v50 = vcombine.low %v4403_v43, %v4407_v44 }
 0x293   :  { %5291 = vmatpush1.bf16.msra.mxu0 %v10853_v46  ;;  %v10840_v46 = vcombine.high %v4403_v43, %v4407_v44 }
 0x294   :  { %5292 = vmatprep.subr.bf16.mxu0 %v10862_v47  ;;  %v4411_v47 = vld [vmem:[%s14682_s4 + $0xd8] sm:$0xff] }
 0x295   :  { %v10847_v53 = vcombine.low %v4411_v47, %v4415_v48 }
 0x297   :  { %5293 = vmatpush1.bf16.msra.mxu0 %v10861_v51  ;;  %v10848_v51 = vcombine.high %v4411_v47, %v4415_v48 }
 0x298   :  { %5294 = vmatprep.subr.bf16.mxu0 %v10870_v52  ;;  %v4419_v52 = vld [vmem:[%s14682_s4 + $0x118] sm:$0xff] }
 0x29b   :  { %5295 = vmatpush1.bf16.msra.mxu0 %v10869_v55  ;;  %v4427_v55 = vld [vmem:[%s14682_s4 + $0x158] sm:$0xff] }
 0x29c   :  { %5296 = vmatprep.subr.bf16.mxu0 %v10878_v56  ;;  %v4431_v56 = vld [vmem:[%s14682_s4 + $0x178] sm:$0xff] }
 0x29d   :  { %v10864_v58 = vcombine.high %v4427_v55, %v4431_v56  ;;  %v10863_v1 = vcombine.low %v4427_v55, %v4431_v56 }
 0x29f   :  { %5297 = vmatpush1.bf16.msra.mxu0 %v10877_v62  ;;  %v4435_v62 = vld [vmem:[%s14682_s4 + $0x198] sm:$0xff] }
 0x2a0   :  { %5298 = vmatprep.subr.bf16.mxu0 %v10886_v0  ;;  %v4439_v0 = vld [vmem:[%s14682_s4 + $0x1b8] sm:$0xff] }
 0x2a1   :  { %v10872_v2 = vcombine.high %v4435_v62, %v4439_v0  ;;  %v10871_v5 = vcombine.low %v4435_v62, %v4439_v0 }
 0x2a3   :  { %5299 = vmatpush1.bf16.msra.mxu0 %v10885_v3  ;;  %v4443_v3 = vld [vmem:[%s14682_s4 + $0x1d8] sm:$0xff] }
 0x2a4   :  { %5300 = vmatprep.subr.bf16.mxu0 %v10894_v4  ;;  %v4447_v4 = vld [vmem:[%s14682_s4 + $0x1f8] sm:$0xff] }
 0x2a5   :  { %v10880_v6 = vcombine.high %v4443_v3, %v4447_v4  ;;  %v10879_v9 = vcombine.low %v4443_v3, %v4447_v4 }
 0x2a7   :  { %5301 = vmatpush1.bf16.msra.mxu0 %v10893_v7  ;;  %v4451_v7 = vld [vmem:[%s14682_s4 + $0x218] sm:$0xff] }
 0x2a8   :  { %5302 = vmatprep.subr.bf16.mxu0 %v10902_v8  ;;  %v4455_v8 = vld [vmem:[%s14682_s4 + $0x238] sm:$0xff] }
 0x2a9   :  { %v10888_v10 = vcombine.high %v4451_v7, %v4455_v8  ;;  %v10887_v16 = vcombine.low %v4451_v7, %v4455_v8 }
 0x2ab   :  { %5303 = vmatpush1.bf16.msra.mxu0 %v10901_v11  ;;  %v4459_v11 = vld [vmem:[%s14682_s4 + $0x258] sm:$0xff] }
 0x2ac   :  { %5304 = vmatprep.subr.bf16.mxu0 %v10910_v15  ;;  %v4463_v15 = vld [vmem:[%s14682_s4 + $0x278] sm:$0xff] }
 0x2ad   :  { %v10896_v20 = vcombine.high %v4459_v11, %v4463_v15  ;;  %v10895_v23 = vcombine.low %v4459_v11, %v4463_v15 }
 0x2af   :  { %5305 = vmatpush1.bf16.msra.mxu0 %v10909_v21  ;;  %v4467_v21 = vld [vmem:[%s14682_s4 + $0x298] sm:$0xff] }
 0x2b0   :  { %5306 = vmatprep.subr.bf16.mxu0 %v10918_v22  ;;  %v4471_v22 = vld [vmem:[%s14682_s4 + $0x2b8] sm:$0xff] }
 0x2b1   :  { %v10904_v24 = vcombine.high %v4467_v21, %v4471_v22  ;;  %v10903_v27 = vcombine.low %v4467_v21, %v4471_v22  ;;  %v13750_v21 = vand.u32 127, %v4269_v59  ;;  %v11635_v22 = vmov -1e+30  }
 0x2b3   :  { %5307 = vmatpush1.bf16.msra.mxu0 %v10917_v25  ;;  %v4475_v25 = vld [vmem:[%s14682_s4 + $0x2d8] sm:$0xff]  ;;  %vm5370_vm3 = vcmp.le.s32.totalorder %v13750_v21, %v13350_v60 }
 0x2b4   :  { %5308 = vmatprep.subr.bf16.mxu0 %v10926_v26  ;;  %v4479_v26 = vld [vmem:[%s14682_s4 + $0x2f8] sm:$0xff] }
 0x2b5   :  { %v10912_v28 = vcombine.high %v4475_v25, %v4479_v26  ;;  %v10911_v31 = vcombine.low %v4475_v25, %v4479_v26 }
 0x2b7   :  { %5309 = vmatpush1.bf16.msra.mxu0 %v10925_v29  ;;  %v4483_v29 = vld [vmem:[%s14682_s4 + $0x318] sm:$0xff] }
 0x2b8   :  { %5310 = vmatprep.subr.bf16.mxu0 %v10934_v30  ;;  %v4487_v30 = vld [vmem:[%s14682_s4 + $0x338] sm:$0xff] }
 0x2b9   :  { %v10920_v32 = vcombine.high %v4483_v29, %v4487_v30  ;;  %v10919_v35 = vcombine.low %v4483_v29, %v4487_v30 }
 0x2bb   :  { %5311 = vmatpush1.bf16.msra.mxu0 %v10933_v33  ;;  %v4491_v33 = vld [vmem:[%s14682_s4 + $0x358] sm:$0xff] }
 0x2bc   :  { %5312 = vmatprep.subr.bf16.mxu0 %v10942_v34  ;;  %v4495_v34 = vld [vmem:[%s14682_s4 + $0x378] sm:$0xff] }
 0x2bd   :  { %v10928_v36 = vcombine.high %v4491_v33, %v4495_v34  ;;  %v10927_v39 = vcombine.low %v4491_v33, %v4495_v34 }
 0x2bf   :  { %5313 = vmatpush1.bf16.msra.mxu0 %v10941_v37  ;;  %v4499_v37 = vld [vmem:[%s14682_s4 + $0x398] sm:$0xff] }
 0x2c0   :  { %5325 = vmatprep.subr.bf16.mxu0 %v10824_v38  ;;  %v4503_v38 = vld [vmem:[%s14682_s4 + $0x3b8] sm:$0xff] }
 0x2c1   :  { %v10936_v40 = vcombine.high %v4499_v37, %v4503_v38  ;;  %v10935_v43 = vcombine.low %v4499_v37, %v4503_v38 }
 0x2c2   :  { %5315 = vmatmul.mubr.bf16.vlgmr.msra.gmra.mrb[12].mxu0 %v13389_v19 }
 0x2c3   :  { %5326 = vmatpush1.bf16.msra.mxu0 %v10823_v41  ;;  %5357 = vmatprep.mubr.bf16.mxu0 %v13385_v18  ;;  %v4423_v18 = vld [vmem:[%s14682_s4 + $0x138] sm:$0xff] }
 0x2c4   :  { %5327 = vmatprep.subr.bf16.mxu0 %v10832_v42  ;;  %v10856_v54 = vcombine.high %v4419_v52, %v4423_v18  ;;  %v10855_v57 = vcombine.low %v4419_v52, %v4423_v18  ;;  %v4507_v41 = vld [vmem:[%s14682_s4 + $0x3d8] sm:$0xff] }
 0x2c5   :  { %v4511_v42 = vld [vmem:[%s14682_s4 + $0x3f8] sm:$0xff] }
 0x2c6   :  { %v10944_v44 = vcombine.high %v4507_v41, %v4511_v42 }
 0x2c7   :  { %5328 = vmatpush1.bf16.msra.mxu0 %v10831_v45  ;;  %v10943_v45 = vcombine.low %v4507_v41, %v4511_v42 }
 0x2c8   :  { %5329 = vmatprep.subr.bf16.mxu0 %v10840_v46 }
 0x2cb   :  { %5330 = vmatpush1.bf16.msra.mxu0 %v10839_v50 }
 0x2cc   :  { %5331 = vmatprep.subr.bf16.mxu0 %v10848_v51  ;;  %v13685_v51 = vsub.s32 2, %v13350_v60 }
 0x2cf   :  { %5332 = vmatpush1.bf16.msra.mxu0 %v10847_v53 }
 0x2d0   :  { %5333 = vmatprep.subr.bf16.mxu0 %v10856_v54 }
 0x2d3   :  { %5334 = vmatpush1.bf16.msra.mxu0 %v10855_v57 }
 0x2d4   :  { %5335 = vmatprep.subr.bf16.mxu0 %v10864_v58  ;;  %v13707_v58 = vsub.s32 5, %v13350_v60 }
 0x2d7   :  { %5336 = vmatpush1.bf16.msra.mxu0 %v10863_v1 }
 0x2d8   :  { %5337 = vmatprep.subr.bf16.mxu0 %v10872_v2 }
 0x2db   :  { %5338 = vmatpush1.bf16.msra.mxu0 %v10871_v5 }
 0x2dc   :  { %5339 = vmatprep.subr.bf16.mxu0 %v10880_v6 }
 0x2df   :  { %5340 = vmatpush1.bf16.msra.mxu0 %v10879_v9 }
 0x2e0   :  { %5341 = vmatprep.subr.bf16.mxu0 %v10888_v10 }
 0x2e3   :  { %5342 = vmatpush1.bf16.msra.mxu0 %v10887_v16 }
 0x2e4   :  { %5343 = vmatprep.subr.bf16.mxu0 %v10896_v20 }
 0x2e7   :  { %5344 = vmatpush1.bf16.msra.mxu0 %v10895_v23  ;;  %v13754_v23 = vsel %vm5370_vm3, 0.0, %v11635_v22 }
 0x2e8   :  { %5345 = vmatprep.subr.bf16.mxu0 %v10904_v24 }
 0x2eb   :  { %5346 = vmatpush1.bf16.msra.mxu0 %v10903_v27 }
 0x2ec   :  { %5347 = vmatprep.subr.bf16.mxu0 %v10912_v28 }
 0x2ef   :  { %5348 = vmatpush1.bf16.msra.mxu0 %v10911_v31 }
 0x2f0   :  { %5349 = vmatprep.subr.bf16.mxu0 %v10920_v32 }
 0x2f3   :  { %5350 = vmatpush1.bf16.msra.mxu0 %v10919_v35 }
 0x2f4   :  { %5351 = vmatprep.subr.bf16.mxu0 %v10928_v36 }
 0x2f7   :  { %5352 = vmatpush1.bf16.msra.mxu0 %v10927_v39 }
 0x2f8   :  { %5353 = vmatprep.subr.bf16.mxu0 %v10936_v40 }
 0x2fb   :  { %5354 = vmatpush1.bf16.msra.mxu0 %v10935_v43 }
 0x2fc   :  { %5355 = vmatprep.subr.bf16.mxu0 %v10944_v44 }
 0x2ff   :  { %5356 = vmatpush1.bf16.msra.mxu0 %v10943_v45 }
 0x300   :  { %11167 = vmatprep.subr.mxu0 %v11626_v49 }
 0x302   :  { %5358 = vmatmul.mubr.bf16.vlgmr.msra.gmra.mrb[16].mxu0 %v13389_v19  ;;  %v13690_v19 = vld [vmem:[%s14683_s5] sm:$0xff] }
 0x303   :  { %11169 = vmatprep.mubr.msk.f32.mxu0 %vm11634_vm1, %v11626_v49  ;;  %v4527_v52 = vrot.slane %v13690_v19, %v13685_v51  ;;  %v4539_v62 = vrot.slane %v13690_v19, %v13707_v58  ;;  %v4519_v5 = vrot.slane %v13690_v19, %v13359_v63 }
 0x315   :  { %v5230_v46 = vpop.f32.mrb[4].mxu0 }
 0x316   :  { %v13676_v47 = vpop.f32.mrb[5].mxu0  ;;  %v13722_v7 = vadd.f32 %v5230_v46, %v4519_v5 }
 0x317   :  { %v5234_v48 = vpop.f32.mrb[6].mxu0 }
 0x318   :  { %v13678_v50 = vpop.f32.mrb[7].mxu0  ;;  %v13730_v9 = vadd.f32 %v5234_v48, %v4519_v5 }
 0x355   :  { %v5273_v18 = vpop.f32.mrb[8].mxu0 }
 0x356   :  { %v13694_v53 = vadd.f32 %v5273_v18, %v4527_v52  ;;  %v13696_v54 = vpop.f32.mrb[9].mxu0 }
 0x357   :  { %v5277_v55 = vpop.f32.mrb[10].mxu0 }
 0x358   :  { %v13698_v56 = vpop.f32.mrb[11].mxu0  ;;  %5373 = vrot.lane.b32.xlu0 %v13694_v53, %s14708_s24  ;;  %v13702_v57 = vadd.f32 %v5277_v55, %v4527_v52 }
 0x35c   :  { %5452 = vrot.lane.b32.xlu0 %v13702_v57, %s14708_s24 }
 0x395   :  { %v13711_v0 = vpop.f32.mrb[12].mxu0 }
 0x396   :  { %v5318_v1 = vpop.f32.mrb[13].mxu0 }
 0x397   :  { %v13713_v2 = vadd.f32 %v5318_v1, %v4539_v62  ;;  %v13715_v3 = vpop.f32.mrb[14].mxu0 }
 0x398   :  { %v5322_v4 = vpop.f32.mrb[15].mxu0 }
 0x399   :  { %11178 = vmatpush3.msra.mxu1 %v13713_v2  ;;  %v13733_v10 = vadd.f32 %v5322_v4, %v4539_v62 }
 0x39a   :  { %11187 = vmatprep.subr.mxu1 %v11626_v49 }
 0x3ca   :  { %v5374_v6 = vpop.permute.xlu0 %5373 }
 0x3cb   :  { %11168 = vmatpush3.xpose.msk.msra.mxu0 %vm5375_vm2, %v5374_v6 }
 0x3cc   :  { %11172 = vmatprep.subr.mxu0 %v11626_v49 }
 0x3ce   :  { %v5453_v8 = vpop.permute.xlu0 %5452  ;;  %11170 = vmatmul.mubr.msk.f32.vlgmr.msra.gmra.mrb[20].mxu0 %vm5375_vm2, %v13722_v7 }
 0x3cf   :  { %11173 = vmatpush3.xpose.msk.msra.mxu0 %vm5375_vm2, %v5453_v8  ;;  %11174 = vmatprep.mubr.msk.f32.mxu0 %vm11634_vm1, %v11626_v49 }
 0x3d0   :  { %11182 = vmatprep.subr.mxu0 %v11626_v49 }
 0x3d2   :  { %11175 = vmatmul.mubr.msk.f32.vlgmr.msra.gmra.mrb[22].mxu0 %vm5375_vm2, %v13730_v9 }
 0x3d3   :  { %11183 = vmatpush3.msra.mxu0 %v13733_v10  ;;  %11184 = vmatprep.mubr.msk.f32.mxu0 %vm11634_vm1, %v11626_v49 }
 0x3d4   :  { %11192 = vmatprep.subr.mxu0 %v11626_v49 }
 0x3d5   :  { %v13741_v11 = vpop.f32.mrb[16].mxu0 }
 0x3d6   :  { %v13743_v15 = vpop.f32.mrb[17].mxu0 }
 0x3d7   :  { %v13745_v16 = vpop.f32.mrb[18].mxu0 }
 0x3d8   :  { %v13747_v20 = vpop.f32.mrb[19].mxu0 }
 0x4a1   :  { %v5447_v24 = vpop.f32.mrb[20].mxu0 }
 0x4a2   :  { %v5448_v25 = vadd.f32 %v5447_v24, %v13754_v23  ;;  %v11171_v26 = vpop.f32.mrb[21].mxu0 }
 0x4a4   :  { %v5529_v27 = vsel %vm4296_vm0, %v5448_v25, -inf }
 0x4a5   :  { %5530 = vmax.xlane.f32.xlu1 %v5529_v27  ;;  %v5525_v28 = vpop.f32.mrb[22].mxu0 }
 0x4a6   :  { %v5526_v29 = vadd.f32 %v5525_v28, %v13754_v23  ;;  %v11176_v30 = vpop.f32.mrb[23].mxu0 }
 0x4a8   :  { %v5532_v59 = vsel %vm4296_vm0, %v5526_v29, -inf }
 0x4a9   :  { %5533 = vmax.xlane.f32.xlu1 %v5532_v59 }
 0x4ba   :  { %5699 = vrot.lane.b32.xlu1 %v13694_v53, %s11636_s2 }
 0x4be   :  { %5777 = vrot.lane.b32.xlu1 %v13702_v57, %s11636_s2 }
 0x4c2   :  { %5697 = vrot.lane.b32.xlu1 %v13722_v7, %s11637_s27 }
 0x532   :  { %v5531_v31 = vpop.xlane.xlu1 %5530 }
 0x533   :  { %v5535_v32 = vsub.f32 %v5448_v25, %v5531_v31 }
 0x535   :  { %v5537_v33 = vmul.f32 1.442695, %v5535_v32 }
 0x536   :  { %v5534_v34 = vpop.xlane.xlu1 %5533 }
 0x537   :  { %11516 = vpow2.f32 %v5537_v33  ;;  %v5536_v35 = vsub.f32 %v5526_v29, %v5534_v34 }
 0x539   :  { %v5539_v36 = vmul.f32 1.442695, %v5536_v35 }
 0x53a   :  { %v5700_v41 = vpop.permute.xlu1 %5699 }
 0x53b   :  { %11518 = vpow2.f32 %v5539_v36 }
 0x53e   :  { %v5778_v42 = vpop.permute.xlu1 %5777 }
 0x541   :  { %v11517_v37 = vpop.eup %11516 }
 0x542   :  { %v5541_v38 = vsel %vm4296_vm0, %v11517_v37, 0.0  ;;  %v5698_v43 = vpop.permute.xlu1 %5697 }
 0x543   :  { %5542 = vadd.xlane.f32.xlu0 %v5541_v38 }
 0x545   :  { %v11519_v39 = vpop.eup %11518 }
 0x546   :  { %v5544_v40 = vsel %vm4296_vm0, %v11519_v39, 0.0 }
 0x547   :  { %5545 = vadd.xlane.f32.xlu1 %v5544_v40 }
 0x558   :  { %5775 = vrot.lane.b32.xlu1 %v13730_v9, %s11637_s27 }
 0x5d0   :  { %v5543_v44 = vpop.xlane.xlu0 %5542 }
 0x5d1   :  { %11520 = vrcp.f32 %v5543_v44 }
 0x5d4   :  { %v5546_v45 = vpop.xlane.xlu1 %5545 }
 0x5d5   :  { %11522 = vrcp.f32 %v5546_v45 }
 0x5d8   :  { %v5776_v55 = vpop.permute.xlu1 %5775 }
 0x5db   :  { %v11521_v46 = vpop.eup %11520 }
 0x5dc   :  { %v5549_v48 = vmul.f32 %v11521_v46, %v11517_v37 }
 0x5de   :  { %11180 = vmatmul.mubr.msk.f32.vlgmr.msra.gmra.mrb[0].mxu1 %vm4296_vm0, %v5549_v48 }
 0x5df   :  { %v11523_v52 = vpop.eup %11522  ;;  %11188 = vmatpush3.xpose.msk.msra.mxu1 %vm5375_vm2, %v5700_v41  ;;  %11189 = vmatprep.mubr.msk.f32.mxu1 %vm11634_vm1, %v11626_v49 }
 0x5e0   :  { %v5550_v18 = vmul.f32 %v11523_v52, %v11519_v39  ;;  %11197 = vmatprep.subr.mxu1 %v11626_v49 }
 0x5e2   :  { %11185 = vmatmul.mubr.msk.f32.vlgmr.msra.gmra.mrb[24].mxu0 %vm4296_vm0, %v5550_v18  ;;  %11190 = vmatmul.mubr.msk.f32.vlgmr.msra.gmra.mrb[2].mxu1 %vm5375_vm2, %v5698_v43 }
 0x5e3   :  { %11193 = vmatpush3.xpose.msk.msra.mxu0 %vm5375_vm2, %v5778_v42  ;;  %11194 = vmatprep.mubr.msk.f32.mxu0 %vm11634_vm1, %v11626_v49  ;;  %v13807_v42 = vsub.s32 3, %v13350_v60 }
 0x5e4   :  { %11202 = vmatprep.subr.mxu0 %v11626_v49  ;;  %11199 = vmatprep.mubr.msk.f32.mxu1 %vm11634_vm1, %v11626_v49 }
 0x5e5   :  { %v4531_v43 = vrot.slane %v13690_v19, %v13807_v42 }
 0x5e6   :  { %11195 = vmatmul.mubr.msk.f32.vlgmr.msra.gmra.mrb[26].mxu0 %vm5375_vm2, %v5776_v55 }
 0x5e7   :  { %11204 = vmatprep.mubr.msk.f32.mxu0 %vm11634_vm1, %v11626_v49  ;;  %v13812_v46 = vadd.f32 %v13696_v54, %v4531_v43  ;;  %v13821_v18 = vadd.f32 %v13698_v56, %v4531_v43 }
 0x6b1   :  { %v13786_v62 = vpop.f32.mrb[0].mxu1 }
 0x6b2   :  { %v11181_v1 = vpop.f32.mrb[1].mxu1 }
 0x6b5   :  { %v13788_v4 = vpop.f32.mrb[24].mxu0  ;;  %v5771_v5 = vpop.f32.mrb[2].mxu1 }
 0x6b6   :  { %v5772_v6 = vadd.f32 %v5771_v5, %v13754_v23  ;;  %v11186_v8 = vpop.f32.mrb[25].mxu0  ;;  %v11191_v22 = vpop.f32.mrb[3].mxu1 }
 0x6b8   :  { %v5853_v24 = vsel %vm4296_vm0, %v5772_v6, -inf }
 0x6b9   :  { %5854 = vmax.xlane.f32.xlu0 %v5853_v24  ;;  %v5849_v25 = vpop.f32.mrb[26].mxu0 }
 0x6ba   :  { %v5850_v26 = vadd.f32 %v5849_v25, %v13754_v23  ;;  %v11196_v27 = vpop.f32.mrb[27].mxu0 }
 0x6bc   :  { %v5856_v28 = vsel %vm4296_vm0, %v5850_v26, -inf }
 0x6bd   :  { %5857 = vmax.xlane.f32.xlu1 %v5856_v28 }
 0x6ce   :  { %6106 = vrot.lane.b32.xlu1 %v13730_v9, %s14708_s24 }
 0x6cf   :  { %5876 = vrot.lane.b32.xlu0 %v13713_v2, %s11637_s27 }
 0x6d3   :  { %5953 = vrot.lane.b32.xlu0 %v13733_v10, %s11637_s27 }
 0x746   :  { %v5855_v29 = vpop.xlane.xlu0 %5854 }
 0x747   :  { %v5859_v30 = vsub.f32 %v5772_v6, %v5855_v29 }
 0x749   :  { %v5861_v59 = vmul.f32 1.442695, %v5859_v30 }
 0x74a   :  { %v5877_v31 = vpop.permute.xlu0 %5876  ;;  %v5858_v32 = vpop.xlane.xlu1 %5857 }
 0x74b   :  { %11524 = vpow2.f32 %v5861_v59  ;;  %v5860_v33 = vsub.f32 %v5850_v26, %v5858_v32  ;;  %11198 = vmatpush3.msra.mxu1 %v5877_v31 }
 0x74c   :  { %11207 = vmatprep.subr.mxu1 %v11626_v49 }
 0x74d   :  { %v5863_v34 = vmul.f32 1.442695, %v5860_v33 }
 0x74e   :  { %v5954_v35 = vpop.permute.xlu0 %5953  ;;  %v6107_v54 = vpop.permute.xlu1 %6106 }
 0x74f   :  { %11526 = vpow2.f32 %v5863_v34  ;;  %11203 = vmatpush3.msra.mxu0 %v5954_v35 }
 0x750   :  { %11212 = vmatprep.subr.mxu0 %v11626_v49 }
 0x755   :  { %v11525_v36 = vpop.eup %11524 }
 0x756   :  { %v5865_v37 = vsel %vm4296_vm0, %v11525_v36, 0.0 }
 0x757   :  { %5866 = vadd.xlane.f32.xlu0 %v5865_v37 }
 0x759   :  { %v11527_v38 = vpop.eup %11526 }
 0x75a   :  { %v5868_v39 = vsel %vm4296_vm0, %v11527_v38, 0.0 }
 0x75b   :  { %5869 = vadd.xlane.f32.xlu0 %v5868_v39 }
 0x771   :  { %6029 = vrot.lane.b32.xlu0 %v13722_v7, %s14708_s24 }
 0x7e4   :  { %v5867_v40 = vpop.xlane.xlu0 %5866 }
 0x7e5   :  { %11528 = vrcp.f32 %v5867_v40 }
 0x7e8   :  { %v5870_v41 = vpop.xlane.xlu0 %5869 }
 0x7e9   :  { %11530 = vrcp.f32 %v5870_v41 }
 0x7ec   :  { %v6030_v55 = vpop.permute.xlu0 %6029 }
 0x7ef   :  { %v11529_v44 = vpop.eup %11528 }
 0x7f0   :  { %v5873_v45 = vmul.f32 %v11529_v44, %v11525_v36 }
 0x7f2   :  { %11200 = vmatmul.mubr.msk.f32.vlgmr.msra.gmra.mrb[4].mxu1 %vm4296_vm0, %v5873_v45 }
 0x7f3   :  { %v11531_v48 = vpop.eup %11530  ;;  %11208 = vmatpush3.xpose.msk.msra.mxu1 %vm5375_vm2, %v13812_v46  ;;  %11209 = vmatprep.mubr.msk.f32.mxu1 %vm11634_vm1, %v11626_v49 }
 0x7f4   :  { %v5874_v52 = vmul.f32 %v11531_v48, %v11527_v38  ;;  %11217 = vmatprep.subr.mxu1 %v11626_v49 }
 0x7f6   :  { %11205 = vmatmul.mubr.msk.f32.vlgmr.msra.gmra.mrb[28].mxu0 %vm4296_vm0, %v5874_v52  ;;  %11210 = vmatmul.mubr.msk.f32.vlgmr.msra.gmra.mrb[6].mxu1 %vm5375_vm2, %v6030_v55 }
 0x7f7   :  { %11213 = vmatpush3.xpose.msk.msra.mxu0 %vm5375_vm2, %v13821_v18  ;;  %11214 = vmatprep.mubr.msk.f32.mxu0 %vm11634_vm1, %v11626_v49 }
 0x7f8   :  { %11222 = vmatprep.subr.mxu0 %v11626_v49  ;;  %11219 = vmatprep.mubr.msk.f32.mxu1 %vm11634_vm1, %v11626_v49 }
 0x7fa   :  { %11215 = vmatmul.mubr.msk.f32.vlgmr.msra.gmra.mrb[30].mxu0 %vm5375_vm2, %v6107_v54 }
 0x7fb   :  { %11224 = vmatprep.mubr.msk.f32.mxu0 %vm11634_vm1, %v11626_v49 }
 0x8c5   :  { %v13835_v56 = vpop.f32.mrb[4].mxu1 }
 0x8c6   :  { %v11201_v1 = vpop.f32.mrb[5].mxu1 }
 0x8c9   :  { %v13837_v5 = vpop.f32.mrb[28].mxu0  ;;  %v6102_v6 = vpop.f32.mrb[6].mxu1 }
 0x8ca   :  { %v11426_v8 = vpack.i.bf16 %v13837_v5, %v13835_v56  ;;  %v6103_v22 = vadd.f32 %v6102_v6, %v13754_v23  ;;  %v11206_v24 = vpop.f32.mrb[29].mxu0  ;;  %v11211_v25 = vpop.f32.mrb[7].mxu1 }
 0x8cc   :  { %v6183_v26 = vsel %vm4296_vm0, %v6103_v22, -inf }
 0x8cd   :  { %6184 = vmax.xlane.f32.xlu0 %v6183_v26  ;;  %v6179_v27 = vpop.f32.mrb[30].mxu0 }
 0x8ce   :  { %v6180_v28 = vadd.f32 %v6179_v27, %v13754_v23  ;;  %v11216_v29 = vpop.f32.mrb[31].mxu0 }
 0x8d0   :  { %v6186_v30 = vsel %vm4296_vm0, %v6180_v28, -inf }
 0x8d1   :  { %6187 = vmax.xlane.f32.xlu1 %v6186_v30 }
 0x8e2   :  { %6281 = vrot.lane.b32.xlu1 %v13733_v10, %s14708_s24 }
 0x8e3   :  { %6205 = vrot.lane.b32.xlu0 %v13713_v2, %s14708_s24 }
 0x8e6   :  { %6357 = vrot.lane.b32.xlu1 %v13722_v7, %s11636_s2 }
 0x8e7   :  { %6359 = vrot.lane.b32.xlu0 %v13812_v46, %s11637_s27 }
 0x8eb   :  { %6437 = vrot.lane.b32.xlu0 %v13821_v18, %s11637_s27 }
 0x95a   :  { %v6185_v59 = vpop.xlane.xlu0 %6184 }
 0x95b   :  { %v6189_v31 = vsub.f32 %v6103_v22, %v6185_v59 }
 0x95d   :  { %v6191_v32 = vmul.f32 1.442695, %v6189_v31 }
 0x95e   :  { %v6206_v33 = vpop.permute.xlu0 %6205  ;;  %v6188_v34 = vpop.xlane.xlu1 %6187 }
 0x95f   :  { %11532 = vpow2.f32 %v6191_v32  ;;  %v6190_v35 = vsub.f32 %v6180_v28, %v6188_v34  ;;  %11218 = vmatpush3.msra.mxu1 %v6206_v33 }
 0x960   :  { %11227 = vmatprep.subr.mxu1 %v11626_v49 }
 0x961   :  { %v6193_v36 = vmul.f32 1.442695, %v6190_v35 }
 0x962   :  { %v6282_v37 = vpop.permute.xlu1 %6281  ;;  %v6360_v41 = vpop.permute.xlu0 %6359 }
 0x963   :  { %11534 = vpow2.f32 %v6193_v36  ;;  %11223 = vmatpush3.msra.mxu0 %v6282_v37 }
 0x964   :  { %11232 = vmatprep.subr.mxu0 %v11626_v49 }
 0x966   :  { %v6438_v43 = vpop.permute.xlu0 %6437 }
 0x969   :  { %v11533_v7 = vpop.eup %11532 }
 0x96a   :  { %v6195_v38 = vsel %vm4296_vm0, %v11533_v7, 0.0 }
 0x96b   :  { %6196 = vadd.xlane.f32.xlu0 %v6195_v38 }
 0x96d   :  { %v11535_v39 = vpop.eup %11534 }
 0x96e   :  { %v6198_v40 = vsel %vm4296_vm0, %v11535_v39, 0.0 }
 0x96f   :  { %6199 = vadd.xlane.f32.xlu0 %v6198_v40 }
 0x985   :  { %6435 = vrot.lane.b32.xlu0 %v13730_v9, %s11636_s2  ;;  %v6358_v9 = vpop.permute.xlu1 %6357 }
 0x9f8   :  { %v6197_v44 = vpop.xlane.xlu0 %6196 }
 0x9f9   :  { %11536 = vrcp.f32 %v6197_v44 }
 0x9fc   :  { %v6200_v45 = vpop.xlane.xlu0 %6199 }
 0x9fd   :  { %11538 = vrcp.f32 %v6200_v45 }
 0xa00   :  { %v6436_v1 = vpop.permute.xlu0 %6435 }
 0xa03   :  { %v11537_v48 = vpop.eup %11536 }
 0xa04   :  { %v6203_v52 = vmul.f32 %v11537_v48, %v11533_v7  ;;  %v13900_v48 = vsub.s32 6, %v13350_v60 }
 0xa06   :  { %11220 = vmatmul.mubr.msk.f32.vlgmr.msra.gmra.mrb[8].mxu1 %vm4296_vm0, %v6203_v52 }
 0xa07   :  { %v11539_v55 = vpop.eup %11538  ;;  %11228 = vmatpush3.xpose.msk.msra.mxu1 %vm5375_vm2, %v6360_v41  ;;  %11229 = vmatprep.mubr.msk.f32.mxu1 %vm11634_vm1, %v11626_v49 }
 0xa08   :  { %v6204_v54 = vmul.f32 %v11539_v55, %v11535_v39  ;;  %11237 = vmatprep.subr.mxu1 %v11626_v49  ;;  %v4523_v55 = vrot.slane %v13690_v19, %v13353_v61 }
 0xa0a   :  { %11225 = vmatmul.mubr.msk.f32.vlgmr.msra.gmra.mrb[32].mxu0 %vm4296_vm0, %v6204_v54  ;;  %11230 = vmatmul.mubr.msk.f32.vlgmr.msra.gmra.mrb[10].mxu1 %vm5375_vm2, %v6358_v9  ;;  %v4543_v9 = vrot.slane %v13690_v19, %v13900_v48 }
 0xa0b   :  { %11233 = vmatpush3.xpose.msk.msra.mxu0 %vm5375_vm2, %v6438_v43  ;;  %11234 = vmatprep.mubr.msk.f32.mxu0 %vm11634_vm1, %v11626_v49 }
 0xa0c   :  { %11242 = vmatprep.subr.mxu0 %v11626_v49  ;;  %11239 = vmatprep.mubr.msk.f32.mxu1 %vm11634_vm1, %v11626_v49 }
 0xa0e   :  { %11235 = vmatmul.mubr.msk.f32.vlgmr.msra.gmra.mrb[34].mxu0 %vm5375_vm2, %v6436_v1 }
 0xa0f   :  { %11244 = vmatprep.mubr.msk.f32.mxu0 %vm11634_vm1, %v11626_v49 }
 0xad9   :  { %v13877_v6 = vpop.f32.mrb[8].mxu1 }
 0xada   :  { %v11221_v22 = vpop.f32.mrb[9].mxu1 }
 0xadd   :  { %v13879_v24 = vpop.f32.mrb[32].mxu0  ;;  %v6431_v25 = vpop.f32.mrb[10].mxu1 }
 0xade   :  { %v11436_v26 = vpack.i.bf16 %v13879_v24, %v13877_v6  ;;  %v6432_v27 = vadd.f32 %v6431_v25, %v13754_v23  ;;  %v11226_v28 = vpop.f32.mrb[33].mxu0  ;;  %v11231_v29 = vpop.f32.mrb[11].mxu1  ;;  %v13911_v25 = vadd.f32 %v13676_v47, %v4523_v55  ;;  %v13929_v47 = vadd.f32 %v13745_v16, %v4543_v9 }
 0xadf   :  { %v13915_v28 = vadd.f32 %v13741_v11, %v4543_v9 }
 0xae0   :  { %v6513_v30 = vsel %vm4296_vm0, %v6432_v27, -inf }
 0xae1   :  { %6514 = vmax.xlane.f32.xlu1 %v6513_v30  ;;  %v6509_v59 = vpop.f32.mrb[34].mxu0  ;;  %v13923_v30 = vadd.f32 %v13678_v50, %v4523_v55 }
 0xae2   :  { %v6510_v31 = vadd.f32 %v6509_v59, %v13754_v23  ;;  %v11236_v32 = vpop.f32.mrb[35].mxu0 }
 0xae4   :  { %v6516_v33 = vsel %vm4296_vm0, %v6510_v31, -inf }
 0xae5   :  { %6517 = vmax.xlane.f32.xlu0 %v6516_v33 }
 0xaf2   :  { %6611 = vrot.lane.b32.xlu1 %v13733_v10, %s11636_s2 }
 0xafb   :  { %6535 = vrot.lane.b32.xlu0 %v13713_v2, %s11636_s2 }
 0xb6e   :  { %v6515_v34 = vpop.xlane.xlu1 %6514 }
 0xb6f   :  { %v6519_v35 = vsub.f32 %v6432_v27, %v6515_v34 }
 0xb71   :  { %v6521_v36 = vmul.f32 1.442695, %v6519_v35 }
 0xb72   :  { %v6612_v37 = vpop.permute.xlu1 %6611  ;;  %v6518_v7 = vpop.xlane.xlu0 %6517 }
 0xb73   :  { %11540 = vpow2.f32 %v6521_v36  ;;  %v6520_v38 = vsub.f32 %v6510_v31, %v6518_v7  ;;  %11243 = vmatpush3.msra.mxu0 %v6612_v37 }
 0xb74   :  { %11252 = vmatprep.subr.mxu0 %v11626_v49 }
 0xb75   :  { %v6523_v39 = vmul.f32 1.442695, %v6520_v38 }
 0xb76   :  { %v6536_v40 = vpop.permute.xlu0 %6535 }
 0xb77   :  { %11542 = vpow2.f32 %v6523_v39  ;;  %11238 = vmatpush3.msra.mxu1 %v6536_v40 }
 0xb78   :  { %11247 = vmatprep.subr.mxu1 %v11626_v49 }
 0xb7d   :  { %v11541_v10 = vpop.eup %11540 }
 0xb7e   :  { %v6525_v41 = vsel %vm4296_vm0, %v11541_v10, 0.0 }
 0xb7f   :  { %6526 = vadd.xlane.f32.xlu0 %v6525_v41 }
 0xb81   :  { %v11543_v2 = vpop.eup %11542 }
 0xb82   :  { %v6528_v43 = vsel %vm4296_vm0, %v11543_v2, 0.0 }
 0xb83   :  { %6529 = vadd.xlane.f32.xlu1 %v6528_v43 }
 0xb94   :  { %6687 = vrot.lane.b32.xlu1 %v13812_v46, %s14708_s24 }
 0xb95   :  { %6764 = vrot.lane.b32.xlu0 %v13821_v18, %s14708_s24 }
 0xc0c   :  { %v6527_v44 = vpop.xlane.xlu0 %6526 }
 0xc0d   :  { %11544 = vrcp.f32 %v6527_v44 }
 0xc10   :  { %v6530_v45 = vpop.xlane.xlu1 %6529  ;;  %v6765_v29 = vpop.permute.xlu0 %6764 }
 0xc11   :  { %11546 = vrcp.f32 %v6530_v45 }
 0xc14   :  { %v6688_v1 = vpop.permute.xlu1 %6687 }
 0xc17   :  { %v11545_v52 = vpop.eup %11544 }
 0xc18   :  { %v6533_v54 = vmul.f32 %v11545_v52, %v11541_v10 }
 0xc1a   :  { %11240 = vmatmul.mubr.msk.f32.vlgmr.msra.gmra.mrb[12].mxu1 %vm4296_vm0, %v6533_v54 }
 0xc1b   :  { %v11547_v22 = vpop.eup %11546  ;;  %11248 = vmatpush3.xpose.msk.msra.mxu1 %vm5375_vm2, %v6688_v1  ;;  %11249 = vmatprep.mubr.msk.f32.mxu1 %vm11634_vm1, %v11626_v49 }
 0xc1c   :  { %v6534_v27 = vmul.f32 %v11547_v22, %v11543_v2  ;;  %11257 = vmatprep.subr.mxu1 %v11626_v49 }
 0xc1e   :  { %11245 = vmatmul.mubr.msk.f32.vlgmr.msra.gmra.mrb[36].mxu0 %vm4296_vm0, %v6534_v27  ;;  %11250 = vmatmul.mubr.msk.f32.vlgmr.msra.gmra.mrb[14].mxu1 %vm5375_vm2, %v13911_v25 }
 0xc1f   :  { %11253 = vmatpush3.xpose.msk.msra.mxu0 %vm5375_vm2, %v6765_v29  ;;  %11258 = vmatpush3.msra.mxu1 %v13915_v28 }
 0xc20   :  { %11254 = vmatprep.mubr.msk.f32.mxu0 %vm11634_vm1, %v11626_v49  ;;  %11262 = vmatprep.subr.mxu0 %v11626_v49 }
 0xc21   :  { %11259 = vmatprep.mubr.msk.f32.mxu1 %vm11634_vm1, %v11626_v49  ;;  %11267 = vmatprep.subr.mxu1 %v11626_v49 }
 0xc22   :  { %11255 = vmatmul.mubr.msk.f32.vlgmr.msra.gmra.mrb[38].mxu0 %vm5375_vm2, %v13923_v30 }
 0xc23   :  { %11263 = vmatpush3.msra.mxu0 %v13929_v47  ;;  %11264 = vmatprep.mubr.msk.f32.mxu0 %vm11634_vm1, %v11626_v49 }
 0xc24   :  { %11272 = vmatprep.subr.mxu0 %v11626_v49 }
 0xced   :  { %v13940_v50 = vpop.f32.mrb[12].mxu1 }
 0xcee   :  { %v11241_v11 = vpop.f32.mrb[13].mxu1 }
 0xcf1   :  { %v13942_v16 = vpop.f32.mrb[36].mxu0  ;;  %v6760_v59 = vpop.f32.mrb[14].mxu1 }
 0xcf2   :  { %v11446_v31 = vpack.i.bf16 %v13942_v16, %v13940_v50  ;;  %v6761_v32 = vadd.f32 %v6760_v59, %v13754_v23  ;;  %v11246_v33 = vpop.f32.mrb[37].mxu0  ;;  %v11251_v34 = vpop.f32.mrb[15].mxu1 }
 0xcf4   :  { %v6841_v35 = vsel %vm4296_vm0, %v6761_v32, -inf }
 0xcf5   :  { %6842 = vmax.xlane.f32.xlu1 %v6841_v35  ;;  %v6837_v36 = vpop.f32.mrb[38].mxu0 }
 0xcf6   :  { %v6838_v37 = vadd.f32 %v6837_v36, %v13754_v23  ;;  %v11256_v7 = vpop.f32.mrb[39].mxu0 }
 0xcf8   :  { %v6844_v38 = vsel %vm4296_vm0, %v6838_v37, -inf }
 0xcf9   :  { %6845 = vmax.xlane.f32.xlu0 %v6844_v38 }
 0xd06   :  { %7089 = vrot.lane.b32.xlu1 %v13821_v18, %s11636_s2 }
 0xd0f   :  { %7011 = vrot.lane.b32.xlu0 %v13812_v46, %s11636_s2 }
 0xd82   :  { %v6843_v39 = vpop.xlane.xlu1 %6842 }
 0xd83   :  { %v6847_v40 = vsub.f32 %v6761_v32, %v6843_v39 }
 0xd85   :  { %v6849_v10 = vmul.f32 1.442695, %v6847_v40 }
 0xd86   :  { %v6846_v41 = vpop.xlane.xlu0 %6845  ;;  %v7090_v18 = vpop.permute.xlu1 %7089 }
 0xd87   :  { %11548 = vpow2.f32 %v6849_v10  ;;  %v6848_v2 = vsub.f32 %v6838_v37, %v6846_v41 }
 0xd89   :  { %v6851_v43 = vmul.f32 1.442695, %v6848_v2 }
 0xd8a   :  { %v7012_v46 = vpop.permute.xlu0 %7011 }
 0xd8b   :  { %11550 = vpow2.f32 %v6851_v43 }
 0xd91   :  { %v11549_v44 = vpop.eup %11548 }
 0xd92   :  { %v6853_v45 = vsel %vm4296_vm0, %v11549_v44, 0.0 }
 0xd93   :  { %6854 = vadd.xlane.f32.xlu0 %v6853_v45 }
 0xd95   :  { %v11551_v52 = vpop.eup %11550 }
 0xd96   :  { %v6856_v55 = vsel %vm4296_vm0, %v11551_v52, 0.0 }
 0xd97   :  { %6857 = vadd.xlane.f32.xlu1 %v6856_v55 }
 0xda8   :  { %7009 = vrot.lane.b32.xlu1 %v13911_v25, %s11637_s27 }
 0xda9   :  { %7087 = vrot.lane.b32.xlu0 %v13923_v30, %s11637_s27 }
 0xe20   :  { %v6855_v54 = vpop.xlane.xlu0 %6854 }
 0xe21   :  { %11552 = vrcp.f32 %v6855_v54 }
 0xe24   :  { %v6858_v9 = vpop.xlane.xlu1 %6857  ;;  %v7088_v59 = vpop.permute.xlu0 %7087 }
 0xe25   :  { %11554 = vrcp.f32 %v6858_v9 }
 0xe28   :  { %v7010_v11 = vpop.permute.xlu1 %7009 }
 0xe2b   :  { %v11553_v1 = vpop.eup %11552 }
 0xe2c   :  { %v6861_v22 = vmul.f32 %v11553_v1, %v11549_v44 }
 0xe2e   :  { %11260 = vmatmul.mubr.msk.f32.vlgmr.msra.gmra.mrb[16].mxu1 %vm4296_vm0, %v6861_v22 }
 0xe2f   :  { %v11555_v27 = vpop.eup %11554  ;;  %11268 = vmatpush3.xpose.msk.msra.mxu1 %vm5375_vm2, %v7012_v46  ;;  %11269 = vmatprep.mubr.msk.f32.mxu1 %vm11634_vm1, %v11626_v49 }
 0xe30   :  { %v6862_v29 = vmul.f32 %v11555_v27, %v11551_v52  ;;  %11277 = vmatprep.subr.mxu1 %v11626_v49 }
 0xe32   :  { %11265 = vmatmul.mubr.msk.f32.vlgmr.msra.gmra.mrb[40].mxu0 %vm4296_vm0, %v6862_v29  ;;  %11270 = vmatmul.mubr.msk.f32.vlgmr.msra.gmra.mrb[18].mxu1 %vm5375_vm2, %v7010_v11  ;;  %v13997_v11 = vsub.s32 4, %v13350_v60 }
 0xe33   :  { %11273 = vmatpush3.xpose.msk.msra.mxu0 %vm5375_vm2, %v7090_v18  ;;  %11274 = vmatprep.mubr.msk.f32.mxu0 %vm11634_vm1, %v11626_v49 }
 0xe34   :  { %11282 = vmatprep.subr.mxu0 %v11626_v49  ;;  %11279 = vmatprep.mubr.msk.f32.mxu1 %vm11634_vm1, %v11626_v49 }
 0xe36   :  { %11275 = vmatmul.mubr.msk.f32.vlgmr.msra.gmra.mrb[42].mxu0 %vm5375_vm2, %v7088_v59  ;;  %v4535_v59 = vrot.slane %v13690_v19, %v13997_v11 }
 0xe37   :  { %11284 = vmatprep.mubr.msk.f32.mxu0 %vm11634_vm1, %v11626_v49 }
 0xf01   :  { %v13976_v32 = vpop.f32.mrb[16].mxu1 }
 0xf02   :  { %v11261_v33 = vpop.f32.mrb[17].mxu1 }
 0xf05   :  { %v13978_v34 = vpop.f32.mrb[40].mxu0  ;;  %v7083_v35 = vpop.f32.mrb[18].mxu1 }
 0xf06   :  { %v7084_v36 = vadd.f32 %v7083_v35, %v13754_v23  ;;  %v11266_v37 = vpop.f32.mrb[41].mxu0  ;;  %v11271_v7 = vpop.f32.mrb[19].mxu1 }
 0xf08   :  { %v7165_v38 = vsel %vm4296_vm0, %v7084_v36, -inf }
 0xf09   :  { %7166 = vmax.xlane.f32.xlu1 %v7165_v38  ;;  %v7161_v39 = vpop.f32.mrb[42].mxu0  ;;  %v14011_v38 = vadd.f32 %v13715_v3, %v4535_v59 }
 0xf0a   :  { %v7162_v40 = vadd.f32 %v7161_v39, %v13754_v23  ;;  %v11276_v10 = vpop.f32.mrb[43].mxu0 }
 0xf0c   :  { %v7168_v41 = vsel %vm4296_vm0, %v7162_v40, -inf }
 0xf0d   :  { %7169 = vmax.xlane.f32.xlu0 %v7168_v41 }
 0xf1a   :  { %7265 = vrot.lane.b32.xlu1 %v13929_v47, %s11637_s27 }
 0xf23   :  { %7188 = vrot.lane.b32.xlu0 %v13915_v28, %s11637_s27 }
 0xf96   :  { %v7167_v2 = vpop.xlane.xlu1 %7166 }
 0xf97   :  { %v7171_v43 = vsub.f32 %v7084_v36, %v7167_v2  ;;  %v14002_v36 = vadd.f32 %v13711_v0, %v4535_v59 }
 0xf99   :  { %v7173_v44 = vmul.f32 1.442695, %v7171_v43 }
 0xf9a   :  { %v7266_v45 = vpop.permute.xlu1 %7265  ;;  %v7170_v52 = vpop.xlane.xlu0 %7169 }
 0xf9b   :  { %11556 = vpow2.f32 %v7173_v44  ;;  %v7172_v55 = vsub.f32 %v7162_v40, %v7170_v52  ;;  %11283 = vmatpush3.msra.mxu0 %v7266_v45 }
 0xf9c   :  { %11292 = vmatprep.subr.mxu0 %v11626_v49 }
 0xf9d   :  { %v7175_v46 = vmul.f32 1.442695, %v7172_v55 }
 0xf9e   :  { %v7189_v18 = vpop.permute.xlu0 %7188 }
 0xf9f   :  { %11558 = vpow2.f32 %v7175_v46  ;;  %11278 = vmatpush3.msra.mxu1 %v7189_v18 }
 0xfa0   :  { %11287 = vmatprep.subr.mxu1 %v11626_v49 }
 0xfa5   :  { %v11557_v54 = vpop.eup %11556 }
 0xfa6   :  { %v7177_v9 = vsel %vm4296_vm0, %v11557_v54, 0.0 }
 0xfa7   :  { %7178 = vadd.xlane.f32.xlu0 %v7177_v9 }
 0xfa9   :  { %v11559_v1 = vpop.eup %11558 }
 0xfaa   :  { %v7180_v22 = vsel %vm4296_vm0, %v11559_v1, 0.0 }
 0xfab   :  { %7181 = vadd.xlane.f32.xlu1 %v7180_v22 }
 0xfbc   :  { %7341 = vrot.lane.b32.xlu1 %v13911_v25, %s14708_s24 }
 0xfbd   :  { %7418 = vrot.lane.b32.xlu0 %v13923_v30, %s14708_s24 }
0x1034   :  { %v7179_v27 = vpop.xlane.xlu0 %7178 }
0x1035   :  { %11560 = vrcp.f32 %v7179_v27 }
0x1038   :  { %v7182_v29 = vpop.xlane.xlu1 %7181  ;;  %v7419_v0 = vpop.permute.xlu0 %7418 }
0x1039   :  { %11562 = vrcp.f32 %v7182_v29 }
0x103c   :  { %v7342_v19 = vpop.permute.xlu1 %7341 }
0x103f   :  { %v11561_v33 = vpop.eup %11560 }
0x1040   :  { %v7185_v35 = vmul.f32 %v11561_v33, %v11557_v54 }
0x1042   :  { %11280 = vmatmul.mubr.msk.f32.vlgmr.msra.gmra.mrb[20].mxu1 %vm4296_vm0, %v7185_v35 }
0x1043   :  { %v11563_v37 = vpop.eup %11562  ;;  %11288 = vmatpush3.xpose.msk.msra.mxu1 %vm5375_vm2, %v14002_v36  ;;  %11289 = vmatprep.mubr.msk.f32.mxu1 %vm11634_vm1, %v11626_v49 }
0x1044   :  { %v7186_v7 = vmul.f32 %v11563_v37, %v11559_v1  ;;  %11297 = vmatprep.subr.mxu1 %v11626_v49 }
0x1046   :  { %11285 = vmatmul.mubr.msk.f32.vlgmr.msra.gmra.mrb[44].mxu0 %vm4296_vm0, %v7186_v7  ;;  %11290 = vmatmul.mubr.msk.f32.vlgmr.msra.gmra.mrb[22].mxu1 %vm5375_vm2, %v7342_v19 }
0x1047   :  { %11293 = vmatpush3.xpose.msk.msra.mxu0 %vm5375_vm2, %v14011_v38  ;;  %11294 = vmatprep.mubr.msk.f32.mxu0 %vm11634_vm1, %v11626_v49 }
0x1048   :  { %11302 = vmatprep.subr.mxu0 %v11626_v49  ;;  %11299 = vmatprep.mubr.msk.f32.mxu1 %vm11634_vm1, %v11626_v49 }
0x104a   :  { %11295 = vmatmul.mubr.msk.f32.vlgmr.msra.gmra.mrb[46].mxu0 %vm5375_vm2, %v7419_v0 }
0x104b   :  { %11304 = vmatprep.mubr.msk.f32.mxu0 %vm11634_vm1, %v11626_v49 }
0x1115   :  { %v14025_v3 = vpop.f32.mrb[20].mxu1 }
0x1116   :  { %v11281_v39 = vpop.f32.mrb[21].mxu1 }
0x1119   :  { %v14027_v40 = vpop.f32.mrb[44].mxu0  ;;  %v7414_v10 = vpop.f32.mrb[22].mxu1 }
0x111a   :  { %v11421_v41 = vpack.i.bf16 %v14027_v40, %v14025_v3  ;;  %v7415_v2 = vadd.f32 %v7414_v10, %v13754_v23  ;;  %v11286_v43 = vpop.f32.mrb[45].mxu0  ;;  %v11291_v44 = vpop.f32.mrb[23].mxu1 }
0x111c   :  { %v7495_v45 = vsel %vm4296_vm0, %v7415_v2, -inf }
0x111d   :  { %7496 = vmax.xlane.f32.xlu1 %v7495_v45  ;;  %v7491_v52 = vpop.f32.mrb[46].mxu0 }
0x111e   :  { %v7492_v55 = vadd.f32 %v7491_v52, %v13754_v23  ;;  %v11296_v46 = vpop.f32.mrb[47].mxu0 }
0x1120   :  { %v7498_v18 = vsel %vm4296_vm0, %v7492_v55, -inf }
0x1121   :  { %7499 = vmax.xlane.f32.xlu0 %v7498_v18 }
0x112e   :  { %7593 = vrot.lane.b32.xlu1 %v13929_v47, %s14708_s24 }
0x1132   :  { %7671 = vrot.lane.b32.xlu1 %v14002_v36, %s11637_s27 }
0x1137   :  { %7517 = vrot.lane.b32.xlu0 %v13915_v28, %s14708_s24 }
0x113b   :  { %7749 = vrot.lane.b32.xlu0 %v14011_v38, %s11637_s27 }
0x11aa   :  { %v7497_v54 = vpop.xlane.xlu1 %7496 }
0x11ab   :  { %v7501_v9 = vsub.f32 %v7415_v2, %v7497_v54 }
0x11ad   :  { %v7503_v1 = vmul.f32 1.442695, %v7501_v9 }
0x11ae   :  { %v7594_v22 = vpop.permute.xlu1 %7593  ;;  %v7500_v27 = vpop.xlane.xlu0 %7499 }
0x11af   :  { %11564 = vpow2.f32 %v7503_v1  ;;  %v7502_v29 = vsub.f32 %v7492_v55, %v7500_v27  ;;  %11303 = vmatpush3.msra.mxu0 %v7594_v22 }
0x11b0   :  { %11312 = vmatprep.subr.mxu0 %v11626_v49 }
0x11b1   :  { %v7505_v59 = vmul.f32 1.442695, %v7502_v29 }
0x11b2   :  { %v7518_v33 = vpop.permute.xlu0 %7517  ;;  %v7672_v39 = vpop.permute.xlu1 %7671 }
0x11b3   :  { %11566 = vpow2.f32 %v7505_v59  ;;  %11298 = vmatpush3.msra.mxu1 %v7518_v33 }
0x11b4   :  { %11307 = vmatprep.subr.mxu1 %v11626_v49 }
0x11b6   :  { %v7750_v0 = vpop.permute.xlu0 %7749 }
0x11b9   :  { %v11565_v35 = vpop.eup %11564 }
0x11ba   :  { %v7507_v37 = vsel %vm4296_vm0, %v11565_v35, 0.0 }
0x11bb   :  { %7508 = vadd.xlane.f32.xlu0 %v7507_v37 }
0x11bd   :  { %v11567_v7 = vpop.eup %11566 }
0x11be   :  { %v7510_v19 = vsel %vm4296_vm0, %v11567_v7, 0.0 }
0x11bf   :  { %7511 = vadd.xlane.f32.xlu1 %v7510_v19 }
0x11d0   :  { %7669 = vrot.lane.b32.xlu1 %v13911_v25, %s11636_s2 }
0x11d1   :  { %7747 = vrot.lane.b32.xlu0 %v13923_v30, %s11636_s2 }
0x1248   :  { %v7509_v10 = vpop.xlane.xlu0 %7508 }
0x1249   :  { %11568 = vrcp.f32 %v7509_v10 }
0x124c   :  { %v7512_v2 = vpop.xlane.xlu1 %7511  ;;  %v7748_v52 = vpop.permute.xlu0 %7747 }
0x124d   :  { %11570 = vrcp.f32 %v7512_v2 }
0x1250   :  { %v7670_v30 = vpop.permute.xlu1 %7669 }
0x1253   :  { %v11569_v43 = vpop.eup %11568 }
0x1254   :  { %v7515_v44 = vmul.f32 %v11569_v43, %v11565_v35 }
0x1256   :  { %11300 = vmatmul.mubr.msk.f32.vlgmr.msra.gmra.mrb[24].mxu1 %vm4296_vm0, %v7515_v44 }
0x1257   :  { %v11571_v45 = vpop.eup %11570  ;;  %11308 = vmatpush3.xpose.msk.msra.mxu1 %vm5375_vm2, %v7672_v39  ;;  %11309 = vmatprep.mubr.msk.f32.mxu1 %vm11634_vm1, %v11626_v49 }
0x1258   :  { %v7516_v25 = vmul.f32 %v11571_v45, %v11567_v7  ;;  %11317 = vmatprep.subr.mxu1 %v11626_v49 }
0x125a   :  { %11305 = vmatmul.mubr.msk.f32.vlgmr.msra.gmra.mrb[48].mxu0 %vm4296_vm0, %v7516_v25  ;;  %11310 = vmatmul.mubr.msk.f32.vlgmr.msra.gmra.mrb[26].mxu1 %vm5375_vm2, %v7670_v30 }
0x125b   :  { %11313 = vmatpush3.xpose.msk.msra.mxu0 %vm5375_vm2, %v7750_v0  ;;  %11314 = vmatprep.mubr.msk.f32.mxu0 %vm11634_vm1, %v11626_v49 }
0x125c   :  { %11322 = vmatprep.subr.mxu0 %v11626_v49  ;;  %11319 = vmatprep.mubr.msk.f32.mxu1 %vm11634_vm1, %v11626_v49 }
0x125e   :  { %11315 = vmatmul.mubr.msk.f32.vlgmr.msra.gmra.mrb[50].mxu0 %vm5375_vm2, %v7748_v52 }
0x125f   :  { %11324 = vmatprep.mubr.msk.f32.mxu0 %vm11634_vm1, %v11626_v49 }
0x1329   :  { %v14067_v55 = vpop.f32.mrb[24].mxu1 }
0x132a   :  { %v11301_v46 = vpop.f32.mrb[25].mxu1 }
0x132b   :  { %v14090_v46 = vsub.s32 7, %v13350_v60 }
0x132d   :  { %v14069_v18 = vpop.f32.mrb[48].mxu0  ;;  %v7743_v54 = vpop.f32.mrb[26].mxu1 }
0x132e   :  { %v11431_v9 = vpack.i.bf16 %v14069_v18, %v14067_v55  ;;  %v7744_v1 = vadd.f32 %v7743_v54, %v13754_v23  ;;  %v11306_v22 = vpop.f32.mrb[49].mxu0  ;;  %v11311_v27 = vpop.f32.mrb[27].mxu1 }
0x132f   :  { %v11600_v22 = vld [vmem:[%s14683_s5] sm:$0xff] }
0x1330   :  { %v7825_v29 = vsel %vm4296_vm0, %v7744_v1, -inf  ;;  %v4547_v27 = vrot.slane %v11600_v22, %v14090_v46 }
0x1331   :  { %7826 = vmax.xlane.f32.xlu1 %v7825_v29  ;;  %v7821_v59 = vpop.f32.mrb[50].mxu0 }
0x1332   :  { %v7822_v33 = vadd.f32 %v7821_v59, %v13754_v23  ;;  %v11316_v35 = vpop.f32.mrb[51].mxu0  ;;  %v14102_v60 = vadd.f32 %v13743_v15, %v4547_v27 }
0x1334   :  { %v7828_v37 = vsel %vm4296_vm0, %v7822_v33, -inf }
0x1335   :  { %7829 = vmax.xlane.f32.xlu0 %v7828_v37  ;;  %v14113_v37 = vadd.f32 %v13747_v20, %v4547_v27 }
0x1342   :  { %7923 = vrot.lane.b32.xlu1 %v13929_v47, %s11636_s2 }
0x134b   :  { %7847 = vrot.lane.b32.xlu0 %v13915_v28, %s11636_s2 }
0x13be   :  { %v7827_v7 = vpop.xlane.xlu1 %7826 }
0x13bf   :  { %v7831_v19 = vsub.f32 %v7744_v1, %v7827_v7 }
0x13c1   :  { %v7833_v0 = vmul.f32 1.442695, %v7831_v19 }
0x13c2   :  { %v7924_v39 = vpop.permute.xlu1 %7923  ;;  %v7830_v10 = vpop.xlane.xlu0 %7829 }
0x13c3   :  { %11572 = vpow2.f32 %v7833_v0  ;;  %v7832_v2 = vsub.f32 %v7822_v33, %v7830_v10  ;;  %11323 = vmatpush3.msra.mxu0 %v7924_v39 }
0x13c4   :  { %11332 = vmatprep.subr.mxu0 %v11626_v49 }
0x13c5   :  { %v7835_v43 = vmul.f32 1.442695, %v7832_v2 }
0x13c6   :  { %v7848_v44 = vpop.permute.xlu0 %7847 }
0x13c7   :  { %11574 = vpow2.f32 %v7835_v43  ;;  %11318 = vmatpush3.msra.mxu1 %v7848_v44 }
0x13c8   :  { %11327 = vmatprep.subr.mxu1 %v11626_v49 }
0x13cd   :  { %v11573_v47 = vpop.eup %11572 }
0x13ce   :  { %v7837_v45 = vsel %vm4296_vm0, %v11573_v47, 0.0 }
0x13cf   :  { %7838 = vadd.xlane.f32.xlu0 %v7837_v45 }
0x13d1   :  { %v11575_v28 = vpop.eup %11574 }
0x13d2   :  { %v7840_v25 = vsel %vm4296_vm0, %v11575_v28, 0.0 }
0x13d3   :  { %7841 = vadd.xlane.f32.xlu1 %v7840_v25 }
0x13e4   :  { %7999 = vrot.lane.b32.xlu1 %v14002_v36, %s14708_s24 }
0x13e5   :  { %8075 = vrot.lane.b32.xlu0 %v14011_v38, %s14708_s24 }
0x145c   :  { %v7839_v30 = vpop.xlane.xlu0 %7838 }
0x145d   :  { %11576 = vrcp.f32 %v7839_v30 }
0x1460   :  { %v7842_v52 = vpop.xlane.xlu1 %7841  ;;  %v8076_v35 = vpop.permute.xlu0 %8075 }
0x1461   :  { %11578 = vrcp.f32 %v7842_v52 }
0x1464   :  { %v8000_v29 = vpop.permute.xlu1 %7999 }
0x1467   :  { %v11577_v54 = vpop.eup %11576 }
0x1468   :  { %v7845_v1 = vmul.f32 %v11577_v54, %v11573_v47 }
0x146a   :  { %11320 = vmatmul.mubr.msk.f32.vlgmr.msra.gmra.mrb[28].mxu1 %vm4296_vm0, %v7845_v1 }
0x146b   :  { %v11579_v59 = vpop.eup %11578  ;;  %11328 = vmatpush3.xpose.msk.msra.mxu1 %vm5375_vm2, %v8000_v29  ;;  %11329 = vmatprep.mubr.msk.f32.mxu1 %vm11634_vm1, %v11626_v49 }
0x146c   :  { %v7846_v33 = vmul.f32 %v11579_v59, %v11575_v28  ;;  %11337 = vmatprep.subr.mxu1 %v11626_v49 }
0x146e   :  { %11325 = vmatmul.mubr.msk.f32.vlgmr.msra.gmra.mrb[52].mxu0 %vm4296_vm0, %v7846_v33  ;;  %11330 = vmatmul.mubr.msk.f32.vlgmr.msra.gmra.mrb[30].mxu1 %vm5375_vm2, %v13694_v53 }
0x146f   :  { %11333 = vmatpush3.xpose.msk.msra.mxu0 %vm5375_vm2, %v8076_v35  ;;  %11338 = vmatpush3.msra.mxu1 %v14102_v60 }
0x1470   :  { %11334 = vmatprep.mubr.msk.f32.mxu0 %vm11634_vm1, %v11626_v49  ;;  %11342 = vmatprep.subr.mxu0 %v11626_v49 }
0x1471   :  { %11339 = vmatprep.mubr.msk.f32.mxu1 %vm11634_vm1, %v11626_v49  ;;  %11347 = vmatprep.subr.mxu1 %v11626_v49 }
0x1472   :  { %11335 = vmatmul.mubr.msk.f32.vlgmr.msra.gmra.mrb[54].mxu0 %vm5375_vm2, %v13702_v57 }
0x1473   :  { %11343 = vmatpush3.msra.mxu0 %v14113_v37  ;;  %11344 = vmatprep.mubr.msk.f32.mxu0 %vm11634_vm1, %v11626_v49 }
0x1474   :  { %11352 = vmatprep.subr.mxu0 %v11626_v49 }
0x153d   :  { %v14124_v15 = vpop.f32.mrb[28].mxu1 }
0x153e   :  { %v11321_v7 = vpop.f32.mrb[29].mxu1 }
0x1541   :  { %v14126_v20 = vpop.f32.mrb[52].mxu0  ;;  %v8071_v19 = vpop.f32.mrb[30].mxu1 }
0x1542   :  { %v11441_v0 = vpack.i.bf16 %v14126_v20, %v14124_v15  ;;  %v8072_v39 = vadd.f32 %v8071_v19, %v13754_v23  ;;  %v11326_v10 = vpop.f32.mrb[53].mxu0  ;;  %v11331_v2 = vpop.f32.mrb[31].mxu1 }
0x1544   :  { %v8151_v43 = vsel %vm4296_vm0, %v8072_v39, -inf }
0x1545   :  { %8152 = vmax.xlane.f32.xlu1 %v8151_v43  ;;  %v8147_v44 = vpop.f32.mrb[54].mxu0 }
0x1546   :  { %v8148_v47 = vadd.f32 %v8147_v44, %v13754_v23  ;;  %v11336_v45 = vpop.f32.mrb[55].mxu0 }
0x1548   :  { %v8154_v28 = vsel %vm4296_vm0, %v8148_v47, -inf }
0x1549   :  { %8155 = vmax.xlane.f32.xlu0 %v8154_v28 }
0x1556   :  { %8399 = vrot.lane.b32.xlu1 %v14011_v38, %s11636_s2 }
0x155f   :  { %8321 = vrot.lane.b32.xlu0 %v14002_v36, %s11636_s2 }
0x15d2   :  { %v8153_v25 = vpop.xlane.xlu1 %8152 }
0x15d3   :  { %v8157_v30 = vsub.f32 %v8072_v39, %v8153_v25 }
0x15d5   :  { %v8159_v52 = vmul.f32 1.442695, %v8157_v30 }
0x15d6   :  { %v8156_v54 = vpop.xlane.xlu0 %8155  ;;  %v8400_v38 = vpop.permute.xlu1 %8399 }
0x15d7   :  { %11580 = vpow2.f32 %v8159_v52  ;;  %v8158_v1 = vsub.f32 %v8148_v47, %v8156_v54 }
0x15d9   :  { %v8161_v22 = vmul.f32 1.442695, %v8158_v1 }
0x15da   :  { %v8322_v36 = vpop.permute.xlu0 %8321 }
0x15db   :  { %11582 = vpow2.f32 %v8161_v22 }
0x15e1   :  { %v11581_v27 = vpop.eup %11580 }
0x15e2   :  { %v8163_v29 = vsel %vm4296_vm0, %v11581_v27, 0.0 }
0x15e3   :  { %8164 = vadd.xlane.f32.xlu0 %v8163_v29 }
0x15e5   :  { %v11583_v59 = vpop.eup %11582 }
0x15e6   :  { %v8166_v33 = vsel %vm4296_vm0, %v11583_v59, 0.0 }
0x15e7   :  { %8167 = vadd.xlane.f32.xlu1 %v8166_v33 }
0x15f8   :  { %8319 = vrot.lane.b32.xlu1 %v13694_v53, %s11637_s27 }
0x15f9   :  { %8397 = vrot.lane.b32.xlu0 %v13702_v57, %s11637_s27 }
0x1670   :  { %v8165_v35 = vpop.xlane.xlu0 %8164 }
0x1671   :  { %11584 = vrcp.f32 %v8165_v35 }
0x1674   :  { %v8168_v7 = vpop.xlane.xlu1 %8167  ;;  %v8398_v2 = vpop.permute.xlu0 %8397 }
0x1675   :  { %11586 = vrcp.f32 %v8168_v7 }
0x1678   :  { %v8320_v57 = vpop.permute.xlu1 %8319 }
0x167b   :  { %v11585_v19 = vpop.eup %11584 }
0x167c   :  { %v8171_v39 = vmul.f32 %v11585_v19, %v11581_v27 }
0x167e   :  { %11340 = vmatmul.mubr.msk.f32.vlgmr.msra.gmra.mrb[32].mxu1 %vm4296_vm0, %v8171_v39 }
0x167f   :  { %v11587_v10 = vpop.eup %11586  ;;  %11348 = vmatpush3.xpose.msk.msra.mxu1 %vm5375_vm2, %v8322_v36  ;;  %11349 = vmatprep.mubr.msk.f32.mxu1 %vm11634_vm1, %v11626_v49 }
0x1680   :  { %v8172_v53 = vmul.f32 %v11587_v10, %v11583_v59  ;;  %11357 = vmatprep.subr.mxu1 %v11626_v49 }
0x1682   :  { %11345 = vmatmul.mubr.msk.f32.vlgmr.msra.gmra.mrb[56].mxu0 %vm4296_vm0, %v8172_v53  ;;  %11350 = vmatmul.mubr.msk.f32.vlgmr.msra.gmra.mrb[34].mxu1 %vm5375_vm2, %v8320_v57  ;;  %v11461_v53 = vld [vmem:[%s14684_s6 + $0x14] ss:$8 sps:$4 sm:$0xff]  }
0x1683   :  { %11353 = vmatpush3.xpose.msk.msra.mxu0 %vm5375_vm2, %v8400_v38  ;;  %11354 = vmatprep.mubr.msk.f32.mxu0 %vm11634_vm1, %v11626_v49 }
0x1684   :  { %11362 = vmatprep.subr.mxu0 %v11626_v49  ;;  %11359 = vmatprep.mubr.msk.f32.mxu1 %vm11634_vm1, %v11626_v49 }
0x1686   :  { %11355 = vmatmul.mubr.msk.f32.vlgmr.msra.gmra.mrb[58].mxu0 %vm5375_vm2, %v8398_v2 }
0x1687   :  { %11364 = vmatprep.mubr.msk.f32.mxu0 %vm11634_vm1, %v11626_v49 }
0x1751   :  { %v14160_v43 = vpop.f32.mrb[32].mxu1 }
0x1752   :  { %v11341_v44 = vpop.f32.mrb[33].mxu1 }
0x1755   :  { %v14162_v47 = vpop.f32.mrb[56].mxu0  ;;  %v8393_v45 = vpop.f32.mrb[34].mxu1 }
0x1756   :  { %v8394_v28 = vadd.f32 %v8393_v45, %v13754_v23  ;;  %v11346_v25 = vpop.f32.mrb[57].mxu0  ;;  %v11351_v30 = vpop.f32.mrb[35].mxu1 }
0x1758   :  { %v8475_v52 = vsel %vm4296_vm0, %v8394_v28, -inf }
0x1759   :  { %8476 = vmax.xlane.f32.xlu1 %v8475_v52  ;;  %v8471_v54 = vpop.f32.mrb[58].mxu0 }
0x175a   :  { %v8472_v1 = vadd.f32 %v8471_v54, %v13754_v23  ;;  %v11356_v22 = vpop.f32.mrb[59].mxu0  ;;  %v11459_v54 = vld [vmem:[%s14684_s6 + $0x10] ss:$8 sps:$4 sm:$0xff]  }
0x175c   :  { %v8478_v27 = vsel %vm4296_vm0, %v8472_v1, -inf }
0x175d   :  { %8479 = vmax.xlane.f32.xlu0 %v8478_v27  ;;  %v11464_v27 = vld [vmem:[%s14684_s6 + $0x24] ss:$8 sps:$4 sm:$0xff]  }
0x17e6   :  { %v8477_v29 = vpop.xlane.xlu1 %8476 }
0x17e7   :  { %v8481_v59 = vsub.f32 %v8394_v28, %v8477_v29 }
0x17e9   :  { %v8483_v33 = vmul.f32 1.442695, %v8481_v59 }
0x17ea   :  { %v8480_v36 = vpop.xlane.xlu0 %8479 }
0x17eb   :  { %11588 = vpow2.f32 %v8483_v33  ;;  %v8482_v38 = vsub.f32 %v8472_v1, %v8480_v36 }
0x17ed   :  { %v8485_v35 = vmul.f32 1.442695, %v8482_v38 }
0x17ef   :  { %11590 = vpow2.f32 %v8485_v35 }
0x17f5   :  { %v11589_v7 = vpop.eup %11588 }
0x17f6   :  { %v8487_v19 = vsel %vm4296_vm0, %v11589_v7, 0.0 }
0x17f7   :  { %8488 = vadd.xlane.f32.xlu0 %v8487_v19 }
0x17f9   :  { %v11591_v39 = vpop.eup %11590 }
0x17fa   :  { %v8490_v10 = vsel %vm4296_vm0, %v11591_v39, 0.0 }
0x17fb   :  { %8491 = vadd.xlane.f32.xlu1 %v8490_v10  ;;  %v11465_v10 = vld [vmem:[%s14684_s6 + $0x30] ss:$8 sps:$4 sm:$0xff]  }
0x180c   :  { %8575 = vrot.lane.b32.xlu1 %v14113_v37, %s11637_s27 }
0x180d   :  { %8498 = vrot.lane.b32.xlu0 %v14102_v60, %s11637_s27 }
0x1810   :  { %11422 = vrot.lane.b32.xlu1 %v11421_v41, %s11636_s2 }
0x1811   :  { %11427 = vrot.lane.b32.xlu0 %v11426_v8, %s11636_s2  ;;  %v11458_v8 = vld [vmem:[%s14684_s6 + $0x4] ss:$8 sps:$4 sm:$0xff]  }
0x1814   :  { %11432 = vrot.lane.b32.xlu1 %v11431_v9, %s14708_s24  ;;  %v11456_v9 = vld [vmem:[%s14684_s6] ss:$8 sps:$4 sm:$0xff]  }
0x1815   :  { %11437 = vrot.lane.b32.xlu0 %v11436_v26, %s14708_s24 }
0x1818   :  { %11442 = vrot.lane.b32.xlu1 %v11441_v0, %s11637_s27 }
0x1819   :  { %11447 = vrot.lane.b32.xlu0 %v11446_v31, %s11637_s27 }
0x1884   :  { %v8489_v23 = vpop.xlane.xlu0 %8488 }
0x1885   :  { %11592 = vrcp.f32 %v8489_v23  ;;  %v11470_v23 = vld [vmem:[%s14684_s6 + $0x44] ss:$8 sps:$4 sm:$0xff]  }
0x1888   :  { %v8492_v56 = vpop.xlane.xlu1 %8491  ;;  %v8499_v5 = vpop.permute.xlu0 %8498 }
0x1889   :  { %11594 = vrcp.f32 %v8492_v56  ;;  %11358 = vmatpush3.msra.mxu1 %v8499_v5  ;;  %v11468_v56 = vld [vmem:[%s14684_s6 + $0x40] ss:$8 sps:$4 sm:$0xff]   ;;  %v11473_v5 = vld [vmem:[%s14684_s6 + $0x54] ss:$8 sps:$4 sm:$0xff]  }
0x188c   :  { %v8576_v6 = vpop.permute.xlu1 %8575  ;;  %v11428_v24 = vpop.permute.xlu0 %11427 }
0x188d   :  { %11363 = vmatpush3.msra.mxu0 %v8576_v6  ;;  %v11430_v40 = vunpack.i.h.bf16 %v11428_v24  ;;  %v11429_v41 = vunpack.i.l.bf16 %v11428_v24  ;;  %v11476_v6 = vld [vmem:[%s14684_s6 + $0x64] ss:$8 sps:$4 sm:$0xff]   ;;  %v11474_v24 = vld [vmem:[%s14684_s6 + $0x60] ss:$8 sps:$4 sm:$0xff]  }
0x188e   :  { %8981 = vmatprep.subr.bf16.mxu0 %v11458_v8  ;;  %v11471_v8 = vld [vmem:[%s14684_s6 + $0x50] ss:$8 sps:$4 sm:$0xff]  }
0x188f   :  { %v11593_v26 = vpop.eup %11592  ;;  %v8708_v37 = vsel %vm5375_vm2, %v13788_v4, %v11430_v40  ;;  %v8707_v15 = vsel %vm5375_vm2, %v13786_v62, %v11429_v41  ;;  %v11482_v40 = vld [vmem:[%s14684_s6 + $0x84] ss:$8 sps:$4 sm:$0xff]   ;;  %v11480_v41 = vld [vmem:[%s14684_s6 + $0x80] ss:$8 sps:$4 sm:$0xff]  }
0x1890   :  { %v8495_v3 = vmul.f32 %v11593_v26, %v11589_v7  ;;  %v11423_v50 = vpop.permute.xlu1 %11422  ;;  %v11438_v16 = vpop.permute.xlu0 %11437  ;;  %v11462_v7 = vld [vmem:[%s14684_s6 + $0x20] ss:$8 sps:$4 sm:$0xff]   ;;  %v11479_v26 = vld [vmem:[%s14684_s6 + $0x74] ss:$8 sps:$4 sm:$0xff]  }
0x1891   :  { %v11440_v31 = vunpack.i.h.bf16 %v11438_v16  ;;  %v11439_v55 = vunpack.i.l.bf16 %v11438_v16  ;;  %v11425_v57 = vunpack.i.h.bf16 %v11423_v50  ;;  %v11424_v2 = vunpack.i.l.bf16 %v11423_v50  ;;  %v11485_v50 = vld [vmem:[%s14684_s6 + $0x94] ss:$8 sps:$4 sm:$0xff]   ;;  %v11483_v16 = vld [vmem:[%s14684_s6 + $0x90] ss:$8 sps:$4 sm:$0xff]  }
0x1892   :  { %11360 = vmatmul.mubr.msk.f32.vlgmr.msra.gmra.mrb[36].mxu1 %vm4296_vm0, %v8495_v3  ;;  %v11477_v3 = vld [vmem:[%s14684_s6 + $0x70] ss:$8 sps:$4 sm:$0xff]  }
0x1893   :  { %v11595_v18 = vpop.eup %11594  ;;  %v8710_v28 = vsel %vm8709_vm4, %v8707_v15, %v11439_v55  ;;  %v8711_v25 = vsel %vm8709_vm4, %v8708_v37, %v11440_v31  ;;  %v8716_v29 = vsel %vm5375_vm2, %v13978_v34, %v11425_v57  ;;  %v8715_v59 = vsel %vm5375_vm2, %v13976_v32, %v11424_v2  ;;  %v11467_v32 = vld [vmem:[%s14684_s6 + $0x34] ss:$8 sps:$4 sm:$0xff]   ;;  %v11488_v31 = vld [vmem:[%s14684_s6 + $0xa4] ss:$8 sps:$4 sm:$0xff]   ;;  %v11486_v55 = vld [vmem:[%s14684_s6 + $0xa0] ss:$8 sps:$4 sm:$0xff]  }
0x1894   :  { %v8496_v60 = vmul.f32 %v11595_v18, %v11591_v39  ;;  %v11433_v20 = vpop.permute.xlu1 %11432  ;;  %v11448_v0 = vpop.permute.xlu0 %11447  ;;  %v11491_v18 = vld [vmem:[%s14684_s6 + $0xb4] ss:$8 sps:$4 sm:$0xff]   ;;  %v11492_v37 = vld [vmem:[%s14684_s6 + $0xc0] ss:$8 sps:$4 sm:$0xff]   ;;  %v11501_v2 = vld [vmem:[%s14684_s6 + $0xf0] ss:$8 sps:$4 sm:$0xff]  }
0x1895   :  { %v11450_v44 = vunpack.i.h.bf16 %v11448_v0  ;;  %v11449_v45 = vunpack.i.l.bf16 %v11448_v0  ;;  %v11435_v30 = vunpack.i.h.bf16 %v11433_v20  ;;  %v11434_v4 = vunpack.i.l.bf16 %v11433_v20  ;;  %v11497_v15 = vld [vmem:[%s14684_s6 + $0xd4] ss:$8 sps:$4 sm:$0xff]   ;;  %v11495_v20 = vld [vmem:[%s14684_s6 + $0xd0] ss:$8 sps:$4 sm:$0xff]   ;;  %v11500_v0 = vld [vmem:[%s14684_s6 + $0xe4] ss:$8 sps:$4 sm:$0xff]  }
0x1896   :  { %11365 = vmatmul.mubr.msk.f32.vlgmr.msra.gmra.mrb[60].mxu0 %vm4296_vm0, %v8496_v60  ;;  %v11494_v60 = vld [vmem:[%s14684_s6 + $0xc4] ss:$8 sps:$4 sm:$0xff]   ;;  %v11503_v57 = vld [vmem:[%s14684_s6 + $0xf4] ss:$8 sps:$4 sm:$0xff]  }
0x1897   :  { %v14216_v62 = vsel %vm8712_vm5, %v8710_v28, %v11449_v45  ;;  %v14219_v52 = vsel %vm8712_vm5, %v8711_v25, %v11450_v44  ;;  %8982 = vmatpush1.bf16.msra.mxu0 %v11456_v9  ;;  %v8717_v38 = vsel %vm8709_vm4, %v8715_v59, %v11434_v4  ;;  %v8718_v35 = vsel %vm8709_vm4, %v8716_v29, %v11435_v30  ;;  %v11489_v9 = vld [vmem:[%s14684_s6 + $0xb0] ss:$8 sps:$4 sm:$0xff]   ;;  %v11504_v44 = vld [vmem:[%s14684_s6 + $0x100] ss:$8 sps:$4 sm:$0xff]   ;;  %v11506_v45 = vld [vmem:[%s14684_s6 + $0x104] ss:$8 sps:$4 sm:$0xff]  }
0x1898   :  { %v8764_v1 = vpack.c.bf16 %v14219_v52, %v14216_v62  ;;  %v11443_v22 = vpop.permute.xlu1 %11442  ;;  %8983 = vmatprep.subr.bf16.mxu0 %v11461_v53  ;;  %v11498_v53 = vld [vmem:[%s14684_s6 + $0xe0] ss:$8 sps:$4 sm:$0xff]   ;;  %v11509_v28 = vld [vmem:[%s14684_s6 + $0x114] ss:$8 sps:$4 sm:$0xff]   ;;  %v11507_v25 = vld [vmem:[%s14684_s6 + $0x110] ss:$8 sps:$4 sm:$0xff]  }
0x1899   :  { %v11445_v33 = vunpack.i.h.bf16 %v11443_v22  ;;  %v11444_v36 = vunpack.i.l.bf16 %v11443_v22  ;;  %v11512_v30 = vld [vmem:[%s14684_s6 + $0x124] ss:$8 sps:$4 sm:$0xff]   ;;  %v11510_v4 = vld [vmem:[%s14684_s6 + $0x120] ss:$8 sps:$4 sm:$0xff]   ;;  %v11515_v62 = vld [vmem:[%s14684_s6 + $0x134] ss:$8 sps:$4 sm:$0xff]  }
0x189a   :  { %v11513_v52 = vld [vmem:[%s14684_s6 + $0x130] ss:$8 sps:$4 sm:$0xff]  }
0x189b   :  { %8984 = vmatpush1.bf16.msra.mxu0 %v11459_v54  ;;  %v8719_v19 = vsel %vm8712_vm5, %v8717_v38, %v11444_v36  ;;  %v8720_v39 = vsel %vm8712_vm5, %v8718_v35, %v11445_v33  ;;  %v11638_v54 = vmov 0  }
0x189c   :  { %8985 = vmatprep.subr.bf16.mxu0 %v11464_v27  ;;  %v8765_v34 = vpack.c.bf16 %v8720_v39, %v8719_v19  ;;  %v8763_v39 = vld [vmem:[%s14685_s7] sm:$0x3] }
0x189e   :  { %9013 = vmatprep.mubr.bf16.mxu0 %v8765_v34  ;;  %v8771_v34 = vrot.slane %v8763_v39, %v13359_v63 }
0x189f   :  { %8986 = vmatpush1.bf16.msra.mxu0 %v11462_v7 }
0x18a0   :  { %8987 = vmatprep.subr.bf16.mxu0 %v11467_v32  ;;  %v8775_v32 = vrot.slane %v8763_v39, %v13353_v61 }
0x18a3   :  { %8988 = vmatpush1.bf16.msra.mxu0 %v11465_v10 }
0x18a4   :  { %8989 = vmatprep.subr.bf16.mxu0 %v11470_v23 }
0x18a7   :  { %8990 = vmatpush1.bf16.msra.mxu0 %v11468_v56 }
0x18a8   :  { %8991 = vmatprep.subr.bf16.mxu0 %v11473_v5 }
0x18ab   :  { %8992 = vmatpush1.bf16.msra.mxu0 %v11471_v8 }
0x18ac   :  { %8993 = vmatprep.subr.bf16.mxu0 %v11476_v6 }
0x18af   :  { %8994 = vmatpush1.bf16.msra.mxu0 %v11474_v24 }
0x18b0   :  { %8995 = vmatprep.subr.bf16.mxu0 %v11479_v26 }
0x18b3   :  { %8996 = vmatpush1.bf16.msra.mxu0 %v11477_v3 }
0x18b4   :  { %8997 = vmatprep.subr.bf16.mxu0 %v11482_v40 }
0x18b7   :  { %8998 = vmatpush1.bf16.msra.mxu0 %v11480_v41 }
0x18b8   :  { %8999 = vmatprep.subr.bf16.mxu0 %v11485_v50 }
0x18bb   :  { %9000 = vmatpush1.bf16.msra.mxu0 %v11483_v16  ;;  %v4271_v16 = vadd.s32 128, %v13750_v21 }
0x18bc   :  { %9001 = vmatprep.subr.bf16.mxu0 %v11488_v31 }
0x18bd   :  { %vm4273_vm6 = vcmp.lt.s32.totalorder %v4271_v16, 250 }
0x18bf   :  { %9002 = vmatpush1.bf16.msra.mxu0 %v11486_v55 }
0x18c0   :  { %9003 = vmatprep.subr.bf16.mxu0 %v11491_v18 }
0x18c3   :  { %9004 = vmatpush1.bf16.msra.mxu0 %v11489_v9 }
0x18c4   :  { %9005 = vmatprep.subr.bf16.mxu0 %v11494_v60 }
0x18c7   :  { %9006 = vmatpush1.bf16.msra.mxu0 %v11492_v37 }
0x18c8   :  { %9007 = vmatprep.subr.bf16.mxu0 %v11497_v15 }
0x18cb   :  { %9008 = vmatpush1.bf16.msra.mxu0 %v11495_v20 }
0x18cc   :  { %9009 = vmatprep.subr.bf16.mxu0 %v11500_v0 }
0x18cf   :  { %9010 = vmatpush1.bf16.msra.mxu0 %v11498_v53 }
0x18d0   :  { %9011 = vmatprep.subr.bf16.mxu0 %v11503_v57 }
0x18d3   :  { %9012 = vmatpush1.bf16.msra.mxu0 %v11501_v2 }
0x18d4   :  { %9024 = vmatprep.subr.bf16.mxu0 %v11506_v45 }
0x18d6   :  { %9014 = vmatmul.mubr.bf16.vlgmr.msra.gmra.mrb[64].mxu0 %v8764_v1 }
0x18d7   :  { %9025 = vmatpush1.bf16.msra.mxu0 %v11504_v44  ;;  %9056 = vmatprep.mubr.bf16.mxu0 %v11638_v54 }
0x18d8   :  { %9026 = vmatprep.subr.bf16.mxu0 %v11509_v28 }
0x18db   :  { %9027 = vmatpush1.bf16.msra.mxu0 %v11507_v25 }
0x18dc   :  { %9028 = vmatprep.subr.bf16.mxu0 %v11512_v30 }
0x18df   :  { %9029 = vmatpush1.bf16.msra.mxu0 %v11510_v4  ;;  %v9107_v4 = vld [vmem:[%s14686_s8] sm:$0x3] }
0x18e0   :  { %9030 = vmatprep.subr.bf16.mxu0 %v11515_v62  ;;  %v9123_v62 = vld [vmem:[%s14687_s9] sm:$0x3]  ;;  %v9116_v54 = vrot.slane %v9107_v4, %v13353_v61 }
0x18e3   :  { %9031 = vmatpush1.bf16.msra.mxu0 %v11513_v52  ;;  %v9112_v52 = vrot.slane %v9107_v4, %v13359_v63 }
0x1965   :  { %v8570_v1 = vpop.f32.mrb[36].mxu1 }
0x1966   :  { %v11361_v22 = vpop.f32.mrb[37].mxu1 }
0x1967   :  { %v9128_v22 = vrot.slane %v9123_v62, %v13359_v63 }
0x1969   :  { %v8647_v27 = vpop.f32.mrb[60].mxu0 }
0x196a   :  { %v11451_v29 = vpack.i.bf16 %v8647_v27, %v8570_v1  ;;  %v11366_v59 = vpop.f32.mrb[61].mxu0  ;;  %v9132_v27 = vrot.slane %v9123_v62, %v13353_v61 }
0x196c   :  { %11452 = vrot.lane.b32.xlu1 %v11451_v29, %s11636_s2 }
0x19de   :  { %v11453_v33 = vpop.permute.xlu1 %11452 }
0x19df   :  { %v11455_v36 = vunpack.i.h.bf16 %v11453_v33  ;;  %v11454_v38 = vunpack.i.l.bf16 %v11453_v33 }
0x19e1   :  { %v8722_v35 = vsel %vm5375_vm2, %v14162_v47, %v11455_v36  ;;  %v8721_v7 = vsel %vm5375_vm2, %v14160_v43, %v11454_v38 }
0x19e2   :  { %v8766_v19 = vpack.c.bf16 %v8722_v35, %v8721_v7 }
0x19e4   :  { %11045 = vmatmul.mubr.msk.bf16.vlgmr.msra.gmra.mrb[64].mxu0 %vm8709_vm4, %v8766_v19 }
0x1ab7   :  { %v9058_v10 = vpop.f32.mrb[64].mxu0 }
0x1ab8   :  { %v11367_v23 = vadd.f32 %v9058_v10, %v8771_v34  ;;  %v9060_v56 = vpop.f32.mrb[65].mxu0 }
0x1ab9   :  { %v11368_v5 = vadd.f32 %v9060_v56, %v8775_v32  ;;  %v9062_v8 = vpop.f32.mrb[66].mxu0 }
0x1aba   :  { %v9067_v47 = vadd.f32 %v11367_v23, %v13381_v17  ;;  %v11369_v6 = vadd.f32 %v9062_v8, %v8771_v34  ;;  %v9064_v43 = vpop.f32.mrb[67].mxu0  ;;  %v14362_v17 = vsel %vm4273_vm6, 1.0, %v11626_v49 }
0x1abb   :  { %v9068_v24 = vadd.f32 %v11368_v5, %v13371_v13  ;;  %v11370_v26 = vadd.f32 %v9064_v43, %v8775_v32 }
0x1abc   :  { %v9069_v3 = vadd.f32 %v11369_v6, %v13369_v12 }
0x1abd   :  { %v9070_v40 = vadd.f32 %v11370_v26, %v13373_v14  ;;  %v9071_v41 = vadd.f32 %v9068_v24, %v9067_v47 }
0x1abf   :  { %9072 = vadd.xlane.f32.xlu0 %v9071_v41  ;;  %v9074_v50 = vadd.f32 %v9070_v40, %v9069_v3 }
0x1ac1   :  { %9075 = vadd.xlane.f32.xlu1 %v9074_v50 }
0x1b4c   :  { %v9073_v31 = vpop.xlane.xlu0 %9072 }
0x1b4d   :  { %v9077_v55 = vmul.f32 0.004, %v9073_v31 }
0x1b4e   :  { %v9076_v18 = vpop.xlane.xlu1 %9075 }
0x1b4f   :  { %v9079_v9 = vsub.f32 %v9067_v47, %v9077_v55  ;;  %v9080_v13 = vsub.f32 %v9068_v24, %v9077_v55  ;;  %v9078_v60 = vmul.f32 0.004, %v9076_v18 }
0x1b51   :  { %v9084_v12 = vmul.f32 %v14362_v17, %v9080_v13  ;;  %v9082_v37 = vsub.f32 %v9070_v40, %v9078_v60  ;;  %v9081_v14 = vsub.f32 %v9069_v3, %v9078_v60  ;;  %v9087_v20 = vmul.f32 %v9079_v9, %v9079_v9 }
0x1b53   :  { %v9086_v15 = vmul.f32 %v14362_v17, %v9082_v37  ;;  %v9088_v0 = vmul.f32 %v9084_v12, %v9084_v12  ;;  %v9089_v57 = vmul.f32 %v9081_v14, %v9081_v14 }
0x1b55   :  { %v9090_v53 = vmul.f32 %v9086_v15, %v9086_v15  ;;  %v9091_v21 = vadd.f32 %v9088_v0, %v9087_v20 }
0x1b57   :  { %9092 = vadd.xlane.f32.xlu0 %v9091_v21  ;;  %v9094_v2 = vadd.f32 %v9090_v53, %v9089_v57 }
0x1b5b   :  { %9095 = vadd.xlane.f32.xlu0 %v9094_v2 }
0x1be4   :  { %v9093_v49 = vpop.xlane.xlu0 %9092 }
0x1be5   :  { %v9097_v44 = vmul.f32 0.004, %v9093_v49 }
0x1be7   :  { %v9099_v45 = vadd.f32 1e-05, %v9097_v44 }
0x1be8   :  { %v9096_v28 = vpop.xlane.xlu0 %9095 }
0x1be9   :  { %11596 = vrsqrt.f32 %v9099_v45  ;;  %v9098_v25 = vmul.f32 0.004, %v9096_v28 }
0x1beb   :  { %v9100_v30 = vadd.f32 1e-05, %v9098_v25 }
0x1bed   :  { %11598 = vrsqrt.f32 %v9100_v30 }
0x1bf3   :  { %v11597_v1 = vpop.eup %11596 }
0x1bf4   :  { %v9103_v29 = vmul.f32 %v11597_v1, %v9079_v9  ;;  %v9104_v59 = vmul.f32 %v11597_v1, %v9084_v12 }
0x1bf6   :  { %v9119_v33 = vmul.f32 %v9112_v52, %v9103_v29  ;;  %v9120_v36 = vmul.f32 %v9116_v54, %v9104_v59 }
0x1bf7   :  { %v11599_v38 = vpop.eup %11598 }
0x1bf8   :  { %v14376_v35 = vadd.f32 %v9128_v22, %v9119_v33  ;;  %v14378_v7 = vadd.f32 %v9132_v27, %v9120_v36  ;;  %v9105_v19 = vmul.f32 %v11599_v38, %v9081_v14  ;;  %v9106_v39 = vmul.f32 %v11599_v38, %v9086_v15 }
0x1bfa   :  { %v9121_v34 = vmul.f32 %v9112_v52, %v9105_v19  ;;  %v9122_v32 = vmul.f32 %v9116_v54, %v9106_v39 }
0x1bfc   :  { %v14380_v10 = vadd.f32 %v9128_v22, %v9121_v34  ;;  %v14382_v23 = vadd.f32 %v9132_v27, %v9122_v32 }
0x1bfd   :  { %11621 = dma.done.wait [#allocation4], 32768 }
0x1bfe   :  { %11622 = vsyncadd [#allocation4], 4294934528  ;;  %v14386_v56 = vpack.c.bf16 %v14382_v23, %v14378_v7  ;;  %v9144_v5 = vld [vmem:[#allocation2 + $0x8] sm:$0xff]  ;;  %v9143_v8 = vld [vmem:[#allocation2] sm:$0xff] }
0x1bff   :  { %v9160_v47 = vld [vmem:[#allocation2 + $0x88] sm:$0xff]  ;;  %9485 = vmatprep.subr.bf16.mxu0 %v9144_v5  ;;  %v9159_v6 = vld [vmem:[#allocation2 + $0x80] sm:$0xff] }
0x1c00   :  { %9517 = vmatprep.mubr.bf16.mxu0 %v14386_v56  ;;  %9603 = vmatprep.mubr.bf16.mxu1 %v14386_v56  ;;  %v9176_v43 = vld [vmem:[#allocation2 + $0x108] sm:$0xff]  ;;  %v9175_v24 = vld [vmem:[#allocation2 + $0x100] sm:$0xff] }
0x1c01   :  { %9486 = vmatpush1.bf16.msra.mxu0 %v9143_v8  ;;  %v9192_v26 = vld [vmem:[#allocation2 + $0x188] sm:$0xff]  ;;  %v9191_v3 = vld [vmem:[#allocation2 + $0x180] sm:$0xff] }
0x1c02   :  { %9487 = vmatprep.subr.bf16.mxu0 %v9160_v47  ;;  %v9208_v40 = vld [vmem:[#allocation2 + $0x208] sm:$0xff]  ;;  %v9207_v41 = vld [vmem:[#allocation2 + $0x200] sm:$0xff] }
0x1c03   :  { %v9224_v50 = vld [vmem:[#allocation2 + $0x288] sm:$0xff]  ;;  %v9223_v16 = vld [vmem:[#allocation2 + $0x280] sm:$0xff] }
0x1c04   :  { %v9240_v31 = vld [vmem:[#allocation2 + $0x308] sm:$0xff]  ;;  %v9147_v18 = vld [vmem:[#allocation2 + $0x20] sm:$0xff] }
0x1c05   :  { %9488 = vmatpush1.bf16.msra.mxu0 %v9159_v6  ;;  %v9148_v55 = vld [vmem:[#allocation2 + $0x28] sm:$0xff]  ;;  %v9239_v13 = vld [vmem:[#allocation2 + $0x300] sm:$0xff]  ;;  %v9146_v6 = vld [vmem:[#allocation2 + $0x18] sm:$0xff] }
0x1c06   :  { %9489 = vmatprep.subr.bf16.mxu0 %v9176_v43  ;;  %9571 = vmatprep.subr.bf16.mxu1 %v9148_v55  ;;  %v9164_v9 = vld [vmem:[#allocation2 + $0xa8] sm:$0xff]  ;;  %v9163_v12 = vld [vmem:[#allocation2 + $0xa0] sm:$0xff] }
0x1c07   :  { %9572 = vmatpush1.bf16.msra.mxu1 %v9147_v18  ;;  %v9256_v60 = vld [vmem:[#allocation2 + $0x388] sm:$0xff]  ;;  %v9255_v14 = vld [vmem:[#allocation2 + $0x380] sm:$0xff] }
0x1c08   :  { %9573 = vmatprep.subr.bf16.mxu1 %v9164_v9  ;;  %v9180_v37 = vld [vmem:[#allocation2 + $0x128] sm:$0xff]  ;;  %v9179_v20 = vld [vmem:[#allocation2 + $0x120] sm:$0xff]  ;;  %v9177_v9 = vld [vmem:[#allocation2 + $0x110] sm:$0xff] }
0x1c09   :  { %9490 = vmatpush1.bf16.msra.mxu0 %v9175_v24  ;;  %v9272_v15 = vld [vmem:[#allocation2 + $0x408] sm:$0xff]  ;;  %v9271_v53 = vld [vmem:[#allocation2 + $0x400] sm:$0xff]  ;;  %v14392_v24 = vpack.c.bf16 %v14380_v10, %v14376_v35 }
0x1c0a   :  { %9491 = vmatprep.subr.bf16.mxu0 %v9192_v26  ;;  %v9196_v0 = vld [vmem:[#allocation2 + $0x1a8] sm:$0xff]  ;;  %v9195_v57 = vld [vmem:[#allocation2 + $0x1a0] sm:$0xff] }
0x1c0b   :  { %9574 = vmatpush1.bf16.msra.mxu1 %v9163_v12  ;;  %v9288_v21 = vld [vmem:[#allocation2 + $0x488] sm:$0xff]  ;;  %v9287_v49 = vld [vmem:[#allocation2 + $0x480] sm:$0xff] }
0x1c0c   :  { %9575 = vmatprep.subr.bf16.mxu1 %v9180_v37  ;;  %v9212_v2 = vld [vmem:[#allocation2 + $0x228] sm:$0xff]  ;;  %v9211_v45 = vld [vmem:[#allocation2 + $0x220] sm:$0xff]  ;;  %v9193_v37 = vld [vmem:[#allocation2 + $0x190] sm:$0xff] }
0x1c0d   :  { %9492 = vmatpush1.bf16.msra.mxu0 %v9191_v3  ;;  %v9304_v44 = vld [vmem:[#allocation2 + $0x508] sm:$0xff]  ;;  %v9303_v25 = vld [vmem:[#allocation2 + $0x500] sm:$0xff]  ;;  %v9145_v3 = vld [vmem:[#allocation2 + $0x10] sm:$0xff] }
0x1c0e   :  { %9493 = vmatprep.subr.bf16.mxu0 %v9208_v40  ;;  %v9228_v28 = vld [vmem:[#allocation2 + $0x2a8] sm:$0xff]  ;;  %v9227_v4 = vld [vmem:[#allocation2 + $0x2a0] sm:$0xff]  ;;  %v9162_v40 = vld [vmem:[#allocation2 + $0x98] sm:$0xff] }
0x1c0f   :  { %9576 = vmatpush1.bf16.msra.mxu1 %v9179_v20  ;;  %v9320_v30 = vld [vmem:[#allocation2 + $0x588] sm:$0xff]  ;;  %v9319_v52 = vld [vmem:[#allocation2 + $0x580] sm:$0xff] }
0x1c10   :  { %9577 = vmatprep.subr.bf16.mxu1 %v9196_v0  ;;  %v9244_v62 = vld [vmem:[#allocation2 + $0x328] sm:$0xff]  ;;  %v9243_v1 = vld [vmem:[#allocation2 + $0x320] sm:$0xff]  ;;  %v9209_v0 = vld [vmem:[#allocation2 + $0x210] sm:$0xff] }
0x1c11   :  { %9494 = vmatpush1.bf16.msra.mxu0 %v9207_v41  ;;  %v9336_v54 = vld [vmem:[#allocation2 + $0x608] sm:$0xff]  ;;  %v9335_v27 = vld [vmem:[#allocation2 + $0x600] sm:$0xff] }
0x1c12   :  { %9495 = vmatprep.subr.bf16.mxu0 %v9224_v50  ;;  %v9260_v22 = vld [vmem:[#allocation2 + $0x3a8] sm:$0xff]  ;;  %v9259_v59 = vld [vmem:[#allocation2 + $0x3a0] sm:$0xff] }
0x1c13   :  { %9578 = vmatpush1.bf16.msra.mxu1 %v9195_v57  ;;  %v9352_v29 = vld [vmem:[#allocation2 + $0x688] sm:$0xff]  ;;  %v9351_v36 = vld [vmem:[#allocation2 + $0x680] sm:$0xff] }
0x1c14   :  { %9579 = vmatprep.subr.bf16.mxu1 %v9212_v2  ;;  %v9276_v33 = vld [vmem:[#allocation2 + $0x428] sm:$0xff]  ;;  %v9275_v19 = vld [vmem:[#allocation2 + $0x420] sm:$0xff]  ;;  %v9225_v2 = vld [vmem:[#allocation2 + $0x290] sm:$0xff] }
0x1c15   :  { %9496 = vmatpush1.bf16.msra.mxu0 %v9223_v16  ;;  %v9368_v38 = vld [vmem:[#allocation2 + $0x708] sm:$0xff]  ;;  %v9367_v34 = vld [vmem:[#allocation2 + $0x700] sm:$0xff]  ;;  %v9161_v16 = vld [vmem:[#allocation2 + $0x90] sm:$0xff] }
0x1c16   :  { %9497 = vmatprep.subr.bf16.mxu0 %v9240_v31  ;;  %v9292_v39 = vld [vmem:[#allocation2 + $0x4a8] sm:$0xff]  ;;  %v9291_v5 = vld [vmem:[#allocation2 + $0x4a0] sm:$0xff]  ;;  %v9178_v31 = vld [vmem:[#allocation2 + $0x118] sm:$0xff] }
0x1c17   :  { %9580 = vmatpush1.bf16.msra.mxu1 %v9211_v45  ;;  %v9384_v32 = vld [vmem:[#allocation2 + $0x788] sm:$0xff]  ;;  %v9383_v47 = vld [vmem:[#allocation2 + $0x780] sm:$0xff] }
0x1c18   :  { %9581 = vmatprep.subr.bf16.mxu1 %v9228_v28  ;;  %v9308_v8 = vld [vmem:[#allocation2 + $0x528] sm:$0xff]  ;;  %v9307_v43 = vld [vmem:[#allocation2 + $0x520] sm:$0xff]  ;;  %v9241_v28 = vld [vmem:[#allocation2 + $0x310] sm:$0xff] }
0x1c19   :  { %9498 = vmatpush1.bf16.msra.mxu0 %v9239_v13  ;;  %v9324_v26 = vld [vmem:[#allocation2 + $0x5a8] sm:$0xff]  ;;  %v9323_v41 = vld [vmem:[#allocation2 + $0x5a0] sm:$0xff]  ;;  %v9194_v13 = vld [vmem:[#allocation2 + $0x198] sm:$0xff] }
0x1c1a   :  { %9499 = vmatprep.subr.bf16.mxu0 %v9256_v60  ;;  %v9340_v50 = vld [vmem:[#allocation2 + $0x628] sm:$0xff]  ;;  %v9339_v55 = vld [vmem:[#allocation2 + $0x620] sm:$0xff] }
0x1c1b   :  { %9582 = vmatpush1.bf16.msra.mxu1 %v9227_v4  ;;  %v9356_v18 = vld [vmem:[#allocation2 + $0x6a8] sm:$0xff]  ;;  %v9355_v60 = vld [vmem:[#allocation2 + $0x6a0] sm:$0xff] }
0x1c1c   :  { %9583 = vmatprep.subr.bf16.mxu1 %v9244_v62  ;;  %v9372_v12 = vld [vmem:[#allocation2 + $0x728] sm:$0xff]  ;;  %v9257_v62 = vld [vmem:[#allocation2 + $0x390] sm:$0xff] }
0x1c1d   :  { %9500 = vmatpush1.bf16.msra.mxu0 %v9255_v14  ;;  %v9210_v14 = vld [vmem:[#allocation2 + $0x218] sm:$0xff]  ;;  %v9388_v20 = vld [vmem:[#allocation2 + $0x7a8] sm:$0xff] }
0x1c1e   :  { %9501 = vmatprep.subr.bf16.mxu0 %v9272_v15  ;;  %v9371_v15 = vld [vmem:[#allocation2 + $0x720] sm:$0xff]  ;;  %v9152_v57 = vld [vmem:[#allocation2 + $0x48] sm:$0xff] }
0x1c1f   :  { %9584 = vmatpush1.bf16.msra.mxu1 %v9243_v1  ;;  %v9168_v45 = vld [vmem:[#allocation2 + $0xc8] sm:$0xff] }
0x1c20   :  { %9585 = vmatprep.subr.bf16.mxu1 %v9260_v22  ;;  %v9184_v4 = vld [vmem:[#allocation2 + $0x148] sm:$0xff]  ;;  %v9273_v22 = vld [vmem:[#allocation2 + $0x410] sm:$0xff] }
0x1c21   :  { %9502 = vmatpush1.bf16.msra.mxu0 %v9271_v53  ;;  %v9226_v53 = vld [vmem:[#allocation2 + $0x298] sm:$0xff]  ;;  %v9200_v1 = vld [vmem:[#allocation2 + $0x1c8] sm:$0xff] }
0x1c22   :  { %9503 = vmatprep.subr.bf16.mxu0 %v9288_v21  ;;  %v9387_v21 = vld [vmem:[#allocation2 + $0x7a0] sm:$0xff] }
0x1c23   :  { %9586 = vmatpush1.bf16.msra.mxu1 %v9259_v59  ;;  %v9216_v59 = vld [vmem:[#allocation2 + $0x248] sm:$0xff] }
0x1c24   :  { %9587 = vmatprep.subr.bf16.mxu1 %v9276_v33  ;;  %v9289_v33 = vld [vmem:[#allocation2 + $0x490] sm:$0xff] }
0x1c25   :  { %9504 = vmatpush1.bf16.msra.mxu0 %v9287_v49  ;;  %v9242_v49 = vld [vmem:[#allocation2 + $0x318] sm:$0xff] }
0x1c26   :  { %9505 = vmatprep.subr.bf16.mxu0 %v9304_v44  ;;  %v9151_v44 = vld [vmem:[#allocation2 + $0x40] sm:$0xff] }
0x1c27   :  { %9588 = vmatpush1.bf16.msra.mxu1 %v9275_v19  ;;  %v9232_v19 = vld [vmem:[#allocation2 + $0x2c8] sm:$0xff] }
0x1c28   :  { %9589 = vmatprep.subr.bf16.mxu1 %v9292_v39  ;;  %v9305_v39 = vld [vmem:[#allocation2 + $0x510] sm:$0xff] }
0x1c29   :  { %9506 = vmatpush1.bf16.msra.mxu0 %v9303_v25  ;;  %v9258_v25 = vld [vmem:[#allocation2 + $0x398] sm:$0xff] }
0x1c2a   :  { %9507 = vmatprep.subr.bf16.mxu0 %v9320_v30  ;;  %v9167_v30 = vld [vmem:[#allocation2 + $0xc0] sm:$0xff] }
0x1c2b   :  { %9590 = vmatpush1.bf16.msra.mxu1 %v9291_v5  ;;  %v9248_v5 = vld [vmem:[#allocation2 + $0x348] sm:$0xff] }
0x1c2c   :  { %9591 = vmatprep.subr.bf16.mxu1 %v9308_v8  ;;  %v9321_v8 = vld [vmem:[#allocation2 + $0x590] sm:$0xff] }
0x1c2d   :  { %9508 = vmatpush1.bf16.msra.mxu0 %v9319_v52  ;;  %v9274_v52 = vld [vmem:[#allocation2 + $0x418] sm:$0xff] }
0x1c2e   :  { %9509 = vmatprep.subr.bf16.mxu0 %v9336_v54  ;;  %v9183_v54 = vld [vmem:[#allocation2 + $0x140] sm:$0xff] }
0x1c2f   :  { %9592 = vmatpush1.bf16.msra.mxu1 %v9307_v43  ;;  %v9264_v43 = vld [vmem:[#allocation2 + $0x3c8] sm:$0xff] }
0x1c30   :  { %9593 = vmatprep.subr.bf16.mxu1 %v9324_v26  ;;  %v9337_v26 = vld [vmem:[#allocation2 + $0x610] sm:$0xff] }
0x1c31   :  { %9510 = vmatpush1.bf16.msra.mxu0 %v9335_v27  ;;  %v9290_v27 = vld [vmem:[#allocation2 + $0x498] sm:$0xff] }
0x1c32   :  { %9511 = vmatprep.subr.bf16.mxu0 %v9352_v29  ;;  %v9199_v29 = vld [vmem:[#allocation2 + $0x1c0] sm:$0xff] }
0x1c33   :  { %9594 = vmatpush1.bf16.msra.mxu1 %v9323_v41  ;;  %v9280_v41 = vld [vmem:[#allocation2 + $0x448] sm:$0xff] }
0x1c34   :  { %9595 = vmatprep.subr.bf16.mxu1 %v9340_v50  ;;  %v9353_v50 = vld [vmem:[#allocation2 + $0x690] sm:$0xff] }
0x1c35   :  { %9512 = vmatpush1.bf16.msra.mxu0 %v9351_v36  ;;  %v9306_v36 = vld [vmem:[#allocation2 + $0x518] sm:$0xff] }
0x1c36   :  { %9513 = vmatprep.subr.bf16.mxu0 %v9368_v38  ;;  %v9215_v38 = vld [vmem:[#allocation2 + $0x240] sm:$0xff] }
0x1c37   :  { %9596 = vmatpush1.bf16.msra.mxu1 %v9339_v55  ;;  %v9296_v55 = vld [vmem:[#allocation2 + $0x4c8] sm:$0xff] }
0x1c38   :  { %9597 = vmatprep.subr.bf16.mxu1 %v9356_v18  ;;  %v9369_v18 = vld [vmem:[#allocation2 + $0x710] sm:$0xff] }
0x1c39   :  { %9514 = vmatpush1.bf16.msra.mxu0 %v9367_v34  ;;  %v9322_v34 = vld [vmem:[#allocation2 + $0x598] sm:$0xff] }
0x1c3a   :  { %9515 = vmatprep.subr.bf16.mxu0 %v9384_v32  ;;  %v9231_v32 = vld [vmem:[#allocation2 + $0x2c0] sm:$0xff] }
0x1c3b   :  { %9598 = vmatpush1.bf16.msra.mxu1 %v9355_v60  ;;  %v9312_v60 = vld [vmem:[#allocation2 + $0x548] sm:$0xff] }
0x1c3c   :  { %9599 = vmatprep.subr.bf16.mxu1 %v9372_v12  ;;  %v9385_v12 = vld [vmem:[#allocation2 + $0x790] sm:$0xff] }
0x1c3d   :  { %9516 = vmatpush1.bf16.msra.mxu0 %v9383_v47  ;;  %v9338_v47 = vld [vmem:[#allocation2 + $0x618] sm:$0xff] }
0x1c3e   :  { %9528 = vmatprep.subr.bf16.mxu0 %v9146_v6  ;;  %v9247_v6 = vld [vmem:[#allocation2 + $0x340] sm:$0xff] }
0x1c3f   :  { %9600 = vmatpush1.bf16.msra.mxu1 %v9371_v15  ;;  %v9328_v15 = vld [vmem:[#allocation2 + $0x5c8] sm:$0xff] }
0x1c40   :  { %9518 = vmatmul.mubr.bf16.vlgmr.msra.gmra.mrb[68].mxu0 %v14392_v24  ;;  %9601 = vmatprep.subr.bf16.mxu1 %v9388_v20  ;;  %v9149_v20 = vld [vmem:[#allocation2 + $0x30] sm:$0xff] }
0x1c41   :  { %9529 = vmatpush1.bf16.msra.mxu0 %v9145_v3  ;;  %9560 = vmatprep.mubr.bf16.mxu0 %v14386_v56  ;;  %v9354_v3 = vld [vmem:[#allocation2 + $0x698] sm:$0xff] }
0x1c42   :  { %9530 = vmatprep.subr.bf16.mxu0 %v9162_v40  ;;  %v9263_v40 = vld [vmem:[#allocation2 + $0x3c0] sm:$0xff] }
0x1c43   :  { %9602 = vmatpush1.bf16.msra.mxu1 %v9387_v21  ;;  %v9344_v21 = vld [vmem:[#allocation2 + $0x648] sm:$0xff] }
0x1c44   :  { %9657 = vmatprep.subr.bf16.mxu1 %v9152_v57  ;;  %v9165_v57 = vld [vmem:[#allocation2 + $0xb0] sm:$0xff] }
0x1c45   :  { %9531 = vmatpush1.bf16.msra.mxu0 %v9161_v16  ;;  %v9370_v16 = vld [vmem:[#allocation2 + $0x718] sm:$0xff] }
0x1c46   :  { %9532 = vmatprep.subr.bf16.mxu0 %v9178_v31  ;;  %9604 = vmatmul.mubr.bf16.vlgmr.msra.gmra.mrb[40].mxu1 %v14392_v24  ;;  %v9279_v31 = vld [vmem:[#allocation2 + $0x440] sm:$0xff] }
0x1c47   :  { %9658 = vmatpush1.bf16.msra.mxu1 %v9151_v44  ;;  %9689 = vmatprep.mubr.bf16.mxu1 %v14386_v56  ;;  %v9360_v44 = vld [vmem:[#allocation2 + $0x6c8] sm:$0xff] }
0x1c48   :  { %9659 = vmatprep.subr.bf16.mxu1 %v9168_v45  ;;  %v9181_v45 = vld [vmem:[#allocation2 + $0x130] sm:$0xff] }
0x1c49   :  { %9533 = vmatpush1.bf16.msra.mxu0 %v9177_v9  ;;  %v9386_v9 = vld [vmem:[#allocation2 + $0x798] sm:$0xff] }
0x1c4a   :  { %9534 = vmatprep.subr.bf16.mxu0 %v9194_v13  ;;  %v9295_v13 = vld [vmem:[#allocation2 + $0x4c0] sm:$0xff] }
0x1c4b   :  { %9660 = vmatpush1.bf16.msra.mxu1 %v9167_v30  ;;  %v9376_v30 = vld [vmem:[#allocation2 + $0x748] sm:$0xff] }
0x1c4c   :  { %9661 = vmatprep.subr.bf16.mxu1 %v9184_v4  ;;  %v9197_v4 = vld [vmem:[#allocation2 + $0x1b0] sm:$0xff] }
0x1c4d   :  { %9535 = vmatpush1.bf16.msra.mxu0 %v9193_v37  ;;  %v9150_v37 = vld [vmem:[#allocation2 + $0x38] sm:$0xff] }
0x1c4e   :  { %9536 = vmatprep.subr.bf16.mxu0 %v9210_v14  ;;  %v9311_v14 = vld [vmem:[#allocation2 + $0x540] sm:$0xff] }
0x1c4f   :  { %9662 = vmatpush1.bf16.msra.mxu1 %v9183_v54  ;;  %v9392_v54 = vld [vmem:[#allocation2 + $0x7c8] sm:$0xff] }
0x1c50   :  { %9663 = vmatprep.subr.bf16.mxu1 %v9200_v1  ;;  %v9213_v1 = vld [vmem:[#allocation2 + $0x230] sm:$0xff] }
0x1c51   :  { %9537 = vmatpush1.bf16.msra.mxu0 %v9209_v0  ;;  %v9166_v0 = vld [vmem:[#allocation2 + $0xb8] sm:$0xff] }
0x1c52   :  { %9538 = vmatprep.subr.bf16.mxu0 %v9226_v53  ;;  %v9327_v53 = vld [vmem:[#allocation2 + $0x5c0] sm:$0xff] }
0x1c53   :  { %9664 = vmatpush1.bf16.msra.mxu1 %v9199_v29  ;;  %v9156_v29 = vld [vmem:[#allocation2 + $0x68] sm:$0xff] }
0x1c54   :  { %9665 = vmatprep.subr.bf16.mxu1 %v9216_v59  ;;  %v9229_v59 = vld [vmem:[#allocation2 + $0x2b0] sm:$0xff] }
0x1c55   :  { %9539 = vmatpush1.bf16.msra.mxu0 %v9225_v2  ;;  %v9182_v2 = vld [vmem:[#allocation2 + $0x138] sm:$0xff] }
0x1c56   :  { %9540 = vmatprep.subr.bf16.mxu0 %v9242_v49  ;;  %v9343_v49 = vld [vmem:[#allocation2 + $0x640] sm:$0xff] }
0x1c57   :  { %9666 = vmatpush1.bf16.msra.mxu1 %v9215_v38  ;;  %v9172_v38 = vld [vmem:[#allocation2 + $0xe8] sm:$0xff] }
0x1c58   :  { %9667 = vmatprep.subr.bf16.mxu1 %v9232_v19  ;;  %v9245_v19 = vld [vmem:[#allocation2 + $0x330] sm:$0xff] }
0x1c59   :  { %9541 = vmatpush1.bf16.msra.mxu0 %v9241_v28  ;;  %v9198_v28 = vld [vmem:[#allocation2 + $0x1b8] sm:$0xff] }
0x1c5a   :  { %9542 = vmatprep.subr.bf16.mxu0 %v9258_v25  ;;  %v9359_v25 = vld [vmem:[#allocation2 + $0x6c0] sm:$0xff] }
0x1c5b   :  { %9668 = vmatpush1.bf16.msra.mxu1 %v9231_v32  ;;  %v9188_v32 = vld [vmem:[#allocation2 + $0x168] sm:$0xff] }
0x1c5c   :  { %9669 = vmatprep.subr.bf16.mxu1 %v9248_v5  ;;  %v9261_v5 = vld [vmem:[#allocation2 + $0x3b0] sm:$0xff] }
0x1c5d   :  { %9543 = vmatpush1.bf16.msra.mxu0 %v9257_v62  ;;  %v9214_v62 = vld [vmem:[#allocation2 + $0x238] sm:$0xff] }
0x1c5e   :  { %9544 = vmatprep.subr.bf16.mxu0 %v9274_v52  ;;  %v9375_v52 = vld [vmem:[#allocation2 + $0x740] sm:$0xff] }
0x1c5f   :  { %9670 = vmatpush1.bf16.msra.mxu1 %v9247_v6  ;;  %v9204_v6 = vld [vmem:[#allocation2 + $0x1e8] sm:$0xff] }
0x1c60   :  { %9671 = vmatprep.subr.bf16.mxu1 %v9264_v43  ;;  %v9277_v43 = vld [vmem:[#allocation2 + $0x430] sm:$0xff] }
0x1c61   :  { %9545 = vmatpush1.bf16.msra.mxu0 %v9273_v22  ;;  %v9230_v22 = vld [vmem:[#allocation2 + $0x2b8] sm:$0xff] }
0x1c62   :  { %9546 = vmatprep.subr.bf16.mxu0 %v9290_v27  ;;  %v9391_v27 = vld [vmem:[#allocation2 + $0x7c0] sm:$0xff] }
0x1c63   :  { %9672 = vmatpush1.bf16.msra.mxu1 %v9263_v40  ;;  %v9220_v40 = vld [vmem:[#allocation2 + $0x268] sm:$0xff] }
0x1c64   :  { %9673 = vmatprep.subr.bf16.mxu1 %v9280_v41  ;;  %v9293_v41 = vld [vmem:[#allocation2 + $0x4b0] sm:$0xff] }
0x1c65   :  { %9547 = vmatpush1.bf16.msra.mxu0 %v9289_v33  ;;  %v9246_v33 = vld [vmem:[#allocation2 + $0x338] sm:$0xff] }
0x1c66   :  { %9548 = vmatprep.subr.bf16.mxu0 %v9306_v36  ;;  %v9155_v36 = vld [vmem:[#allocation2 + $0x60] sm:$0xff] }
0x1c67   :  { %9674 = vmatpush1.bf16.msra.mxu1 %v9279_v31  ;;  %v9236_v31 = vld [vmem:[#allocation2 + $0x2e8] sm:$0xff] }
0x1c68   :  { %9675 = vmatprep.subr.bf16.mxu1 %v9296_v55  ;;  %v9309_v55 = vld [vmem:[#allocation2 + $0x530] sm:$0xff] }
0x1c69   :  { %9549 = vmatpush1.bf16.msra.mxu0 %v9305_v39  ;;  %v9262_v39 = vld [vmem:[#allocation2 + $0x3b8] sm:$0xff] }
0x1c6a   :  { %9550 = vmatprep.subr.bf16.mxu0 %v9322_v34  ;;  %v9171_v34 = vld [vmem:[#allocation2 + $0xe0] sm:$0xff] }
0x1c6b   :  { %9676 = vmatpush1.bf16.msra.mxu1 %v9295_v13  ;;  %v9252_v13 = vld [vmem:[#allocation2 + $0x368] sm:$0xff] }
0x1c6c   :  { %9677 = vmatprep.subr.bf16.mxu1 %v9312_v60  ;;  %v9325_v60 = vld [vmem:[#allocation2 + $0x5b0] sm:$0xff] }
0x1c6d   :  { %9551 = vmatpush1.bf16.msra.mxu0 %v9321_v8  ;;  %v9278_v8 = vld [vmem:[#allocation2 + $0x438] sm:$0xff] }
0x1c6e   :  { %9552 = vmatprep.subr.bf16.mxu0 %v9338_v47  ;;  %v9187_v47 = vld [vmem:[#allocation2 + $0x160] sm:$0xff] }
0x1c6f   :  { %9678 = vmatpush1.bf16.msra.mxu1 %v9311_v14  ;;  %v9268_v14 = vld [vmem:[#allocation2 + $0x3e8] sm:$0xff] }
0x1c70   :  { %9679 = vmatprep.subr.bf16.mxu1 %v9328_v15  ;;  %v9341_v15 = vld [vmem:[#allocation2 + $0x630] sm:$0xff] }
0x1c71   :  { %9553 = vmatpush1.bf16.msra.mxu0 %v9337_v26  ;;  %v9294_v26 = vld [vmem:[#allocation2 + $0x4b8] sm:$0xff] }
0x1c72   :  { %9554 = vmatprep.subr.bf16.mxu0 %v9354_v3  ;;  %v9203_v3 = vld [vmem:[#allocation2 + $0x1e0] sm:$0xff] }
0x1c73   :  { %9680 = vmatpush1.bf16.msra.mxu1 %v9327_v53  ;;  %v9284_v53 = vld [vmem:[#allocation2 + $0x468] sm:$0xff] }
0x1c74   :  { %9681 = vmatprep.subr.bf16.mxu1 %v9344_v21  ;;  %v9357_v21 = vld [vmem:[#allocation2 + $0x6b0] sm:$0xff] }
0x1c75   :  { %9555 = vmatpush1.bf16.msra.mxu0 %v9353_v50  ;;  %v9310_v50 = vld [vmem:[#allocation2 + $0x538] sm:$0xff] }
0x1c76   :  { %9556 = vmatprep.subr.bf16.mxu0 %v9370_v16  ;;  %v9219_v16 = vld [vmem:[#allocation2 + $0x260] sm:$0xff] }
0x1c77   :  { %9682 = vmatpush1.bf16.msra.mxu1 %v9343_v49  ;;  %v9300_v49 = vld [vmem:[#allocation2 + $0x4e8] sm:$0xff] }
0x1c78   :  { %9683 = vmatprep.subr.bf16.mxu1 %v9360_v44  ;;  %v9373_v44 = vld [vmem:[#allocation2 + $0x730] sm:$0xff] }
0x1c79   :  { %9557 = vmatpush1.bf16.msra.mxu0 %v9369_v18  ;;  %v9326_v18 = vld [vmem:[#allocation2 + $0x5b8] sm:$0xff] }
0x1c7a   :  { %9558 = vmatprep.subr.bf16.mxu0 %v9386_v9  ;;  %v9235_v9 = vld [vmem:[#allocation2 + $0x2e0] sm:$0xff] }
0x1c7b   :  { %9684 = vmatpush1.bf16.msra.mxu1 %v9359_v25  ;;  %v9316_v25 = vld [vmem:[#allocation2 + $0x568] sm:$0xff] }
0x1c7c   :  { %9685 = vmatprep.subr.bf16.mxu1 %v9376_v30  ;;  %v9389_v30 = vld [vmem:[#allocation2 + $0x7b0] sm:$0xff] }
0x1c7d   :  { %9559 = vmatpush1.bf16.msra.mxu0 %v9385_v12  ;;  %v9342_v12 = vld [vmem:[#allocation2 + $0x638] sm:$0xff] }
0x1c7e   :  { %9614 = vmatprep.subr.bf16.mxu0 %v9150_v37  ;;  %v9251_v37 = vld [vmem:[#allocation2 + $0x360] sm:$0xff] }
0x1c7f   :  { %9686 = vmatpush1.bf16.msra.mxu1 %v9375_v52  ;;  %v9332_v52 = vld [vmem:[#allocation2 + $0x5e8] sm:$0xff] }
0x1c80   :  { %9561 = vmatmul.mubr.bf16.vlgmr.msra.gmra.mrb[72].mxu0 %v14392_v24  ;;  %9687 = vmatprep.subr.bf16.mxu1 %v9392_v54  ;;  %v9153_v54 = vld [vmem:[#allocation2 + $0x50] sm:$0xff] }
0x1c81   :  { %9615 = vmatpush1.bf16.msra.mxu0 %v9149_v20  ;;  %9646 = vmatprep.mubr.bf16.mxu0 %v14386_v56  ;;  %v9358_v20 = vld [vmem:[#allocation2 + $0x6b8] sm:$0xff] }
0x1c82   :  { %9616 = vmatprep.subr.bf16.mxu0 %v9166_v0  ;;  %v9267_v0 = vld [vmem:[#allocation2 + $0x3e0] sm:$0xff] }
0x1c83   :  { %9688 = vmatpush1.bf16.msra.mxu1 %v9391_v27  ;;  %v9348_v27 = vld [vmem:[#allocation2 + $0x668] sm:$0xff] }
0x1c84   :  { %9743 = vmatprep.subr.bf16.mxu1 %v9156_v29  ;;  %v9169_v29 = vld [vmem:[#allocation2 + $0xd0] sm:$0xff] }
0x1c85   :  { %9617 = vmatpush1.bf16.msra.mxu0 %v9165_v57  ;;  %v9374_v57 = vld [vmem:[#allocation2 + $0x738] sm:$0xff] }
0x1c86   :  { %9618 = vmatprep.subr.bf16.mxu0 %v9182_v2  ;;  %9690 = vmatmul.mubr.bf16.vlgmr.msra.gmra.mrb[44].mxu1 %v14392_v24  ;;  %v9283_v2 = vld [vmem:[#allocation2 + $0x460] sm:$0xff] }
0x1c87   :  { %9744 = vmatpush1.bf16.msra.mxu1 %v9155_v36  ;;  %9775 = vmatprep.mubr.bf16.mxu1 %v14386_v56  ;;  %v9364_v36 = vld [vmem:[#allocation2 + $0x6e8] sm:$0xff] }
0x1c88   :  { %9745 = vmatprep.subr.bf16.mxu1 %v9172_v38  ;;  %v9185_v38 = vld [vmem:[#allocation2 + $0x150] sm:$0xff] }
0x1c89   :  { %9619 = vmatpush1.bf16.msra.mxu0 %v9181_v45  ;;  %v9390_v45 = vld [vmem:[#allocation2 + $0x7b8] sm:$0xff] }
0x1c8a   :  { %9620 = vmatprep.subr.bf16.mxu0 %v9198_v28  ;;  %v9299_v28 = vld [vmem:[#allocation2 + $0x4e0] sm:$0xff] }
0x1c8b   :  { %9746 = vmatpush1.bf16.msra.mxu1 %v9171_v34  ;;  %v9380_v34 = vld [vmem:[#allocation2 + $0x768] sm:$0xff] }
0x1c8c   :  { %9747 = vmatprep.subr.bf16.mxu1 %v9188_v32  ;;  %v9201_v32 = vld [vmem:[#allocation2 + $0x1d0] sm:$0xff] }
0x1c8d   :  { %9621 = vmatpush1.bf16.msra.mxu0 %v9197_v4  ;;  %v9154_v4 = vld [vmem:[#allocation2 + $0x58] sm:$0xff] }
0x1c8e   :  { %9622 = vmatprep.subr.bf16.mxu0 %v9214_v62  ;;  %v9315_v62 = vld [vmem:[#allocation2 + $0x560] sm:$0xff] }
0x1c8f   :  { %9748 = vmatpush1.bf16.msra.mxu1 %v9187_v47  ;;  %v9396_v47 = vld [vmem:[#allocation2 + $0x7e8] sm:$0xff] }
0x1c90   :  { %9749 = vmatprep.subr.bf16.mxu1 %v9204_v6  ;;  %v9217_v6 = vld [vmem:[#allocation2 + $0x250] sm:$0xff] }
0x1c91   :  { %9623 = vmatpush1.bf16.msra.mxu0 %v9213_v1  ;;  %v9170_v1 = vld [vmem:[#allocation2 + $0xd8] sm:$0xff] }
0x1c92   :  { %9624 = vmatprep.subr.bf16.mxu0 %v9230_v22  ;;  %v9331_v22 = vld [vmem:[#allocation2 + $0x5e0] sm:$0xff] }
0x1c93   :  { %9750 = vmatpush1.bf16.msra.mxu1 %v9203_v3  ;;  %v9233_v3 = vld [vmem:[#allocation2 + $0x2d0] sm:$0xff] }
0x1c94   :  { %9751 = vmatprep.subr.bf16.mxu1 %v9220_v40  ;;  %v9250_v40 = vld [vmem:[#allocation2 + $0x358] sm:$0xff] }
0x1c95   :  { %9625 = vmatpush1.bf16.msra.mxu0 %v9229_v59  ;;  %v9186_v59 = vld [vmem:[#allocation2 + $0x158] sm:$0xff] }
0x1c96   :  { %9626 = vmatprep.subr.bf16.mxu0 %v9246_v33  ;;  %v9347_v33 = vld [vmem:[#allocation2 + $0x660] sm:$0xff] }
0x1c97   :  { %9752 = vmatpush1.bf16.msra.mxu1 %v9219_v16  ;;  %v9265_v16 = vld [vmem:[#allocation2 + $0x3d0] sm:$0xff] }
0x1c98   :  { %9753 = vmatprep.subr.bf16.mxu1 %v9236_v31  ;;  %v9282_v31 = vld [vmem:[#allocation2 + $0x458] sm:$0xff] }
0x1c99   :  { %9627 = vmatpush1.bf16.msra.mxu0 %v9245_v19  ;;  %v9202_v19 = vld [vmem:[#allocation2 + $0x1d8] sm:$0xff] }
0x1c9a   :  { %9628 = vmatprep.subr.bf16.mxu0 %v9262_v39  ;;  %v9363_v39 = vld [vmem:[#allocation2 + $0x6e0] sm:$0xff] }
0x1c9b   :  { %9754 = vmatpush1.bf16.msra.mxu1 %v9235_v9  ;;  %v9297_v9 = vld [vmem:[#allocation2 + $0x4d0] sm:$0xff] }
0x1c9c   :  { %9755 = vmatprep.subr.bf16.mxu1 %v9252_v13  ;;  %v9314_v13 = vld [vmem:[#allocation2 + $0x558] sm:$0xff] }
0x1c9d   :  { %9629 = vmatpush1.bf16.msra.mxu0 %v9261_v5  ;;  %v9218_v5 = vld [vmem:[#allocation2 + $0x258] sm:$0xff] }
0x1c9e   :  { %9630 = vmatprep.subr.bf16.mxu0 %v9278_v8  ;;  %v9379_v8 = vld [vmem:[#allocation2 + $0x760] sm:$0xff] }
0x1c9f   :  { %9756 = vmatpush1.bf16.msra.mxu1 %v9251_v37  ;;  %v9329_v37 = vld [vmem:[#allocation2 + $0x5d0] sm:$0xff] }
0x1ca0   :  { %9757 = vmatprep.subr.bf16.mxu1 %v9268_v14  ;;  %v9346_v14 = vld [vmem:[#allocation2 + $0x658] sm:$0xff] }
0x1ca1   :  { %9631 = vmatpush1.bf16.msra.mxu0 %v9277_v43  ;;  %v9234_v43 = vld [vmem:[#allocation2 + $0x2d8] sm:$0xff] }
0x1ca2   :  { %9632 = vmatprep.subr.bf16.mxu0 %v9294_v26  ;;  %v9395_v26 = vld [vmem:[#allocation2 + $0x7e0] sm:$0xff] }
0x1ca3   :  { %9758 = vmatpush1.bf16.msra.mxu1 %v9267_v0  ;;  %v9361_v0 = vld [vmem:[#allocation2 + $0x6d0] sm:$0xff] }
0x1ca4   :  { %9759 = vmatprep.subr.bf16.mxu1 %v9284_v53  ;;  %v9378_v53 = vld [vmem:[#allocation2 + $0x758] sm:$0xff] }
0x1ca5   :  { %9633 = vmatpush1.bf16.msra.mxu0 %v9293_v41  ;;  %v9249_v41 = vld [vmem:[#allocation2 + $0x350] sm:$0xff] }
0x1ca6   :  { %9634 = vmatprep.subr.bf16.mxu0 %v9310_v50  ;;  %v9266_v50 = vld [vmem:[#allocation2 + $0x3d8] sm:$0xff] }
0x1ca7   :  { %9760 = vmatpush1.bf16.msra.mxu1 %v9283_v2  ;;  %v9393_v2 = vld [vmem:[#allocation2 + $0x7d0] sm:$0xff] }
0x1ca8   :  { %9761 = vmatprep.subr.bf16.mxu1 %v9300_v49  ;;  %v9158_v49 = vld [vmem:[#allocation2 + $0x78] sm:$0xff] }
0x1ca9   :  { %9635 = vmatpush1.bf16.msra.mxu0 %v9309_v55  ;;  %v9281_v55 = vld [vmem:[#allocation2 + $0x450] sm:$0xff] }
0x1caa   :  { %9636 = vmatprep.subr.bf16.mxu0 %v9326_v18  ;;  %v9298_v18 = vld [vmem:[#allocation2 + $0x4d8] sm:$0xff] }
0x1cab   :  { %9762 = vmatpush1.bf16.msra.mxu1 %v9299_v28  ;;  %v9173_v28 = vld [vmem:[#allocation2 + $0xf0] sm:$0xff] }
0x1cac   :  { %9763 = vmatprep.subr.bf16.mxu1 %v9316_v25  ;;  %v9190_v25 = vld [vmem:[#allocation2 + $0x178] sm:$0xff] }
0x1cad   :  { %9637 = vmatpush1.bf16.msra.mxu0 %v9325_v60  ;;  %v9313_v60 = vld [vmem:[#allocation2 + $0x550] sm:$0xff] }
0x1cae   :  { %9638 = vmatprep.subr.bf16.mxu0 %v9342_v12  ;;  %v9330_v12 = vld [vmem:[#allocation2 + $0x5d8] sm:$0xff] }
0x1caf   :  { %9764 = vmatpush1.bf16.msra.mxu1 %v9315_v62  ;;  %v9205_v62 = vld [vmem:[#allocation2 + $0x1f0] sm:$0xff] }
0x1cb0   :  { %9765 = vmatprep.subr.bf16.mxu1 %v9332_v52  ;;  %v9222_v52 = vld [vmem:[#allocation2 + $0x278] sm:$0xff] }
0x1cb1   :  { %9639 = vmatpush1.bf16.msra.mxu0 %v9341_v15  ;;  %v9345_v15 = vld [vmem:[#allocation2 + $0x650] sm:$0xff] }
0x1cb2   :  { %9640 = vmatprep.subr.bf16.mxu0 %v9358_v20  ;;  %v9362_v20 = vld [vmem:[#allocation2 + $0x6d8] sm:$0xff] }
0x1cb3   :  { %9766 = vmatpush1.bf16.msra.mxu1 %v9331_v22 }
0x1cb4   :  { %9767 = vmatprep.subr.bf16.mxu1 %v9348_v27 }
0x1cb5   :  { %9641 = vmatpush1.bf16.msra.mxu0 %v9357_v21  ;;  %v9377_v21 = vld [vmem:[#allocation2 + $0x750] sm:$0xff] }
0x1cb6   :  { %9642 = vmatprep.subr.bf16.mxu0 %v9374_v57  ;;  %v9394_v57 = vld [vmem:[#allocation2 + $0x7d8] sm:$0xff] }
0x1cb7   :  { %9768 = vmatpush1.bf16.msra.mxu1 %v9347_v33  ;;  %v9254_v33 = vld [vmem:[#allocation2 + $0x378] sm:$0xff] }
0x1cb8   :  { %9769 = vmatprep.subr.bf16.mxu1 %v9364_v36 }
0x1cb9   :  { %9643 = vmatpush1.bf16.msra.mxu0 %v9373_v44  ;;  %v9157_v44 = vld [vmem:[#allocation2 + $0x70] sm:$0xff] }
0x1cba   :  { %9644 = vmatprep.subr.bf16.mxu0 %v9390_v45  ;;  %v9174_v45 = vld [vmem:[#allocation2 + $0xf8] sm:$0xff] }
0x1cbb   :  { %9770 = vmatpush1.bf16.msra.mxu1 %v9363_v39 }
0x1cbc   :  { %9771 = vmatprep.subr.bf16.mxu1 %v9380_v34 }
0x1cbd   :  { %9645 = vmatpush1.bf16.msra.mxu0 %v9389_v30  ;;  %v9189_v30 = vld [vmem:[#allocation2 + $0x170] sm:$0xff] }
0x1cbe   :  { %9700 = vmatprep.subr.bf16.mxu0 %v9154_v4  ;;  %v9206_v4 = vld [vmem:[#allocation2 + $0x1f8] sm:$0xff] }
0x1cbf   :  { %9772 = vmatpush1.bf16.msra.mxu1 %v9379_v8  ;;  %v9253_v8 = vld [vmem:[#allocation2 + $0x370] sm:$0xff] }
0x1cc0   :  { %9647 = vmatmul.mubr.bf16.vlgmr.msra.gmra.mrb[76].mxu0 %v14392_v24  ;;  %9773 = vmatprep.subr.bf16.mxu1 %v9396_v47 }
0x1cc1   :  { %9701 = vmatpush1.bf16.msra.mxu0 %v9153_v54  ;;  %9732 = vmatprep.mubr.bf16.mxu0 %v14386_v56  ;;  %v14410_v54 = vld [vmem:[%s14691_s13] sm:$0xff] }
0x1cc2   :  { %9702 = vmatprep.subr.bf16.mxu0 %v9170_v1  ;;  %v9221_v1 = vld [vmem:[#allocation2 + $0x270] sm:$0xff]  ;;  %v9408_v22 = vrot.slane %v14410_v54, %v13359_v63  ;;  %v9412_v27 = vrot.slane %v14410_v54, %v13353_v61 }
0x1cc3   :  { %9774 = vmatpush1.bf16.msra.mxu1 %v9395_v26 }
0x1cc5   :  { %9703 = vmatpush1.bf16.msra.mxu0 %v9169_v29  ;;  %v9237_v29 = vld [vmem:[#allocation2 + $0x2f0] sm:$0xff] }
0x1cc6   :  { %9704 = vmatprep.subr.bf16.mxu0 %v9186_v59  ;;  %9776 = vmatmul.mubr.bf16.vlgmr.msra.gmra.mrb[48].mxu1 %v14392_v24 }
0x1cc9   :  { %9705 = vmatpush1.bf16.msra.mxu0 %v9185_v38 }
0x1cca   :  { %9706 = vmatprep.subr.bf16.mxu0 %v9202_v19 }
0x1ccd   :  { %9707 = vmatpush1.bf16.msra.mxu0 %v9201_v32 }
0x1cce   :  { %9708 = vmatprep.subr.bf16.mxu0 %v9218_v5 }
0x1cd1   :  { %9709 = vmatpush1.bf16.msra.mxu0 %v9217_v6 }
0x1cd2   :  { %9710 = vmatprep.subr.bf16.mxu0 %v9234_v43  ;;  %v9270_v43 = vld [vmem:[#allocation2 + $0x3f8] sm:$0xff] }
0x1cd5   :  { %9711 = vmatpush1.bf16.msra.mxu0 %v9233_v3 }
0x1cd6   :  { %9712 = vmatprep.subr.bf16.mxu0 %v9250_v40  ;;  %v9269_v40 = vld [vmem:[#allocation2 + $0x3f0] sm:$0xff] }
0x1cd9   :  { %9713 = vmatpush1.bf16.msra.mxu0 %v9249_v41  ;;  %v9286_v41 = vld [vmem:[#allocation2 + $0x478] sm:$0xff] }
0x1cda   :  { %9714 = vmatprep.subr.bf16.mxu0 %v9266_v50  ;;  %v9285_v50 = vld [vmem:[#allocation2 + $0x470] sm:$0xff] }
0x1cdd   :  { %9715 = vmatpush1.bf16.msra.mxu0 %v9265_v16  ;;  %v9302_v16 = vld [vmem:[#allocation2 + $0x4f8] sm:$0xff] }
0x1cde   :  { %9716 = vmatprep.subr.bf16.mxu0 %v9282_v31  ;;  %v9301_v31 = vld [vmem:[#allocation2 + $0x4f0] sm:$0xff] }
0x1ce1   :  { %9717 = vmatpush1.bf16.msra.mxu0 %v9281_v55  ;;  %v9318_v55 = vld [vmem:[#allocation2 + $0x578] sm:$0xff] }
0x1ce2   :  { %9718 = vmatprep.subr.bf16.mxu0 %v9298_v18  ;;  %v9424_v18 = vrot.slane %v14410_v54, %v13997_v11 }
0x1ce5   :  { %9719 = vmatpush1.bf16.msra.mxu0 %v9297_v9  ;;  %v9317_v9 = vld [vmem:[#allocation2 + $0x570] sm:$0xff] }
0x1ce6   :  { %9720 = vmatprep.subr.bf16.mxu0 %v9314_v13  ;;  %v9428_v13 = vrot.slane %v14410_v54, %v13707_v58 }
0x1ce9   :  { %9721 = vmatpush1.bf16.msra.mxu0 %v9313_v60  ;;  %v9334_v60 = vld [vmem:[#allocation2 + $0x5f8] sm:$0xff] }
0x1cea   :  { %9722 = vmatprep.subr.bf16.mxu0 %v9330_v12 }
0x1ced   :  { %9723 = vmatpush1.bf16.msra.mxu0 %v9329_v37 }
0x1cee   :  { %9724 = vmatprep.subr.bf16.mxu0 %v9346_v14 }
0x1cf1   :  { %9725 = vmatpush1.bf16.msra.mxu0 %v9345_v15  ;;  %v9333_v15 = vld [vmem:[#allocation2 + $0x5f0] sm:$0xff] }
0x1cf2   :  { %9726 = vmatprep.subr.bf16.mxu0 %v9362_v20 }
0x1cf5   :  { %9727 = vmatpush1.bf16.msra.mxu0 %v9361_v0 }
0x1cf6   :  { %9728 = vmatprep.subr.bf16.mxu0 %v9378_v53  ;;  %v9350_v53 = vld [vmem:[#allocation2 + $0x678] sm:$0xff] }
0x1cf9   :  { %9729 = vmatpush1.bf16.msra.mxu0 %v9377_v21 }
0x1cfa   :  { %9730 = vmatprep.subr.bf16.mxu0 %v9394_v57 }
0x1cfd   :  { %9731 = vmatpush1.bf16.msra.mxu0 %v9393_v2 }
0x1cfe   :  { %9786 = vmatprep.subr.bf16.mxu0 %v9158_v49 }
0x1d00   :  { %9733 = vmatmul.mubr.bf16.vlgmr.msra.gmra.mrb[80].mxu0 %v14392_v24 }
0x1d01   :  { %9787 = vmatpush1.bf16.msra.mxu0 %v9157_v44  ;;  %9818 = vmatprep.mubr.bf16.mxu0 %v14386_v56  ;;  %v9238_v56 = vld [vmem:[#allocation2 + $0x2f8] sm:$0xff] }
0x1d02   :  { %9788 = vmatprep.subr.bf16.mxu0 %v9174_v45 }
0x1d05   :  { %9789 = vmatpush1.bf16.msra.mxu0 %v9173_v28  ;;  %v9349_v28 = vld [vmem:[#allocation2 + $0x670] sm:$0xff] }
0x1d06   :  { %9790 = vmatprep.subr.bf16.mxu0 %v9190_v25 }
0x1d09   :  { %9791 = vmatpush1.bf16.msra.mxu0 %v9189_v30  ;;  %v9366_v30 = vld [vmem:[#allocation2 + $0x6f8] sm:$0xff] }
0x1d0a   :  { %9792 = vmatprep.subr.bf16.mxu0 %v9206_v4  ;;  %v9365_v4 = vld [vmem:[#allocation2 + $0x6f0] sm:$0xff] }
0x1d0d   :  { %9793 = vmatpush1.bf16.msra.mxu0 %v9205_v62  ;;  %v9382_v62 = vld [vmem:[#allocation2 + $0x778] sm:$0xff] }
0x1d0e   :  { %9794 = vmatprep.subr.bf16.mxu0 %v9222_v52  ;;  %v9381_v52 = vld [vmem:[#allocation2 + $0x770] sm:$0xff] }
0x1d11   :  { %9795 = vmatpush1.bf16.msra.mxu0 %v9221_v1  ;;  %v9398_v1 = vld [vmem:[#allocation2 + $0x7f8] sm:$0xff] }
0x1d12   :  { %9796 = vmatprep.subr.bf16.mxu0 %v9238_v56  ;;  %v9397_v56 = vld [vmem:[#allocation2 + $0x7f0] sm:$0xff] }
0x1d13   :  { %v9519_v59 = vpop.f32.mrb[68].mxu0 }
0x1d14   :  { %v14416_v36 = vadd.f32 %v9519_v59, %v9408_v22  ;;  %v9521_v38 = vpop.f32.mrb[69].mxu0 }
0x1d15   :  { %v14418_v19 = vadd.f32 %v9521_v38, %v9412_v27  ;;  %v9523_v39 = vpop.f32.mrb[70].mxu0  ;;  %9797 = vmatpush1.bf16.msra.mxu0 %v9237_v29 }
0x1d16   :  { %v9829_v34 = vmax.f32 %v14416_v36, 0.0  ;;  %v14421_v32 = vadd.f32 %v9523_v39, %v9408_v22  ;;  %v9525_v5 = vpop.f32.mrb[71].mxu0  ;;  %9798 = vmatprep.subr.bf16.mxu0 %v9254_v33  ;;  %v9416_v22 = vrot.slane %v14410_v54, %v13685_v51 }
0x1d17   :  { %v9830_v47 = vmax.f32 %v14418_v19, 0.0  ;;  %v14424_v6 = vadd.f32 %v9525_v5, %v9412_v27  ;;  %v9420_v27 = vrot.slane %v14410_v54, %v13807_v42 }
0x1d18   :  { %v9845_v26 = vmax.f32 %v14421_v32, 0.0 }
0x1d19   :  { %v9846_v3 = vmax.f32 %v14424_v6, 0.0  ;;  %9799 = vmatpush1.bf16.msra.mxu0 %v9253_v8  ;;  %v9605_v12 = vpop.f32.mrb[40].mxu1 }
0x1d1a   :  { %9800 = vmatprep.subr.bf16.mxu0 %v9270_v43  ;;  %v14432_v37 = vadd.f32 %v9605_v12, %v9424_v18  ;;  %v9607_v14 = vpop.f32.mrb[41].mxu1 }
0x1d1b   :  { %v14434_v20 = vadd.f32 %v9607_v14, %v9428_v13  ;;  %v9609_v0 = vpop.f32.mrb[42].mxu1 }
0x1d1c   :  { %v9833_v21 = vmax.f32 %v14432_v37, 0.0  ;;  %v14437_v57 = vadd.f32 %v9609_v0, %v9424_v18  ;;  %v9611_v2 = vpop.f32.mrb[43].mxu1 }
0x1d1d   :  { %9801 = vmatpush1.bf16.msra.mxu0 %v9269_v40  ;;  %v9834_v49 = vmax.f32 %v14434_v20, 0.0  ;;  %v14440_v44 = vadd.f32 %v9611_v2, %v9428_v13 }
0x1d1e   :  { %9802 = vmatprep.subr.bf16.mxu0 %v9286_v41  ;;  %v9849_v45 = vmax.f32 %v14437_v57, 0.0 }
0x1d1f   :  { %v9850_v25 = vmax.f32 %v14440_v44, 0.0 }
0x1d21   :  { %9803 = vmatpush1.bf16.msra.mxu0 %v9285_v50 }
0x1d22   :  { %9804 = vmatprep.subr.bf16.mxu0 %v9302_v16  ;;  %v9400_v16 = vld [vmem:[%s14691_s13 + $0x8] sm:$0xff] }
0x1d25   :  { %9805 = vmatpush1.bf16.msra.mxu0 %v9301_v31  ;;  %v9440_v31 = vrot.slane %v9400_v16, %v13359_v63 }
0x1d26   :  { %9806 = vmatprep.subr.bf16.mxu0 %v9318_v55  ;;  %v9444_v55 = vrot.slane %v9400_v16, %v13353_v61 }
0x1d29   :  { %9807 = vmatpush1.bf16.msra.mxu0 %v9317_v9 }
0x1d2a   :  { %9808 = vmatprep.subr.bf16.mxu0 %v9334_v60 }
0x1d2d   :  { %9809 = vmatpush1.bf16.msra.mxu0 %v9333_v15 }
0x1d2e   :  { %9810 = vmatprep.subr.bf16.mxu0 %v9350_v53 }
0x1d31   :  { %9811 = vmatpush1.bf16.msra.mxu0 %v9349_v28 }
0x1d32   :  { %9812 = vmatprep.subr.bf16.mxu0 %v9366_v30  ;;  %v9452_v30 = vrot.slane %v9400_v16, %v13807_v42 }
0x1d35   :  { %9813 = vmatpush1.bf16.msra.mxu0 %v9365_v4  ;;  %v9432_v4 = vrot.slane %v14410_v54, %v13900_v48 }
0x1d36   :  { %9814 = vmatprep.subr.bf16.mxu0 %v9382_v62  ;;  %v9436_v62 = vrot.slane %v14410_v54, %v14090_v46 }
0x1d39   :  { %9815 = vmatpush1.bf16.msra.mxu0 %v9381_v52 }
0x1d3a   :  { %9816 = vmatprep.subr.bf16.mxu0 %v9398_v1 }
0x1d3d   :  { %9817 = vmatpush1.bf16.msra.mxu0 %v9397_v56 }
0x1d40   :  { %9819 = vmatmul.mubr.bf16.vlgmr.msra.gmra.mrb[84].mxu0 %v14392_v24 }
0x1d53   :  { %v9562_v29 = vpop.f32.mrb[72].mxu0 }
0x1d54   :  { %v14449_v59 = vadd.f32 %v9562_v29, %v9416_v22  ;;  %v9564_v33 = vpop.f32.mrb[73].mxu0 }
0x1d55   :  { %v14451_v38 = vadd.f32 %v9564_v33, %v9420_v27  ;;  %v9566_v39 = vpop.f32.mrb[74].mxu0 }
0x1d56   :  { %v9831_v5 = vmax.f32 %v14449_v59, 0.0  ;;  %v14454_v8 = vadd.f32 %v9566_v39, %v9416_v22  ;;  %v9568_v43 = vpop.f32.mrb[75].mxu0 }
0x1d57   :  { %v9832_v24 = vmax.f32 %v14451_v38, 0.0  ;;  %v14457_v40 = vadd.f32 %v9568_v43, %v9420_v27 }
0x1d58   :  { %v9847_v41 = vmax.f32 %v14454_v8, 0.0 }
0x1d59   :  { %v9848_v50 = vmax.f32 %v14457_v40, 0.0  ;;  %v9691_v18 = vpop.f32.mrb[44].mxu1 }
0x1d5a   :  { %v14466_v9 = vadd.f32 %v9691_v18, %v9440_v31  ;;  %v9693_v13 = vpop.f32.mrb[45].mxu1  ;;  %v9456_v18 = vrot.slane %v9400_v16, %v13997_v11 }
0x1d5b   :  { %v14468_v60 = vadd.f32 %v9693_v13, %v9444_v55  ;;  %v9695_v12 = vpop.f32.mrb[46].mxu1  ;;  %v9460_v13 = vrot.slane %v9400_v16, %v13707_v58  ;;  %v9468_v58 = vrot.slane %v9400_v16, %v14090_v46 }
0x1d5c   :  { %v14471_v15 = vadd.f32 %v9695_v12, %v9440_v31  ;;  %v9697_v0 = vpop.f32.mrb[47].mxu1 }
0x1d5d   :  { %v14474_v2 = vadd.f32 %v9697_v0, %v9444_v55 }
0x1d93   :  { %v9648_v52 = vpop.f32.mrb[76].mxu0 }
0x1d94   :  { %v14482_v1 = vadd.f32 %v9648_v52, %v9432_v4  ;;  %v9650_v56 = vpop.f32.mrb[77].mxu0 }
0x1d95   :  { %v14484_v22 = vadd.f32 %v9650_v56, %v9436_v62  ;;  %v9652_v27 = vpop.f32.mrb[78].mxu0 }
0x1d96   :  { %v14487_v33 = vadd.f32 %v9652_v27, %v9432_v4  ;;  %v9654_v39 = vpop.f32.mrb[79].mxu0 }
0x1d97   :  { %v9836_v43 = vmax.f32 %v14484_v22, 0.0  ;;  %v14490_v31 = vadd.f32 %v9654_v39, %v9436_v62 }
0x1d99   :  { %v9777_v12 = vpop.f32.mrb[48].mxu1 }
0x1d9a   :  { %v14496_v0 = vadd.f32 %v9777_v12, %v9456_v18  ;;  %v9779_v52 = vpop.f32.mrb[49].mxu1  ;;  %v9448_v12 = vrot.slane %v9400_v16, %v13685_v51 }
0x1d9b   :  { %v14498_v56 = vadd.f32 %v9779_v52, %v9460_v13  ;;  %v9781_v4 = vpop.f32.mrb[50].mxu1 }
0x1d9c   :  { %v14501_v28 = vadd.f32 %v9781_v4, %v9456_v18  ;;  %v9783_v62 = vpop.f32.mrb[51].mxu1 }
0x1d9d   :  { %v14504_v14 = vadd.f32 %v9783_v62, %v9460_v13 }
0x1dd3   :  { %v9734_v52 = vpop.f32.mrb[80].mxu0 }
0x1dd4   :  { %v14510_v53 = vadd.f32 %v9734_v52, %v9448_v12  ;;  %v9736_v55 = vpop.f32.mrb[81].mxu0  ;;  %v9464_v52 = vrot.slane %v9400_v16, %v13900_v48 }
0x1dd5   :  { %v14512_v27 = vadd.f32 %v9736_v55, %v9452_v30  ;;  %v9738_v18 = vpop.f32.mrb[82].mxu0 }
0x1dd6   :  { %v14515_v39 = vadd.f32 %v9738_v18, %v9448_v12  ;;  %v9740_v13 = vpop.f32.mrb[83].mxu0 }
0x1dd7   :  { %v14518_v11 = vadd.f32 %v9740_v13, %v9452_v30 }
0x1dd9   :  { %v9856_v42 = vmax.f32 %v14518_v11, 0.0 }
0x1e13   :  { %v9820_v55 = vpop.f32.mrb[84].mxu0 }
0x1e14   :  { %v14524_v29 = vadd.f32 %v9820_v55, %v9464_v52  ;;  %v9822_v54 = vpop.f32.mrb[85].mxu0 }
0x1e15   :  { %v14526_v4 = vadd.f32 %v9822_v54, %v9468_v58  ;;  %v9824_v12 = vpop.f32.mrb[86].mxu0 }
0x1e16   :  { %v14529_v62 = vadd.f32 %v9824_v12, %v9464_v52  ;;  %v9826_v30 = vpop.f32.mrb[87].mxu0 }
0x1e17   :  { %v9844_v13 = vmax.f32 %v14526_v4, 0.0  ;;  %v14532_v51 = vadd.f32 %v9826_v30, %v9468_v58 }
0x1e19   :  { %v9860_v46 = vmax.f32 %v14532_v51, 0.0 }
0x1e1a   :  { %11623 = dma.done.wait [#allocation4 + $0x1], 32768 }
0x1e1b   :  { %11624 = vsyncadd [#allocation4 + $0x1], 4294934528  ;;  %v10123_v16 = vpack.c.bf16 %v9846_v3, %v9830_v47  ;;  %v9866_v54 = vld [vmem:[#allocation3 + $0x8] sm:$0xff]  ;;  %v9865_v52 = vld [vmem:[#allocation3] sm:$0xff] }
0x1e1c   :  { %v9868_v55 = vld [vmem:[#allocation3 + $0x18] sm:$0xff]  ;;  %10149 = vmatprep.subr.bf16.mxu1 %v9866_v54  ;;  %v9867_v58 = vld [vmem:[#allocation3 + $0x10] sm:$0xff]  ;;  %v9870_v12 = vld [vmem:[#allocation3 + $0x28] sm:$0xff] }
0x1e1d   :  { %10181 = vmatprep.mubr.bf16.mxu1 %v10123_v16  ;;  %10150 = vmatpush1.bf16.msra.mxu1 %v9865_v52  ;;  %v9869_v30 = vld [vmem:[#allocation3 + $0x20] sm:$0xff]  ;;  %v9872_v48 = vld [vmem:[#allocation3 + $0x38] sm:$0xff]  ;;  %v9871_v18 = vld [vmem:[#allocation3 + $0x30] sm:$0xff] }
0x1e1e   :  { %10151 = vmatprep.subr.bf16.mxu1 %v9868_v55  ;;  %v9874_v19 = vld [vmem:[#allocation3 + $0x48] sm:$0xff]  ;;  %v9873_v47 = vld [vmem:[#allocation3 + $0x40] sm:$0xff]  ;;  %v9876_v6 = vld [vmem:[#allocation3 + $0x58] sm:$0xff] }
0x1e1f   :  { %v9875_v3 = vld [vmem:[#allocation3 + $0x50] sm:$0xff]  ;;  %v9878_v16 = vld [vmem:[#allocation3 + $0x68] sm:$0xff]  ;;  %v9877_v54 = vld [vmem:[#allocation3 + $0x60] sm:$0xff] }
0x1e20   :  { %v9880_v52 = vld [vmem:[#allocation3 + $0x78] sm:$0xff]  ;;  %v9879_v55 = vld [vmem:[#allocation3 + $0x70] sm:$0xff]  ;;  %v9901_v36 = vld [vmem:[#allocation3 + $0x120] sm:$0xff] }
0x1e21   :  { %10152 = vmatpush1.bf16.msra.mxu1 %v9867_v58  ;;  %v9882_v58 = vld [vmem:[#allocation3 + $0x88] sm:$0xff]  ;;  %v9904_v32 = vld [vmem:[#allocation3 + $0x138] sm:$0xff]  ;;  %v9905_v38 = vld [vmem:[#allocation3 + $0x140] sm:$0xff] }
0x1e22   :  { %10153 = vmatprep.subr.bf16.mxu1 %v9870_v12  ;;  %v9884_v12 = vld [vmem:[#allocation3 + $0x98] sm:$0xff]  ;;  %v9907_v40 = vld [vmem:[#allocation3 + $0x150] sm:$0xff]  ;;  %v9933_v59 = vld [vmem:[#allocation3 + $0x220] sm:$0xff] }
0x1e23   :  { %v9936_v8 = vld [vmem:[#allocation3 + $0x238] sm:$0xff]  ;;  %v9938_v20 = vld [vmem:[#allocation3 + $0x248] sm:$0xff]  ;;  %v9965_v37 = vld [vmem:[#allocation3 + $0x320] sm:$0xff] }
0x1e24   :  { %v9940_v44 = vld [vmem:[#allocation3 + $0x258] sm:$0xff]  ;;  %v9969_v22 = vld [vmem:[#allocation3 + $0x340] sm:$0xff]  ;;  %v10098_v4 = vld [vmem:[#allocation3 + $0x748] sm:$0xff] }
0x1e25   :  { %10154 = vmatpush1.bf16.msra.mxu1 %v9869_v30  ;;  %v9886_v30 = vld [vmem:[#allocation3 + $0xa8] sm:$0xff]  ;;  %v9968_v57 = vld [vmem:[#allocation3 + $0x338] sm:$0xff]  ;;  %v10033_v11 = vld [vmem:[#allocation3 + $0x540] sm:$0xff] }
0x1e26   :  { %10155 = vmatprep.subr.bf16.mxu1 %v9872_v48  ;;  %v9881_v48 = vld [vmem:[#allocation3 + $0x80] sm:$0xff] }
0x1e27   :  { %v10097_v51 = vld [vmem:[#allocation3 + $0x740] sm:$0xff] }
0x1e29   :  { %10156 = vmatpush1.bf16.msra.mxu1 %v9871_v18  ;;  %v9883_v18 = vld [vmem:[#allocation3 + $0x90] sm:$0xff] }
0x1e2a   :  { %10157 = vmatprep.subr.bf16.mxu1 %v9874_v19  ;;  %v9885_v19 = vld [vmem:[#allocation3 + $0xa0] sm:$0xff] }
0x1e2d   :  { %10158 = vmatpush1.bf16.msra.mxu1 %v9873_v47  ;;  %v9888_v47 = vld [vmem:[#allocation3 + $0xb8] sm:$0xff] }
0x1e2e   :  { %10159 = vmatprep.subr.bf16.mxu1 %v9876_v6  ;;  %v9887_v6 = vld [vmem:[#allocation3 + $0xb0] sm:$0xff] }
0x1e31   :  { %10160 = vmatpush1.bf16.msra.mxu1 %v9875_v3  ;;  %v9890_v3 = vld [vmem:[#allocation3 + $0xc8] sm:$0xff] }
0x1e32   :  { %10161 = vmatprep.subr.bf16.mxu1 %v9878_v16  ;;  %v9889_v16 = vld [vmem:[#allocation3 + $0xc0] sm:$0xff] }
0x1e35   :  { %10162 = vmatpush1.bf16.msra.mxu1 %v9877_v54  ;;  %v9892_v54 = vld [vmem:[#allocation3 + $0xd8] sm:$0xff] }
0x1e36   :  { %10163 = vmatprep.subr.bf16.mxu1 %v9880_v52  ;;  %v9891_v52 = vld [vmem:[#allocation3 + $0xd0] sm:$0xff] }
0x1e39   :  { %10164 = vmatpush1.bf16.msra.mxu1 %v9879_v55  ;;  %v9894_v55 = vld [vmem:[#allocation3 + $0xe8] sm:$0xff] }
0x1e3a   :  { %10165 = vmatprep.subr.bf16.mxu1 %v9882_v58  ;;  %v9893_v58 = vld [vmem:[#allocation3 + $0xe0] sm:$0xff] }
0x1e3d   :  { %10166 = vmatpush1.bf16.msra.mxu1 %v9881_v48  ;;  %v9896_v48 = vld [vmem:[#allocation3 + $0xf8] sm:$0xff] }
0x1e3e   :  { %10167 = vmatprep.subr.bf16.mxu1 %v9884_v12  ;;  %v9895_v12 = vld [vmem:[#allocation3 + $0xf0] sm:$0xff] }
0x1e41   :  { %10168 = vmatpush1.bf16.msra.mxu1 %v9883_v18  ;;  %v9898_v18 = vld [vmem:[#allocation3 + $0x108] sm:$0xff] }
0x1e42   :  { %10169 = vmatprep.subr.bf16.mxu1 %v9886_v30  ;;  %v10122_v30 = vpack.c.bf16 %v9845_v26, %v9829_v34  ;;  %v9903_v34 = vld [vmem:[#allocation3 + $0x130] sm:$0xff]  ;;  %v9906_v26 = vld [vmem:[#allocation3 + $0x148] sm:$0xff] }
0x1e45   :  { %10170 = vmatpush1.bf16.msra.mxu1 %v9885_v19  ;;  %v10125_v19 = vpack.c.bf16 %v9848_v50, %v9832_v24  ;;  %v9908_v24 = vld [vmem:[#allocation3 + $0x158] sm:$0xff]  ;;  %v9910_v50 = vld [vmem:[#allocation3 + $0x168] sm:$0xff] }
0x1e46   :  { %10171 = vmatprep.subr.bf16.mxu1 %v9888_v47  ;;  %v9897_v47 = vld [vmem:[#allocation3 + $0x100] sm:$0xff] }
0x1e49   :  { %10172 = vmatpush1.bf16.msra.mxu1 %v9887_v6  ;;  %v9900_v6 = vld [vmem:[#allocation3 + $0x118] sm:$0xff] }
0x1e4a   :  { %10173 = vmatprep.subr.bf16.mxu1 %v9890_v3  ;;  %v9899_v3 = vld [vmem:[#allocation3 + $0x110] sm:$0xff] }
0x1e4d   :  { %10174 = vmatpush1.bf16.msra.mxu1 %v9889_v16  ;;  %v9902_v16 = vld [vmem:[#allocation3 + $0x128] sm:$0xff] }
0x1e4e   :  { %10175 = vmatprep.subr.bf16.mxu1 %v9892_v54  ;;  %v9909_v54 = vld [vmem:[#allocation3 + $0x160] sm:$0xff] }
0x1e51   :  { %10176 = vmatpush1.bf16.msra.mxu1 %v9891_v52  ;;  %v9912_v52 = vld [vmem:[#allocation3 + $0x178] sm:$0xff] }
0x1e52   :  { %10177 = vmatprep.subr.bf16.mxu1 %v9894_v55  ;;  %v9911_v55 = vld [vmem:[#allocation3 + $0x170] sm:$0xff] }
0x1e55   :  { %10178 = vmatpush1.bf16.msra.mxu1 %v9893_v58  ;;  %v9914_v58 = vld [vmem:[#allocation3 + $0x188] sm:$0xff] }
0x1e56   :  { %10179 = vmatprep.subr.bf16.mxu1 %v9896_v48  ;;  %v9913_v48 = vld [vmem:[#allocation3 + $0x180] sm:$0xff] }
0x1e59   :  { %10180 = vmatpush1.bf16.msra.mxu1 %v9895_v12  ;;  %v9916_v12 = vld [vmem:[#allocation3 + $0x198] sm:$0xff] }
0x1e5a   :  { %10192 = vmatprep.subr.bf16.mxu1 %v9898_v18  ;;  %v9915_v18 = vld [vmem:[#allocation3 + $0x190] sm:$0xff] }
0x1e5c   :  { %10182 = vmatmul.mubr.bf16.vlgmr.msra.gmra.mrb[52].mxu1 %v10122_v30  ;;  %v9918_v30 = vld [vmem:[#allocation3 + $0x1a8] sm:$0xff] }
0x1e5d   :  { %10193 = vmatpush1.bf16.msra.mxu1 %v9897_v47  ;;  %10224 = vmatprep.mubr.bf16.mxu1 %v10125_v19  ;;  %v9917_v19 = vld [vmem:[#allocation3 + $0x1a0] sm:$0xff]  ;;  %v9920_v47 = vld [vmem:[#allocation3 + $0x1b8] sm:$0xff] }
0x1e5e   :  { %10194 = vmatprep.subr.bf16.mxu1 %v9900_v6  ;;  %v9919_v6 = vld [vmem:[#allocation3 + $0x1b0] sm:$0xff] }
0x1e61   :  { %10195 = vmatpush1.bf16.msra.mxu1 %v9899_v3  ;;  %v9922_v3 = vld [vmem:[#allocation3 + $0x1c8] sm:$0xff] }
0x1e62   :  { %10196 = vmatprep.subr.bf16.mxu1 %v9902_v16  ;;  %v9921_v16 = vld [vmem:[#allocation3 + $0x1c0] sm:$0xff] }
0x1e65   :  { %10197 = vmatpush1.bf16.msra.mxu1 %v9901_v36  ;;  %v9924_v36 = vld [vmem:[#allocation3 + $0x1d8] sm:$0xff] }
0x1e66   :  { %10198 = vmatprep.subr.bf16.mxu1 %v9904_v32  ;;  %v9923_v32 = vld [vmem:[#allocation3 + $0x1d0] sm:$0xff] }
0x1e69   :  { %10199 = vmatpush1.bf16.msra.mxu1 %v9903_v34  ;;  %v9926_v34 = vld [vmem:[#allocation3 + $0x1e8] sm:$0xff] }
0x1e6a   :  { %10200 = vmatprep.subr.bf16.mxu1 %v9906_v26  ;;  %v9925_v26 = vld [vmem:[#allocation3 + $0x1e0] sm:$0xff] }
0x1e6d   :  { %10201 = vmatpush1.bf16.msra.mxu1 %v9905_v38  ;;  %v9928_v38 = vld [vmem:[#allocation3 + $0x1f8] sm:$0xff] }
0x1e6e   :  { %10202 = vmatprep.subr.bf16.mxu1 %v9908_v24  ;;  %v9927_v24 = vld [vmem:[#allocation3 + $0x1f0] sm:$0xff] }
0x1e71   :  { %10203 = vmatpush1.bf16.msra.mxu1 %v9907_v40  ;;  %v9930_v40 = vld [vmem:[#allocation3 + $0x208] sm:$0xff] }
0x1e72   :  { %10204 = vmatprep.subr.bf16.mxu1 %v9910_v50  ;;  %v10124_v50 = vpack.c.bf16 %v9847_v41, %v9831_v5  ;;  %v9935_v5 = vld [vmem:[#allocation3 + $0x230] sm:$0xff]  ;;  %v9942_v41 = vld [vmem:[#allocation3 + $0x268] sm:$0xff] }
0x1e75   :  { %10205 = vmatpush1.bf16.msra.mxu1 %v9909_v54  ;;  %v10127_v54 = vpack.c.bf16 %v9850_v25, %v9834_v49  ;;  %v9937_v49 = vld [vmem:[#allocation3 + $0x240] sm:$0xff]  ;;  %v9939_v25 = vld [vmem:[#allocation3 + $0x250] sm:$0xff] }
0x1e76   :  { %10206 = vmatprep.subr.bf16.mxu1 %v9912_v52  ;;  %v9929_v52 = vld [vmem:[#allocation3 + $0x200] sm:$0xff] }
0x1e79   :  { %10207 = vmatpush1.bf16.msra.mxu1 %v9911_v55  ;;  %v9932_v55 = vld [vmem:[#allocation3 + $0x218] sm:$0xff] }
0x1e7a   :  { %10208 = vmatprep.subr.bf16.mxu1 %v9914_v58  ;;  %v9931_v58 = vld [vmem:[#allocation3 + $0x210] sm:$0xff] }
0x1e7d   :  { %10209 = vmatpush1.bf16.msra.mxu1 %v9913_v48  ;;  %v9934_v48 = vld [vmem:[#allocation3 + $0x228] sm:$0xff] }
0x1e7e   :  { %10210 = vmatprep.subr.bf16.mxu1 %v9916_v12  ;;  %v9941_v12 = vld [vmem:[#allocation3 + $0x260] sm:$0xff] }
0x1e81   :  { %10211 = vmatpush1.bf16.msra.mxu1 %v9915_v18  ;;  %v9944_v18 = vld [vmem:[#allocation3 + $0x278] sm:$0xff] }
0x1e82   :  { %10212 = vmatprep.subr.bf16.mxu1 %v9918_v30  ;;  %v9943_v30 = vld [vmem:[#allocation3 + $0x270] sm:$0xff] }
0x1e85   :  { %10213 = vmatpush1.bf16.msra.mxu1 %v9917_v19  ;;  %v9946_v19 = vld [vmem:[#allocation3 + $0x288] sm:$0xff] }
0x1e86   :  { %10214 = vmatprep.subr.bf16.mxu1 %v9920_v47  ;;  %v9945_v47 = vld [vmem:[#allocation3 + $0x280] sm:$0xff] }
0x1e89   :  { %10215 = vmatpush1.bf16.msra.mxu1 %v9919_v6  ;;  %v9948_v6 = vld [vmem:[#allocation3 + $0x298] sm:$0xff] }
0x1e8a   :  { %10216 = vmatprep.subr.bf16.mxu1 %v9922_v3  ;;  %v9947_v3 = vld [vmem:[#allocation3 + $0x290] sm:$0xff] }
0x1e8d   :  { %10217 = vmatpush1.bf16.msra.mxu1 %v9921_v16  ;;  %v9950_v16 = vld [vmem:[#allocation3 + $0x2a8] sm:$0xff] }
0x1e8e   :  { %10218 = vmatprep.subr.bf16.mxu1 %v9924_v36  ;;  %v9949_v36 = vld [vmem:[#allocation3 + $0x2a0] sm:$0xff] }
0x1e91   :  { %10219 = vmatpush1.bf16.msra.mxu1 %v9923_v32  ;;  %v9952_v32 = vld [vmem:[#allocation3 + $0x2b8] sm:$0xff] }
0x1e92   :  { %10220 = vmatprep.subr.bf16.mxu1 %v9926_v34  ;;  %v9951_v34 = vld [vmem:[#allocation3 + $0x2b0] sm:$0xff] }
0x1e95   :  { %10221 = vmatpush1.bf16.msra.mxu1 %v9925_v26  ;;  %v9954_v26 = vld [vmem:[#allocation3 + $0x2c8] sm:$0xff] }
0x1e96   :  { %10222 = vmatprep.subr.bf16.mxu1 %v9928_v38  ;;  %v9953_v38 = vld [vmem:[#allocation3 + $0x2c0] sm:$0xff] }
0x1e99   :  { %10223 = vmatpush1.bf16.msra.mxu1 %v9927_v24  ;;  %v9956_v24 = vld [vmem:[#allocation3 + $0x2d8] sm:$0xff] }
0x1e9a   :  { %10235 = vmatprep.subr.bf16.mxu1 %v9930_v40  ;;  %v9955_v40 = vld [vmem:[#allocation3 + $0x2d0] sm:$0xff] }
0x1e9c   :  { %10225 = vmatmul.mubr.bf16.vlgmr.msra.gmra.mrb[52].mxu1 %v10124_v50  ;;  %v9958_v50 = vld [vmem:[#allocation3 + $0x2e8] sm:$0xff] }
0x1e9d   :  { %10236 = vmatpush1.bf16.msra.mxu1 %v9929_v52  ;;  %10267 = vmatprep.mubr.bf16.mxu1 %v10127_v54  ;;  %v9957_v54 = vld [vmem:[#allocation3 + $0x2e0] sm:$0xff]  ;;  %v9960_v52 = vld [vmem:[#allocation3 + $0x2f8] sm:$0xff] }
0x1e9e   :  { %10237 = vmatprep.subr.bf16.mxu1 %v9932_v55  ;;  %v9959_v55 = vld [vmem:[#allocation3 + $0x2f0] sm:$0xff] }
0x1ea1   :  { %10238 = vmatpush1.bf16.msra.mxu1 %v9931_v58  ;;  %v9962_v58 = vld [vmem:[#allocation3 + $0x308] sm:$0xff] }
0x1ea2   :  { %10239 = vmatprep.subr.bf16.mxu1 %v9934_v48  ;;  %v10126_v48 = vpack.c.bf16 %v9849_v45, %v9833_v21  ;;  %v9967_v21 = vld [vmem:[#allocation3 + $0x330] sm:$0xff]  ;;  %v9970_v45 = vld [vmem:[#allocation3 + $0x348] sm:$0xff] }
0x1ea5   :  { %10240 = vmatpush1.bf16.msra.mxu1 %v9933_v59  ;;  %v14709_v59 = vmax.f32 %v14490_v31, 0.0  ;;  %v9971_v31 = vld [vmem:[#allocation3 + $0x350] sm:$0xff] }
0x1ea6   :  { %10241 = vmatprep.subr.bf16.mxu1 %v9936_v8 }
0x1ea7   :  { %v10129_v8 = vpack.c.bf16 %v14709_v59, %v9836_v43  ;;  %v9972_v43 = vld [vmem:[#allocation3 + $0x358] sm:$0xff] }
0x1ea9   :  { %10242 = vmatpush1.bf16.msra.mxu1 %v9935_v5  ;;  %v9961_v5 = vld [vmem:[#allocation3 + $0x300] sm:$0xff] }
0x1eaa   :  { %10243 = vmatprep.subr.bf16.mxu1 %v9938_v20  ;;  %v9964_v20 = vld [vmem:[#allocation3 + $0x318] sm:$0xff] }
0x1ead   :  { %10244 = vmatpush1.bf16.msra.mxu1 %v9937_v49  ;;  %v9963_v49 = vld [vmem:[#allocation3 + $0x310] sm:$0xff] }
0x1eae   :  { %10245 = vmatprep.subr.bf16.mxu1 %v9940_v44  ;;  %v9966_v44 = vld [vmem:[#allocation3 + $0x328] sm:$0xff] }
0x1eb1   :  { %10246 = vmatpush1.bf16.msra.mxu1 %v9939_v25  ;;  %v9974_v25 = vld [vmem:[#allocation3 + $0x368] sm:$0xff] }
0x1eb2   :  { %10247 = vmatprep.subr.bf16.mxu1 %v9942_v41  ;;  %v9973_v41 = vld [vmem:[#allocation3 + $0x360] sm:$0xff] }
0x1eb5   :  { %10248 = vmatpush1.bf16.msra.mxu1 %v9941_v12  ;;  %v9976_v12 = vld [vmem:[#allocation3 + $0x378] sm:$0xff] }
0x1eb6   :  { %10249 = vmatprep.subr.bf16.mxu1 %v9944_v18  ;;  %v9975_v18 = vld [vmem:[#allocation3 + $0x370] sm:$0xff] }
0x1eb9   :  { %10250 = vmatpush1.bf16.msra.mxu1 %v9943_v30  ;;  %v9978_v30 = vld [vmem:[#allocation3 + $0x388] sm:$0xff] }
0x1eba   :  { %10251 = vmatprep.subr.bf16.mxu1 %v9946_v19  ;;  %v9977_v19 = vld [vmem:[#allocation3 + $0x380] sm:$0xff] }
0x1ebd   :  { %10252 = vmatpush1.bf16.msra.mxu1 %v9945_v47  ;;  %v9980_v47 = vld [vmem:[#allocation3 + $0x398] sm:$0xff] }
0x1ebe   :  { %10253 = vmatprep.subr.bf16.mxu1 %v9948_v6  ;;  %v9979_v6 = vld [vmem:[#allocation3 + $0x390] sm:$0xff] }
0x1ec1   :  { %10254 = vmatpush1.bf16.msra.mxu1 %v9947_v3  ;;  %v9982_v3 = vld [vmem:[#allocation3 + $0x3a8] sm:$0xff] }
0x1ec2   :  { %10255 = vmatprep.subr.bf16.mxu1 %v9950_v16  ;;  %v9981_v16 = vld [vmem:[#allocation3 + $0x3a0] sm:$0xff] }
0x1ec5   :  { %10256 = vmatpush1.bf16.msra.mxu1 %v9949_v36  ;;  %v9984_v36 = vld [vmem:[#allocation3 + $0x3b8] sm:$0xff] }
0x1ec6   :  { %10257 = vmatprep.subr.bf16.mxu1 %v9952_v32  ;;  %v9983_v32 = vld [vmem:[#allocation3 + $0x3b0] sm:$0xff] }
0x1ec9   :  { %10258 = vmatpush1.bf16.msra.mxu1 %v9951_v34  ;;  %v9986_v34 = vld [vmem:[#allocation3 + $0x3c8] sm:$0xff] }
0x1eca   :  { %10259 = vmatprep.subr.bf16.mxu1 %v9954_v26  ;;  %v9985_v26 = vld [vmem:[#allocation3 + $0x3c0] sm:$0xff] }
0x1ecd   :  { %10260 = vmatpush1.bf16.msra.mxu1 %v9953_v38  ;;  %v9988_v38 = vld [vmem:[#allocation3 + $0x3d8] sm:$0xff] }
0x1ece   :  { %10261 = vmatprep.subr.bf16.mxu1 %v9956_v24  ;;  %v9987_v24 = vld [vmem:[#allocation3 + $0x3d0] sm:$0xff] }
0x1ed1   :  { %10262 = vmatpush1.bf16.msra.mxu1 %v9955_v40  ;;  %v9990_v40 = vld [vmem:[#allocation3 + $0x3e8] sm:$0xff] }
0x1ed2   :  { %10263 = vmatprep.subr.bf16.mxu1 %v9958_v50  ;;  %v9989_v50 = vld [vmem:[#allocation3 + $0x3e0] sm:$0xff] }
0x1ed5   :  { %10264 = vmatpush1.bf16.msra.mxu1 %v9957_v54  ;;  %v9992_v54 = vld [vmem:[#allocation3 + $0x3f8] sm:$0xff] }
0x1ed6   :  { %10265 = vmatprep.subr.bf16.mxu1 %v9960_v52  ;;  %v9991_v52 = vld [vmem:[#allocation3 + $0x3f0] sm:$0xff] }
0x1ed9   :  { %10266 = vmatpush1.bf16.msra.mxu1 %v9959_v55  ;;  %v9994_v55 = vld [vmem:[#allocation3 + $0x408] sm:$0xff] }
0x1eda   :  { %10278 = vmatprep.subr.bf16.mxu1 %v9962_v58  ;;  %v14710_v58 = vmax.f32 %v14482_v1, 0.0  ;;  %v9997_v1 = vld [vmem:[#allocation3 + $0x420] sm:$0xff] }
0x1edc   :  { %10268 = vmatmul.mubr.bf16.vlgmr.msra.gmra.mrb[52].mxu1 %v10126_v48  ;;  %v14711_v48 = vmax.f32 %v14487_v33, 0.0  ;;  %v10000_v33 = vld [vmem:[#allocation3 + $0x438] sm:$0xff] }
0x1edd   :  { %10279 = vmatpush1.bf16.msra.mxu1 %v9961_v5  ;;  %10310 = vmatprep.mubr.bf16.mxu1 %v10129_v8  ;;  %v14712_v8 = vmax.f32 %v14468_v60, 0.0  ;;  %v14713_v5 = vmax.f32 %v14474_v2, 0.0  ;;  %v10002_v60 = vld [vmem:[#allocation3 + $0x448] sm:$0xff]  ;;  %v10001_v2 = vld [vmem:[#allocation3 + $0x440] sm:$0xff] }
0x1ede   :  { %10280 = vmatprep.subr.bf16.mxu1 %v9964_v20  ;;  %v10128_v59 = vpack.c.bf16 %v14711_v48, %v14710_v58  ;;  %v14716_v48 = vmax.f32 %v14512_v27, 0.0  ;;  %v10034_v27 = vld [vmem:[#allocation3 + $0x548] sm:$0xff] }
0x1edf   :  { %v10131_v20 = vpack.c.bf16 %v14713_v5, %v14712_v8  ;;  %v10025_v8 = vld [vmem:[#allocation3 + $0x500] sm:$0xff]  ;;  %v10028_v5 = vld [vmem:[#allocation3 + $0x518] sm:$0xff] }
0x1ee1   :  { %10281 = vmatpush1.bf16.msra.mxu1 %v9963_v49  ;;  %v9993_v49 = vld [vmem:[#allocation3 + $0x400] sm:$0xff] }
0x1ee2   :  { %10282 = vmatprep.subr.bf16.mxu1 %v9966_v44  ;;  %v9996_v44 = vld [vmem:[#allocation3 + $0x418] sm:$0xff] }
0x1ee5   :  { %10283 = vmatpush1.bf16.msra.mxu1 %v9965_v37  ;;  %v9995_v37 = vld [vmem:[#allocation3 + $0x410] sm:$0xff] }
0x1ee6   :  { %10284 = vmatprep.subr.bf16.mxu1 %v9968_v57  ;;  %v9998_v57 = vld [vmem:[#allocation3 + $0x428] sm:$0xff] }
0x1ee9   :  { %10285 = vmatpush1.bf16.msra.mxu1 %v9967_v21  ;;  %v9999_v21 = vld [vmem:[#allocation3 + $0x430] sm:$0xff] }
0x1eea   :  { %10286 = vmatprep.subr.bf16.mxu1 %v9970_v45  ;;  %v10004_v45 = vld [vmem:[#allocation3 + $0x458] sm:$0xff] }
0x1eed   :  { %10287 = vmatpush1.bf16.msra.mxu1 %v9969_v22  ;;  %v10003_v22 = vld [vmem:[#allocation3 + $0x450] sm:$0xff] }
0x1eee   :  { %10288 = vmatprep.subr.bf16.mxu1 %v9972_v43  ;;  %v10006_v43 = vld [vmem:[#allocation3 + $0x468] sm:$0xff] }
0x1ef1   :  { %10289 = vmatpush1.bf16.msra.mxu1 %v9971_v31  ;;  %v10005_v31 = vld [vmem:[#allocation3 + $0x460] sm:$0xff] }
0x1ef2   :  { %10290 = vmatprep.subr.bf16.mxu1 %v9974_v25  ;;  %v10008_v25 = vld [vmem:[#allocation3 + $0x478] sm:$0xff] }
0x1ef5   :  { %10291 = vmatpush1.bf16.msra.mxu1 %v9973_v41  ;;  %v10007_v41 = vld [vmem:[#allocation3 + $0x470] sm:$0xff] }
0x1ef6   :  { %10292 = vmatprep.subr.bf16.mxu1 %v9976_v12  ;;  %v10010_v12 = vld [vmem:[#allocation3 + $0x488] sm:$0xff] }
0x1ef9   :  { %10293 = vmatpush1.bf16.msra.mxu1 %v9975_v18  ;;  %v10009_v18 = vld [vmem:[#allocation3 + $0x480] sm:$0xff] }
0x1efa   :  { %10294 = vmatprep.subr.bf16.mxu1 %v9978_v30  ;;  %v10012_v30 = vld [vmem:[#allocation3 + $0x498] sm:$0xff] }
0x1efd   :  { %10295 = vmatpush1.bf16.msra.mxu1 %v9977_v19  ;;  %v10011_v19 = vld [vmem:[#allocation3 + $0x490] sm:$0xff] }
0x1efe   :  { %10296 = vmatprep.subr.bf16.mxu1 %v9980_v47  ;;  %v10014_v47 = vld [vmem:[#allocation3 + $0x4a8] sm:$0xff] }
0x1f01   :  { %10297 = vmatpush1.bf16.msra.mxu1 %v9979_v6  ;;  %v10013_v6 = vld [vmem:[#allocation3 + $0x4a0] sm:$0xff] }
0x1f02   :  { %10298 = vmatprep.subr.bf16.mxu1 %v9982_v3  ;;  %v10016_v3 = vld [vmem:[#allocation3 + $0x4b8] sm:$0xff] }
0x1f05   :  { %10299 = vmatpush1.bf16.msra.mxu1 %v9981_v16  ;;  %v10015_v16 = vld [vmem:[#allocation3 + $0x4b0] sm:$0xff] }
0x1f06   :  { %10300 = vmatprep.subr.bf16.mxu1 %v9984_v36  ;;  %v10018_v36 = vld [vmem:[#allocation3 + $0x4c8] sm:$0xff] }
0x1f09   :  { %10301 = vmatpush1.bf16.msra.mxu1 %v9983_v32  ;;  %v10017_v32 = vld [vmem:[#allocation3 + $0x4c0] sm:$0xff] }
0x1f0a   :  { %10302 = vmatprep.subr.bf16.mxu1 %v9986_v34  ;;  %v10020_v34 = vld [vmem:[#allocation3 + $0x4d8] sm:$0xff] }
0x1f0d   :  { %10303 = vmatpush1.bf16.msra.mxu1 %v9985_v26  ;;  %v10019_v26 = vld [vmem:[#allocation3 + $0x4d0] sm:$0xff] }
0x1f0e   :  { %10304 = vmatprep.subr.bf16.mxu1 %v9988_v38  ;;  %v10022_v38 = vld [vmem:[#allocation3 + $0x4e8] sm:$0xff] }
0x1f11   :  { %10305 = vmatpush1.bf16.msra.mxu1 %v9987_v24  ;;  %v10021_v24 = vld [vmem:[#allocation3 + $0x4e0] sm:$0xff] }
0x1f12   :  { %10306 = vmatprep.subr.bf16.mxu1 %v9990_v40  ;;  %v10024_v40 = vld [vmem:[#allocation3 + $0x4f8] sm:$0xff] }
0x1f15   :  { %10307 = vmatpush1.bf16.msra.mxu1 %v9989_v50  ;;  %v10023_v50 = vld [vmem:[#allocation3 + $0x4f0] sm:$0xff] }
0x1f16   :  { %10308 = vmatprep.subr.bf16.mxu1 %v9992_v54  ;;  %v10026_v54 = vld [vmem:[#allocation3 + $0x508] sm:$0xff] }
0x1f19   :  { %10309 = vmatpush1.bf16.msra.mxu1 %v9991_v52  ;;  %v14714_v52 = vmax.f32 %v14466_v9, 0.0  ;;  %v10029_v9 = vld [vmem:[#allocation3 + $0x520] sm:$0xff] }
0x1f1a   :  { %10321 = vmatprep.subr.bf16.mxu1 %v9994_v55  ;;  %v14715_v55 = vmax.f32 %v14471_v15, 0.0  ;;  %v10032_v15 = vld [vmem:[#allocation3 + $0x538] sm:$0xff] }
0x1f1c   :  { %10311 = vmatmul.mubr.bf16.vlgmr.msra.gmra.mrb[52].mxu1 %v10128_v59  ;;  %v10130_v58 = vpack.c.bf16 %v14715_v55, %v14714_v52  ;;  %v10133_v59 = vpack.c.bf16 %v9856_v42, %v14716_v48  ;;  %v10036_v42 = vld [vmem:[#allocation3 + $0x558] sm:$0xff]  ;;  %v10059_v52 = vld [vmem:[#allocation3 + $0x610] sm:$0xff]  ;;  %v10062_v55 = vld [vmem:[#allocation3 + $0x628] sm:$0xff] }
0x1f1d   :  { %10322 = vmatpush1.bf16.msra.mxu1 %v9993_v49  ;;  %10353 = vmatprep.mubr.bf16.mxu1 %v10131_v20  ;;  %v10027_v20 = vld [vmem:[#allocation3 + $0x510] sm:$0xff]  ;;  %v10030_v49 = vld [vmem:[#allocation3 + $0x528] sm:$0xff]  ;;  %v10068_v48 = vld [vmem:[#allocation3 + $0x658] sm:$0xff] }
0x1f1e   :  { %10323 = vmatprep.subr.bf16.mxu1 %v9996_v44  ;;  %v10031_v44 = vld [vmem:[#allocation3 + $0x530] sm:$0xff] }
0x1f21   :  { %10324 = vmatpush1.bf16.msra.mxu1 %v9995_v37  ;;  %v10035_v37 = vld [vmem:[#allocation3 + $0x550] sm:$0xff] }
0x1f22   :  { %10325 = vmatprep.subr.bf16.mxu1 %v9998_v57  ;;  %v10038_v57 = vld [vmem:[#allocation3 + $0x568] sm:$0xff] }
0x1f25   :  { %10326 = vmatpush1.bf16.msra.mxu1 %v9997_v1  ;;  %v10037_v1 = vld [vmem:[#allocation3 + $0x560] sm:$0xff] }
0x1f26   :  { %10327 = vmatprep.subr.bf16.mxu1 %v10000_v33  ;;  %v10040_v33 = vld [vmem:[#allocation3 + $0x578] sm:$0xff] }
0x1f29   :  { %10328 = vmatpush1.bf16.msra.mxu1 %v9999_v21  ;;  %v10039_v21 = vld [vmem:[#allocation3 + $0x570] sm:$0xff] }
0x1f2a   :  { %10329 = vmatprep.subr.bf16.mxu1 %v10002_v60  ;;  %v10042_v60 = vld [vmem:[#allocation3 + $0x588] sm:$0xff] }
0x1f2d   :  { %10330 = vmatpush1.bf16.msra.mxu1 %v10001_v2  ;;  %v10041_v2 = vld [vmem:[#allocation3 + $0x580] sm:$0xff] }
0x1f2e   :  { %10331 = vmatprep.subr.bf16.mxu1 %v10004_v45  ;;  %v10044_v45 = vld [vmem:[#allocation3 + $0x598] sm:$0xff] }
0x1f31   :  { %10332 = vmatpush1.bf16.msra.mxu1 %v10003_v22  ;;  %v10043_v22 = vld [vmem:[#allocation3 + $0x590] sm:$0xff] }
0x1f32   :  { %10333 = vmatprep.subr.bf16.mxu1 %v10006_v43  ;;  %v10046_v43 = vld [vmem:[#allocation3 + $0x5a8] sm:$0xff] }
0x1f35   :  { %10334 = vmatpush1.bf16.msra.mxu1 %v10005_v31  ;;  %v10045_v31 = vld [vmem:[#allocation3 + $0x5a0] sm:$0xff] }
0x1f36   :  { %10335 = vmatprep.subr.bf16.mxu1 %v10008_v25  ;;  %v10048_v25 = vld [vmem:[#allocation3 + $0x5b8] sm:$0xff] }
0x1f39   :  { %10336 = vmatpush1.bf16.msra.mxu1 %v10007_v41  ;;  %v10047_v41 = vld [vmem:[#allocation3 + $0x5b0] sm:$0xff] }
0x1f3a   :  { %10337 = vmatprep.subr.bf16.mxu1 %v10010_v12  ;;  %v10050_v12 = vld [vmem:[#allocation3 + $0x5c8] sm:$0xff] }
0x1f3d   :  { %10338 = vmatpush1.bf16.msra.mxu1 %v10009_v18  ;;  %v10049_v18 = vld [vmem:[#allocation3 + $0x5c0] sm:$0xff] }
0x1f3e   :  { %10339 = vmatprep.subr.bf16.mxu1 %v10012_v30  ;;  %v10052_v30 = vld [vmem:[#allocation3 + $0x5d8] sm:$0xff] }
0x1f41   :  { %10340 = vmatpush1.bf16.msra.mxu1 %v10011_v19  ;;  %v10051_v19 = vld [vmem:[#allocation3 + $0x5d0] sm:$0xff] }
0x1f42   :  { %10341 = vmatprep.subr.bf16.mxu1 %v10014_v47  ;;  %v10054_v47 = vld [vmem:[#allocation3 + $0x5e8] sm:$0xff] }
0x1f45   :  { %10342 = vmatpush1.bf16.msra.mxu1 %v10013_v6  ;;  %v10053_v6 = vld [vmem:[#allocation3 + $0x5e0] sm:$0xff] }
0x1f46   :  { %10343 = vmatprep.subr.bf16.mxu1 %v10016_v3  ;;  %v10056_v3 = vld [vmem:[#allocation3 + $0x5f8] sm:$0xff] }
0x1f49   :  { %10344 = vmatpush1.bf16.msra.mxu1 %v10015_v16  ;;  %v10055_v16 = vld [vmem:[#allocation3 + $0x5f0] sm:$0xff] }
0x1f4a   :  { %10345 = vmatprep.subr.bf16.mxu1 %v10018_v36  ;;  %v10058_v36 = vld [vmem:[#allocation3 + $0x608] sm:$0xff] }
0x1f4d   :  { %10346 = vmatpush1.bf16.msra.mxu1 %v10017_v32  ;;  %v14717_v32 = vmax.f32 %v14510_v53, 0.0  ;;  %v10061_v53 = vld [vmem:[#allocation3 + $0x620] sm:$0xff] }
0x1f4e   :  { %10347 = vmatprep.subr.bf16.mxu1 %v10020_v34  ;;  %v14718_v34 = vmax.f32 %v14515_v39, 0.0  ;;  %v10064_v39 = vld [vmem:[#allocation3 + $0x638] sm:$0xff] }
0x1f51   :  { %10348 = vmatpush1.bf16.msra.mxu1 %v10019_v26  ;;  %v10132_v26 = vpack.c.bf16 %v14718_v34, %v14717_v32  ;;  %v10104_v32 = vld [vmem:[#allocation3 + $0x778] sm:$0xff]  ;;  %v10103_v34 = vld [vmem:[#allocation3 + $0x770] sm:$0xff] }
0x1f52   :  { %10349 = vmatprep.subr.bf16.mxu1 %v10022_v38  ;;  %v14719_v38 = vmax.f32 %v14498_v56, 0.0  ;;  %v10066_v56 = vld [vmem:[#allocation3 + $0x648] sm:$0xff] }
0x1f55   :  { %10350 = vmatpush1.bf16.msra.mxu1 %v10021_v24  ;;  %v14720_v24 = vmax.f32 %v14504_v14, 0.0  ;;  %v10065_v14 = vld [vmem:[#allocation3 + $0x640] sm:$0xff] }
0x1f56   :  { %10351 = vmatprep.subr.bf16.mxu1 %v10024_v40 }
0x1f57   :  { %v10135_v40 = vpack.c.bf16 %v14720_v24, %v14719_v38  ;;  %v10105_v38 = vld [vmem:[#allocation3 + $0x780] sm:$0xff]  ;;  %v10108_v24 = vld [vmem:[#allocation3 + $0x798] sm:$0xff] }
0x1f59   :  { %10352 = vmatpush1.bf16.msra.mxu1 %v10023_v50  ;;  %v10057_v50 = vld [vmem:[#allocation3 + $0x600] sm:$0xff] }
0x1f5a   :  { %10364 = vmatprep.subr.bf16.mxu1 %v10026_v54  ;;  %v10060_v54 = vld [vmem:[#allocation3 + $0x618] sm:$0xff] }
0x1f5c   :  { %10354 = vmatmul.mubr.bf16.vlgmr.msra.gmra.mrb[52].mxu1 %v10130_v58  ;;  %v10063_v58 = vld [vmem:[#allocation3 + $0x630] sm:$0xff] }
0x1f5d   :  { %10365 = vmatpush1.bf16.msra.mxu1 %v10025_v8  ;;  %10396 = vmatprep.mubr.bf16.mxu1 %v10133_v59  ;;  %v10067_v59 = vld [vmem:[#allocation3 + $0x650] sm:$0xff]  ;;  %v10070_v8 = vld [vmem:[#allocation3 + $0x668] sm:$0xff] }
0x1f5e   :  { %10366 = vmatprep.subr.bf16.mxu1 %v10028_v5  ;;  %v10069_v5 = vld [vmem:[#allocation3 + $0x660] sm:$0xff] }
0x1f61   :  { %10367 = vmatpush1.bf16.msra.mxu1 %v10027_v20  ;;  %v10072_v20 = vld [vmem:[#allocation3 + $0x678] sm:$0xff] }
0x1f62   :  { %10368 = vmatprep.subr.bf16.mxu1 %v10030_v49  ;;  %v10071_v49 = vld [vmem:[#allocation3 + $0x670] sm:$0xff] }
0x1f65   :  { %10369 = vmatpush1.bf16.msra.mxu1 %v10029_v9  ;;  %v10074_v9 = vld [vmem:[#allocation3 + $0x688] sm:$0xff] }
0x1f66   :  { %10370 = vmatprep.subr.bf16.mxu1 %v10032_v15  ;;  %v10073_v15 = vld [vmem:[#allocation3 + $0x680] sm:$0xff] }
0x1f69   :  { %10371 = vmatpush1.bf16.msra.mxu1 %v10031_v44  ;;  %v10076_v44 = vld [vmem:[#allocation3 + $0x698] sm:$0xff] }
0x1f6a   :  { %10372 = vmatprep.subr.bf16.mxu1 %v10034_v27  ;;  %v10075_v27 = vld [vmem:[#allocation3 + $0x690] sm:$0xff] }
0x1f6d   :  { %10373 = vmatpush1.bf16.msra.mxu1 %v10033_v11  ;;  %v10078_v11 = vld [vmem:[#allocation3 + $0x6a8] sm:$0xff] }
0x1f6e   :  { %10374 = vmatprep.subr.bf16.mxu1 %v10036_v42  ;;  %v10077_v42 = vld [vmem:[#allocation3 + $0x6a0] sm:$0xff] }
0x1f71   :  { %10375 = vmatpush1.bf16.msra.mxu1 %v10035_v37  ;;  %v10080_v37 = vld [vmem:[#allocation3 + $0x6b8] sm:$0xff] }
0x1f72   :  { %10376 = vmatprep.subr.bf16.mxu1 %v10038_v57  ;;  %v10079_v57 = vld [vmem:[#allocation3 + $0x6b0] sm:$0xff] }
0x1f75   :  { %10377 = vmatpush1.bf16.msra.mxu1 %v10037_v1  ;;  %v10082_v1 = vld [vmem:[#allocation3 + $0x6c8] sm:$0xff] }
0x1f76   :  { %10378 = vmatprep.subr.bf16.mxu1 %v10040_v33  ;;  %v10081_v33 = vld [vmem:[#allocation3 + $0x6c0] sm:$0xff] }
0x1f79   :  { %10379 = vmatpush1.bf16.msra.mxu1 %v10039_v21  ;;  %v10084_v21 = vld [vmem:[#allocation3 + $0x6d8] sm:$0xff] }
0x1f7a   :  { %10380 = vmatprep.subr.bf16.mxu1 %v10042_v60  ;;  %v10083_v60 = vld [vmem:[#allocation3 + $0x6d0] sm:$0xff] }
0x1f7d   :  { %10381 = vmatpush1.bf16.msra.mxu1 %v10041_v2  ;;  %v10086_v2 = vld [vmem:[#allocation3 + $0x6e8] sm:$0xff] }
0x1f7e   :  { %10382 = vmatprep.subr.bf16.mxu1 %v10044_v45  ;;  %v10085_v45 = vld [vmem:[#allocation3 + $0x6e0] sm:$0xff] }
0x1f81   :  { %10383 = vmatpush1.bf16.msra.mxu1 %v10043_v22  ;;  %v10088_v22 = vld [vmem:[#allocation3 + $0x6f8] sm:$0xff] }
0x1f82   :  { %10384 = vmatprep.subr.bf16.mxu1 %v10046_v43  ;;  %v10087_v43 = vld [vmem:[#allocation3 + $0x6f0] sm:$0xff] }
0x1f85   :  { %10385 = vmatpush1.bf16.msra.mxu1 %v10045_v31  ;;  %v10090_v31 = vld [vmem:[#allocation3 + $0x708] sm:$0xff] }
0x1f86   :  { %10386 = vmatprep.subr.bf16.mxu1 %v10048_v25  ;;  %v14721_v25 = vmax.f32 %v14496_v0, 0.0  ;;  %v10093_v0 = vld [vmem:[#allocation3 + $0x720] sm:$0xff] }
0x1f89   :  { %10387 = vmatpush1.bf16.msra.mxu1 %v10047_v41  ;;  %v14722_v41 = vmax.f32 %v14501_v28, 0.0  ;;  %v10096_v28 = vld [vmem:[#allocation3 + $0x738] sm:$0xff] }
0x1f8a   :  { %10388 = vmatprep.subr.bf16.mxu1 %v10050_v12 }
0x1f8b   :  { %v10134_v12 = vpack.c.bf16 %v14722_v41, %v14721_v25 }
0x1f8d   :  { %10389 = vmatpush1.bf16.msra.mxu1 %v10049_v18  ;;  %v10137_v18 = vpack.c.bf16 %v9860_v46, %v9844_v13  ;;  %v10100_v13 = vld [vmem:[#allocation3 + $0x758] sm:$0xff]  ;;  %v10099_v46 = vld [vmem:[#allocation3 + $0x750] sm:$0xff] }
0x1f8e   :  { %10390 = vmatprep.subr.bf16.mxu1 %v10052_v30  ;;  %v10089_v30 = vld [vmem:[#allocation3 + $0x700] sm:$0xff] }
0x1f91   :  { %10391 = vmatpush1.bf16.msra.mxu1 %v10051_v19  ;;  %v10092_v19 = vld [vmem:[#allocation3 + $0x718] sm:$0xff] }
0x1f92   :  { %10392 = vmatprep.subr.bf16.mxu1 %v10054_v47  ;;  %v10091_v47 = vld [vmem:[#allocation3 + $0x710] sm:$0xff] }
0x1f95   :  { %10393 = vmatpush1.bf16.msra.mxu1 %v10053_v6  ;;  %v10094_v6 = vld [vmem:[#allocation3 + $0x728] sm:$0xff] }
0x1f96   :  { %10394 = vmatprep.subr.bf16.mxu1 %v10056_v3  ;;  %v10095_v3 = vld [vmem:[#allocation3 + $0x730] sm:$0xff] }
0x1f99   :  { %10395 = vmatpush1.bf16.msra.mxu1 %v10055_v16  ;;  %v10102_v16 = vld [vmem:[#allocation3 + $0x768] sm:$0xff] }
0x1f9a   :  { %10407 = vmatprep.subr.bf16.mxu1 %v10058_v36  ;;  %v10101_v36 = vld [vmem:[#allocation3 + $0x760] sm:$0xff] }
0x1f9c   :  { %10397 = vmatmul.mubr.bf16.vlgmr.msra.gmra.mrb[52].mxu1 %v10132_v26  ;;  %v10106_v26 = vld [vmem:[#allocation3 + $0x788] sm:$0xff] }
0x1f9d   :  { %10408 = vmatpush1.bf16.msra.mxu1 %v10057_v50  ;;  %10439 = vmatprep.mubr.bf16.mxu1 %v10135_v40  ;;  %v10107_v40 = vld [vmem:[#allocation3 + $0x790] sm:$0xff]  ;;  %v10110_v50 = vld [vmem:[#allocation3 + $0x7a8] sm:$0xff] }
0x1f9e   :  { %10409 = vmatprep.subr.bf16.mxu1 %v10060_v54  ;;  %v10109_v54 = vld [vmem:[#allocation3 + $0x7a0] sm:$0xff] }
0x1fa1   :  { %10410 = vmatpush1.bf16.msra.mxu1 %v10059_v52  ;;  %v10112_v52 = vld [vmem:[#allocation3 + $0x7b8] sm:$0xff] }
0x1fa2   :  { %10411 = vmatprep.subr.bf16.mxu1 %v10062_v55  ;;  %v10111_v55 = vld [vmem:[#allocation3 + $0x7b0] sm:$0xff] }
0x1fa5   :  { %10412 = vmatpush1.bf16.msra.mxu1 %v10061_v53  ;;  %v10114_v53 = vld [vmem:[#allocation3 + $0x7c8] sm:$0xff] }
0x1fa6   :  { %10413 = vmatprep.subr.bf16.mxu1 %v10064_v39  ;;  %v10113_v39 = vld [vmem:[#allocation3 + $0x7c0] sm:$0xff] }
0x1fa9   :  { %10414 = vmatpush1.bf16.msra.mxu1 %v10063_v58  ;;  %v10116_v58 = vld [vmem:[#allocation3 + $0x7d8] sm:$0xff] }
0x1faa   :  { %10415 = vmatprep.subr.bf16.mxu1 %v10066_v56  ;;  %v10115_v56 = vld [vmem:[#allocation3 + $0x7d0] sm:$0xff] }
0x1fad   :  { %10416 = vmatpush1.bf16.msra.mxu1 %v10065_v14  ;;  %v10118_v14 = vld [vmem:[#allocation3 + $0x7e8] sm:$0xff] }
0x1fae   :  { %10417 = vmatprep.subr.bf16.mxu1 %v10068_v48  ;;  %v10117_v48 = vld [vmem:[#allocation3 + $0x7e0] sm:$0xff] }
0x1fb1   :  { %10418 = vmatpush1.bf16.msra.mxu1 %v10067_v59  ;;  %v10120_v59 = vld [vmem:[#allocation3 + $0x7f8] sm:$0xff] }
0x1fb2   :  { %10419 = vmatprep.subr.bf16.mxu1 %v10070_v8  ;;  %v10119_v8 = vld [vmem:[#allocation3 + $0x7f0] sm:$0xff] }
0x1fb5   :  { %10420 = vmatpush1.bf16.msra.mxu1 %v10069_v5  ;;  %v14723_v5 = vmax.f32 %v14524_v29, 0.0 }
0x1fb6   :  { %10421 = vmatprep.subr.bf16.mxu1 %v10072_v20  ;;  %v14724_v20 = vmax.f32 %v14529_v62, 0.0 }
0x1fb9   :  { %10422 = vmatpush1.bf16.msra.mxu1 %v10071_v49  ;;  %v10136_v49 = vpack.c.bf16 %v14724_v20, %v14723_v5  ;;  %v10549_v20 = vld [vmem:[%s14689_s11] sm:$0x3] }
0x1fba   :  { %10423 = vmatprep.subr.bf16.mxu1 %v10074_v9  ;;  %v10121_v9 = vld [vmem:[%s14693_s15] sm:$0x3] }
0x1fbd   :  { %10424 = vmatpush1.bf16.msra.mxu1 %v10073_v15  ;;  %v10142_v15 = vrot.slane %v10121_v9, %v13359_v63 }
0x1fbe   :  { %10425 = vmatprep.subr.bf16.mxu1 %v10076_v44  ;;  %v10146_v44 = vrot.slane %v10121_v9, %v13353_v61 }
0x1fc1   :  { %10426 = vmatpush1.bf16.msra.mxu1 %v10075_v27 }
0x1fc2   :  { %10427 = vmatprep.subr.bf16.mxu1 %v10078_v11 }
0x1fc5   :  { %10428 = vmatpush1.bf16.msra.mxu1 %v10077_v42 }
0x1fc6   :  { %10429 = vmatprep.subr.bf16.mxu1 %v10080_v37 }
0x1fc9   :  { %10430 = vmatpush1.bf16.msra.mxu1 %v10079_v57 }
0x1fca   :  { %10431 = vmatprep.subr.bf16.mxu1 %v10082_v1 }
0x1fcd   :  { %10432 = vmatpush1.bf16.msra.mxu1 %v10081_v33 }
0x1fce   :  { %10433 = vmatprep.subr.bf16.mxu1 %v10084_v21 }
0x1fd1   :  { %10434 = vmatpush1.bf16.msra.mxu1 %v10083_v60 }
0x1fd2   :  { %10435 = vmatprep.subr.bf16.mxu1 %v10086_v2 }
0x1fd5   :  { %10436 = vmatpush1.bf16.msra.mxu1 %v10085_v45 }
0x1fd6   :  { %10437 = vmatprep.subr.bf16.mxu1 %v10088_v22 }
0x1fd9   :  { %10438 = vmatpush1.bf16.msra.mxu1 %v10087_v43  ;;  %v11601_v43 = vld [vmem:[%s14694_s16 + $0x40] sm:$0xff]  }
0x1fda   :  { %10450 = vmatprep.subr.bf16.mxu1 %v10090_v31  ;;  %11145 = vmatprep.subr.bf16.mxu0 %v11601_v43 }
0x1fdc   :  { %10440 = vmatmul.mubr.bf16.vlgmr.msra.gmra.mrb[52].mxu1 %v10134_v12 }
0x1fdd   :  { %10451 = vmatpush1.bf16.msra.mxu1 %v10089_v30  ;;  %10482 = vmatprep.mubr.bf16.mxu1 %v10137_v18 }
0x1fde   :  { %10452 = vmatprep.subr.bf16.mxu1 %v10092_v19 }
0x1fe1   :  { %10453 = vmatpush1.bf16.msra.mxu1 %v10091_v47 }
0x1fe2   :  { %10454 = vmatprep.subr.bf16.mxu1 %v10094_v6 }
0x1fe5   :  { %10455 = vmatpush1.bf16.msra.mxu1 %v10093_v0 }
0x1fe6   :  { %10456 = vmatprep.subr.bf16.mxu1 %v10096_v28 }
0x1fe9   :  { %10457 = vmatpush1.bf16.msra.mxu1 %v10095_v3 }
0x1fea   :  { %10458 = vmatprep.subr.bf16.mxu1 %v10098_v4 }
0x1fed   :  { %10459 = vmatpush1.bf16.msra.mxu1 %v10097_v51  ;;  %v11603_v51 = vld [vmem:[%s14694_s16 + $0x48] sm:$0xff]  }
0x1fee   :  { %10460 = vmatprep.subr.bf16.mxu1 %v10100_v13  ;;  %v11604_v13 = vld [vmem:[%s14694_s16 + $0x8] sm:$0xff]  }
0x1ff1   :  { %10461 = vmatpush1.bf16.msra.mxu1 %v10099_v46  ;;  %v11606_v46 = vld [vmem:[%s14694_s16 + $0x10] sm:$0xff]  }
0x1ff2   :  { %10462 = vmatprep.subr.bf16.mxu1 %v10102_v16  ;;  %v11607_v16 = vld [vmem:[%s14694_s16 + $0x58] sm:$0xff]  }
0x1ff5   :  { %10463 = vmatpush1.bf16.msra.mxu1 %v10101_v36  ;;  %v11608_v36 = vld [vmem:[%s14694_s16 + $0x18] sm:$0xff]  }
0x1ff6   :  { %10464 = vmatprep.subr.bf16.mxu1 %v10104_v32  ;;  %v11609_v32 = vld [vmem:[%s14694_s16 + $0x60] sm:$0xff]  }
0x1ff9   :  { %10465 = vmatpush1.bf16.msra.mxu1 %v10103_v34  ;;  %v11610_v34 = vld [vmem:[%s14694_s16 + $0x20] sm:$0xff]  }
0x1ffa   :  { %10466 = vmatprep.subr.bf16.mxu1 %v10106_v26  ;;  %v11611_v26 = vld [vmem:[%s14694_s16 + $0x68] sm:$0xff]  }
0x1ffd   :  { %10467 = vmatpush1.bf16.msra.mxu1 %v10105_v38  ;;  %v11612_v38 = vld [vmem:[%s14694_s16 + $0x28] sm:$0xff]  }
0x1ffe   :  { %10468 = vmatprep.subr.bf16.mxu1 %v10108_v24  ;;  %v11613_v24 = vld [vmem:[%s14694_s16 + $0x70] sm:$0xff]  }
0x2001   :  { %10469 = vmatpush1.bf16.msra.mxu1 %v10107_v40  ;;  %v11614_v40 = vld [vmem:[%s14694_s16 + $0x30] sm:$0xff]  }
0x2002   :  { %10470 = vmatprep.subr.bf16.mxu1 %v10110_v50  ;;  %v11615_v50 = vld [vmem:[%s14694_s16 + $0x78] sm:$0xff]  }
0x2005   :  { %10471 = vmatpush1.bf16.msra.mxu1 %v10109_v54  ;;  %v11616_v54 = vld [vmem:[%s14694_s16 + $0x38] sm:$0xff]  }
0x2006   :  { %10472 = vmatprep.subr.bf16.mxu1 %v10112_v52 }
0x2009   :  { %10473 = vmatpush1.bf16.msra.mxu1 %v10111_v55 }
0x200a   :  { %10474 = vmatprep.subr.bf16.mxu1 %v10114_v53 }
0x200d   :  { %10475 = vmatpush1.bf16.msra.mxu1 %v10113_v39 }
0x200e   :  { %10476 = vmatprep.subr.bf16.mxu1 %v10116_v58 }
0x2011   :  { %10477 = vmatpush1.bf16.msra.mxu1 %v10115_v56 }
0x2012   :  { %10478 = vmatprep.subr.bf16.mxu1 %v10118_v14  ;;  %v10533_v14 = vld [vmem:[%s14688_s10] sm:$0x3] }
0x2013   :  { %v10542_v5 = vrot.slane %v10533_v14, %v13353_v61 }
0x2015   :  { %10479 = vmatpush1.bf16.msra.mxu1 %v10117_v48 }
0x2016   :  { %10480 = vmatprep.subr.bf16.mxu1 %v10120_v59 }
0x2019   :  { %10481 = vmatpush1.bf16.msra.mxu1 %v10119_v8  ;;  %v10538_v8 = vrot.slane %v10533_v14, %v13359_v63 }
0x201c   :  { %10483 = vmatmul.mubr.bf16.vlgmr.msra.gmra.mrb[52].mxu1 %v10136_v49 }
0x20ef   :  { %v10484_v27 = vpop.f32.mrb[52].mxu1 }
0x20f0   :  { %v11371_v11 = vadd.f32 %v10484_v27, %v10142_v15  ;;  %v10486_v42 = vpop.f32.mrb[53].mxu1 }
0x20f1   :  { %v11372_v37 = vadd.f32 %v10486_v42, %v10146_v44  ;;  %v10488_v57 = vpop.f32.mrb[54].mxu1 }
0x20f2   :  { %v10493_v29 = vadd.f32 %v11371_v11, %v14376_v35  ;;  %v11373_v1 = vadd.f32 %v10488_v57, %v10142_v15  ;;  %v10490_v62 = vpop.f32.mrb[55].mxu1  ;;  %v11602_v35 = vld [vmem:[%s14694_s16] sm:$0xff]   ;;  %v10554_v15 = vrot.slane %v10549_v20, %v13359_v63 }
0x20f3   :  { %v10494_v33 = vadd.f32 %v11372_v37, %v14378_v7  ;;  %v11374_v21 = vadd.f32 %v10490_v62, %v10146_v44  ;;  %11146 = vmatpush3.bf16.msra.mxu0 %v11602_v35  ;;  %v10558_v44 = vrot.slane %v10549_v20, %v13353_v61  ;;  %v11046_v63 = vld [vmem:[%s14695_s17] ss:$0 sm:$0xff] }
0x20f4   :  { %v10495_v60 = vadd.f32 %v11373_v1, %v14380_v10  ;;  %11147 = vmatprep.subr.bf16.mxu0 %v11603_v51 }
0x20f5   :  { %v10496_v2 = vadd.f32 %v11374_v21, %v14382_v23  ;;  %v10497_v45 = vadd.f32 %v10494_v33, %v10493_v29 }
0x20f7   :  { %10498 = vadd.xlane.f32.xlu0 %v10497_v45  ;;  %v10500_v22 = vadd.f32 %v10496_v2, %v10495_v60  ;;  %11148 = vmatpush3.bf16.msra.mxu0 %v11604_v13 }
0x20fb   :  { %10501 = vadd.xlane.f32.xlu0 %v10500_v22 }
0x2184   :  { %v10499_v7 = vpop.xlane.xlu0 %10498 }
0x2185   :  { %v10503_v31 = vmul.f32 0.004, %v10499_v7 }
0x2187   :  { %v10505_v25 = vsub.f32 %v10493_v29, %v10503_v31  ;;  %v10506_v10 = vsub.f32 %v10494_v33, %v10503_v31 }
0x2188   :  { %v10502_v41 = vpop.xlane.xlu0 %10501 }
0x2189   :  { %v10510_v23 = vmul.f32 %v14362_v17, %v10506_v10  ;;  %v10504_v12 = vmul.f32 0.004, %v10502_v41  ;;  %v10513_v19 = vmul.f32 %v10505_v25, %v10505_v25 }
0x218b   :  { %v10507_v18 = vsub.f32 %v10495_v60, %v10504_v12  ;;  %v10508_v30 = vsub.f32 %v10496_v2, %v10504_v12  ;;  %v10514_v47 = vmul.f32 %v10510_v23, %v10510_v23 }
0x218d   :  { %v10512_v6 = vmul.f32 %v14362_v17, %v10508_v30  ;;  %v10517_v0 = vadd.f32 %v10514_v47, %v10513_v19  ;;  %v10515_v28 = vmul.f32 %v10507_v18, %v10507_v18  ;;  %v11605_v17 = vld [vmem:[%s14694_s16 + $0x50] sm:$0xff]  }
0x218e   :  { %11149 = vmatprep.subr.bf16.mxu0 %v11605_v17 }
0x218f   :  { %10518 = vadd.xlane.f32.xlu1 %v10517_v0  ;;  %v10516_v3 = vmul.f32 %v10512_v6, %v10512_v6  ;;  %11150 = vmatpush3.bf16.msra.mxu0 %v11606_v46 }
0x2190   :  { %11151 = vmatprep.subr.bf16.mxu0 %v11607_v16 }
0x2191   :  { %v10520_v4 = vadd.f32 %v10516_v3, %v10515_v28 }
0x2193   :  { %10521 = vadd.xlane.f32.xlu1 %v10520_v4  ;;  %11152 = vmatpush3.bf16.msra.mxu0 %v11608_v36 }
0x2194   :  { %11153 = vmatprep.subr.bf16.mxu0 %v11609_v32 }
0x2197   :  { %11154 = vmatpush3.bf16.msra.mxu0 %v11610_v34 }
0x2198   :  { %11155 = vmatprep.subr.bf16.mxu0 %v11611_v26 }
0x219b   :  { %11156 = vmatpush3.bf16.msra.mxu0 %v11612_v38 }
0x219c   :  { %11157 = vmatprep.subr.bf16.mxu0 %v11613_v24 }
0x219f   :  { %11158 = vmatpush3.bf16.msra.mxu0 %v11614_v40 }
0x21a0   :  { %11159 = vmatprep.subr.bf16.mxu0 %v11615_v50 }
0x21a3   :  { %11160 = vmatpush3.bf16.msra.mxu0 %v11616_v54 }
0x221c   :  { %v10519_v52 = vpop.xlane.xlu1 %10518 }
0x221d   :  { %v10523_v55 = vmul.f32 0.004, %v10519_v52 }
0x221f   :  { %v10525_v53 = vadd.f32 1e-05, %v10523_v55 }
0x2220   :  { %v10522_v39 = vpop.xlane.xlu1 %10521 }
0x2221   :  { %11617 = vrsqrt.f32 %v10525_v53  ;;  %v10524_v58 = vmul.f32 0.004, %v10522_v39 }
0x2223   :  { %v10526_v56 = vadd.f32 1e-05, %v10524_v58 }
0x2225   :  { %11619 = vrsqrt.f32 %v10526_v56 }
0x222b   :  { %v11618_v48 = vpop.eup %11617 }
0x222c   :  { %v10530_v59 = vmul.f32 %v11618_v48, %v10510_v23  ;;  %v10529_v49 = vmul.f32 %v11618_v48, %v10505_v25 }
0x222e   :  { %v10546_v11 = vmul.f32 %v10542_v5, %v10530_v59  ;;  %v10545_v37 = vmul.f32 %v10538_v8, %v10529_v49 }
0x222f   :  { %v11620_v9 = vpop.eup %11619 }
0x2230   :  { %v10532_v27 = vmul.f32 %v11620_v9, %v10512_v6  ;;  %v10531_v42 = vmul.f32 %v11620_v9, %v10507_v18  ;;  %v10562_v1 = vadd.f32 %v10558_v44, %v10546_v11  ;;  %v10561_v33 = vadd.f32 %v10554_v15, %v10545_v37 }
0x2232   :  { %v10548_v57 = vmul.f32 %v10542_v5, %v10532_v27  ;;  %v10547_v29 = vmul.f32 %v10538_v8, %v10531_v42 }
0x2234   :  { %v10564_v62 = vadd.f32 %v10558_v44, %v10548_v57  ;;  %v10563_v21 = vadd.f32 %v10554_v15, %v10547_v29 }
0x2236   :  { %v10599_v60 = vpack.c.bf16 %v10564_v62, %v10562_v1  ;;  %v10598_v2 = vpack.c.bf16 %v10563_v21, %v10561_v33 }
0x2238   :  { %10734 = vmatprep.mubr.bf16.mxu0 %v10599_v60 }
0x2239   :  { %10735 = vmatmul.mubr.bf16.vlgmr.msra.gmra.mrb[88].mxu0 %v10598_v2 }
0x230c   :  { %v11161_v45 = vpop.f32.mrb[88].mxu0 }
0x230d   :  { %v11162_v61 = vpop.f32.mrb[89].mxu0 }
0x230e   :  { %v11163_v22 = vadd.f32 %v11162_v61, %v11161_v45  ;;  %v11164_v43 = vpop.f32.mrb[90].mxu0 }
0x230f   :  { %v11165_v35 = vpop.f32.mrb[91].mxu0 }
0x2310   :  { %v10737_v7 = vadd.f32 %v11163_v22, %v11046_v63  ;;  %v11166_v31 = vadd.f32 %v11165_v35, %v11164_v43 }
0x2312   :  { %10743 = vst [vmem:[%s14696_s18] sm:$0xff] %v10737_v7  ;;  %v10740_v25 = vadd.f32 %v11166_v31, %v11046_v63 }
0x2314   :  { %10744 = vst [vmem:[%s14696_s18 + $0x8] sm:$0xff] %v10740_v25 }
0x2315   :  { %10749 = vsyncmov [#allocation4] }
0x2318   :  { %s10750_s26 = vpop.sfrf %10749 }
0x2319   :  { %p11063_p0 = scmp.ne.s32.totalorder %s10750_s26, 0 }
0x231b   :  { %10754 = shalt.err (%p11063_p0)  }
0x231c   :  { %10756 = vsyncmov [#allocation4 + $0x1] }
0x231f   :  { %s10757_s17 = vpop.sfrf %10756 }
0x2320   :  { %p11064_p1 = scmp.ne.s32.totalorder %s10757_s17, 0 }
0x2322   :  { %10761 = shalt.err (%p11064_p1)  }

</bundles_post_ra>
